<compile_context>
chip_gen: v5e
topology: v5e:2x2
jax: 0.10.0
libtpu: 0.0.40
codegen_flags: <defaults>
</compile_context>

<pallas_src>
import functools
import math

import jax
import jax.numpy as jnp
from jax.experimental import pallas as pl
from jax.experimental.pallas import tpu as pltpu

# ------------------------- model hyper-parameters ---------------------------
EMB_DIMS = 32      # (original module uses 512; scaled down for the example)
FF_DIMS = 64       # keeps the 2x ratio of the original (512 -> 1024)
N_HEADS = 4
N_LAYERS = 1
LN_EPS = 1e-6
LANE = 128         # lane width of the packed weight slab


# --------------------------------- kernel ------------------------------------
def transformer_kernel(x_ref, w_ref, out_ref, *, layout, n_layers, d, n_heads,
                       b2, s):
    """x_ref: (2, 2B, S, D) — [0] encoder inputs, [1] decoder inputs.
    w_ref: (R, 128) packed weight slab.  out_ref: (2B, S, D)."""
    d_k = d // n_heads

    def W(name):
        off, r, c = layout[name]
        return w_ref[off:off + r, 0:c]          # static slice: free ref view

    def layernorm(x, name):
        g = W(name + "_g")                      # (1, d)
        b = W(name + "_b")
        mean = jnp.mean(x, axis=-1, keepdims=True)
        diff = x - mean
        var = jnp.sum(diff * diff, axis=-1, keepdims=True) * (1.0 / (d - 1))
        std = jnp.sqrt(var)                     # unbiased std, eps added to std
        return g * (diff / (std + LN_EPS)) + b

    def mha_core(q, k, v, prefix):
        # q, k, v: (b2*s, d); the 1/sqrt(d_k) scale is already folded into q.
        ctx_heads = []
        for hi in range(n_heads):
            sl = slice(hi * d_k, (hi + 1) * d_k)
            qh = q[:, sl].reshape(b2, s, d_k)
            kh = k[:, sl].reshape(b2, s, d_k)
            vh = v[:, sl].reshape(b2, s, d_k)
            sc = jnp.einsum("bqe,bke->bqk", qh, kh,
                            preferred_element_type=jnp.float32)
            sc = sc - jnp.max(sc, axis=-1, keepdims=True)
            e = jnp.exp(sc)
            p_attn = e / jnp.sum(e, axis=-1, keepdims=True)
            ctx_heads.append(jnp.einsum("bqk,bke->bqe", p_attn, vh,
                                        preferred_element_type=jnp.float32))
        # concat(ctx_h) @ Wo == original multi-head output projection
        ctx = jnp.concatenate(ctx_heads, axis=-1).reshape(b2 * s, d)
        return (jnp.dot(ctx, W(prefix + "_wo"),
                        preferred_element_type=jnp.float32) + W(prefix + "_bo"))

    def self_attn(x, prefix):
        qkv = (jnp.dot(x, W(prefix + "_wqkv"),
                       preferred_element_type=jnp.float32) + W(prefix + "_bqkv"))
        return mha_core(qkv[:, :d], qkv[:, d:2 * d], qkv[:, 2 * d:], prefix)

    def cross_attn(x, mem, prefix):
        wqkv = W(prefix + "_wqkv")
        bqkv = W(prefix + "_bqkv")
        q = jnp.dot(x, wqkv[:, :d],
                    preferred_element_type=jnp.float32) + bqkv[:, :d]
        kv = jnp.dot(mem, wqkv[:, d:],
                     preferred_element_type=jnp.float32) + bqkv[:, d:]
        return mha_core(q, kv[:, :d], kv[:, d:], prefix)

    def ffn(x, prefix):
        h1 = (jnp.dot(x, W(prefix + "_w1"),
                      preferred_element_type=jnp.float32) + W(prefix + "_b1"))
        h1 = jnp.maximum(h1, 0.0)
        return (jnp.dot(h1, W(prefix + "_w2"),
                        preferred_element_type=jnp.float32) + W(prefix + "_b2"))

    # ---------------- encoder (both directions folded into batch) ------------
    x = x_ref[0].reshape(b2 * s, d)
    for li in range(n_layers):
        p = f"enc{li}"
        x = x + self_attn(layernorm(x, p + "_ln0"), p + "_self")
        x = x + ffn(layernorm(x, p + "_ln1"), p + "_ff")
    memory = layernorm(x, "enc_norm")

    # ---------------- decoder ------------------------------------------------
    x = x_ref[1].reshape(b2 * s, d)
    for li in range(n_layers):
        p = f"dec{li}"
        x = x + self_attn(layernorm(x, p + "_ln0"), p + "_self")
        x = x + cross_attn(layernorm(x, p + "_ln1"), memory, p + "_src")
        x = x + ffn(layernorm(x, p + "_ln2"), p + "_ff")
    x = layernorm(x, "dec_norm")

    # TODO(synk): if writeback shows up in profiling, emit a lane-dense
    # (2B, S*D) output slab instead of last-dim D=32.
    out_ref[...] = x.reshape(b2, s, d)


# ------------------------------ host wrapper ---------------------------------
def transformer_forward(src, tgt, slab, layout):
    # src, tgt: (B, emb_dims, seq) — PyTorch channel-first layout.
    B, D, S = src.shape
    src_t = jnp.transpose(src, (0, 2, 1))                 # (B, S, D)
    tgt_t = jnp.transpose(tgt, (0, 2, 1))
    # direction 0: encode src / decode tgt ; direction 1: encode tgt / decode src
    enc_in = jnp.concatenate([src_t, tgt_t], axis=0)      # (2B, S, D)
    dec_in = jnp.concatenate([tgt_t, src_t], axis=0)      # (2B, S, D)
    x_all = jnp.stack([enc_in, dec_in], axis=0)           # (2, 2B, S, D)

    kern = functools.partial(
        transformer_kernel, layout=layout, n_layers=N_LAYERS,
        d=D, n_heads=N_HEADS, b2=2 * B, s=S)

    out = pl.pallas_call(
        kern,
        out_shape=jax.ShapeDtypeStruct((2 * B, S, D), jnp.float32),
        compiler_params=pltpu.CompilerParams(vmem_limit_bytes=32 * 1024 * 1024),
    )(x_all, slab)

    tgt_embedding = jnp.transpose(out[:B], (0, 2, 1))     # model(src, tgt)
    src_embedding = jnp.transpose(out[B:], (0, 2, 1))     # model(tgt, src)
    return src_embedding, tgt_embedding


# ---------------------------- parameter init ---------------------------------
def _linear_init(key, din, dout, scale=0.05):
    k1, k2 = jax.random.split(key)
    w = scale * jax.random.normal(k1, (din, dout), jnp.float32)
    b = scale * jax.random.normal(k2, (1, dout), jnp.float32)
    return w, b


def _attn_init(key, d):
    ks = jax.random.split(key, 4)
    p = {}
    for name, k in zip("qkvo", ks):
        w, b = _linear_init(k, d, d)
        p["w" + name], p["b" + name] = w, b
    return p


def _ff_init(key, d, f):
    k1, k2 = jax.random.split(key)
    w1, b1 = _linear_init(k1, d, f)
    w2, b2 = _linear_init(k2, f, d)
    return {"w1": w1, "b1": b1, "w2": w2, "b2": b2}


def _ln_init(d):
    return jnp.ones((1, d), jnp.float32), jnp.zeros((1, d), jnp.float32)


def init_params(key, d=EMB_DIMS, f=FF_DIMS, n_layers=N_LAYERS):
    k_enc, k_dec = jax.random.split(key)

    enc_layers = []
    for k in jax.random.split(k_enc, n_layers):
        ka, kf = jax.random.split(k)
        g0, b0 = _ln_init(d)
        g1, b1 = _ln_init(d)
        enc_layers.append({"self_attn": _attn_init(ka, d),
                           "ff": _ff_init(kf, d, f),
                           "ln0_g": g0, "ln0_b": b0,
                           "ln1_g": g1, "ln1_b": b1})
    eg, eb = _ln_init(d)

    dec_layers = []
    for k in jax.random.split(k_dec, n_layers):
        ka, kc, kf = jax.random.split(k, 3)
        g0, b0 = _ln_init(d)
        g1, b1 = _ln_init(d)
        g2, b2 = _ln_init(d)
        dec_layers.append({"self_attn": _attn_init(ka, d),
                           "src_attn": _attn_init(kc, d),
                           "ff": _ff_init(kf, d, f),
                           "ln0_g": g0, "ln0_b": b0,
                           "ln1_g": g1, "ln1_b": b1,
                           "ln2_g": g2, "ln2_b": b2})
    dg, db = _ln_init(d)

    return {"enc": {"layers": enc_layers, "norm_g": eg, "norm_b": eb},
            "dec": {"layers": dec_layers, "norm_g": dg, "norm_b": db}}


# ------------------ host-side packing into one weight slab -------------------
def pack_params(params, d=EMB_DIMS, h=N_HEADS):
    """Fuse QKV, fold 1/sqrt(d_k) into the Q columns, and pack every tensor
    into a single lane-dense (rows, 128) f32 slab with 8-row-aligned blocks."""
    d_k = d // h
    scale = 1.0 / math.sqrt(d_k)

    blocks, layout = [], {}
    cursor = 0

    def add(name, arr):
        nonlocal cursor
        arr = jnp.asarray(arr, jnp.float32)
        r, c = arr.shape
        assert c <= LANE, f"{name}: {c} cols > {LANE}"
        r_pad = ((r + 7) // 8) * 8
        block = jnp.zeros((r_pad, LANE), jnp.float32).at[:r, :c].set(arr)
        blocks.append(block)
        layout[name] = (cursor, r, c)
        cursor += r_pad

    def add_attn(prefix, ap):
        wqkv = jnp.concatenate([ap["wq"] * scale, ap["wk"], ap["wv"]], axis=1)
        bqkv = jnp.concatenate([ap["bq"] * scale, ap["bk"], ap["bv"]], axis=1)
        add(prefix + "_wqkv", wqkv)
        add(prefix + "_bqkv", bqkv)
        add(prefix + "_wo", ap["wo"])
        add(prefix + "_bo", ap["bo"])

    def add_ffn(prefix, fp):
        add(prefix + "_w1", fp["w1"]); add(prefix + "_b1", fp["b1"])
        add(prefix + "_w2", fp["w2"]); add(prefix + "_b2", fp["b2"])

    def add_ln(prefix, g, b):
        add(prefix + "_g", g); add(prefix + "_b", b)

    for li, lp in enumerate(params["enc"]["layers"]):
        p = f"enc{li}"
        add_attn(p + "_self", lp["self_attn"])
        add_ffn(p + "_ff", lp["ff"])
        add_ln(p + "_ln0", lp["ln0_g"], lp["ln0_b"])
        add_ln(p + "_ln1", lp["ln1_g"], lp["ln1_b"])
    add_ln("enc_norm", params["enc"]["norm_g"], params["enc"]["norm_b"])

    for li, lp in enumerate(params["dec"]["layers"]):
        p = f"dec{li}"
        add_attn(p + "_self", lp["self_attn"])
        add_attn(p + "_src", lp["src_attn"])
        add_ffn(p + "_ff", lp["ff"])
        add_ln(p + "_ln0", lp["ln0_g"], lp["ln0_b"])
        add_ln(p + "_ln1", lp["ln1_g"], lp["ln1_b"])
        add_ln(p + "_ln2", lp["ln2_g"], lp["ln2_b"])
    add_ln("dec_norm", params["dec"]["norm_g"], params["dec"]["norm_b"])

    return jnp.concatenate(blocks, axis=0), layout


# ----------------------- pure-JAX reference (for checking) -------------------
def _ref_ln(x, g, b):
    d = x.shape[-1]
    mean = jnp.mean(x, axis=-1, keepdims=True)
    var = jnp.sum((x - mean) ** 2, axis=-1, keepdims=True) / (d - 1)
    return g * (x - mean) / (jnp.sqrt(var) + LN_EPS) + b


def _ref_attention(q_in, kv_in, p, n_heads):
    hp = jax.lax.Precision.HIGHEST
    Bq, Sq, D = q_in.shape
    Sk = kv_in.shape[1]
    d_k = D // n_heads

    def lin(x, w, b):
        return jnp.einsum("bsd,de->bse", x, w, precision=hp) + b

    q = lin(q_in, p["wq"], p["bq"]).reshape(Bq, Sq, n_heads, d_k).transpose(0, 2, 1, 3)
    k = lin(kv_in, p["wk"], p["bk"]).reshape(Bq, Sk, n_heads, d_k).transpose(0, 2, 1, 3)
    v = lin(kv_in, p["wv"], p["bv"]).reshape(Bq, Sk, n_heads, d_k).transpose(0, 2, 1, 3)
    sc = jnp.einsum("bhqe,bhke->bhqk", q, k, precision=hp) / math.sqrt(d_k)
    a = jax.nn.softmax(sc, axis=-1)
    ctx = jnp.einsum("bhqk,bhke->bhqe", a, v, precision=hp)
    ctx = ctx.transpose(0, 2, 1, 3).reshape(Bq, Sq, D)
    return jnp.einsum("bsd,de->bse", ctx, p["wo"], precision=hp) + p["bo"]


def _ref_ffn(x, p):
    hp = jax.lax.Precision.HIGHEST
    h1 = jnp.maximum(jnp.einsum("bsd,df->bsf", x, p["w1"], precision=hp) + p["b1"], 0.0)
    return jnp.einsum("bsf,fd->bsd", h1, p["w2"], precision=hp) + p["b2"]


def _ref_model(src, tgt, params, n_heads):
    x = src
    for lp in params["enc"]["layers"]:
        hdn = _ref_ln(x, lp["ln0_g"], lp["ln0_b"])
        x = x + _ref_attention(hdn, hdn, lp["self_attn"], n_heads)
        hdn = _ref_ln(x, lp["ln1_g"], lp["ln1_b"])
        x = x + _ref_ffn(hdn, lp["ff"])
    memory = _ref_ln(x, params["enc"]["norm_g"], params["enc"]["norm_b"])

    x = tgt
    for lp in params["dec"]["layers"]:
        hdn = _ref_ln(x, lp["ln0_g"], lp["ln0_b"])
        x = x + _ref_attention(hdn, hdn, lp["self_attn"], n_heads)
        hdn = _ref_ln(x, lp["ln1_g"], lp["ln1_b"])
        x = x + _ref_attention(hdn, memory, lp["src_attn"], n_heads)
        hdn = _ref_ln(x, lp["ln2_g"], lp["ln2_b"])
        x = x + _ref_ffn(hdn, lp["ff"])
    return _ref_ln(x, params["dec"]["norm_g"], params["dec"]["norm_b"])


# ---------------------------------- main -------------------------------------
if __name__ == "__main__":
    B, D, S = 2, EMB_DIMS, 16

    key = jax.random.PRNGKey(0)
    k_src, k_tgt, k_param = jax.random.split(key, 3)
    src = jax.random.normal(k_src, (B, D, S), jnp.float32)   # (batch, emb, seq)
    tgt = jax.random.normal(k_tgt, (B, D, S), jnp.float32)

    params = init_params(k_param)
    slab, layout = pack_params(params)

    fwd = jax.jit(lambda s_, t_: transformer_forward(s_, t_, slab, layout))
    src_embedding, tgt_embedding = fwd(src, tgt)
    jax.block_until_ready((src_embedding, tgt_embedding))

    assert src_embedding.shape == (B, D, S)
    assert tgt_embedding.shape == (B, D, S)

    # Correctness check against a pure-JAX mirror of the PyTorch module.
    src_t = jnp.transpose(src, (0, 2, 1))
    tgt_t = jnp.transpose(tgt, (0, 2, 1))
    ref_tgt = jnp.transpose(_ref_model(src_t, tgt_t, params, N_HEADS), (0, 2, 1))
    ref_src = jnp.transpose(_ref_model(tgt_t, src_t, params, N_HEADS), (0, 2, 1))
    err = max(float(jnp.max(jnp.abs(src_embedding - ref_src))),
              float(jnp.max(jnp.abs(tgt_embedding - ref_tgt))))
    assert err < 2e-3, f"kernel vs reference mismatch: max abs err = {err}"

    print("KERNEL_OK")
</pallas_src>

<mosaic_0001>
module attributes {stable_mosaic.version = 11 : i64} {
  func.func @transformer_kernel(%arg0: memref<2x4x16x32xf32, #tpu.memory_space<vmem>>, %arg1: memref<576x128xf32, #tpu.memory_space<vmem>>, %arg2: memref<4x16x32xf32, #tpu.memory_space<vmem>>) attributes {dimension_semantics = [], scalar_prefetch = 0 : i64, scratch_operands = 0 : i64, tpu.core_type = #tpu.core_type<tc>} {
    %c0 = arith.constant 0 : index
    %c0_0 = arith.constant 0 : index
    %c0_1 = arith.constant 0 : index
    %c0_2 = arith.constant 0 : index
    %0 = vector.load %arg0[%c0, %c0_0, %c0_1, %c0_2] : memref<2x4x16x32xf32, #tpu.memory_space<vmem>>, vector<1x4x16x32xf32>
    %1 = vector.shape_cast %0 : vector<1x4x16x32xf32> to vector<4x16x32xf32>
    %2 = vector.shape_cast %1 : vector<4x16x32xf32> to vector<64x32xf32>
    %c192 = arith.constant 192 : index
    %c0_3 = arith.constant 0 : index
    %3 = vector.load %arg1[%c192, %c0_3] : memref<576x128xf32, #tpu.memory_space<vmem>>, vector<1x32xf32>
    %c200 = arith.constant 200 : index
    %c0_4 = arith.constant 0 : index
    %4 = vector.load %arg1[%c200, %c0_4] : memref<576x128xf32, #tpu.memory_space<vmem>>, vector<1x32xf32>
    %cst = arith.constant dense<0.000000e+00> : vector<64xf32>
    %5 = vector.multi_reduction <add>, %2, %cst [1] : vector<64x32xf32> to vector<64xf32>
    %6 = vector.shape_cast %5 : vector<64xf32> to vector<64x1xf32>
    %cst_5 = arith.constant 3.200000e+01 : f32
    %7 = vector.broadcast %cst_5 : f32 to vector<64x1xf32>
    %8 = arith.divf %6, %7 : vector<64x1xf32>
    %9 = vector.broadcast %8 : vector<64x1xf32> to vector<64x32xf32>
    %10 = arith.subf %2, %9 : vector<64x32xf32>
    %11 = arith.mulf %10, %10 : vector<64x32xf32>
    %cst_6 = arith.constant dense<0.000000e+00> : vector<64xf32>
    %12 = vector.multi_reduction <add>, %11, %cst_6 [1] : vector<64x32xf32> to vector<64xf32>
    %13 = vector.shape_cast %12 : vector<64xf32> to vector<64x1xf32>
    %cst_7 = arith.constant 0.0322580636 : f32
    %14 = vector.broadcast %cst_7 : f32 to vector<64x1xf32>
    %15 = arith.mulf %13, %14 : vector<64x1xf32>
    %16 = math.sqrt %15 : vector<64x1xf32>
    %cst_8 = arith.constant 9.99999997E-7 : f32
    %17 = vector.broadcast %cst_8 : f32 to vector<64x1xf32>
    %18 = arith.addf %16, %17 : vector<64x1xf32>
    %19 = vector.broadcast %18 : vector<64x1xf32> to vector<64x32xf32>
    %20 = arith.divf %10, %19 : vector<64x32xf32>
    %21 = vector.broadcast %3 : vector<1x32xf32> to vector<64x32xf32>
    %22 = arith.mulf %21, %20 : vector<64x32xf32>
    %23 = vector.broadcast %4 : vector<1x32xf32> to vector<64x32xf32>
    %24 = arith.addf %22, %23 : vector<64x32xf32>
    %c0_9 = arith.constant 0 : index
    %c0_10 = arith.constant 0 : index
    %25 = vector.load %arg1[%c0_9, %c0_10] : memref<576x128xf32, #tpu.memory_space<vmem>>, vector<32x96xf32>
    %cst_11 = arith.constant dense<0.000000e+00> : vector<64x96xf32>
    %26 = tpu.matmul %24, %25, %cst_11 {dimension_numbers = #tpu.dot_dimension_numbers<[1], [0], [0], [1], [0, 0, 1, 1], [], []>} : vector<64x32xf32>, vector<32x96xf32>, vector<64x96xf32> -> vector<64x96xf32>
    %c32 = arith.constant 32 : index
    %c0_12 = arith.constant 0 : index
    %27 = vector.load %arg1[%c32, %c0_12] : memref<576x128xf32, #tpu.memory_space<vmem>>, vector<1x96xf32>
    %28 = vector.broadcast %27 : vector<1x96xf32> to vector<64x96xf32>
    %29 = arith.addf %26, %28 : vector<64x96xf32>
    %30 = vector.extract_strided_slice %29 {offsets = [0, 0], sizes = [64, 32], strides = [1, 1]} : vector<64x96xf32> to vector<64x32xf32>
    %31 = vector.extract_strided_slice %29 {offsets = [0, 32], sizes = [64, 32], strides = [1, 1]} : vector<64x96xf32> to vector<64x32xf32>
    %32 = vector.extract_strided_slice %29 {offsets = [0, 64], sizes = [64, 32], strides = [1, 1]} : vector<64x96xf32> to vector<64x32xf32>
    %33 = vector.extract_strided_slice %30 {offsets = [0, 0], sizes = [64, 8], strides = [1, 1]} : vector<64x32xf32> to vector<64x8xf32>
    %34 = vector.shape_cast %33 : vector<64x8xf32> to vector<4x16x8xf32>
    %35 = vector.extract_strided_slice %31 {offsets = [0, 0], sizes = [64, 8], strides = [1, 1]} : vector<64x32xf32> to vector<64x8xf32>
    %36 = vector.shape_cast %35 : vector<64x8xf32> to vector<4x16x8xf32>
    %37 = vector.extract_strided_slice %32 {offsets = [0, 0], sizes = [64, 8], strides = [1, 1]} : vector<64x32xf32> to vector<64x8xf32>
    %38 = vector.shape_cast %37 : vector<64x8xf32> to vector<4x16x8xf32>
    "tpu.trace_start"() <{level = 10 : i32, message = "bqe,bke->bqk"}> : () -> ()
    %cst_13 = arith.constant dense<0.000000e+00> : vector<4x16x16xf32>
    %39 = tpu.matmul %34, %36, %cst_13 {dimension_numbers = #tpu.dot_dimension_numbers<[2], [2], [1], [1], [0, 0, 0, 1, 1, 1], [0], [0]>} : vector<4x16x8xf32>, vector<4x16x8xf32>, vector<4x16x16xf32> -> vector<4x16x16xf32>
    "tpu.trace_stop"() : () -> ()
    %cst_14 = arith.constant dense<0xFF800000> : vector<4x16xf32>
    %40 = vector.multi_reduction <maximumf>, %39, %cst_14 [2] : vector<4x16x16xf32> to vector<4x16xf32>
    %41 = vector.shape_cast %40 : vector<4x16xf32> to vector<4x16x1xf32>
    %42 = vector.broadcast %41 : vector<4x16x1xf32> to vector<4x16x16xf32>
    %43 = arith.subf %39, %42 : vector<4x16x16xf32>
    %44 = math.exp %43 : vector<4x16x16xf32>
    %cst_15 = arith.constant dense<0.000000e+00> : vector<4x16xf32>
    %45 = vector.multi_reduction <add>, %44, %cst_15 [2] : vector<4x16x16xf32> to vector<4x16xf32>
    %46 = vector.shape_cast %45 : vector<4x16xf32> to vector<4x16x1xf32>
    %47 = vector.broadcast %46 : vector<4x16x1xf32> to vector<4x16x16xf32>
    %48 = arith.divf %44, %47 : vector<4x16x16xf32>
    "tpu.trace_start"() <{level = 10 : i32, message = "bqk,bke->bqe"}> : () -> ()
    %cst_16 = arith.constant dense<0.000000e+00> : vector<4x16x8xf32>
    %49 = tpu.matmul %48, %38, %cst_16 {dimension_numbers = #tpu.dot_dimension_numbers<[2], [1], [1], [2], [0, 0, 0, 1, 1, 2], [0], [0]>} : vector<4x16x16xf32>, vector<4x16x8xf32>, vector<4x16x8xf32> -> vector<4x16x8xf32>
    "tpu.trace_stop"() : () -> ()
    %50 = vector.extract_strided_slice %30 {offsets = [0, 8], sizes = [64, 8], strides = [1, 1]} : vector<64x32xf32> to vector<64x8xf32>
    %51 = vector.shape_cast %50 : vector<64x8xf32> to vector<4x16x8xf32>
    %52 = vector.extract_strided_slice %31 {offsets = [0, 8], sizes = [64, 8], strides = [1, 1]} : vector<64x32xf32> to vector<64x8xf32>
    %53 = vector.shape_cast %52 : vector<64x8xf32> to vector<4x16x8xf32>
    %54 = vector.extract_strided_slice %32 {offsets = [0, 8], sizes = [64, 8], strides = [1, 1]} : vector<64x32xf32> to vector<64x8xf32>
    %55 = vector.shape_cast %54 : vector<64x8xf32> to vector<4x16x8xf32>
    "tpu.trace_start"() <{level = 10 : i32, message = "bqe,bke->bqk"}> : () -> ()
    %cst_17 = arith.constant dense<0.000000e+00> : vector<4x16x16xf32>
    %56 = tpu.matmul %51, %53, %cst_17 {dimension_numbers = #tpu.dot_dimension_numbers<[2], [2], [1], [1], [0, 0, 0, 1, 1, 1], [0], [0]>} : vector<4x16x8xf32>, vector<4x16x8xf32>, vector<4x16x16xf32> -> vector<4x16x16xf32>
    "tpu.trace_stop"() : () -> ()
    %cst_18 = arith.constant dense<0xFF800000> : vector<4x16xf32>
    %57 = vector.multi_reduction <maximumf>, %56, %cst_18 [2] : vector<4x16x16xf32> to vector<4x16xf32>
    %58 = vector.shape_cast %57 : vector<4x16xf32> to vector<4x16x1xf32>
    %59 = vector.broadcast %58 : vector<4x16x1xf32> to vector<4x16x16xf32>
    %60 = arith.subf %56, %59 : vector<4x16x16xf32>
    %61 = math.exp %60 : vector<4x16x16xf32>
    %cst_19 = arith.constant dense<0.000000e+00> : vector<4x16xf32>
    %62 = vector.multi_reduction <add>, %61, %cst_19 [2] : vector<4x16x16xf32> to vector<4x16xf32>
    %63 = vector.shape_cast %62 : vector<4x16xf32> to vector<4x16x1xf32>
    %64 = vector.broadcast %63 : vector<4x16x1xf32> to vector<4x16x16xf32>
    %65 = arith.divf %61, %64 : vector<4x16x16xf32>
    "tpu.trace_start"() <{level = 10 : i32, message = "bqk,bke->bqe"}> : () -> ()
    %cst_20 = arith.constant dense<0.000000e+00> : vector<4x16x8xf32>
    %66 = tpu.matmul %65, %55, %cst_20 {dimension_numbers = #tpu.dot_dimension_numbers<[2], [1], [1], [2], [0, 0, 0, 1, 1, 2], [0], [0]>} : vector<4x16x16xf32>, vector<4x16x8xf32>, vector<4x16x8xf32> -> vector<4x16x8xf32>
    "tpu.trace_stop"() : () -> ()
    %67 = vector.extract_strided_slice %30 {offsets = [0, 16], sizes = [64, 8], strides = [1, 1]} : vector<64x32xf32> to vector<64x8xf32>
    %68 = vector.shape_cast %67 : vector<64x8xf32> to vector<4x16x8xf32>
    %69 = vector.extract_strided_slice %31 {offsets = [0, 16], sizes = [64, 8], strides = [1, 1]} : vector<64x32xf32> to vector<64x8xf32>
    %70 = vector.shape_cast %69 : vector<64x8xf32> to vector<4x16x8xf32>
    %71 = vector.extract_strided_slice %32 {offsets = [0, 16], sizes = [64, 8], strides = [1, 1]} : vector<64x32xf32> to vector<64x8xf32>
    %72 = vector.shape_cast %71 : vector<64x8xf32> to vector<4x16x8xf32>
    "tpu.trace_start"() <{level = 10 : i32, message = "bqe,bke->bqk"}> : () -> ()
    %cst_21 = arith.constant dense<0.000000e+00> : vector<4x16x16xf32>
    %73 = tpu.matmul %68, %70, %cst_21 {dimension_numbers = #tpu.dot_dimension_numbers<[2], [2], [1], [1], [0, 0, 0, 1, 1, 1], [0], [0]>} : vector<4x16x8xf32>, vector<4x16x8xf32>, vector<4x16x16xf32> -> vector<4x16x16xf32>
    "tpu.trace_stop"() : () -> ()
    %cst_22 = arith.constant dense<0xFF800000> : vector<4x16xf32>
    %74 = vector.multi_reduction <maximumf>, %73, %cst_22 [2] : vector<4x16x16xf32> to vector<4x16xf32>
    %75 = vector.shape_cast %74 : vector<4x16xf32> to vector<4x16x1xf32>
    %76 = vector.broadcast %75 : vector<4x16x1xf32> to vector<4x16x16xf32>
    %77 = arith.subf %73, %76 : vector<4x16x16xf32>
    %78 = math.exp %77 : vector<4x16x16xf32>
    %cst_23 = arith.constant dense<0.000000e+00> : vector<4x16xf32>
    %79 = vector.multi_reduction <add>, %78, %cst_23 [2] : vector<4x16x16xf32> to vector<4x16xf32>
    %80 = vector.shape_cast %79 : vector<4x16xf32> to vector<4x16x1xf32>
    %81 = vector.broadcast %80 : vector<4x16x1xf32> to vector<4x16x16xf32>
    %82 = arith.divf %78, %81 : vector<4x16x16xf32>
    "tpu.trace_start"() <{level = 10 : i32, message = "bqk,bke->bqe"}> : () -> ()
    %cst_24 = arith.constant dense<0.000000e+00> : vector<4x16x8xf32>
    %83 = tpu.matmul %82, %72, %cst_24 {dimension_numbers = #tpu.dot_dimension_numbers<[2], [1], [1], [2], [0, 0, 0, 1, 1, 2], [0], [0]>} : vector<4x16x16xf32>, vector<4x16x8xf32>, vector<4x16x8xf32> -> vector<4x16x8xf32>
    "tpu.trace_stop"() : () -> ()
    %84 = vector.extract_strided_slice %30 {offsets = [0, 24], sizes = [64, 8], strides = [1, 1]} : vector<64x32xf32> to vector<64x8xf32>
    %85 = vector.shape_cast %84 : vector<64x8xf32> to vector<4x16x8xf32>
    %86 = vector.extract_strided_slice %31 {offsets = [0, 24], sizes = [64, 8], strides = [1, 1]} : vector<64x32xf32> to vector<64x8xf32>
    %87 = vector.shape_cast %86 : vector<64x8xf32> to vector<4x16x8xf32>
    %88 = vector.extract_strided_slice %32 {offsets = [0, 24], sizes = [64, 8], strides = [1, 1]} : vector<64x32xf32> to vector<64x8xf32>
    %89 = vector.shape_cast %88 : vector<64x8xf32> to vector<4x16x8xf32>
    "tpu.trace_start"() <{level = 10 : i32, message = "bqe,bke->bqk"}> : () -> ()
    %cst_25 = arith.constant dense<0.000000e+00> : vector<4x16x16xf32>
    %90 = tpu.matmul %85, %87, %cst_25 {dimension_numbers = #tpu.dot_dimension_numbers<[2], [2], [1], [1], [0, 0, 0, 1, 1, 1], [0], [0]>} : vector<4x16x8xf32>, vector<4x16x8xf32>, vector<4x16x16xf32> -> vector<4x16x16xf32>
    "tpu.trace_stop"() : () -> ()
    %cst_26 = arith.constant dense<0xFF800000> : vector<4x16xf32>
    %91 = vector.multi_reduction <maximumf>, %90, %cst_26 [2] : vector<4x16x16xf32> to vector<4x16xf32>
    %92 = vector.shape_cast %91 : vector<4x16xf32> to vector<4x16x1xf32>
    %93 = vector.broadcast %92 : vector<4x16x1xf32> to vector<4x16x16xf32>
    %94 = arith.subf %90, %93 : vector<4x16x16xf32>
    %95 = math.exp %94 : vector<4x16x16xf32>
    %cst_27 = arith.constant dense<0.000000e+00> : vector<4x16xf32>
    %96 = vector.multi_reduction <add>, %95, %cst_27 [2] : vector<4x16x16xf32> to vector<4x16xf32>
    %97 = vector.shape_cast %96 : vector<4x16xf32> to vector<4x16x1xf32>
    %98 = vector.broadcast %97 : vector<4x16x1xf32> to vector<4x16x16xf32>
    %99 = arith.divf %95, %98 : vector<4x16x16xf32>
    "tpu.trace_start"() <{level = 10 : i32, message = "bqk,bke->bqe"}> : () -> ()
    %cst_28 = arith.constant dense<0.000000e+00> : vector<4x16x8xf32>
    %100 = tpu.matmul %99, %89, %cst_28 {dimension_numbers = #tpu.dot_dimension_numbers<[2], [1], [1], [2], [0, 0, 0, 1, 1, 2], [0], [0]>} : vector<4x16x16xf32>, vector<4x16x8xf32>, vector<4x16x8xf32> -> vector<4x16x8xf32>
    "tpu.trace_stop"() : () -> ()
    %101 = tpu.concatenate %49, %66, %83, %100 in 2 : vector<4x16x8xf32>, vector<4x16x8xf32>, vector<4x16x8xf32>, vector<4x16x8xf32> -> vector<4x16x32xf32>
    %102 = vector.shape_cast %101 : vector<4x16x32xf32> to vector<64x32xf32>
    %c40 = arith.constant 40 : index
    %c0_29 = arith.constant 0 : index
    %103 = vector.load %arg1[%c40, %c0_29] : memref<576x128xf32, #tpu.memory_space<vmem>>, vector<32x32xf32>
    %cst_30 = arith.constant dense<0.000000e+00> : vector<64x32xf32>
    %104 = tpu.matmul %102, %103, %cst_30 {dimension_numbers = #tpu.dot_dimension_numbers<[1], [0], [0], [1], [0, 0, 1, 1], [], []>} : vector<64x32xf32>, vector<32x32xf32>, vector<64x32xf32> -> vector<64x32xf32>
    %c72 = arith.constant 72 : index
    %c0_31 = arith.constant 0 : index
    %105 = vector.load %arg1[%c72, %c0_31] : memref<576x128xf32, #tpu.memory_space<vmem>>, vector<1x32xf32>
    %106 = vector.broadcast %105 : vector<1x32xf32> to vector<64x32xf32>
    %107 = arith.addf %104, %106 : vector<64x32xf32>
    %108 = arith.addf %2, %107 : vector<64x32xf32>
    %c208 = arith.constant 208 : index
    %c0_32 = arith.constant 0 : index
    %109 = vector.load %arg1[%c208, %c0_32] : memref<576x128xf32, #tpu.memory_space<vmem>>, vector<1x32xf32>
    %c216 = arith.constant 216 : index
    %c0_33 = arith.constant 0 : index
    %110 = vector.load %arg1[%c216, %c0_33] : memref<576x128xf32, #tpu.memory_space<vmem>>, vector<1x32xf32>
    %cst_34 = arith.constant dense<0.000000e+00> : vector<64xf32>
    %111 = vector.multi_reduction <add>, %108, %cst_34 [1] : vector<64x32xf32> to vector<64xf32>
    %112 = vector.shape_cast %111 : vector<64xf32> to vector<64x1xf32>
    %cst_35 = arith.constant 3.200000e+01 : f32
    %113 = vector.broadcast %cst_35 : f32 to vector<64x1xf32>
    %114 = arith.divf %112, %113 : vector<64x1xf32>
    %115 = vector.broadcast %114 : vector<64x1xf32> to vector<64x32xf32>
    %116 = arith.subf %108, %115 : vector<64x32xf32>
    %117 = arith.mulf %116, %116 : vector<64x32xf32>
    %cst_36 = arith.constant dense<0.000000e+00> : vector<64xf32>
    %118 = vector.multi_reduction <add>, %117, %cst_36 [1] : vector<64x32xf32> to vector<64xf32>
    %119 = vector.shape_cast %118 : vector<64xf32> to vector<64x1xf32>
    %cst_37 = arith.constant 0.0322580636 : f32
    %120 = vector.broadcast %cst_37 : f32 to vector<64x1xf32>
    %121 = arith.mulf %119, %120 : vector<64x1xf32>
    %122 = math.sqrt %121 : vector<64x1xf32>
    %cst_38 = arith.constant 9.99999997E-7 : f32
    %123 = vector.broadcast %cst_38 : f32 to vector<64x1xf32>
    %124 = arith.addf %122, %123 : vector<64x1xf32>
    %125 = vector.broadcast %124 : vector<64x1xf32> to vector<64x32xf32>
    %126 = arith.divf %116, %125 : vector<64x32xf32>
    %127 = vector.broadcast %109 : vector<1x32xf32> to vector<64x32xf32>
    %128 = arith.mulf %127, %126 : vector<64x32xf32>
    %129 = vector.broadcast %110 : vector<1x32xf32> to vector<64x32xf32>
    %130 = arith.addf %128, %129 : vector<64x32xf32>
    %c80 = arith.constant 80 : index
    %c0_39 = arith.constant 0 : index
    %131 = vector.load %arg1[%c80, %c0_39] : memref<576x128xf32, #tpu.memory_space<vmem>>, vector<32x64xf32>
    %cst_40 = arith.constant dense<0.000000e+00> : vector<64x64xf32>
    %132 = tpu.matmul %130, %131, %cst_40 {dimension_numbers = #tpu.dot_dimension_numbers<[1], [0], [0], [1], [0, 0, 1, 1], [], []>} : vector<64x32xf32>, vector<32x64xf32>, vector<64x64xf32> -> vector<64x64xf32>
    %c112 = arith.constant 112 : index
    %c0_41 = arith.constant 0 : index
    %133 = vector.load %arg1[%c112, %c0_41] : memref<576x128xf32, #tpu.memory_space<vmem>>, vector<1x64xf32>
    %134 = vector.broadcast %133 : vector<1x64xf32> to vector<64x64xf32>
    %135 = arith.addf %132, %134 : vector<64x64xf32>
    %cst_42 = arith.constant 0.000000e+00 : f32
    %136 = vector.broadcast %cst_42 : f32 to vector<64x64xf32>
    %137 = arith.maximumf %135, %136 : vector<64x64xf32>
    %c120 = arith.constant 120 : index
    %c0_43 = arith.constant 0 : index
    %138 = vector.load %arg1[%c120, %c0_43] : memref<576x128xf32, #tpu.memory_space<vmem>>, vector<64x32xf32>
    %cst_44 = arith.constant dense<0.000000e+00> : vector<64x32xf32>
    %139 = tpu.matmul %137, %138, %cst_44 {dimension_numbers = #tpu.dot_dimension_numbers<[1], [0], [0], [1], [0, 0, 1, 1], [], []>} : vector<64x64xf32>, vector<64x32xf32>, vector<64x32xf32> -> vector<64x32xf32>
    %c184 = arith.constant 184 : index
    %c0_45 = arith.constant 0 : index
    %140 = vector.load %arg1[%c184, %c0_45] : memref<576x128xf32, #tpu.memory_space<vmem>>, vector<1x32xf32>
    %141 = vector.broadcast %140 : vector<1x32xf32> to vector<64x32xf32>
    %142 = arith.addf %139, %141 : vector<64x32xf32>
    %143 = arith.addf %108, %142 : vector<64x32xf32>
    %c224 = arith.constant 224 : index
    %c0_46 = arith.constant 0 : index
    %144 = vector.load %arg1[%c224, %c0_46] : memref<576x128xf32, #tpu.memory_space<vmem>>, vector<1x32xf32>
    %c232 = arith.constant 232 : index
    %c0_47 = arith.constant 0 : index
    %145 = vector.load %arg1[%c232, %c0_47] : memref<576x128xf32, #tpu.memory_space<vmem>>, vector<1x32xf32>
    %cst_48 = arith.constant dense<0.000000e+00> : vector<64xf32>
    %146 = vector.multi_reduction <add>, %143, %cst_48 [1] : vector<64x32xf32> to vector<64xf32>
    %147 = vector.shape_cast %146 : vector<64xf32> to vector<64x1xf32>
    %cst_49 = arith.constant 3.200000e+01 : f32
    %148 = vector.broadcast %cst_49 : f32 to vector<64x1xf32>
    %149 = arith.divf %147, %148 : vector<64x1xf32>
    %150 = vector.broadcast %149 : vector<64x1xf32> to vector<64x32xf32>
    %151 = arith.subf %143, %150 : vector<64x32xf32>
    %152 = arith.mulf %151, %151 : vector<64x32xf32>
    %cst_50 = arith.constant dense<0.000000e+00> : vector<64xf32>
    %153 = vector.multi_reduction <add>, %152, %cst_50 [1] : vector<64x32xf32> to vector<64xf32>
    %154 = vector.shape_cast %153 : vector<64xf32> to vector<64x1xf32>
    %cst_51 = arith.constant 0.0322580636 : f32
    %155 = vector.broadcast %cst_51 : f32 to vector<64x1xf32>
    %156 = arith.mulf %154, %155 : vector<64x1xf32>
    %157 = math.sqrt %156 : vector<64x1xf32>
    %cst_52 = arith.constant 9.99999997E-7 : f32
    %158 = vector.broadcast %cst_52 : f32 to vector<64x1xf32>
    %159 = arith.addf %157, %158 : vector<64x1xf32>
    %160 = vector.broadcast %159 : vector<64x1xf32> to vector<64x32xf32>
    %161 = arith.divf %151, %160 : vector<64x32xf32>
    %162 = vector.broadcast %144 : vector<1x32xf32> to vector<64x32xf32>
    %163 = arith.mulf %162, %161 : vector<64x32xf32>
    %164 = vector.broadcast %145 : vector<1x32xf32> to vector<64x32xf32>
    %165 = arith.addf %163, %164 : vector<64x32xf32>
    %c1 = arith.constant 1 : index
    %c0_53 = arith.constant 0 : index
    %c0_54 = arith.constant 0 : index
    %c0_55 = arith.constant 0 : index
    %166 = vector.load %arg0[%c1, %c0_53, %c0_54, %c0_55] : memref<2x4x16x32xf32, #tpu.memory_space<vmem>>, vector<1x4x16x32xf32>
    %167 = vector.shape_cast %166 : vector<1x4x16x32xf32> to vector<4x16x32xf32>
    %168 = vector.shape_cast %167 : vector<4x16x32xf32> to vector<64x32xf32>
    %c512 = arith.constant 512 : index
    %c0_56 = arith.constant 0 : index
    %169 = vector.load %arg1[%c512, %c0_56] : memref<576x128xf32, #tpu.memory_space<vmem>>, vector<1x32xf32>
    %c520 = arith.constant 520 : index
    %c0_57 = arith.constant 0 : index
    %170 = vector.load %arg1[%c520, %c0_57] : memref<576x128xf32, #tpu.memory_space<vmem>>, vector<1x32xf32>
    %cst_58 = arith.constant dense<0.000000e+00> : vector<64xf32>
    %171 = vector.multi_reduction <add>, %168, %cst_58 [1] : vector<64x32xf32> to vector<64xf32>
    %172 = vector.shape_cast %171 : vector<64xf32> to vector<64x1xf32>
    %cst_59 = arith.constant 3.200000e+01 : f32
    %173 = vector.broadcast %cst_59 : f32 to vector<64x1xf32>
    %174 = arith.divf %172, %173 : vector<64x1xf32>
    %175 = vector.broadcast %174 : vector<64x1xf32> to vector<64x32xf32>
    %176 = arith.subf %168, %175 : vector<64x32xf32>
    %177 = arith.mulf %176, %176 : vector<64x32xf32>
    %cst_60 = arith.constant dense<0.000000e+00> : vector<64xf32>
    %178 = vector.multi_reduction <add>, %177, %cst_60 [1] : vector<64x32xf32> to vector<64xf32>
    %179 = vector.shape_cast %178 : vector<64xf32> to vector<64x1xf32>
    %cst_61 = arith.constant 0.0322580636 : f32
    %180 = vector.broadcast %cst_61 : f32 to vector<64x1xf32>
    %181 = arith.mulf %179, %180 : vector<64x1xf32>
    %182 = math.sqrt %181 : vector<64x1xf32>
    %cst_62 = arith.constant 9.99999997E-7 : f32
    %183 = vector.broadcast %cst_62 : f32 to vector<64x1xf32>
    %184 = arith.addf %182, %183 : vector<64x1xf32>
    %185 = vector.broadcast %184 : vector<64x1xf32> to vector<64x32xf32>
    %186 = arith.divf %176, %185 : vector<64x32xf32>
    %187 = vector.broadcast %169 : vector<1x32xf32> to vector<64x32xf32>
    %188 = arith.mulf %187, %186 : vector<64x32xf32>
    %189 = vector.broadcast %170 : vector<1x32xf32> to vector<64x32xf32>
    %190 = arith.addf %188, %189 : vector<64x32xf32>
    %c240 = arith.constant 240 : index
    %c0_63 = arith.constant 0 : index
    %191 = vector.load %arg1[%c240, %c0_63] : memref<576x128xf32, #tpu.memory_space<vmem>>, vector<32x96xf32>
    %cst_64 = arith.constant dense<0.000000e+00> : vector<64x96xf32>
    %192 = tpu.matmul %190, %191, %cst_64 {dimension_numbers = #tpu.dot_dimension_numbers<[1], [0], [0], [1], [0, 0, 1, 1], [], []>} : vector<64x32xf32>, vector<32x96xf32>, vector<64x96xf32> -> vector<64x96xf32>
    %c272 = arith.constant 272 : index
    %c0_65 = arith.constant 0 : index
    %193 = vector.load %arg1[%c272, %c0_65] : memref<576x128xf32, #tpu.memory_space<vmem>>, vector<1x96xf32>
    %194 = vector.broadcast %193 : vector<1x96xf32> to vector<64x96xf32>
    %195 = arith.addf %192, %194 : vector<64x96xf32>
    %196 = vector.extract_strided_slice %195 {offsets = [0, 0], sizes = [64, 32], strides = [1, 1]} : vector<64x96xf32> to vector<64x32xf32>
    %197 = vector.extract_strided_slice %195 {offsets = [0, 32], sizes = [64, 32], strides = [1, 1]} : vector<64x96xf32> to vector<64x32xf32>
    %198 = vector.extract_strided_slice %195 {offsets = [0, 64], sizes = [64, 32], strides = [1, 1]} : vector<64x96xf32> to vector<64x32xf32>
    %199 = vector.extract_strided_slice %196 {offsets = [0, 0], sizes = [64, 8], strides = [1, 1]} : vector<64x32xf32> to vector<64x8xf32>
    %200 = vector.shape_cast %199 : vector<64x8xf32> to vector<4x16x8xf32>
    %201 = vector.extract_strided_slice %197 {offsets = [0, 0], sizes = [64, 8], strides = [1, 1]} : vector<64x32xf32> to vector<64x8xf32>
    %202 = vector.shape_cast %201 : vector<64x8xf32> to vector<4x16x8xf32>
    %203 = vector.extract_strided_slice %198 {offsets = [0, 0], sizes = [64, 8], strides = [1, 1]} : vector<64x32xf32> to vector<64x8xf32>
    %204 = vector.shape_cast %203 : vector<64x8xf32> to vector<4x16x8xf32>
    "tpu.trace_start"() <{level = 10 : i32, message = "bqe,bke->bqk"}> : () -> ()
    %cst_66 = arith.constant dense<0.000000e+00> : vector<4x16x16xf32>
    %205 = tpu.matmul %200, %202, %cst_66 {dimension_numbers = #tpu.dot_dimension_numbers<[2], [2], [1], [1], [0, 0, 0, 1, 1, 1], [0], [0]>} : vector<4x16x8xf32>, vector<4x16x8xf32>, vector<4x16x16xf32> -> vector<4x16x16xf32>
    "tpu.trace_stop"() : () -> ()
    %cst_67 = arith.constant dense<0xFF800000> : vector<4x16xf32>
    %206 = vector.multi_reduction <maximumf>, %205, %cst_67 [2] : vector<4x16x16xf32> to vector<4x16xf32>
    %207 = vector.shape_cast %206 : vector<4x16xf32> to vector<4x16x1xf32>
    %208 = vector.broadcast %207 : vector<4x16x1xf32> to vector<4x16x16xf32>
    %209 = arith.subf %205, %208 : vector<4x16x16xf32>
    %210 = math.exp %209 : vector<4x16x16xf32>
    %cst_68 = arith.constant dense<0.000000e+00> : vector<4x16xf32>
    %211 = vector.multi_reduction <add>, %210, %cst_68 [2] : vector<4x16x16xf32> to vector<4x16xf32>
    %212 = vector.shape_cast %211 : vector<4x16xf32> to vector<4x16x1xf32>
    %213 = vector.broadcast %212 : vector<4x16x1xf32> to vector<4x16x16xf32>
    %214 = arith.divf %210, %213 : vector<4x16x16xf32>
    "tpu.trace_start"() <{level = 10 : i32, message = "bqk,bke->bqe"}> : () -> ()
    %cst_69 = arith.constant dense<0.000000e+00> : vector<4x16x8xf32>
    %215 = tpu.matmul %214, %204, %cst_69 {dimension_numbers = #tpu.dot_dimension_numbers<[2], [1], [1], [2], [0, 0, 0, 1, 1, 2], [0], [0]>} : vector<4x16x16xf32>, vector<4x16x8xf32>, vector<4x16x8xf32> -> vector<4x16x8xf32>
    "tpu.trace_stop"() : () -> ()
    %216 = vector.extract_strided_slice %196 {offsets = [0, 8], sizes = [64, 8], strides = [1, 1]} : vector<64x32xf32> to vector<64x8xf32>
    %217 = vector.shape_cast %216 : vector<64x8xf32> to vector<4x16x8xf32>
    %218 = vector.extract_strided_slice %197 {offsets = [0, 8], sizes = [64, 8], strides = [1, 1]} : vector<64x32xf32> to vector<64x8xf32>
    %219 = vector.shape_cast %218 : vector<64x8xf32> to vector<4x16x8xf32>
    %220 = vector.extract_strided_slice %198 {offsets = [0, 8], sizes = [64, 8], strides = [1, 1]} : vector<64x32xf32> to vector<64x8xf32>
    %221 = vector.shape_cast %220 : vector<64x8xf32> to vector<4x16x8xf32>
    "tpu.trace_start"() <{level = 10 : i32, message = "bqe,bke->bqk"}> : () -> ()
    %cst_70 = arith.constant dense<0.000000e+00> : vector<4x16x16xf32>
    %222 = tpu.matmul %217, %219, %cst_70 {dimension_numbers = #tpu.dot_dimension_numbers<[2], [2], [1], [1], [0, 0, 0, 1, 1, 1], [0], [0]>} : vector<4x16x8xf32>, vector<4x16x8xf32>, vector<4x16x16xf32> -> vector<4x16x16xf32>
    "tpu.trace_stop"() : () -> ()
    %cst_71 = arith.constant dense<0xFF800000> : vector<4x16xf32>
    %223 = vector.multi_reduction <maximumf>, %222, %cst_71 [2] : vector<4x16x16xf32> to vector<4x16xf32>
    %224 = vector.shape_cast %223 : vector<4x16xf32> to vector<4x16x1xf32>
    %225 = vector.broadcast %224 : vector<4x16x1xf32> to vector<4x16x16xf32>
    %226 = arith.subf %222, %225 : vector<4x16x16xf32>
    %227 = math.exp %226 : vector<4x16x16xf32>
    %cst_72 = arith.constant dense<0.000000e+00> : vector<4x16xf32>
    %228 = vector.multi_reduction <add>, %227, %cst_72 [2] : vector<4x16x16xf32> to vector<4x16xf32>
    %229 = vector.shape_cast %228 : vector<4x16xf32> to vector<4x16x1xf32>
    %230 = vector.broadcast %229 : vector<4x16x1xf32> to vector<4x16x16xf32>
    %231 = arith.divf %227, %230 : vector<4x16x16xf32>
    "tpu.trace_start"() <{level = 10 : i32, message = "bqk,bke->bqe"}> : () -> ()
    %cst_73 = arith.constant dense<0.000000e+00> : vector<4x16x8xf32>
    %232 = tpu.matmul %231, %221, %cst_73 {dimension_numbers = #tpu.dot_dimension_numbers<[2], [1], [1], [2], [0, 0, 0, 1, 1, 2], [0], [0]>} : vector<4x16x16xf32>, vector<4x16x8xf32>, vector<4x16x8xf32> -> vector<4x16x8xf32>
    "tpu.trace_stop"() : () -> ()
    %233 = vector.extract_strided_slice %196 {offsets = [0, 16], sizes = [64, 8], strides = [1, 1]} : vector<64x32xf32> to vector<64x8xf32>
    %234 = vector.shape_cast %233 : vector<64x8xf32> to vector<4x16x8xf32>
    %235 = vector.extract_strided_slice %197 {offsets = [0, 16], sizes = [64, 8], strides = [1, 1]} : vector<64x32xf32> to vector<64x8xf32>
    %236 = vector.shape_cast %235 : vector<64x8xf32> to vector<4x16x8xf32>
    %237 = vector.extract_strided_slice %198 {offsets = [0, 16], sizes = [64, 8], strides = [1, 1]} : vector<64x32xf32> to vector<64x8xf32>
    %238 = vector.shape_cast %237 : vector<64x8xf32> to vector<4x16x8xf32>
    "tpu.trace_start"() <{level = 10 : i32, message = "bqe,bke->bqk"}> : () -> ()
    %cst_74 = arith.constant dense<0.000000e+00> : vector<4x16x16xf32>
    %239 = tpu.matmul %234, %236, %cst_74 {dimension_numbers = #tpu.dot_dimension_numbers<[2], [2], [1], [1], [0, 0, 0, 1, 1, 1], [0], [0]>} : vector<4x16x8xf32>, vector<4x16x8xf32>, vector<4x16x16xf32> -> vector<4x16x16xf32>
    "tpu.trace_stop"() : () -> ()
    %cst_75 = arith.constant dense<0xFF800000> : vector<4x16xf32>
    %240 = vector.multi_reduction <maximumf>, %239, %cst_75 [2] : vector<4x16x16xf32> to vector<4x16xf32>
    %241 = vector.shape_cast %240 : vector<4x16xf32> to vector<4x16x1xf32>
    %242 = vector.broadcast %241 : vector<4x16x1xf32> to vector<4x16x16xf32>
    %243 = arith.subf %239, %242 : vector<4x16x16xf32>
    %244 = math.exp %243 : vector<4x16x16xf32>
    %cst_76 = arith.constant dense<0.000000e+00> : vector<4x16xf32>
    %245 = vector.multi_reduction <add>, %244, %cst_76 [2] : vector<4x16x16xf32> to vector<4x16xf32>
    %246 = vector.shape_cast %245 : vector<4x16xf32> to vector<4x16x1xf32>
    %247 = vector.broadcast %246 : vector<4x16x1xf32> to vector<4x16x16xf32>
    %248 = arith.divf %244, %247 : vector<4x16x16xf32>
    "tpu.trace_start"() <{level = 10 : i32, message = "bqk,bke->bqe"}> : () -> ()
    %cst_77 = arith.constant dense<0.000000e+00> : vector<4x16x8xf32>
    %249 = tpu.matmul %248, %238, %cst_77 {dimension_numbers = #tpu.dot_dimension_numbers<[2], [1], [1], [2], [0, 0, 0, 1, 1, 2], [0], [0]>} : vector<4x16x16xf32>, vector<4x16x8xf32>, vector<4x16x8xf32> -> vector<4x16x8xf32>
    "tpu.trace_stop"() : () -> ()
    %250 = vector.extract_strided_slice %196 {offsets = [0, 24], sizes = [64, 8], strides = [1, 1]} : vector<64x32xf32> to vector<64x8xf32>
    %251 = vector.shape_cast %250 : vector<64x8xf32> to vector<4x16x8xf32>
    %252 = vector.extract_strided_slice %197 {offsets = [0, 24], sizes = [64, 8], strides = [1, 1]} : vector<64x32xf32> to vector<64x8xf32>
    %253 = vector.shape_cast %252 : vector<64x8xf32> to vector<4x16x8xf32>
    %254 = vector.extract_strided_slice %198 {offsets = [0, 24], sizes = [64, 8], strides = [1, 1]} : vector<64x32xf32> to vector<64x8xf32>
    %255 = vector.shape_cast %254 : vector<64x8xf32> to vector<4x16x8xf32>
    "tpu.trace_start"() <{level = 10 : i32, message = "bqe,bke->bqk"}> : () -> ()
    %cst_78 = arith.constant dense<0.000000e+00> : vector<4x16x16xf32>
    %256 = tpu.matmul %251, %253, %cst_78 {dimension_numbers = #tpu.dot_dimension_numbers<[2], [2], [1], [1], [0, 0, 0, 1, 1, 1], [0], [0]>} : vector<4x16x8xf32>, vector<4x16x8xf32>, vector<4x16x16xf32> -> vector<4x16x16xf32>
    "tpu.trace_stop"() : () -> ()
    %cst_79 = arith.constant dense<0xFF800000> : vector<4x16xf32>
    %257 = vector.multi_reduction <maximumf>, %256, %cst_79 [2] : vector<4x16x16xf32> to vector<4x16xf32>
    %258 = vector.shape_cast %257 : vector<4x16xf32> to vector<4x16x1xf32>
    %259 = vector.broadcast %258 : vector<4x16x1xf32> to vector<4x16x16xf32>
    %260 = arith.subf %256, %259 : vector<4x16x16xf32>
    %261 = math.exp %260 : vector<4x16x16xf32>
    %cst_80 = arith.constant dense<0.000000e+00> : vector<4x16xf32>
    %262 = vector.multi_reduction <add>, %261, %cst_80 [2] : vector<4x16x16xf32> to vector<4x16xf32>
    %263 = vector.shape_cast %262 : vector<4x16xf32> to vector<4x16x1xf32>
    %264 = vector.broadcast %263 : vector<4x16x1xf32> to vector<4x16x16xf32>
    %265 = arith.divf %261, %264 : vector<4x16x16xf32>
    "tpu.trace_start"() <{level = 10 : i32, message = "bqk,bke->bqe"}> : () -> ()
    %cst_81 = arith.constant dense<0.000000e+00> : vector<4x16x8xf32>
    %266 = tpu.matmul %265, %255, %cst_81 {dimension_numbers = #tpu.dot_dimension_numbers<[2], [1], [1], [2], [0, 0, 0, 1, 1, 2], [0], [0]>} : vector<4x16x16xf32>, vector<4x16x8xf32>, vector<4x16x8xf32> -> vector<4x16x8xf32>
    "tpu.trace_stop"() : () -> ()
    %267 = tpu.concatenate %215, %232, %249, %266 in 2 : vector<4x16x8xf32>, vector<4x16x8xf32>, vector<4x16x8xf32>, vector<4x16x8xf32> -> vector<4x16x32xf32>
    %268 = vector.shape_cast %267 : vector<4x16x32xf32> to vector<64x32xf32>
    %c280 = arith.constant 280 : index
    %c0_82 = arith.constant 0 : index
    %269 = vector.load %arg1[%c280, %c0_82] : memref<576x128xf32, #tpu.memory_space<vmem>>, vector<32x32xf32>
    %cst_83 = arith.constant dense<0.000000e+00> : vector<64x32xf32>
    %270 = tpu.matmul %268, %269, %cst_83 {dimension_numbers = #tpu.dot_dimension_numbers<[1], [0], [0], [1], [0, 0, 1, 1], [], []>} : vector<64x32xf32>, vector<32x32xf32>, vector<64x32xf32> -> vector<64x32xf32>
    %c312 = arith.constant 312 : index
    %c0_84 = arith.constant 0 : index
    %271 = vector.load %arg1[%c312, %c0_84] : memref<576x128xf32, #tpu.memory_space<vmem>>, vector<1x32xf32>
    %272 = vector.broadcast %271 : vector<1x32xf32> to vector<64x32xf32>
    %273 = arith.addf %270, %272 : vector<64x32xf32>
    %274 = arith.addf %168, %273 : vector<64x32xf32>
    %c528 = arith.constant 528 : index
    %c0_85 = arith.constant 0 : index
    %275 = vector.load %arg1[%c528, %c0_85] : memref<576x128xf32, #tpu.memory_space<vmem>>, vector<1x32xf32>
    %c536 = arith.constant 536 : index
    %c0_86 = arith.constant 0 : index
    %276 = vector.load %arg1[%c536, %c0_86] : memref<576x128xf32, #tpu.memory_space<vmem>>, vector<1x32xf32>
    %cst_87 = arith.constant dense<0.000000e+00> : vector<64xf32>
    %277 = vector.multi_reduction <add>, %274, %cst_87 [1] : vector<64x32xf32> to vector<64xf32>
    %278 = vector.shape_cast %277 : vector<64xf32> to vector<64x1xf32>
    %cst_88 = arith.constant 3.200000e+01 : f32
    %279 = vector.broadcast %cst_88 : f32 to vector<64x1xf32>
    %280 = arith.divf %278, %279 : vector<64x1xf32>
    %281 = vector.broadcast %280 : vector<64x1xf32> to vector<64x32xf32>
    %282 = arith.subf %274, %281 : vector<64x32xf32>
    %283 = arith.mulf %282, %282 : vector<64x32xf32>
    %cst_89 = arith.constant dense<0.000000e+00> : vector<64xf32>
    %284 = vector.multi_reduction <add>, %283, %cst_89 [1] : vector<64x32xf32> to vector<64xf32>
    %285 = vector.shape_cast %284 : vector<64xf32> to vector<64x1xf32>
    %cst_90 = arith.constant 0.0322580636 : f32
    %286 = vector.broadcast %cst_90 : f32 to vector<64x1xf32>
    %287 = arith.mulf %285, %286 : vector<64x1xf32>
    %288 = math.sqrt %287 : vector<64x1xf32>
    %cst_91 = arith.constant 9.99999997E-7 : f32
    %289 = vector.broadcast %cst_91 : f32 to vector<64x1xf32>
    %290 = arith.addf %288, %289 : vector<64x1xf32>
    %291 = vector.broadcast %290 : vector<64x1xf32> to vector<64x32xf32>
    %292 = arith.divf %282, %291 : vector<64x32xf32>
    %293 = vector.broadcast %275 : vector<1x32xf32> to vector<64x32xf32>
    %294 = arith.mulf %293, %292 : vector<64x32xf32>
    %295 = vector.broadcast %276 : vector<1x32xf32> to vector<64x32xf32>
    %296 = arith.addf %294, %295 : vector<64x32xf32>
    %c320 = arith.constant 320 : index
    %c0_92 = arith.constant 0 : index
    %297 = vector.load %arg1[%c320, %c0_92] : memref<576x128xf32, #tpu.memory_space<vmem>>, vector<32x96xf32>
    %c352 = arith.constant 352 : index
    %c0_93 = arith.constant 0 : index
    %298 = vector.load %arg1[%c352, %c0_93] : memref<576x128xf32, #tpu.memory_space<vmem>>, vector<1x96xf32>
    %299 = vector.extract_strided_slice %297 {offsets = [0, 0], sizes = [32, 32], strides = [1, 1]} : vector<32x96xf32> to vector<32x32xf32>
    %cst_94 = arith.constant dense<0.000000e+00> : vector<64x32xf32>
    %300 = tpu.matmul %296, %299, %cst_94 {dimension_numbers = #tpu.dot_dimension_numbers<[1], [0], [0], [1], [0, 0, 1, 1], [], []>} : vector<64x32xf32>, vector<32x32xf32>, vector<64x32xf32> -> vector<64x32xf32>
    %301 = vector.extract_strided_slice %298 {offsets = [0, 0], sizes = [1, 32], strides = [1, 1]} : vector<1x96xf32> to vector<1x32xf32>
    %302 = vector.broadcast %301 : vector<1x32xf32> to vector<64x32xf32>
    %303 = arith.addf %300, %302 : vector<64x32xf32>
    %304 = vector.extract_strided_slice %297 {offsets = [0, 32], sizes = [32, 64], strides = [1, 1]} : vector<32x96xf32> to vector<32x64xf32>
    %cst_95 = arith.constant dense<0.000000e+00> : vector<64x64xf32>
    %305 = tpu.matmul %165, %304, %cst_95 {dimension_numbers = #tpu.dot_dimension_numbers<[1], [0], [0], [1], [0, 0, 1, 1], [], []>} : vector<64x32xf32>, vector<32x64xf32>, vector<64x64xf32> -> vector<64x64xf32>
    %306 = vector.extract_strided_slice %298 {offsets = [0, 32], sizes = [1, 64], strides = [1, 1]} : vector<1x96xf32> to vector<1x64xf32>
    %307 = vector.broadcast %306 : vector<1x64xf32> to vector<64x64xf32>
    %308 = arith.addf %305, %307 : vector<64x64xf32>
    %309 = vector.extract_strided_slice %308 {offsets = [0, 0], sizes = [64, 32], strides = [1, 1]} : vector<64x64xf32> to vector<64x32xf32>
    %310 = vector.extract_strided_slice %308 {offsets = [0, 32], sizes = [64, 32], strides = [1, 1]} : vector<64x64xf32> to vector<64x32xf32>
    %311 = vector.extract_strided_slice %303 {offsets = [0, 0], sizes = [64, 8], strides = [1, 1]} : vector<64x32xf32> to vector<64x8xf32>
    %312 = vector.shape_cast %311 : vector<64x8xf32> to vector<4x16x8xf32>
    %313 = vector.extract_strided_slice %309 {offsets = [0, 0], sizes = [64, 8], strides = [1, 1]} : vector<64x32xf32> to vector<64x8xf32>
    %314 = vector.shape_cast %313 : vector<64x8xf32> to vector<4x16x8xf32>
    %315 = vector.extract_strided_slice %310 {offsets = [0, 0], sizes = [64, 8], strides = [1, 1]} : vector<64x32xf32> to vector<64x8xf32>
    %316 = vector.shape_cast %315 : vector<64x8xf32> to vector<4x16x8xf32>
    "tpu.trace_start"() <{level = 10 : i32, message = "bqe,bke->bqk"}> : () -> ()
    %cst_96 = arith.constant dense<0.000000e+00> : vector<4x16x16xf32>
    %317 = tpu.matmul %312, %314, %cst_96 {dimension_numbers = #tpu.dot_dimension_numbers<[2], [2], [1], [1], [0, 0, 0, 1, 1, 1], [0], [0]>} : vector<4x16x8xf32>, vector<4x16x8xf32>, vector<4x16x16xf32> -> vector<4x16x16xf32>
    "tpu.trace_stop"() : () -> ()
    %cst_97 = arith.constant dense<0xFF800000> : vector<4x16xf32>
    %318 = vector.multi_reduction <maximumf>, %317, %cst_97 [2] : vector<4x16x16xf32> to vector<4x16xf32>
    %319 = vector.shape_cast %318 : vector<4x16xf32> to vector<4x16x1xf32>
    %320 = vector.broadcast %319 : vector<4x16x1xf32> to vector<4x16x16xf32>
    %321 = arith.subf %317, %320 : vector<4x16x16xf32>
    %322 = math.exp %321 : vector<4x16x16xf32>
    %cst_98 = arith.constant dense<0.000000e+00> : vector<4x16xf32>
    %323 = vector.multi_reduction <add>, %322, %cst_98 [2] : vector<4x16x16xf32> to vector<4x16xf32>
    %324 = vector.shape_cast %323 : vector<4x16xf32> to vector<4x16x1xf32>
    %325 = vector.broadcast %324 : vector<4x16x1xf32> to vector<4x16x16xf32>
    %326 = arith.divf %322, %325 : vector<4x16x16xf32>
    "tpu.trace_start"() <{level = 10 : i32, message = "bqk,bke->bqe"}> : () -> ()
    %cst_99 = arith.constant dense<0.000000e+00> : vector<4x16x8xf32>
    %327 = tpu.matmul %326, %316, %cst_99 {dimension_numbers = #tpu.dot_dimension_numbers<[2], [1], [1], [2], [0, 0, 0, 1, 1, 2], [0], [0]>} : vector<4x16x16xf32>, vector<4x16x8xf32>, vector<4x16x8xf32> -> vector<4x16x8xf32>
    "tpu.trace_stop"() : () -> ()
    %328 = vector.extract_strided_slice %303 {offsets = [0, 8], sizes = [64, 8], strides = [1, 1]} : vector<64x32xf32> to vector<64x8xf32>
    %329 = vector.shape_cast %328 : vector<64x8xf32> to vector<4x16x8xf32>
    %330 = vector.extract_strided_slice %309 {offsets = [0, 8], sizes = [64, 8], strides = [1, 1]} : vector<64x32xf32> to vector<64x8xf32>
    %331 = vector.shape_cast %330 : vector<64x8xf32> to vector<4x16x8xf32>
    %332 = vector.extract_strided_slice %310 {offsets = [0, 8], sizes = [64, 8], strides = [1, 1]} : vector<64x32xf32> to vector<64x8xf32>
    %333 = vector.shape_cast %332 : vector<64x8xf32> to vector<4x16x8xf32>
    "tpu.trace_start"() <{level = 10 : i32, message = "bqe,bke->bqk"}> : () -> ()
    %cst_100 = arith.constant dense<0.000000e+00> : vector<4x16x16xf32>
    %334 = tpu.matmul %329, %331, %cst_100 {dimension_numbers = #tpu.dot_dimension_numbers<[2], [2], [1], [1], [0, 0, 0, 1, 1, 1], [0], [0]>} : vector<4x16x8xf32>, vector<4x16x8xf32>, vector<4x16x16xf32> -> vector<4x16x16xf32>
    "tpu.trace_stop"() : () -> ()
    %cst_101 = arith.constant dense<0xFF800000> : vector<4x16xf32>
    %335 = vector.multi_reduction <maximumf>, %334, %cst_101 [2] : vector<4x16x16xf32> to vector<4x16xf32>
    %336 = vector.shape_cast %335 : vector<4x16xf32> to vector<4x16x1xf32>
    %337 = vector.broadcast %336 : vector<4x16x1xf32> to vector<4x16x16xf32>
    %338 = arith.subf %334, %337 : vector<4x16x16xf32>
    %339 = math.exp %338 : vector<4x16x16xf32>
    %cst_102 = arith.constant dense<0.000000e+00> : vector<4x16xf32>
    %340 = vector.multi_reduction <add>, %339, %cst_102 [2] : vector<4x16x16xf32> to vector<4x16xf32>
    %341 = vector.shape_cast %340 : vector<4x16xf32> to vector<4x16x1xf32>
    %342 = vector.broadcast %341 : vector<4x16x1xf32> to vector<4x16x16xf32>
    %343 = arith.divf %339, %342 : vector<4x16x16xf32>
    "tpu.trace_start"() <{level = 10 : i32, message = "bqk,bke->bqe"}> : () -> ()
    %cst_103 = arith.constant dense<0.000000e+00> : vector<4x16x8xf32>
    %344 = tpu.matmul %343, %333, %cst_103 {dimension_numbers = #tpu.dot_dimension_numbers<[2], [1], [1], [2], [0, 0, 0, 1, 1, 2], [0], [0]>} : vector<4x16x16xf32>, vector<4x16x8xf32>, vector<4x16x8xf32> -> vector<4x16x8xf32>
    "tpu.trace_stop"() : () -> ()
    %345 = vector.extract_strided_slice %303 {offsets = [0, 16], sizes = [64, 8], strides = [1, 1]} : vector<64x32xf32> to vector<64x8xf32>
    %346 = vector.shape_cast %345 : vector<64x8xf32> to vector<4x16x8xf32>
    %347 = vector.extract_strided_slice %309 {offsets = [0, 16], sizes = [64, 8], strides = [1, 1]} : vector<64x32xf32> to vector<64x8xf32>
    %348 = vector.shape_cast %347 : vector<64x8xf32> to vector<4x16x8xf32>
    %349 = vector.extract_strided_slice %310 {offsets = [0, 16], sizes = [64, 8], strides = [1, 1]} : vector<64x32xf32> to vector<64x8xf32>
    %350 = vector.shape_cast %349 : vector<64x8xf32> to vector<4x16x8xf32>
    "tpu.trace_start"() <{level = 10 : i32, message = "bqe,bke->bqk"}> : () -> ()
    %cst_104 = arith.constant dense<0.000000e+00> : vector<4x16x16xf32>
    %351 = tpu.matmul %346, %348, %cst_104 {dimension_numbers = #tpu.dot_dimension_numbers<[2], [2], [1], [1], [0, 0, 0, 1, 1, 1], [0], [0]>} : vector<4x16x8xf32>, vector<4x16x8xf32>, vector<4x16x16xf32> -> vector<4x16x16xf32>
    "tpu.trace_stop"() : () -> ()
    %cst_105 = arith.constant dense<0xFF800000> : vector<4x16xf32>
    %352 = vector.multi_reduction <maximumf>, %351, %cst_105 [2] : vector<4x16x16xf32> to vector<4x16xf32>
    %353 = vector.shape_cast %352 : vector<4x16xf32> to vector<4x16x1xf32>
    %354 = vector.broadcast %353 : vector<4x16x1xf32> to vector<4x16x16xf32>
    %355 = arith.subf %351, %354 : vector<4x16x16xf32>
    %356 = math.exp %355 : vector<4x16x16xf32>
    %cst_106 = arith.constant dense<0.000000e+00> : vector<4x16xf32>
    %357 = vector.multi_reduction <add>, %356, %cst_106 [2] : vector<4x16x16xf32> to vector<4x16xf32>
    %358 = vector.shape_cast %357 : vector<4x16xf32> to vector<4x16x1xf32>
    %359 = vector.broadcast %358 : vector<4x16x1xf32> to vector<4x16x16xf32>
    %360 = arith.divf %356, %359 : vector<4x16x16xf32>
    "tpu.trace_start"() <{level = 10 : i32, message = "bqk,bke->bqe"}> : () -> ()
    %cst_107 = arith.constant dense<0.000000e+00> : vector<4x16x8xf32>
    %361 = tpu.matmul %360, %350, %cst_107 {dimension_numbers = #tpu.dot_dimension_numbers<[2], [1], [1], [2], [0, 0, 0, 1, 1, 2], [0], [0]>} : vector<4x16x16xf32>, vector<4x16x8xf32>, vector<4x16x8xf32> -> vector<4x16x8xf32>
    "tpu.trace_stop"() : () -> ()
    %362 = vector.extract_strided_slice %303 {offsets = [0, 24], sizes = [64, 8], strides = [1, 1]} : vector<64x32xf32> to vector<64x8xf32>
    %363 = vector.shape_cast %362 : vector<64x8xf32> to vector<4x16x8xf32>
    %364 = vector.extract_strided_slice %309 {offsets = [0, 24], sizes = [64, 8], strides = [1, 1]} : vector<64x32xf32> to vector<64x8xf32>
    %365 = vector.shape_cast %364 : vector<64x8xf32> to vector<4x16x8xf32>
    %366 = vector.extract_strided_slice %310 {offsets = [0, 24], sizes = [64, 8], strides = [1, 1]} : vector<64x32xf32> to vector<64x8xf32>
    %367 = vector.shape_cast %366 : vector<64x8xf32> to vector<4x16x8xf32>
    "tpu.trace_start"() <{level = 10 : i32, message = "bqe,bke->bqk"}> : () -> ()
    %cst_108 = arith.constant dense<0.000000e+00> : vector<4x16x16xf32>
    %368 = tpu.matmul %363, %365, %cst_108 {dimension_numbers = #tpu.dot_dimension_numbers<[2], [2], [1], [1], [0, 0, 0, 1, 1, 1], [0], [0]>} : vector<4x16x8xf32>, vector<4x16x8xf32>, vector<4x16x16xf32> -> vector<4x16x16xf32>
    "tpu.trace_stop"() : () -> ()
    %cst_109 = arith.constant dense<0xFF800000> : vector<4x16xf32>
    %369 = vector.multi_reduction <maximumf>, %368, %cst_109 [2] : vector<4x16x16xf32> to vector<4x16xf32>
    %370 = vector.shape_cast %369 : vector<4x16xf32> to vector<4x16x1xf32>
    %371 = vector.broadcast %370 : vector<4x16x1xf32> to vector<4x16x16xf32>
    %372 = arith.subf %368, %371 : vector<4x16x16xf32>
    %373 = math.exp %372 : vector<4x16x16xf32>
    %cst_110 = arith.constant dense<0.000000e+00> : vector<4x16xf32>
    %374 = vector.multi_reduction <add>, %373, %cst_110 [2] : vector<4x16x16xf32> to vector<4x16xf32>
    %375 = vector.shape_cast %374 : vector<4x16xf32> to vector<4x16x1xf32>
    %376 = vector.broadcast %375 : vector<4x16x1xf32> to vector<4x16x16xf32>
    %377 = arith.divf %373, %376 : vector<4x16x16xf32>
    "tpu.trace_start"() <{level = 10 : i32, message = "bqk,bke->bqe"}> : () -> ()
    %cst_111 = arith.constant dense<0.000000e+00> : vector<4x16x8xf32>
    %378 = tpu.matmul %377, %367, %cst_111 {dimension_numbers = #tpu.dot_dimension_numbers<[2], [1], [1], [2], [0, 0, 0, 1, 1, 2], [0], [0]>} : vector<4x16x16xf32>, vector<4x16x8xf32>, vector<4x16x8xf32> -> vector<4x16x8xf32>
    "tpu.trace_stop"() : () -> ()
    %379 = tpu.concatenate %327, %344, %361, %378 in 2 : vector<4x16x8xf32>, vector<4x16x8xf32>, vector<4x16x8xf32>, vector<4x16x8xf32> -> vector<4x16x32xf32>
    %380 = vector.shape_cast %379 : vector<4x16x32xf32> to vector<64x32xf32>
    %c360 = arith.constant 360 : index
    %c0_112 = arith.constant 0 : index
    %381 = vector.load %arg1[%c360, %c0_112] : memref<576x128xf32, #tpu.memory_space<vmem>>, vector<32x32xf32>
    %cst_113 = arith.constant dense<0.000000e+00> : vector<64x32xf32>
    %382 = tpu.matmul %380, %381, %cst_113 {dimension_numbers = #tpu.dot_dimension_numbers<[1], [0], [0], [1], [0, 0, 1, 1], [], []>} : vector<64x32xf32>, vector<32x32xf32>, vector<64x32xf32> -> vector<64x32xf32>
    %c392 = arith.constant 392 : index
    %c0_114 = arith.constant 0 : index
    %383 = vector.load %arg1[%c392, %c0_114] : memref<576x128xf32, #tpu.memory_space<vmem>>, vector<1x32xf32>
    %384 = vector.broadcast %383 : vector<1x32xf32> to vector<64x32xf32>
    %385 = arith.addf %382, %384 : vector<64x32xf32>
    %386 = arith.addf %274, %385 : vector<64x32xf32>
    %c544 = arith.constant 544 : index
    %c0_115 = arith.constant 0 : index
    %387 = vector.load %arg1[%c544, %c0_115] : memref<576x128xf32, #tpu.memory_space<vmem>>, vector<1x32xf32>
    %c552 = arith.constant 552 : index
    %c0_116 = arith.constant 0 : index
    %388 = vector.load %arg1[%c552, %c0_116] : memref<576x128xf32, #tpu.memory_space<vmem>>, vector<1x32xf32>
    %cst_117 = arith.constant dense<0.000000e+00> : vector<64xf32>
    %389 = vector.multi_reduction <add>, %386, %cst_117 [1] : vector<64x32xf32> to vector<64xf32>
    %390 = vector.shape_cast %389 : vector<64xf32> to vector<64x1xf32>
    %cst_118 = arith.constant 3.200000e+01 : f32
    %391 = vector.broadcast %cst_118 : f32 to vector<64x1xf32>
    %392 = arith.divf %390, %391 : vector<64x1xf32>
    %393 = vector.broadcast %392 : vector<64x1xf32> to vector<64x32xf32>
    %394 = arith.subf %386, %393 : vector<64x32xf32>
    %395 = arith.mulf %394, %394 : vector<64x32xf32>
    %cst_119 = arith.constant dense<0.000000e+00> : vector<64xf32>
    %396 = vector.multi_reduction <add>, %395, %cst_119 [1] : vector<64x32xf32> to vector<64xf32>
    %397 = vector.shape_cast %396 : vector<64xf32> to vector<64x1xf32>
    %cst_120 = arith.constant 0.0322580636 : f32
    %398 = vector.broadcast %cst_120 : f32 to vector<64x1xf32>
    %399 = arith.mulf %397, %398 : vector<64x1xf32>
    %400 = math.sqrt %399 : vector<64x1xf32>
    %cst_121 = arith.constant 9.99999997E-7 : f32
    %401 = vector.broadcast %cst_121 : f32 to vector<64x1xf32>
    %402 = arith.addf %400, %401 : vector<64x1xf32>
    %403 = vector.broadcast %402 : vector<64x1xf32> to vector<64x32xf32>
    %404 = arith.divf %394, %403 : vector<64x32xf32>
    %405 = vector.broadcast %387 : vector<1x32xf32> to vector<64x32xf32>
    %406 = arith.mulf %405, %404 : vector<64x32xf32>
    %407 = vector.broadcast %388 : vector<1x32xf32> to vector<64x32xf32>
    %408 = arith.addf %406, %407 : vector<64x32xf32>
    %c400 = arith.constant 400 : index
    %c0_122 = arith.constant 0 : index
    %409 = vector.load %arg1[%c400, %c0_122] : memref<576x128xf32, #tpu.memory_space<vmem>>, vector<32x64xf32>
    %cst_123 = arith.constant dense<0.000000e+00> : vector<64x64xf32>
    %410 = tpu.matmul %408, %409, %cst_123 {dimension_numbers = #tpu.dot_dimension_numbers<[1], [0], [0], [1], [0, 0, 1, 1], [], []>} : vector<64x32xf32>, vector<32x64xf32>, vector<64x64xf32> -> vector<64x64xf32>
    %c432 = arith.constant 432 : index
    %c0_124 = arith.constant 0 : index
    %411 = vector.load %arg1[%c432, %c0_124] : memref<576x128xf32, #tpu.memory_space<vmem>>, vector<1x64xf32>
    %412 = vector.broadcast %411 : vector<1x64xf32> to vector<64x64xf32>
    %413 = arith.addf %410, %412 : vector<64x64xf32>
    %cst_125 = arith.constant 0.000000e+00 : f32
    %414 = vector.broadcast %cst_125 : f32 to vector<64x64xf32>
    %415 = arith.maximumf %413, %414 : vector<64x64xf32>
    %c440 = arith.constant 440 : index
    %c0_126 = arith.constant 0 : index
    %416 = vector.load %arg1[%c440, %c0_126] : memref<576x128xf32, #tpu.memory_space<vmem>>, vector<64x32xf32>
    %cst_127 = arith.constant dense<0.000000e+00> : vector<64x32xf32>
    %417 = tpu.matmul %415, %416, %cst_127 {dimension_numbers = #tpu.dot_dimension_numbers<[1], [0], [0], [1], [0, 0, 1, 1], [], []>} : vector<64x64xf32>, vector<64x32xf32>, vector<64x32xf32> -> vector<64x32xf32>
    %c504 = arith.constant 504 : index
    %c0_128 = arith.constant 0 : index
    %418 = vector.load %arg1[%c504, %c0_128] : memref<576x128xf32, #tpu.memory_space<vmem>>, vector<1x32xf32>
    %419 = vector.broadcast %418 : vector<1x32xf32> to vector<64x32xf32>
    %420 = arith.addf %417, %419 : vector<64x32xf32>
    %421 = arith.addf %386, %420 : vector<64x32xf32>
    %c560 = arith.constant 560 : index
    %c0_129 = arith.constant 0 : index
    %422 = vector.load %arg1[%c560, %c0_129] : memref<576x128xf32, #tpu.memory_space<vmem>>, vector<1x32xf32>
    %c568 = arith.constant 568 : index
    %c0_130 = arith.constant 0 : index
    %423 = vector.load %arg1[%c568, %c0_130] : memref<576x128xf32, #tpu.memory_space<vmem>>, vector<1x32xf32>
    %cst_131 = arith.constant dense<0.000000e+00> : vector<64xf32>
    %424 = vector.multi_reduction <add>, %421, %cst_131 [1] : vector<64x32xf32> to vector<64xf32>
    %425 = vector.shape_cast %424 : vector<64xf32> to vector<64x1xf32>
    %cst_132 = arith.constant 3.200000e+01 : f32
    %426 = vector.broadcast %cst_132 : f32 to vector<64x1xf32>
    %427 = arith.divf %425, %426 : vector<64x1xf32>
    %428 = vector.broadcast %427 : vector<64x1xf32> to vector<64x32xf32>
    %429 = arith.subf %421, %428 : vector<64x32xf32>
    %430 = arith.mulf %429, %429 : vector<64x32xf32>
    %cst_133 = arith.constant dense<0.000000e+00> : vector<64xf32>
    %431 = vector.multi_reduction <add>, %430, %cst_133 [1] : vector<64x32xf32> to vector<64xf32>
    %432 = vector.shape_cast %431 : vector<64xf32> to vector<64x1xf32>
    %cst_134 = arith.constant 0.0322580636 : f32
    %433 = vector.broadcast %cst_134 : f32 to vector<64x1xf32>
    %434 = arith.mulf %432, %433 : vector<64x1xf32>
    %435 = math.sqrt %434 : vector<64x1xf32>
    %cst_135 = arith.constant 9.99999997E-7 : f32
    %436 = vector.broadcast %cst_135 : f32 to vector<64x1xf32>
    %437 = arith.addf %435, %436 : vector<64x1xf32>
    %438 = vector.broadcast %437 : vector<64x1xf32> to vector<64x32xf32>
    %439 = arith.divf %429, %438 : vector<64x32xf32>
    %440 = vector.broadcast %422 : vector<1x32xf32> to vector<64x32xf32>
    %441 = arith.mulf %440, %439 : vector<64x32xf32>
    %442 = vector.broadcast %423 : vector<1x32xf32> to vector<64x32xf32>
    %443 = arith.addf %441, %442 : vector<64x32xf32>
    %444 = vector.shape_cast %443 : vector<64x32xf32> to vector<4x16x32xf32>
    %c0_136 = arith.constant 0 : index
    %c0_137 = arith.constant 0 : index
    %c0_138 = arith.constant 0 : index
    %445 = vector.load %arg2[%c0_136, %c0_137, %c0_138] : memref<4x16x32xf32, #tpu.memory_space<vmem>>, vector<4x16x32xf32>
    tpu.vector_store %arg2[%c0_136, %c0_137, %c0_138], %444 {strides = array<i32>} : memref<4x16x32xf32, #tpu.memory_space<vmem>>, vector<4x16x32xf32>,
    return
  }
}

</mosaic_0001>

<bundles_post_ra>
// kernel: _lambda_.1
= control target key start
LH: loop header
LB: loop body
LE: loop exit
PB: predicated region body
PF: predicated region fallthrough
CT: control target
= control target key end

     0   :  { %7 = vsyncpa [#allocation3], 0  ;;  %s10713_s12 = smov [#allocation2]   ;;  %s10714_s14 = smov 128   ;;  %s14547_s0 = inlined_call_operand.vmem [shape: f32[2,4,16,32], index: 0, kind: input, shape index: {}]   ;;  %s14548_s1 = inlined_call_operand.hbm [shape: f32[576,128], index: 1, kind: input, shape index: {}]   ;;  %s14549_s2 = inlined_call_operand.vmem [shape: f32[4,16,32], index: 2, kind: output, shape index: {}]  }
   0x1   :  { %s14_s11 = sshll.u32 %s14548_s1, 4  ;;  %s16_s13 = sshll.u32 %s10713_s12, 4  ;;  %s15_s11 = int_to_ptr.hbm [resolvable:$true] %s14_s11  ;;  %s17_s13 = int_to_ptr.vmem [resolvable:$true] %s16_s13 }
   0x2   :  { %s10715_s15 = smov 8  }
   0x3   :  { %22 = dma.hbm_to_vmem [thread:$0]  %s15_s11, 9216, %s17_s13, [#allocation3], %s10714_s14, %s10714_s14, %s10715_s15  }
   0x4   :  { %10711 = dma.done.wait [#allocation3], 9216  }
   0x5   :  { %10712 = vsyncadd [#allocation3], 4294958080  ;;  %vm37_vm0 = vcmask 261120   ;;  %v33_v0 = vld [vmem:[%s14547_s0 + $0x30] sm:$0xff]  ;;  %v27_v2 = vld [vmem:[%s14547_s0] sm:$0xff]  ;;  %v10716_v16 = vmov 32.0  }
   0x6   :  { %v29_v1 = vld [vmem:[%s14547_s0 + $0x10] sm:$0xff]  ;;  %v56_v3 = vsel %vm37_vm0, %v33_v0, 0.0  ;;  %v38_v5 = vsel %vm37_vm0, %v27_v2, 0.0  ;;  %v31_v6 = vld [vmem:[%s14547_s0 + $0x20] sm:$0xff]  ;;  %v30_v7 = vld [vmem:[%s14547_s0 + $0x18] sm:$0xff]  ;;  %10059 = vrcp.f32 %v10716_v16  ;;  %s10717_s3 = smov 96  }
   0x7   :  { %v44_v4 = vsel %vm37_vm0, %v29_v1, 0.0  ;;  %v28_v8 = vld [vmem:[%s14547_s0 + $0x8] sm:$0xff]  ;;  %57 = vadd.xlane.f32.xlu2 %v56_v3  ;;  %39 = vadd.xlane.f32.xlu0 %v38_v5  ;;  %v50_v9 = vsel %vm37_vm0, %v31_v6, 0.0  ;;  %v47_v10 = vsel %vm37_vm0, %v30_v7, 0.0  ;;  %v34_v13 = vld [vmem:[%s14547_s0 + $0x38] sm:$0xff]  ;;  %s10718_s4 = smov 88  }
   0x8   :  { %45 = vadd.xlane.f32.xlu1 %v44_v4  ;;  %v41_v11 = vsel %vm37_vm0, %v28_v8, 0.0  ;;  %v32_v12 = vld [vmem:[%s14547_s0 + $0x28] sm:$0xff]  ;;  %v59_v15 = vsel %vm37_vm0, %v34_v13, 0.0  ;;  %s10719_s5 = smov 64   ;;  %s10720_s6 = smov 120  }
   0x9   :  { %v53_v14 = vsel %vm37_vm0, %v32_v12, 0.0  ;;  %s10721_s7 = smov 80   ;;  %s10722_s8 = smov 56  }
   0xa   :  { %s10723_s9 = smov 112   ;;  %s10724_s10 = smov 48  }
   0xb   :  { %s10725_s11 = smov 72   ;;  %s10726_s12 = smov 104  }
   0xc   :  { %v10060_v17 = vpop.eup %10059  ;;  %s10727_s13 = smov 40   ;;  %s10728_s14 = smov 16  }
   0xd   :  { %v63_v18 = vmul.f32 32.0, %v10060_v17  ;;  %vm67_vm1 = vweird.f32 %v10060_v17  ;;  %s10729_s16 = smov 24  }
   0xf   :  { %51 = vadd.xlane.f32.xlu2 %v50_v9  ;;  %42 = vadd.xlane.f32.xlu0 %v41_v11  ;;  %v64_v19 = vsub.f32 1.0, %v63_v18  ;;  %v369_v18 = vld [vmem:[#allocation2 + $0x10] sm:$0xff] }
  0x10   :  { %48 = vadd.xlane.f32.xlu1 %v47_v10 }
  0x11   :  { %v65_v20 = vmul.f32 %v10060_v17, %v64_v19  ;;  %v368_v19 = vld [vmem:[#allocation2 + $0x8] sm:$0xff] }
  0x13   :  { %v66_v21 = vadd.f32 %v10060_v17, %v65_v20 }
  0x15   :  { %v10781_v22 = vsel %vm67_vm1, %v10060_v17, %v66_v21 }
  0x16   :  { %14559 = vst [vmem:[#allocation5_spill] sm:$0xff] %v10781_v22 }
  0x17   :  { %60 = vadd.xlane.f32.xlu0 %v59_v15  ;;  %v370_v15 = vld [vmem:[#allocation2 + $0x18] sm:$0xff] }
  0x18   :  { %54 = vadd.xlane.f32.xlu1 %v53_v14  ;;  %409 = vmatpush.msra.mxu0 %v370_v15 }
  0x19   :  { %9764 = vmatpush.msra.mxu3 %v370_v15 }
  0x1a   :  { %410 = vmatpush.msra.mxu0 %v369_v18 }
  0x1b   :  { %9765 = vmatpush.msra.mxu3 %v369_v18 }
  0x1c   :  { %411 = vmatpush.msra.mxu0 %v368_v19 }
  0x1d   :  { %9766 = vmatpush.msra.mxu3 %v368_v19 }
  0x7a   :  { %v58_v23 = vpop.xlane.xlu2 %57  ;;  %v40_v26 = vpop.xlane.xlu0 %39 }
  0x7b   :  { %v46_v24 = vpop.xlane.xlu1 %45  ;;  %v69_v27 = vmul.f32 %v10781_v22, %v40_v26  ;;  %v75_v39 = vmul.f32 %v10781_v22, %v58_v23  ;;  %v367_v26 = vld [vmem:[#allocation2] sm:$0xff] }
  0x7c   :  { %v71_v25 = vmul.f32 %v10781_v22, %v46_v24  ;;  %412 = vmatpush.msra.mxu0 %v367_v26  ;;  %9767 = vmatpush.msra.mxu3 %v367_v26 }
  0x7d   :  { %v10787_v29 = vsub.f32 %v27_v2, %v69_v27  ;;  %v10809_v46 = vsub.f32 %v33_v0, %v75_v39 }
  0x7e   :  { %v10785_v28 = vsub.f32 %v29_v1, %v71_v25 }
  0x7f   :  { %v85_v31 = vmul.f32 %v10787_v29, %v10787_v29  ;;  %v91_v55 = vmul.f32 %v10809_v46, %v10809_v46 }
  0x80   :  { %v87_v30 = vmul.f32 %v10785_v28, %v10785_v28 }
  0x81   :  { %v93_v35 = vsel %vm37_vm0, %v85_v31, 0.0  ;;  %v111_v58 = vsel %vm37_vm0, %v91_v55, 0.0 }
  0x82   :  { %v99_v32 = vsel %vm37_vm0, %v87_v30, 0.0  ;;  %v52_v33 = vpop.xlane.xlu2 %51  ;;  %94 = vadd.xlane.f32.xlu2 %v93_v35  ;;  %v43_v38 = vpop.xlane.xlu0 %42 }
  0x83   :  { %100 = vadd.xlane.f32.xlu1 %v99_v32  ;;  %v49_v34 = vpop.xlane.xlu1 %48  ;;  %v73_v36 = vmul.f32 %v10781_v22, %v52_v33  ;;  %v70_v40 = vmul.f32 %v10781_v22, %v43_v38 }
  0x84   :  { %v72_v37 = vmul.f32 %v10781_v22, %v49_v34 }
  0x85   :  { %v10799_v41 = vsub.f32 %v31_v6, %v73_v36  ;;  %v10803_v43 = vsub.f32 %v28_v8, %v70_v40 }
  0x86   :  { %v10801_v42 = vsub.f32 %v30_v7, %v72_v37 }
  0x87   :  { %v89_v44 = vmul.f32 %v10799_v41, %v10799_v41  ;;  %v86_v47 = vmul.f32 %v10803_v43, %v10803_v43 }
  0x88   :  { %v88_v45 = vmul.f32 %v10801_v42, %v10801_v42 }
  0x89   :  { %v105_v48 = vsel %vm37_vm0, %v89_v44, 0.0  ;;  %v96_v50 = vsel %vm37_vm0, %v86_v47, 0.0 }
  0x8a   :  { %v102_v49 = vsel %vm37_vm0, %v88_v45, 0.0  ;;  %97 = vadd.xlane.f32.xlu0 %v96_v50  ;;  %v61_v52 = vpop.xlane.xlu0 %60 }
  0x8b   :  { %106 = vadd.xlane.f32.xlu1 %v105_v48  ;;  %v55_v51 = vpop.xlane.xlu1 %54  ;;  %103 = vadd.xlane.f32.xlu2 %v102_v49  ;;  %v76_v53 = vmul.f32 %v10781_v22, %v61_v52 }
  0x8c   :  { %v74_v54 = vmul.f32 %v10781_v22, %v55_v51 }
  0x8d   :  { %v10820_v56 = vsub.f32 %v34_v13, %v76_v53 }
  0x8e   :  { %v10822_v57 = vsub.f32 %v32_v12, %v74_v54 }
  0x8f   :  { %v92_v59 = vmul.f32 %v10820_v56, %v10820_v56 }
  0x90   :  { %v90_v61 = vmul.f32 %v10822_v57, %v10822_v57 }
  0x91   :  { %v114_v60 = vsel %vm37_vm0, %v92_v59, 0.0 }
  0x92   :  { %112 = vadd.xlane.f32.xlu0 %v111_v58  ;;  %v108_v62 = vsel %vm37_vm0, %v90_v61, 0.0 }
  0x93   :  { %115 = vadd.xlane.f32.xlu2 %v114_v60 }
  0x9a   :  { %109 = vadd.xlane.f32.xlu0 %v108_v62 }
  0xf5   :  { %v95_v1 = vpop.xlane.xlu2 %94 }
  0xf6   :  { %v101_v63 = vpop.xlane.xlu1 %100  ;;  %v10833_v2 = vmul.f32 0.032258064, %v95_v1 }
  0xf7   :  { %v10831_v0 = vmul.f32 0.032258064, %v101_v63 }
  0xf8   :  { %vm132_vm3 = vcmp.eq.f32.partialorder %v10833_v2, inf  ;;  %v135_v48 = vand.u32 2147483648, %v10833_v2  ;;  %vm134_vm5 = vcmp.eq.f32.partialorder %v10833_v2, 0.0 }
  0xf9   :  { %10061 = vrsqrt.f32 %v10831_v0  ;;  %vm156_vm2 = vcmp.eq.f32.partialorder %v10831_v0, inf  ;;  %v159_v40 = vand.u32 2147483648, %v10831_v0  ;;  %vm158_vm4 = vcmp.eq.f32.partialorder %v10831_v0, 0.0 }
  0xfa   :  { %10063 = vrsqrt.f32 %v10833_v2 }
  0xfd   :  { %v98_v7 = vpop.xlane.xlu0 %97 }
  0xfe   :  { %v107_v3 = vpop.xlane.xlu1 %106  ;;  %v104_v6 = vpop.xlane.xlu2 %103  ;;  %v10842_v11 = vmul.f32 0.032258064, %v98_v7 }
  0xff   :  { %v10062_v4 = vpop.eup %10061  ;;  %v10837_v5 = vmul.f32 0.032258064, %v107_v3  ;;  %v10840_v10 = vmul.f32 0.032258064, %v104_v6 }
 0x100   :  { %v10064_v8 = vpop.eup %10063  ;;  %v150_v9 = vmul.f32 %v10062_v4, %v10831_v0  ;;  %vm144_vm7 = vcmp.eq.f32.partialorder %v10842_v11, inf  ;;  %vm146_vm8 = vcmp.eq.f32.partialorder %v10842_v11, 0.0 }
 0x101   :  { %v126_v12 = vmul.f32 %v10064_v8, %v10833_v2  ;;  %10065 = vrsqrt.f32 %v10837_v5  ;;  %vm180_vm6 = vcmp.eq.f32.partialorder %v10837_v5, inf  ;;  %v183_v18 = vand.u32 2147483648, %v10837_v5 }
 0x102   :  { %v151_v13 = vmul.f32 %v10062_v4, %v150_v9  ;;  %10067 = vrsqrt.f32 %v10840_v10  ;;  %vm168_vm9 = vcmp.eq.f32.partialorder %v10840_v10, inf  ;;  %vm170_vm10 = vcmp.eq.f32.partialorder %v10840_v10, 0.0 }
 0x103   :  { %v127_v14 = vmul.f32 %v10064_v8, %v126_v12  ;;  %10069 = vrsqrt.f32 %v10842_v11  ;;  %vm182_vm14 = vcmp.eq.f32.partialorder %v10837_v5, 0.0 }
 0x104   :  { %v152_v16 = vmul.f32 0.5, %v151_v13 }
 0x105   :  { %v128_v17 = vmul.f32 0.5, %v127_v14  ;;  %v113_v25 = vpop.xlane.xlu0 %112  ;;  %v147_v14 = vand.u32 2147483648, %v10842_v11 }
 0x106   :  { %v153_v20 = vsub.f32 1.5, %v152_v16  ;;  %v116_v24 = vpop.xlane.xlu2 %115  ;;  %v10852_v36 = vmul.f32 0.032258064, %v113_v25 }
 0x107   :  { %v10066_v21 = vpop.eup %10065  ;;  %v129_v23 = vsub.f32 1.5, %v128_v17  ;;  %v10849_v32 = vmul.f32 0.032258064, %v116_v24 }
 0x108   :  { %v10068_v27 = vpop.eup %10067  ;;  %v154_v30 = vmul.f32 %v10062_v4, %v153_v20  ;;  %v174_v31 = vmul.f32 %v10066_v21, %v10837_v5  ;;  %vm204_vm11 = vcmp.eq.f32.partialorder %v10852_v36, inf  ;;  %vm206_vm13 = vcmp.eq.f32.partialorder %v10852_v36, 0.0 }
 0x109   :  { %v10070_v33 = vpop.eup %10069  ;;  %v130_v34 = vmul.f32 %v10064_v8, %v129_v23  ;;  %v162_v35 = vmul.f32 %v10068_v27, %v10840_v10  ;;  %10071 = vrsqrt.f32 %v10849_v32  ;;  %vm216_vm12 = vcmp.eq.f32.partialorder %v10849_v32, inf }
 0x10a   :  { %v155_v37 = vmul.f32 %v154_v30, %v10831_v0  ;;  %v175_v38 = vmul.f32 %v10066_v21, %v174_v31  ;;  %v138_v39 = vmul.f32 %v10070_v33, %v10842_v11  ;;  %10073 = vrsqrt.f32 %v10852_v36 }
 0x10b   :  { %v131_v44 = vmul.f32 %v130_v34, %v10833_v2  ;;  %v163_v45 = vmul.f32 %v10068_v27, %v162_v35  ;;  %v207_v35 = vand.u32 2147483648, %v10852_v36  ;;  %vm218_vm15 = vcmp.eq.f32.partialorder %v10849_v32, 0.0 }
 0x10c   :  { %v157_v47 = vsel %vm156_vm2, %v10831_v0, %v155_v37  ;;  %v139_v49 = vmul.f32 %v10070_v33, %v138_v39  ;;  %v176_v51 = vmul.f32 0.5, %v175_v38 }
 0x10d   :  { %v133_v50 = vsel %vm132_vm3, %v10833_v2, %v131_v44  ;;  %v164_v52 = vmul.f32 0.5, %v163_v45  ;;  %v110_v55 = vpop.xlane.xlu0 %109  ;;  %v160_v59 = vsel %vm158_vm4, %v159_v40, %v157_v47 }
 0x10e   :  { %v140_v53 = vmul.f32 0.5, %v139_v49  ;;  %v136_v58 = vsel %vm134_vm5, %v135_v48, %v133_v50  ;;  %v10867_v62 = vmul.f32 0.032258064, %v110_v55  ;;  %v177_v1 = vsub.f32 1.5, %v176_v51 }
 0x10f   :  { %v165_v54 = vsub.f32 1.5, %v164_v52  ;;  %v10072_v60 = vpop.eup %10071  ;;  %v10869_v63 = vadd.f32 1e-06, %v136_v58  ;;  %v10873_v0 = vadd.f32 1e-06, %v160_v59 }
 0x110   :  { %v141_v61 = vsub.f32 1.5, %v140_v53  ;;  %v210_v4 = vmul.f32 %v10072_v60, %v10849_v32  ;;  %10075 = vrsqrt.f32 %v10867_v62  ;;  %v10074_v2 = vpop.eup %10073  ;;  %v178_v12 = vmul.f32 %v10066_v21, %v177_v1 }
 0x111   :  { %v166_v3 = vmul.f32 %v10068_v27, %v165_v54  ;;  %v198_v9 = vmul.f32 %v10074_v2, %v10852_v36  ;;  %10077 = vrcp.f32 %v10869_v63  ;;  %v171_v21 = vand.u32 2147483648, %v10840_v10 }
 0x112   :  { %v142_v6 = vmul.f32 %v10070_v33, %v141_v61  ;;  %v211_v7 = vmul.f32 %v10072_v60, %v210_v4  ;;  %10079 = vrcp.f32 %v10873_v0  ;;  %v179_v26 = vmul.f32 %v178_v12, %v10837_v5 }
 0x113   :  { %v167_v13 = vmul.f32 %v166_v3, %v10840_v10  ;;  %v199_v17 = vmul.f32 %v10074_v2, %v198_v9  ;;  %v219_v27 = vand.u32 2147483648, %v10849_v32  ;;  %v238_v34 = vand.u32 2147483647, %v10869_v63 }
 0x114   :  { %v143_v8 = vmul.f32 %v142_v6, %v10842_v11  ;;  %v212_v15 = vmul.f32 0.5, %v211_v7  ;;  %v240_v45 = vand.u32 2147483648, %v10869_v63  ;;  %v181_v48 = vsel %vm180_vm6, %v10837_v5, %v179_v26 }
 0x115   :  { %v200_v24 = vmul.f32 0.5, %v199_v17  ;;  %vm234_vm1 = vweird.f32 %v10869_v63  ;;  %vm10916_vm3 = vcmp.eq.f32.partialorder %v238_v34, 8.507059e+37  ;;  %v268_v3 = vand.u32 2147483647, %v10873_v0 }
 0x116   :  { %v145_v16 = vsel %vm144_vm7, %v10842_v11, %v143_v8  ;;  %v10076_v20 = vpop.eup %10075  ;;  %v213_v23 = vsub.f32 1.5, %v212_v15  ;;  %v169_v11 = vsel %vm168_vm9, %v10840_v10, %v167_v13  ;;  %v241_v1 = vor.u32 1.1754944e-38, %v240_v45 }
 0x117   :  { %v148_v19 = vsel %vm146_vm8, %v147_v14, %v145_v16  ;;  %v186_v30 = vmul.f32 %v10076_v20, %v10867_v62  ;;  %v10078_v31 = vpop.eup %10077  ;;  %v201_v33 = vsub.f32 1.5, %v200_v24  ;;  %v172_v47 = vsel %vm170_vm10, %v171_v21, %v169_v11  ;;  %v10937_v14 = vld [vmem:[#allocation2 + $0xc0] ss:$0 sm:$0xff]  ;;  %v10950_v21 = vld [vmem:[#allocation2 + $0xc8] ss:$0 sm:$0xff] }
 0x118   :  { %v10889_v25 = vadd.f32 1e-06, %v148_v19  ;;  %v230_v38 = vmul.f32 %v10078_v31, %v10869_v63  ;;  %v10902_v39 = vpop.eup %10079  ;;  %v214_v40 = vmul.f32 %v10072_v60, %v213_v23  ;;  %vm235_vm2 = vweird.f32 %v10078_v31 }
 0x119   :  { %v187_v37 = vmul.f32 %v10076_v20, %v186_v30  ;;  %v202_v44 = vmul.f32 %v10074_v2, %v201_v33  ;;  %v260_v51 = vmul.f32 %v10902_v39, %v10873_v0  ;;  %v10920_v58 = vadd.f32 1e-06, %v172_v47  ;;  %vm236_vm4 = vmor %vm234_vm1, %vm235_vm2 }
 0x11a   :  { %10081 = vrcp.f32 %v10889_v25  ;;  %v231_v50 = vsub.f32 1.0, %v230_v38  ;;  %v215_v60 = vmul.f32 %v214_v40, %v10849_v32  ;;  %v253_v2 = vand.u32 2147483647, %v10889_v25 }
 0x11b   :  { %v188_v49 = vmul.f32 0.5, %v187_v37  ;;  %v203_v52 = vmul.f32 %v202_v44, %v10852_v36  ;;  %v261_v55 = vsub.f32 1.0, %v260_v51  ;;  %v270_v7 = vand.u32 2147483648, %v10873_v0 }
 0x11c   :  { %v232_v54 = vmul.f32 %v10078_v31, %v231_v50  ;;  %10083 = vrcp.f32 %v10920_v58  ;;  %v255_v16 = vand.u32 2147483648, %v10889_v25  ;;  %v217_v63 = vsel %vm216_vm12, %v10849_v32, %v215_v60 }
 0x11d   :  { %v189_v10 = vsub.f32 1.5, %v188_v49  ;;  %v205_v61 = vsel %vm204_vm11, %v10852_v36, %v203_v52  ;;  %v262_v9 = vmul.f32 %v10902_v39, %v261_v55  ;;  %vm265_vm5 = vweird.f32 %v10902_v39 }
 0x11e   :  { %v233_v4 = vadd.f32 %v10078_v31, %v232_v54  ;;  %v208_v12 = vsel %vm206_vm13, %v207_v35, %v205_v61  ;;  %vm192_vm7 = vcmp.eq.f32.partialorder %v10867_v62, inf  ;;  %vm249_vm8 = vweird.f32 %v10889_v25 }
 0x11f   :  { %v190_v8 = vmul.f32 %v10076_v20, %v189_v10  ;;  %v10940_v17 = vadd.f32 1e-06, %v208_v12  ;;  %v263_v36 = vadd.f32 %v10902_v39, %v262_v9  ;;  %vm264_vm9 = vweird.f32 %v10873_v0 }
 0x120   :  { %v10082_v59 = vpop.eup %10081  ;;  %v237_v13 = vsel %vm236_vm4, %v10078_v31, %v233_v4  ;;  %vm10958_vm10 = vmor %vm264_vm9, %vm265_vm5  ;;  %v184_v31 = vsel %vm182_vm14, %v183_v18, %v181_v48  ;;  %vm254_vm12 = vcmp.eq.f32.partialorder %v253_v2, 8.507059e+37  ;;  %v256_v0 = vor.u32 1.1754944e-38, %v255_v16 }
 0x121   :  { %v245_v6 = vmul.f32 %v10082_v59, %v10889_v25  ;;  %v242_v19 = vsel %vm10916_vm3, %v241_v1, %v237_v13  ;;  %vm250_vm6 = vweird.f32 %v10082_v59  ;;  %10085 = vrcp.f32 %v10940_v17 }
 0x122   :  { %v243_v20 = vmul.f32 %v242_v19, %v10787_v29  ;;  %v191_v24 = vmul.f32 %v190_v8, %v10867_v62  ;;  %v220_v29 = vsel %vm218_vm15, %v219_v27, %v217_v63  ;;  %v10084_v25 = vpop.eup %10083  ;;  %vm251_vm11 = vmor %vm249_vm8, %vm250_vm6  ;;  %v267_v33 = vsel %vm10958_vm10, %v10902_v39, %v263_v36 }
 0x123   :  { %v246_v15 = vsub.f32 1.0, %v245_v6  ;;  %vm269_vm13 = vcmp.eq.f32.partialorder %v268_v3, 8.507059e+37  ;;  %v271_v37 = vor.u32 1.1754944e-38, %v270_v7  ;;  %v275_v32 = vmul.f32 %v10084_v25, %v10920_v58 }
 0x124   :  { %v350_v26 = vmul.f32 %v10937_v14, %v243_v20  ;;  %v193_v5 = vsel %vm192_vm7, %v10867_v62, %v191_v24  ;;  %v10978_v27 = vadd.f32 1e-06, %v220_v29  ;;  %v10980_v38 = vadd.f32 1e-06, %v184_v31 }
 0x125   :  { %v247_v23 = vmul.f32 %v10082_v59, %v246_v15  ;;  %v195_v44 = vand.u32 2147483648, %v10867_v62  ;;  %v272_v45 = vsel %vm269_vm13, %v271_v37, %v267_v33  ;;  %v276_v47 = vsub.f32 1.0, %v275_v32 }
 0x126   :  { %v359_v34 = vadd.f32 %v10950_v21, %v350_v26  ;;  %vm194_vm14 = vcmp.eq.f32.partialorder %v10867_v62, 0.0  ;;  %vm279_vm15 = vweird.f32 %v10920_v58  ;;  %10087 = vrcp.f32 %v10978_v27 }
 0x127   :  { %v248_v11 = vadd.f32 %v10082_v59, %v247_v23  ;;  %v10086_v40 = vpop.eup %10085  ;;  %v277_v50 = vmul.f32 %v10084_v25, %v276_v47  ;;  %v283_v51 = vand.u32 2147483647, %v10920_v58  ;;  %v196_v52 = vsel %vm194_vm14, %v195_v44, %v193_v5 }
 0x128   :  { %9380 = vmatmul.msk.f32.vlgmr.msra.gmra.mxu0 %vm37_vm0, %v359_v34  ;;  %v320_v48 = vmul.f32 %v10086_v40, %v10940_v17  ;;  %v273_v53 = vmul.f32 %v272_v45, %v10785_v28  ;;  %vm280_vm1 = vweird.f32 %v10084_v25  ;;  %10089 = vrcp.f32 %v10980_v38 }
 0x129   :  { %v252_v35 = vsel %vm251_vm11, %v10082_v59, %v248_v11  ;;  %v330_v62 = vand.u32 2147483648, %v10940_v17  ;;  %v278_v54 = vadd.f32 %v10084_v25, %v277_v50  ;;  %v285_v55 = vand.u32 2147483648, %v10920_v58  ;;  %vm11002_vm4 = vmor %vm279_vm15, %vm280_vm1 }
 0x12a   :  { %v257_v18 = vsel %vm254_vm12, %v256_v0, %v252_v35  ;;  %v321_v10 = vsub.f32 1.0, %v320_v48  ;;  %vm325_vm2 = vweird.f32 %v10086_v40  ;;  %v328_v60 = vand.u32 2147483647, %v10940_v17 }
 0x12b   :  { %v258_v39 = vmul.f32 %v257_v18, %v10803_v43  ;;  %v10997_v61 = vadd.f32 1e-06, %v196_v52  ;;  %vm324_vm3 = vweird.f32 %v10940_v17  ;;  %v352_v3 = vmul.f32 %v10937_v14, %v273_v53 }
 0x12c   :  { %v322_v59 = vmul.f32 %v10086_v40, %v321_v10  ;;  %v10088_v1 = vpop.eup %10087  ;;  %v282_v6 = vsel %vm11002_vm4, %v10084_v25, %v278_v54  ;;  %vm326_vm5 = vmor %vm324_vm3, %vm325_vm2  ;;  %v331_v2 = vor.u32 1.1754944e-38, %v330_v62  ;;  %v286_v7 = vor.u32 1.1754944e-38, %v285_v55  ;;  %v10037_v54 = vld [vmem:[#allocation2 + $0x20] ss:$0 sm:$0xff] }
 0x12d   :  { %v351_v49 = vmul.f32 %v10937_v14, %v258_v39  ;;  %10091 = vrcp.f32 %v10997_v61  ;;  %v335_v58 = vmul.f32 %v10088_v1, %v10978_v27  ;;  %vm329_vm6 = vcmp.eq.f32.partialorder %v328_v60, 8.507059e+37 }
 0x12e   :  { %v323_v4 = vadd.f32 %v10086_v40, %v322_v59  ;;  %v10090_v8 = vpop.eup %10089  ;;  %vm284_vm7 = vcmp.eq.f32.partialorder %v283_v51, 8.507059e+37  ;;  %v361_v17 = vadd.f32 %v10950_v21, %v352_v3  ;;  %vm339_vm8 = vweird.f32 %v10978_v27 }
 0x12f   :  { %v360_v43 = vadd.f32 %v10950_v21, %v351_v49  ;;  %v287_v13 = vsel %vm284_vm7, %v286_v7, %v282_v6  ;;  %v336_v15 = vsub.f32 1.0, %v335_v58  ;;  %v290_v16 = vmul.f32 %v10090_v8, %v10980_v38 }
 0x130   :  { %v327_v9 = vsel %vm326_vm5, %v10086_v40, %v323_v4  ;;  %v345_v19 = vand.u32 2147483648, %v10978_v27  ;;  %vm340_vm9 = vweird.f32 %v10088_v1  ;;  %v343_v20 = vand.u32 2147483647, %v10978_v27 }
 0x131   :  { %9381 = vmatmul.msk.f32.gmra.mxu0 %vm37_vm0, %v360_v43  ;;  %v332_v12 = vsel %vm329_vm6, %v331_v2, %v327_v9  ;;  %v337_v36 = vmul.f32 %v10088_v1, %v336_v15  ;;  %v291_v23 = vsub.f32 1.0, %v290_v16  ;;  %v288_v11 = vmul.f32 %v287_v13, %v10801_v42  ;;  %vm341_vm11 = vmor %vm339_vm8, %vm340_vm9 }
 0x132   :  { %v333_v63 = vmul.f32 %v332_v12, %v10809_v46  ;;  %v298_v30 = vand.u32 2147483647, %v10980_v38  ;;  %v300_v29 = vand.u32 2147483648, %v10980_v38  ;;  %vm295_vm10 = vweird.f32 %v10090_v8 }
 0x133   :  { %v10092_v24 = vpop.eup %10091  ;;  %v338_v31 = vadd.f32 %v10088_v1, %v337_v36  ;;  %v292_v46 = vmul.f32 %v10090_v8, %v291_v23  ;;  %v346_v33 = vor.u32 1.1754944e-38, %v345_v19  ;;  %vm294_vm12 = vweird.f32 %v10980_v38 }
 0x134   :  { %v356_v26 = vmul.f32 %v10937_v14, %v333_v63  ;;  %v305_v25 = vmul.f32 %v10092_v24, %v10997_v61  ;;  %vm344_vm13 = vcmp.eq.f32.partialorder %v343_v20, 8.507059e+37  ;;  %vm296_vm14 = vmor %vm294_vm12, %vm295_vm10  ;;  %vm299_vm15 = vcmp.eq.f32.partialorder %v298_v30, 8.507059e+37 }
 0x135   :  { %v342_v42 = vsel %vm341_vm11, %v10088_v1, %v338_v31  ;;  %v293_v34 = vadd.f32 %v10090_v8, %v292_v46  ;;  %v301_v32 = vor.u32 1.1754944e-38, %v300_v29  ;;  %v353_v5 = vmul.f32 %v10937_v14, %v288_v11 }
 0x136   :  { %v365_v0 = vadd.f32 %v10950_v21, %v356_v26  ;;  %v306_v35 = vsub.f32 1.0, %v305_v25  ;;  %v347_v37 = vsel %vm344_vm13, %v346_v33, %v342_v42  ;;  %vm310_vm1 = vweird.f32 %v10092_v24 }
 0x137   :  { %v348_v18 = vmul.f32 %v347_v37, %v10820_v56  ;;  %v297_v27 = vsel %vm296_vm14, %v10090_v8, %v293_v34  ;;  %v315_v45 = vand.u32 2147483648, %v10997_v61  ;;  %v362_v47 = vadd.f32 %v10950_v21, %v353_v5 }
 0x138   :  { %9386 = vmatmul.msk.f32.vlgmr.msra.gmra.mxu3 %vm37_vm0, %v365_v0  ;;  %v307_v40 = vmul.f32 %v10092_v24, %v306_v35  ;;  %v302_v44 = vsel %vm299_vm15, %v301_v32, %v297_v27  ;;  %vm309_vm2 = vweird.f32 %v10997_v61  ;;  %v313_v49 = vand.u32 2147483647, %v10997_v61 }
 0x139   :  { %9382 = vmatmul.msk.f32.gmra.mxu0 %vm37_vm0, %v361_v17  ;;  %v357_v38 = vmul.f32 %v10937_v14, %v348_v18  ;;  %v303_v48 = vmul.f32 %v302_v44, %v10799_v41  ;;  %vm311_vm3 = vmor %vm309_vm2, %vm310_vm1  ;;  %v316_v51 = vor.u32 1.1754944e-38, %v315_v45  ;;  %vm444_vm5 = vcmask 64512  }
 0x13a   :  { %v308_v39 = vadd.f32 %v10092_v24, %v307_v40  ;;  %vm314_vm4 = vcmp.eq.f32.partialorder %v313_v49, 8.507059e+37  ;;  %vm587_vm6 = vcmask 130048  }
 0x13b   :  { %v366_v50 = vadd.f32 %v10950_v21, %v357_v38  ;;  %v354_v52 = vmul.f32 %v10937_v14, %v303_v48 }
 0x13c   :  { %v312_v56 = vsel %vm311_vm3, %v10092_v24, %v308_v39 }
 0x13d   :  { %v317_v53 = vsel %vm314_vm4, %v316_v51, %v312_v56  ;;  %v363_v10 = vadd.f32 %v10950_v21, %v354_v52 }
 0x13e   :  { %v318_v41 = vmul.f32 %v317_v53, %v10822_v57 }
 0x140   :  { %9387 = vmatmul.msk.f32.gmra.mxu3 %vm37_vm0, %v366_v50  ;;  %v355_v43 = vmul.f32 %v10937_v14, %v318_v41 }
 0x141   :  { %9383 = vmatmul.msk.f32.gmra.mxu0 %vm37_vm0, %v362_v47 }
 0x142   :  { %v364_v62 = vadd.f32 %v10950_v21, %v355_v43 }
 0x149   :  { %9384 = vmatmul.msk.f32.gmra.mxu0 %vm37_vm0, %v363_v10 }
 0x151   :  { %9385 = vmatmul.msk.f32.gmra.mxu0 %vm37_vm0, %v364_v62 }
 0x1a5   :  { %v414_v55 = vpop.f32.mrf.mxu0 }
 0x1a6   :  { %v11047_v59 = vadd.f32 %v10037_v54, %v414_v55 }
 0x1a8   :  { %440 = vrot.lane.b32.xlu2 %v11047_v59, %s10717_s3 }
 0x1ae   :  { %v417_v60 = vpop.f32.mrf.mxu0 }
 0x1af   :  { %v11051_v61 = vadd.f32 %v10037_v54, %v417_v60 }
 0x1b1   :  { %442 = vrot.lane.b32.xlu1 %v11051_v61, %s10717_s3  ;;  %v11129_v32 = vpack.i.bf16 %v11047_v59, %v11051_v61 }
 0x1b6   :  { %v420_v57 = vpop.f32.mrf.mxu0 }
 0x1b7   :  { %v11055_v14 = vadd.f32 %v10037_v54, %v420_v57 }
 0x1b9   :  { %478 = vrot.lane.b32.xlu2 %v11055_v14, %s10717_s3 }
 0x1bb   :  { %v432_v21 = vpop.f32.mrf.mxu3 }
 0x1bc   :  { %v11059_v1 = vadd.f32 %v10037_v54, %v432_v21 }
 0x1be   :  { %v423_v28 = vpop.f32.mrf.mxu0 }
 0x1bf   :  { %v11061_v3 = vadd.f32 %v10037_v54, %v423_v28 }
 0x1c1   :  { %480 = vrot.lane.b32.xlu0 %v11061_v3, %s10717_s3  ;;  %552 = vrot.lane.b32.xlu2 %v11059_v1, %s10717_s3  ;;  %v11121_v37 = vpack.i.bf16 %v11055_v14, %v11061_v3 }
 0x1c3   :  { %v435_v4 = vpop.f32.mrf.mxu3 }
 0x1c4   :  { %v11067_v6 = vadd.f32 %v10037_v54, %v435_v4 }
 0x1c6   :  { %v426_v2 = vpop.f32.mrf.mxu0  ;;  %554 = vrot.lane.b32.xlu1 %v11067_v6, %s10717_s3  ;;  %v11133_v5 = vpack.i.bf16 %v11059_v1, %v11067_v6 }
 0x1c7   :  { %v11071_v7 = vadd.f32 %v10037_v54, %v426_v2 }
 0x1ce   :  { %v429_v58 = vpop.f32.mrf.mxu0  ;;  %515 = vrot.lane.b32.xlu1 %v11071_v7, %s10717_s3 }
 0x1cf   :  { %v11073_v8 = vadd.f32 %v10037_v54, %v429_v58 }
 0x1d1   :  { %517 = vrot.lane.b32.xlu0 %v11073_v8, %s10717_s3  ;;  %v11147_v18 = vpack.i.bf16 %v11071_v7, %v11073_v8 }
 0x202   :  { %v441_v12 = vpop.permute.xlu2 %440 }
 0x213   :  { %v479_v15 = vpop.permute.xlu2 %478 }
 0x21b   :  { %v553_v17 = vpop.permute.xlu2 %552 }
 0x223   :  { %v443_v9 = vpop.permute.xlu1 %442 }
 0x224   :  { %9388 = vmatpush.xpose.msk.msrb.mxu3 %vm444_vm5, %v443_v9 }
 0x228   :  { %9389 = vmatpush.xpose.msk.msrb.mxu3 %vm444_vm5, %v441_v12 }
 0x22b   :  { %9390 = vmatmul.msk.f32.vlgmr.msrb.gmra.mxu3 %vm444_vm5, %v11047_v59 }
 0x233   :  { %9391 = vmatmul.msk.f32.gmra.mxu3 %vm444_vm5, %v11051_v61  ;;  %v481_v13 = vpop.permute.xlu0 %480 }
 0x234   :  { %9392 = vmatpush.xpose.msk.msra.mxu3 %vm444_vm5, %v481_v13 }
 0x238   :  { %9393 = vmatpush.xpose.msk.msra.mxu3 %vm444_vm5, %v479_v15  ;;  %v555_v16 = vpop.permute.xlu1 %554 }
 0x239   :  { %9400 = vmatpush.xpose.msk.msra.mxu1 %vm444_vm5, %v555_v16 }
 0x23b   :  { %9394 = vmatmul.msk.f32.vlgmr.msra.gmra.mxu3 %vm444_vm5, %v11055_v14 }
 0x23d   :  { %9401 = vmatpush.xpose.msk.msra.mxu1 %vm444_vm5, %v553_v17 }
 0x240   :  { %9402 = vmatmul.msk.f32.vlgmr.msra.gmra.mxu1 %vm444_vm5, %v11059_v1  ;;  %v516_v19 = vpop.permute.xlu1 %515 }
 0x243   :  { %9395 = vmatmul.msk.f32.gmra.mxu3 %vm444_vm5, %v11061_v3  ;;  %v518_v63 = vpop.permute.xlu0 %517 }
 0x244   :  { %9396 = vmatpush.xpose.msk.msrb.mxu3 %vm444_vm5, %v518_v63 }
 0x248   :  { %9397 = vmatpush.xpose.msk.msrb.mxu3 %vm444_vm5, %v516_v19  ;;  %9403 = vmatmul.msk.f32.gmra.mxu1 %vm444_vm5, %v11067_v6 }
 0x24b   :  { %9398 = vmatmul.msk.f32.vlgmr.msrb.gmra.mxu3 %vm444_vm5, %v11071_v7 }
 0x253   :  { %9399 = vmatmul.msk.f32.gmra.mxu3 %vm444_vm5, %v11073_v8 }
 0x2ae   :  { %v470_v36 = vpop.f32.mrf.mxu3 }
 0x2af   :  { %v588_v20 = vsel %vm587_vm6, %v470_v36, -inf }
 0x2b0   :  { %589 = vmax.xlane.f32.xlu0 %v588_v20 }
 0x2b6   :  { %v473_v23 = vpop.f32.mrf.mxu3 }
 0x2b7   :  { %v591_v24 = vsel %vm587_vm6, %v473_v23, -inf }
 0x2b8   :  { %592 = vmax.xlane.f32.xlu1 %v591_v24 }
 0x2bd   :  { %v581_v11 = vpop.f32.mrf.mxu1 }
 0x2be   :  { %v11105_v26 = vpop.f32.mrf.mxu3  ;;  %v606_v30 = vsel %vm587_vm6, %v581_v11, -inf }
 0x2bf   :  { %607 = vmax.xlane.f32.xlu2 %v606_v30  ;;  %v594_v25 = vsel %vm587_vm6, %v11105_v26, -inf }
 0x2c5   :  { %v584_v31 = vpop.f32.mrf.mxu1 }
 0x2c6   :  { %v11108_v29 = vpop.f32.mrf.mxu3  ;;  %v609_v46 = vsel %vm587_vm6, %v584_v31, -inf }
 0x2c7   :  { %610 = vmax.xlane.f32.xlu0 %v609_v46  ;;  %595 = vmax.xlane.f32.xlu2 %v594_v25  ;;  %v597_v42 = vsel %vm587_vm6, %v11108_v29, -inf }
 0x2ce   :  { %v544_v0 = vpop.f32.mrf.mxu3 }
 0x2cf   :  { %v600_v33 = vsel %vm587_vm6, %v544_v0, -inf  ;;  %598 = vmax.xlane.f32.xlu0 %v597_v42 }
 0x2d0   :  { %601 = vmax.xlane.f32.xlu1 %v600_v33 }
 0x2d6   :  { %v547_v34 = vpop.f32.mrf.mxu3 }
 0x2d7   :  { %v603_v35 = vsel %vm587_vm6, %v547_v34, -inf }
 0x2d8   :  { %604 = vmax.xlane.f32.xlu2 %v603_v35 }
 0x2e3   :  { %926 = vrot.lane.b32.xlu0 %v11051_v61, %s10718_s4 }
 0x2e9   :  { %9791 = vrot.lane.b32.xlu1 %v11121_v37, %s10719_s5 }
 0x2eb   :  { %920 = vrot.lane.b32.xlu0 %v11047_v59, %s10720_s6 }
 0x2f0   :  { %9786 = vrot.lane.b32.xlu2 %v11129_v32, %s10719_s5 }
 0x2f1   :  { %9796 = vrot.lane.b32.xlu1 %v11133_v5, %s10719_s5 }
 0x2f3   :  { %1004 = vrot.lane.b32.xlu0 %v11073_v8, %s10718_s4 }
 0x2f9   :  { %924 = vrot.lane.b32.xlu1 %v11047_v59, %s10718_s4 }
 0x2fb   :  { %1002 = vrot.lane.b32.xlu0 %v11071_v7, %s10718_s4 }
 0x301   :  { %9801 = vrot.lane.b32.xlu1 %v11147_v18, %s10719_s5 }
 0x303   :  { %965 = vrot.lane.b32.xlu0 %v11061_v3, %s10718_s4 }
 0x309   :  { %922 = vrot.lane.b32.xlu1 %v11051_v61, %s10720_s6 }
 0x323   :  { %v590_v27 = vpop.xlane.xlu0 %589 }
 0x324   :  { %v612_v40 = vsub.f32 %v470_v36, %v590_v27 }
 0x326   :  { %v620_v44 = vmul.f32 1.442695, %v612_v40 }
 0x328   :  { %10093 = vpow2.f32 %v620_v44 }
 0x32b   :  { %v593_v38 = vpop.xlane.xlu1 %592 }
 0x32c   :  { %v613_v39 = vsub.f32 %v473_v23, %v593_v38 }
 0x32e   :  { %v622_v45 = vmul.f32 1.442695, %v613_v39  ;;  %v11155_v47 = vpop.eup %10093 }
 0x32f   :  { %v636_v48 = vsel %vm587_vm6, %v11155_v47, 0.0 }
 0x330   :  { %10095 = vpow2.f32 %v622_v45 }
 0x332   :  { %v608_v49 = vpop.xlane.xlu2 %607 }
 0x333   :  { %637 = vadd.xlane.f32.xlu1 %v636_v48  ;;  %v618_v50 = vsub.f32 %v581_v11, %v608_v49  ;;  %v9810_v49 = vpack.i.bf16 %v11061_v3, %v11073_v8 }
 0x335   :  { %v632_v51 = vmul.f32 1.442695, %v618_v50 }
 0x336   :  { %v11159_v56 = vpop.eup %10095 }
 0x337   :  { %v639_v52 = vsel %vm587_vm6, %v11159_v56, 0.0  ;;  %10097 = vpow2.f32 %v632_v51 }
 0x338   :  { %640 = vadd.xlane.f32.xlu2 %v639_v52 }
 0x33a   :  { %v611_v53 = vpop.xlane.xlu0 %610  ;;  %v596_v10 = vpop.xlane.xlu2 %595 }
 0x33b   :  { %v619_v41 = vsub.f32 %v584_v31, %v611_v53  ;;  %v614_v54 = vsub.f32 %v11105_v26, %v596_v10 }
 0x33d   :  { %v11163_v43 = vpop.eup %10097  ;;  %v634_v62 = vmul.f32 1.442695, %v619_v41  ;;  %v624_v60 = vmul.f32 1.442695, %v614_v54  ;;  %v9815_v41 = vpack.i.bf16 %v11055_v14, %v11071_v7 }
 0x33e   :  { %v654_v55 = vsel %vm587_vm6, %v11163_v43, 0.0 }
 0x33f   :  { %655 = vadd.xlane.f32.xlu0 %v654_v55  ;;  %10099 = vpow2.f32 %v634_v62 }
 0x340   :  { %10101 = vpow2.f32 %v624_v60 }
 0x342   :  { %v599_v15 = vpop.xlane.xlu0 %598 }
 0x343   :  { %v602_v57 = vpop.xlane.xlu1 %601  ;;  %v615_v33 = vsub.f32 %v11108_v29, %v599_v15 }
 0x344   :  { %v616_v21 = vsub.f32 %v544_v0, %v602_v57 }
 0x345   :  { %v11168_v28 = vpop.eup %10099  ;;  %v626_v35 = vmul.f32 1.442695, %v615_v33 }
 0x346   :  { %v657_v4 = vsel %vm587_vm6, %v11168_v28, 0.0  ;;  %v628_v2 = vmul.f32 1.442695, %v616_v21  ;;  %v11174_v12 = vpop.eup %10101 }
 0x347   :  { %658 = vadd.xlane.f32.xlu0 %v657_v4  ;;  %v642_v16 = vsel %vm587_vm6, %v11174_v12, 0.0 }
 0x348   :  { %10103 = vpow2.f32 %v628_v2 }
 0x34b   :  { %v605_v58 = vpop.xlane.xlu2 %604 }
 0x34c   :  { %v617_v9 = vsub.f32 %v547_v34, %v605_v58  ;;  %998 = vrot.lane.b32.xlu1 %v11071_v7, %s10720_s6 }
 0x34e   :  { %v630_v13 = vmul.f32 1.442695, %v617_v9  ;;  %v11178_v19 = vpop.eup %10103 }
 0x34f   :  { %643 = vadd.xlane.f32.xlu0 %v642_v16  ;;  %v648_v26 = vsel %vm587_vm6, %v11178_v19, 0.0 }
 0x350   :  { %10105 = vpow2.f32 %v630_v13 }
 0x351   :  { %10107 = vpow2.f32 %v626_v35 }
 0x353   :  { %v9787_v17 = vpop.permute.xlu2 %9786 }
 0x354   :  { %v9788_v63 = vunpack.i.l.bf16 %v9787_v17  ;;  %v9789_v20 = vunpack.i.h.bf16 %v9787_v17 }
 0x355   :  { %v927_v23 = vpop.permute.xlu0 %926 }
 0x356   :  { %v11180_v36 = vpop.eup %10105  ;;  %806 = vmatpush.msra.mxu2 %v9788_v63 }
 0x357   :  { %v651_v24 = vsel %vm587_vm6, %v11180_v36, 0.0  ;;  %649 = vadd.xlane.f32.xlu0 %v648_v26  ;;  %v11199_v44 = vpop.eup %10107 }
 0x358   :  { %652 = vadd.xlane.f32.xlu2 %v651_v24  ;;  %807 = vmatpush.msra.mxu2 %v9789_v20  ;;  %v645_v39 = vsel %vm587_vm6, %v11199_v44, 0.0 }
 0x35b   :  { %v9792_v11 = vpop.permute.xlu1 %9791 }
 0x35c   :  { %v9793_v30 = vunpack.i.l.bf16 %v9792_v11  ;;  %v9794_v31 = vunpack.i.h.bf16 %v9792_v11 }
 0x35d   :  { %v11186_v46 = vpop.permute.xlu0 %920 }
 0x35e   :  { %841 = vmatpush.msra.mxu3 %v9793_v30 }
 0x360   :  { %842 = vmatpush.msra.mxu3 %v9794_v31 }
 0x362   :  { %9412 = vmatpush.xpose.msk.msrb.mxu3 %vm444_vm5, %v927_v23 }
 0x363   :  { %v9797_v25 = vpop.permute.xlu1 %9796 }
 0x364   :  { %v9798_v0 = vunpack.i.l.bf16 %v9797_v25  ;;  %v9799_v42 = vunpack.i.h.bf16 %v9797_v25 }
 0x365   :  { %v11190_v34 = vpop.permute.xlu0 %1004 }
 0x366   :  { %911 = vmatpush.msrb.mxu2 %v9798_v0 }
 0x368   :  { %912 = vmatpush.msrb.mxu2 %v9799_v42 }
 0x36b   :  { %v925_v27 = vpop.permute.xlu1 %924  ;;  %1000 = vrot.lane.b32.xlu0 %v11073_v8, %s10720_s6 }
 0x36c   :  { %9413 = vmatpush.xpose.msk.msrb.mxu3 %vm444_vm5, %v925_v27 }
 0x36d   :  { %v11195_v40 = vpop.permute.xlu0 %1002 }
 0x370   :  { %963 = vrot.lane.b32.xlu2 %v11055_v14, %s10718_s4 }
 0x373   :  { %v9802_v29 = vpop.permute.xlu1 %9801  ;;  %1041 = vrot.lane.b32.xlu0 %v11059_v1, %s10718_s4 }
 0x374   :  { %v9803_v38 = vunpack.i.l.bf16 %v9802_v29  ;;  %v9804_v45 = vunpack.i.h.bf16 %v9802_v29 }
 0x375   :  { %v966_v48 = vpop.permute.xlu0 %965 }
 0x376   :  { %876 = vmatpush.msrb.mxu1 %v9803_v38  ;;  %646 = vadd.xlane.f32.xlu1 %v645_v39 }
 0x378   :  { %877 = vmatpush.msrb.mxu1 %v9804_v45  ;;  %1039 = vrot.lane.b32.xlu2 %v11067_v6, %s10720_s6 }
 0x37a   :  { %9416 = vmatpush.xpose.msk.msra.mxu1 %vm444_vm5, %v966_v48 }
 0x37b   :  { %1037 = vrot.lane.b32.xlu0 %v11059_v1, %s10720_s6  ;;  %v11219_v50 = vpop.permute.xlu1 %922 }
 0x380   :  { %1414 = vrot.lane.b32.xlu2 %v11051_v61, %s10721_s7 }
 0x383   :  { %9811 = vrot.lane.b32.xlu0 %v9810_v49, %s10722_s8 }
 0x38f   :  { %959 = vrot.lane.b32.xlu1 %v11055_v14, %s10720_s6 }
 0x397   :  { %1043 = vrot.lane.b32.xlu1 %v11067_v6, %s10718_s4 }
 0x39f   :  { %961 = vrot.lane.b32.xlu1 %v11061_v3, %s10720_s6 }
 0x3a6   :  { %v638_v51 = vpop.xlane.xlu1 %637 }
 0x3a7   :  { %10109 = vrcp.f32 %v638_v51  ;;  %9806 = vrot.lane.b32.xlu1 %v11129_v32, %s10722_s8  ;;  %v671_v54 = vand.u32 2147483648, %v638_v51  ;;  %v669_v57 = vand.u32 2147483647, %v638_v51  ;;  %vm665_vm8 = vweird.f32 %v638_v51 }
 0x3a9   :  { %v672_v9 = vor.u32 1.1754944e-38, %v671_v54  ;;  %vm670_vm10 = vcmp.eq.f32.partialorder %v669_v57, 8.507059e+37 }
 0x3ab   :  { %v641_v52 = vpop.xlane.xlu2 %640 }
 0x3ac   :  { %10111 = vrcp.f32 %v641_v52  ;;  %v686_v17 = vand.u32 2147483648, %v641_v52  ;;  %v684_v20 = vand.u32 2147483647, %v641_v52  ;;  %vm680_vm12 = vweird.f32 %v641_v52 }
 0x3ad   :  { %v10110_v53 = vpop.eup %10109 }
 0x3ae   :  { %v661_v10 = vmul.f32 %v10110_v53, %v638_v51  ;;  %vm666_vm7 = vweird.f32 %v10110_v53  ;;  %v687_v11 = vor.u32 1.1754944e-38, %v686_v17  ;;  %vm685_vm14 = vcmp.eq.f32.partialorder %v684_v20, 8.507059e+37 }
 0x3af   :  { %9816 = vrot.lane.b32.xlu1 %v9815_v41, %s10722_s8  ;;  %vm667_vm9 = vmor %vm665_vm8, %vm666_vm7 }
 0x3b0   :  { %v662_v62 = vsub.f32 1.0, %v661_v10 }
 0x3b2   :  { %v10112_v55 = vpop.eup %10111  ;;  %v663_v60 = vmul.f32 %v10110_v53, %v662_v62  ;;  %v656_v4 = vpop.xlane.xlu0 %655 }
 0x3b3   :  { %v676_v21 = vmul.f32 %v10112_v55, %v641_v52  ;;  %10113 = vrcp.f32 %v656_v4  ;;  %vm681_vm11 = vweird.f32 %v10112_v55  ;;  %v761_v33 = vand.u32 2147483648, %v656_v4 }
 0x3b4   :  { %v664_v2 = vadd.f32 %v10110_v53, %v663_v60  ;;  %vm682_vm13 = vmor %vm680_vm12, %vm681_vm11  ;;  %v759_v35 = vand.u32 2147483647, %v656_v4  ;;  %vm755_vm1 = vweird.f32 %v656_v4 }
 0x3b5   :  { %v677_v58 = vsub.f32 1.0, %v676_v21  ;;  %v762_v27 = vor.u32 1.1754944e-38, %v761_v33 }
 0x3b6   :  { %v668_v13 = vsel %vm667_vm9, %v10110_v53, %v664_v2  ;;  %vm760_vm3 = vcmp.eq.f32.partialorder %v759_v35, 8.507059e+37 }
 0x3b7   :  { %v673_v15 = vsel %vm670_vm10, %v672_v9, %v668_v13  ;;  %v678_v16 = vmul.f32 %v10112_v55, %v677_v58 }
 0x3b8   :  { %v674_v63 = vmul.f32 %v11155_v47, %v673_v15 }
 0x3b9   :  { %v679_v23 = vadd.f32 %v10112_v55, %v678_v16  ;;  %v10114_v24 = vpop.eup %10113 }
 0x3ba   :  { %9404 = vmatmul.msk.f32.vlgmr.msra.gmra.mxu2 %vm587_vm6, %v674_v63  ;;  %v751_v30 = vmul.f32 %v10114_v24, %v656_v4  ;;  %v659_v31 = vpop.xlane.xlu0 %658  ;;  %vm756_vm15 = vweird.f32 %v10114_v24 }
 0x3bb   :  { %9420 = vmatpush.xpose.msk.msra.mxu2 %vm444_vm5, %v11190_v34  ;;  %v683_v26 = vsel %vm682_vm13, %v10112_v55, %v679_v23  ;;  %10115 = vrcp.f32 %v659_v31  ;;  %vm757_vm2 = vmor %vm755_vm1, %vm756_vm15  ;;  %v776_v51 = vand.u32 2147483648, %v659_v31  ;;  %vm770_vm7 = vweird.f32 %v659_v31 }
 0x3bc   :  { %v688_v25 = vsel %vm685_vm14, %v687_v11, %v683_v26  ;;  %v752_v0 = vsub.f32 1.0, %v751_v30 }
 0x3bd   :  { %v689_v42 = vmul.f32 %v11159_v56, %v688_v25  ;;  %v774_v56 = vand.u32 2147483647, %v659_v31  ;;  %v777_v62 = vor.u32 1.1754944e-38, %v776_v51 }
 0x3be   :  { %v753_v47 = vmul.f32 %v10114_v24, %v752_v0 }
 0x3bf   :  { %9421 = vmatpush.xpose.msk.msra.mxu2 %vm444_vm5, %v11195_v40  ;;  %vm775_vm9 = vcmp.eq.f32.partialorder %v774_v56, 8.507059e+37 }
 0x3c0   :  { %v754_v34 = vadd.f32 %v10114_v24, %v753_v47 }
 0x3c1   :  { %v10116_v29 = vpop.eup %10115 }
 0x3c2   :  { %9405 = vmatmul.msk.f32.gmra.mxu2 %vm587_vm6, %v689_v42  ;;  %v758_v38 = vsel %vm757_vm2, %v10114_v24, %v754_v34  ;;  %v766_v39 = vmul.f32 %v10116_v29, %v659_v31  ;;  %v644_v45 = vpop.xlane.xlu0 %643  ;;  %vm771_vm4 = vweird.f32 %v10116_v29  ;;  %v999_v31 = vpop.permute.xlu1 %998 }
 0x3c3   :  { %v763_v48 = vsel %vm760_vm3, %v762_v27, %v758_v38  ;;  %10117 = vrcp.f32 %v644_v45  ;;  %vm772_vm8 = vmor %vm770_vm7, %vm771_vm4  ;;  %v701_v21 = vand.u32 2147483648, %v644_v45  ;;  %v699_v58 = vand.u32 2147483647, %v644_v45 }
 0x3c4   :  { %v767_v49 = vsub.f32 1.0, %v766_v39  ;;  %v764_v40 = vmul.f32 %v11163_v43, %v763_v48  ;;  %vm695_vm11 = vweird.f32 %v644_v45 }
 0x3c5   :  { %v702_v63 = vor.u32 1.1754944e-38, %v701_v21  ;;  %vm700_vm13 = vcmp.eq.f32.partialorder %v699_v58, 8.507059e+37 }
 0x3c6   :  { %v768_v52 = vmul.f32 %v10116_v29, %v767_v49 }
 0x3c8   :  { %v769_v10 = vadd.f32 %v10116_v29, %v768_v52 }
 0x3c9   :  { %v10118_v41 = vpop.eup %10117 }
 0x3ca   :  { %9410 = vmatmul.msk.f32.vlgmr.msrb.gmra.mxu2 %vm587_vm6, %v764_v40  ;;  %v691_v54 = vmul.f32 %v10118_v41, %v644_v45  ;;  %v650_v55 = vpop.xlane.xlu0 %649  ;;  %v773_v60 = vsel %vm772_vm8, %v10116_v29, %v769_v10  ;;  %vm696_vm10 = vweird.f32 %v10118_v41 }
 0x3cb   :  { %v11238_v53 = vpop.xlane.xlu2 %652  ;;  %v778_v43 = vsel %vm775_vm9, %v777_v62, %v773_v60  ;;  %vm697_vm12 = vmor %vm695_vm11, %vm696_vm10  ;;  %v731_v30 = vand.u32 2147483648, %v650_v55  ;;  %v729_v0 = vand.u32 2147483647, %v650_v55  ;;  %vm725_vm15 = vweird.f32 %v650_v55 }
 0x3cc   :  { %10119 = vrcp.f32 %v11238_v53  ;;  %v692_v57 = vsub.f32 1.0, %v691_v54  ;;  %v779_v4 = vmul.f32 %v11168_v28, %v778_v43  ;;  %vm740_vm4 = vweird.f32 %v11238_v53 }
 0x3cd   :  { %10121 = vrcp.f32 %v650_v55  ;;  %v732_v42 = vor.u32 1.1754944e-38, %v731_v30  ;;  %vm730_vm2 = vcmp.eq.f32.partialorder %v729_v0, 8.507059e+37  ;;  %v744_v38 = vand.u32 2147483647, %v11238_v53 }
 0x3ce   :  { %v693_v2 = vmul.f32 %v10118_v41, %v692_v57 }
 0x3cf   :  { %vm745_vm8 = vcmp.eq.f32.partialorder %v744_v38, 8.507059e+37 }
 0x3d0   :  { %v694_v13 = vadd.f32 %v10118_v41, %v693_v2 }
 0x3d2   :  { %v10120_v9 = vpop.eup %10119  ;;  %9411 = vmatmul.msk.f32.gmra.mxu2 %vm587_vm6, %v779_v4  ;;  %v698_v20 = vsel %vm697_vm12, %v10118_v41, %v694_v13 }
 0x3d3   :  { %v736_v15 = vmul.f32 %v10120_v9, %v11238_v53  ;;  %v964_v16 = vpop.permute.xlu2 %963  ;;  %v10122_v17 = vpop.eup %10121  ;;  %v703_v24 = vsel %vm700_vm13, %v702_v63, %v698_v20  ;;  %vm741_vm3 = vweird.f32 %v10120_v9 }
 0x3d4   :  { %9417 = vmatpush.xpose.msk.msra.mxu1 %vm444_vm5, %v964_v16  ;;  %v721_v28 = vmul.f32 %v10122_v17, %v650_v55  ;;  %v704_v11 = vmul.f32 %v11174_v12, %v703_v24  ;;  %vm726_vm14 = vweird.f32 %v10122_v17  ;;  %v746_v12 = vand.u32 2147483648, %v11238_v53  ;;  %vm742_vm7 = vmor %vm740_vm4, %vm741_vm3 }
 0x3d5   :  { %v737_v23 = vsub.f32 1.0, %v736_v15  ;;  %vm727_vm1 = vmor %vm725_vm15, %vm726_vm14 }
 0x3d6   :  { %v722_v26 = vsub.f32 1.0, %v721_v28  ;;  %9406 = vmatmul.msk.f32.vlgmr.msra.gmra.mxu3 %vm587_vm6, %v704_v11  ;;  %v747_v48 = vor.u32 1.1754944e-38, %v746_v12 }
 0x3d7   :  { %v738_v33 = vmul.f32 %v10120_v9, %v737_v23 }
 0x3d8   :  { %v723_v25 = vmul.f32 %v10122_v17, %v722_v26 }
 0x3d9   :  { %v739_v34 = vadd.f32 %v10120_v9, %v738_v33 }
 0x3da   :  { %9422 = vmatmul.msk.f32.vlgmr.msra.gmra.mxu2 %vm444_vm5, %v999_v31  ;;  %v724_v47 = vadd.f32 %v10122_v17, %v723_v25 }
 0x3db   :  { %v743_v45 = vsel %vm742_vm7, %v10120_v9, %v739_v34 }
 0x3dc   :  { %v728_v35 = vsel %vm727_vm1, %v10122_v17, %v724_v47  ;;  %v748_v49 = vsel %vm745_vm8, %v747_v48, %v743_v45 }
 0x3dd   :  { %v733_v27 = vsel %vm730_vm2, %v732_v42, %v728_v35  ;;  %v1001_v39 = vpop.permute.xlu0 %1000  ;;  %v749_v40 = vmul.f32 %v11180_v36, %v748_v49 }
 0x3de   :  { %v734_v29 = vmul.f32 %v11178_v19, %v733_v27 }
 0x3e0   :  { %9408 = vmatmul.msk.f32.vlgmr.msrb.gmra.mxu1 %vm587_vm6, %v734_v29 }
 0x3e2   :  { %9423 = vmatmul.msk.f32.gmra.mxu2 %vm444_vm5, %v1001_v39 }
 0x3e5   :  { %v1042_v51 = vpop.permute.xlu0 %1041 }
 0x3e8   :  { %9409 = vmatmul.msk.f32.gmra.mxu1 %vm587_vm6, %v749_v40 }
 0x3e9   :  { %v647_v19 = vpop.xlane.xlu1 %646 }
 0x3ea   :  { %10123 = vrcp.f32 %v647_v19  ;;  %v716_v41 = vand.u32 2147483648, %v647_v19  ;;  %v714_v54 = vand.u32 2147483647, %v647_v19  ;;  %vm710_vm10 = vweird.f32 %v647_v19 }
 0x3ec   :  { %v717_v36 = vor.u32 1.1754944e-38, %v716_v41  ;;  %vm715_vm12 = vcmp.eq.f32.partialorder %v714_v54, 8.507059e+37 }
 0x3ed   :  { %v1038_v52 = vpop.permute.xlu0 %1037 }
 0x3f0   :  { %v10124_v56 = vpop.eup %10123 }
 0x3f1   :  { %v706_v53 = vmul.f32 %v10124_v56, %v647_v19  ;;  %vm711_vm9 = vweird.f32 %v10124_v56 }
 0x3f2   :  { %vm712_vm11 = vmor %vm710_vm10, %vm711_vm9 }
 0x3f3   :  { %v707_v10 = vsub.f32 1.0, %v706_v53 }
 0x3f5   :  { %v708_v62 = vmul.f32 %v10124_v56, %v707_v10  ;;  %v9812_v55 = vpop.permute.xlu0 %9811 }
 0x3f6   :  { %v9814_v43 = vunpack.i.h.bf16 %v9812_v55  ;;  %v9813_v57 = vunpack.i.l.bf16 %v9812_v55 }
 0x3f7   :  { %v709_v60 = vadd.f32 %v10124_v56, %v708_v62 }
 0x3f8   :  { %1329 = vmatpush.msrb.mxu1 %v9814_v43  ;;  %1364 = vmatpush.msrb.mxu2 %v9813_v57 }
 0x3f9   :  { %v713_v21 = vsel %vm712_vm11, %v10124_v56, %v709_v60 }
 0x3fa   :  { %v718_v4 = vsel %vm715_vm12, %v717_v36, %v713_v21 }
 0x3fb   :  { %v719_v2 = vmul.f32 %v11199_v44, %v718_v4  ;;  %v1040_v44 = vpop.permute.xlu2 %1039 }
 0x3fd   :  { %9407 = vmatmul.msk.f32.gmra.mxu3 %vm587_vm6, %v719_v2 }
 0x401   :  { %v960_v58 = vpop.permute.xlu1 %959 }
 0x402   :  { %9418 = vmatmul.msk.f32.vlgmr.msra.gmra.mxu1 %vm444_vm5, %v960_v58 }
 0x405   :  { %9414 = vmatmul.msk.f32.vlgmr.msrb.gmra.mxu3 %vm444_vm5, %v11186_v46  ;;  %v1415_v46 = vpop.permute.xlu2 %1414 }
 0x409   :  { %v1044_v9 = vpop.permute.xlu1 %1043 }
 0x40a   :  { %9424 = vmatpush.xpose.msk.msra.mxu3 %vm444_vm5, %v1044_v9 }
 0x40d   :  { %9415 = vmatmul.msk.f32.gmra.mxu3 %vm444_vm5, %v11219_v50 }
 0x40e   :  { %9425 = vmatpush.xpose.msk.msra.mxu3 %vm444_vm5, %v1042_v51 }
 0x411   :  { %v962_v13 = vpop.permute.xlu1 %961 }
 0x412   :  { %9419 = vmatmul.msk.f32.gmra.mxu1 %vm444_vm5, %v962_v13 }
 0x415   :  { %9426 = vmatmul.msk.f32.vlgmr.msra.gmra.mxu3 %vm444_vm5, %v1038_v52 }
 0x419   :  { %v9807_v15 = vpop.permute.xlu1 %9806 }
 0x41a   :  { %v9808_v16 = vunpack.i.l.bf16 %v9807_v15  ;;  %v9809_v17 = vunpack.i.h.bf16 %v9807_v15 }
 0x41c   :  { %1294 = vmatpush.msrb.mxu0 %v9808_v16 }
 0x41d   :  { %9427 = vmatmul.msk.f32.gmra.mxu3 %vm444_vm5, %v1040_v44 }
 0x41e   :  { %1295 = vmatpush.msrb.mxu0 %v9809_v17 }
 0x420   :  { %9436 = vmatpush.xpose.msk.msra.mxu0 %vm444_vm5, %v1415_v46 }
 0x421   :  { %v9817_v63 = vpop.permute.xlu1 %9816 }
 0x422   :  { %v9819_v50 = vunpack.i.h.bf16 %v9817_v63  ;;  %v9818_v20 = vunpack.i.l.bf16 %v9817_v63 }
 0x424   :  { %1330 = vmatpush.msrb.mxu1 %v9819_v50  ;;  %1365 = vmatpush.msrb.mxu2 %v9818_v20 }
 0x43d   :  { %v11269_v23 = vpop.f32.mrf.mxu2 }
 0x445   :  { %v11271_v28 = vpop.f32.mrf.mxu2 }
 0x44d   :  { %v11273_v24 = vpop.f32.mrf.mxu2 }
 0x455   :  { %v11275_v26 = vpop.f32.mrf.mxu2 }
 0x459   :  { %v11279_v0 = vpop.f32.mrf.mxu3 }
 0x45d   :  { %v1031_v11 = vpop.f32.mrf.mxu2  ;;  %v11281_v33 = vpop.f32.mrf.mxu1 }
 0x45e   :  { %v1088_v30 = vsel %vm587_vm6, %v1031_v11, -inf }
 0x45f   :  { %1089 = vmax.xlane.f32.xlu2 %v1088_v30 }
 0x465   :  { %v1034_v31 = vpop.f32.mrf.mxu2  ;;  %v11285_v42 = vpop.f32.mrf.mxu1 }
 0x466   :  { %v1091_v25 = vsel %vm587_vm6, %v1034_v31, -inf }
 0x467   :  { %1092 = vmax.xlane.f32.xlu2 %v1091_v25 }
 0x47f   :  { %v11288_v27 = vpop.f32.mrf.mxu1 }
 0x480   :  { %v11283_v47 = vpop.f32.mrf.mxu3  ;;  %v1082_v38 = vsel %vm587_vm6, %v11288_v27, -inf }
 0x488   :  { %v953_v35 = vpop.f32.mrf.mxu3 }
 0x489   :  { %v1076_v34 = vsel %vm587_vm6, %v953_v35, -inf }
 0x48a   :  { %1077 = vmax.xlane.f32.xlu1 %v1076_v34 }
 0x48f   :  { %v11293_v39 = vpop.f32.mrf.mxu1 }
 0x490   :  { %v956_v12 = vpop.f32.mrf.mxu3  ;;  %v1085_v48 = vsel %vm587_vm6, %v11293_v39, -inf }
 0x491   :  { %v1079_v29 = vsel %vm587_vm6, %v956_v12, -inf }
 0x492   :  { %1080 = vmax.xlane.f32.xlu0 %v1079_v29  ;;  %1083 = vmax.xlane.f32.xlu1 %v1082_v38 }
 0x498   :  { %v11295_v45 = vpop.f32.mrf.mxu3 }
 0x499   :  { %v1094_v49 = vsel %vm587_vm6, %v11295_v45, -inf }
 0x49a   :  { %1086 = vmax.xlane.f32.xlu0 %v1085_v48  ;;  %1095 = vmax.xlane.f32.xlu1 %v1094_v49 }
 0x4a0   :  { %v1073_v40 = vpop.f32.mrf.mxu3 }
 0x4a1   :  { %v1097_v51 = vsel %vm587_vm6, %v1073_v40, -inf }
 0x4a2   :  { %1098 = vmax.xlane.f32.xlu2 %v1097_v51 }
 0x4d2   :  { %v1090_v19 = vpop.xlane.xlu2 %1089 }
 0x4d3   :  { %v1104_v52 = vsub.f32 %v1031_v11, %v1090_v19 }
 0x4d5   :  { %v1116_v56 = vmul.f32 1.442695, %v1104_v52 }
 0x4d7   :  { %10125 = vpow2.f32 %v1116_v56 }
 0x4da   :  { %v1093_v2 = vpop.xlane.xlu2 %1092 }
 0x4db   :  { %v1105_v58 = vsub.f32 %v1034_v31, %v1093_v2 }
 0x4dd   :  { %v11302_v53 = vpop.eup %10125  ;;  %v1118_v9 = vmul.f32 1.442695, %v1105_v58 }
 0x4de   :  { %v1136_v10 = vsel %vm587_vm6, %v11302_v53, 0.0 }
 0x4df   :  { %1137 = vadd.xlane.f32.xlu2 %v1136_v10 }
 0x4f7   :  { %1408 = vrot.lane.b32.xlu2 %v11047_v59, %s10723_s9 }
 0x4fd   :  { %v1078_v41 = vpop.xlane.xlu1 %1077 }
 0x4fe   :  { %v1100_v62 = vsub.f32 %v953_v35, %v1078_v41 }
 0x4ff   :  { %1410 = vrot.lane.b32.xlu2 %v11051_v61, %s10723_s9 }
 0x500   :  { %v1108_v54 = vmul.f32 1.442695, %v1100_v62 }
 0x502   :  { %10127 = vpow2.f32 %v1108_v54 }
 0x505   :  { %v1081_v55 = vpop.xlane.xlu0 %1080  ;;  %v1084_v11 = vpop.xlane.xlu1 %1083 }
 0x506   :  { %v1101_v60 = vsub.f32 %v956_v12, %v1081_v55  ;;  %v1102_v29 = vsub.f32 %v11288_v27, %v1084_v11 }
 0x507   :  { %9821 = vrot.lane.b32.xlu2 %v11133_v5, %s10722_s8 }
 0x508   :  { %v11312_v43 = vpop.eup %10127  ;;  %v1110_v57 = vmul.f32 1.442695, %v1101_v60  ;;  %v1112_v51 = vmul.f32 1.442695, %v1102_v29 }
 0x509   :  { %v1124_v36 = vsel %vm587_vm6, %v11312_v43, 0.0 }
 0x50a   :  { %1125 = vadd.xlane.f32.xlu0 %v1124_v36  ;;  %10129 = vpow2.f32 %v1110_v57 }
 0x50b   :  { %10131 = vpow2.f32 %v1118_v9 }
 0x50d   :  { %v1096_v52 = vpop.xlane.xlu1 %1095  ;;  %v1087_v54 = vpop.xlane.xlu0 %1086 }
 0x50e   :  { %v1106_v27 = vsub.f32 %v11295_v45, %v1096_v52 }
 0x50f   :  { %1451 = vrot.lane.b32.xlu2 %v11055_v14, %s10721_s7 }
 0x510   :  { %v11318_v21 = vpop.eup %10129  ;;  %v1120_v41 = vmul.f32 1.442695, %v1106_v27 }
 0x511   :  { %v1127_v4 = vsel %vm587_vm6, %v11318_v21, 0.0  ;;  %v11334_v13 = vpop.eup %10131 }
 0x512   :  { %1128 = vadd.xlane.f32.xlu1 %v1127_v4  ;;  %v1139_v44 = vsel %vm587_vm6, %v11334_v13, 0.0 }
 0x515   :  { %v1099_v15 = vpop.xlane.xlu2 %1098 }
 0x516   :  { %v1107_v16 = vsub.f32 %v1073_v40, %v1099_v15 }
 0x517   :  { %1447 = vrot.lane.b32.xlu2 %v11055_v14, %s10723_s9 }
 0x518   :  { %v1122_v17 = vmul.f32 1.442695, %v1107_v16 }
 0x51a   :  { %10133 = vpow2.f32 %v1122_v17 }
 0x51e   :  { %1492 = vrot.lane.b32.xlu0 %v11073_v8, %s10721_s7 }
 0x520   :  { %v11342_v63 = vpop.eup %10133 }
 0x521   :  { %v1145_v50 = vsel %vm587_vm6, %v11342_v63, 0.0 }
 0x526   :  { %1453 = vrot.lane.b32.xlu0 %v11061_v3, %s10721_s7 }
 0x52b   :  { %1412 = vrot.lane.b32.xlu1 %v11047_v59, %s10721_s7 }
 0x52e   :  { %1490 = vrot.lane.b32.xlu0 %v11071_v7, %s10721_s7 }
 0x536   :  { %1486 = vrot.lane.b32.xlu0 %v11071_v7, %s10723_s9 }
 0x53e   :  { %1488 = vrot.lane.b32.xlu0 %v11073_v8, %s10723_s9 }
 0x540   :  { %1140 = vadd.xlane.f32.xlu2 %v1139_v44 }
 0x546   :  { %1449 = vrot.lane.b32.xlu0 %v11061_v3, %s10723_s9 }
 0x552   :  { %v1138_v46 = vpop.xlane.xlu2 %1137 }
 0x553   :  { %10135 = vrcp.f32 %v1138_v46  ;;  %v1219_v35 = vand.u32 2147483648, %v1138_v46  ;;  %v1217_v12 = vand.u32 2147483647, %v1138_v46  ;;  %vm1213_vm14 = vweird.f32 %v1138_v46 }
 0x554   :  { %10137 = vpow2.f32 %v1112_v51 }
 0x555   :  { %1146 = vadd.xlane.f32.xlu1 %v1145_v50  ;;  %v1220_v48 = vor.u32 1.1754944e-38, %v1219_v35  ;;  %vm1218_vm1 = vcmp.eq.f32.partialorder %v1217_v12, 8.507059e+37  ;;  %10139 = vpow2.f32 %v1120_v41 }
 0x558   :  { %1531 = vrot.lane.b32.xlu2 %v11067_v6, %s10721_s7 }
 0x559   :  { %v10136_v20 = vpop.eup %10135 }
 0x55a   :  { %v1209_v30 = vmul.f32 %v10136_v20, %v1138_v46  ;;  %v11348_v31 = vpop.permute.xlu2 %1408  ;;  %vm1214_vm13 = vweird.f32 %v10136_v20  ;;  %v11360_v55 = vpop.eup %10137 }
 0x55b   :  { %vm1215_vm15 = vmor %vm1213_vm14, %vm1214_vm13  ;;  %v1130_v45 = vsel %vm587_vm6, %v11360_v55, 0.0  ;;  %v11369_v36 = vpop.eup %10139 }
 0x55c   :  { %v1210_v25 = vsub.f32 1.0, %v1209_v30 }
 0x55e   :  { %v1211_v34 = vmul.f32 %v10136_v20, %v1210_v25 }
 0x560   :  { %v1212_v38 = vadd.f32 %v10136_v20, %v1211_v34  ;;  %1525 = vrot.lane.b32.xlu2 %v11059_v1, %s10723_s9 }
 0x562   :  { %v1216_v49 = vsel %vm1215_vm15, %v10136_v20, %v1212_v38  ;;  %v11353_v40 = vpop.permute.xlu2 %1410 }
 0x563   :  { %v1221_v19 = vsel %vm1218_vm1, %v1220_v48, %v1216_v49 }
 0x564   :  { %v1222_v56 = vmul.f32 %v11302_v53, %v1221_v19  ;;  %v1103_v53 = vsub.f32 %v11293_v39, %v1087_v54  ;;  %v1142_v39 = vsel %vm587_vm6, %v11369_v36, 0.0 }
 0x566   :  { %9432 = vmatmul.msk.f32.vlgmr.msrb.gmra.mxu2 %vm587_vm6, %v1222_v56  ;;  %v1114_v57 = vmul.f32 1.442695, %v1103_v53 }
 0x568   :  { %9826 = vrot.lane.b32.xlu2 %v11129_v32, %s10724_s10  ;;  %10141 = vpow2.f32 %v1114_v57 }
 0x56a   :  { %v9822_v10 = vpop.permute.xlu2 %9821 }
 0x56b   :  { %v9823_v62 = vunpack.i.l.bf16 %v9822_v10  ;;  %v9824_v60 = vunpack.i.h.bf16 %v9822_v10 }
 0x56d   :  { %1399 = vmatpush.msrb.mxu3 %v9823_v62 }
 0x56e   :  { %1529 = vrot.lane.b32.xlu1 %v11059_v1, %s10721_s7  ;;  %v11375_v4 = vpop.eup %10141 }
 0x56f   :  { %1400 = vmatpush.msrb.mxu3 %v9824_v60  ;;  %v1133_v58 = vsel %vm587_vm6, %v11375_v4, 0.0 }
 0x570   :  { %1900 = vrot.lane.b32.xlu2 %v11047_v59, %s10725_s11  ;;  %1131 = vadd.xlane.f32.xlu0 %v1130_v45 }
 0x572   :  { %v1452_v41 = vpop.permute.xlu2 %1451 }
 0x576   :  { %1902 = vrot.lane.b32.xlu1 %v11051_v61, %s10725_s11 }
 0x578   :  { %1143 = vadd.xlane.f32.xlu0 %v1142_v39 }
 0x57d   :  { %v1126_v2 = vpop.xlane.xlu0 %1125 }
 0x57e   :  { %10143 = vrcp.f32 %v1126_v2  ;;  %v1159_v17 = vand.u32 2147483648, %v1126_v2  ;;  %v1157_v50 = vand.u32 2147483647, %v1126_v2  ;;  %vm1153_vm3 = vweird.f32 %v1126_v2 }
 0x580   :  { %1134 = vadd.xlane.f32.xlu0 %v1133_v58  ;;  %v1160_v11 = vor.u32 1.1754944e-38, %v1159_v17  ;;  %vm1158_vm7 = vcmp.eq.f32.partialorder %v1157_v50, 8.507059e+37 }
 0x584   :  { %v10144_v9 = vpop.eup %10143 }
 0x585   :  { %v1149_v44 = vmul.f32 %v10144_v9, %v1126_v2  ;;  %v1129_v15 = vpop.xlane.xlu1 %1128  ;;  %vm1154_vm2 = vweird.f32 %v10144_v9 }
 0x586   :  { %10145 = vrcp.f32 %v1129_v15  ;;  %vm1155_vm4 = vmor %vm1153_vm3, %vm1154_vm2  ;;  %v1174_v48 = vand.u32 2147483648, %v1129_v15  ;;  %v1172_v51 = vand.u32 2147483647, %v1129_v15  ;;  %vm1168_vm9 = vweird.f32 %v1129_v15 }
 0x587   :  { %v1150_v16 = vsub.f32 1.0, %v1149_v44 }
 0x588   :  { %v1175_v52 = vor.u32 1.1754944e-38, %v1174_v48  ;;  %vm1173_vm11 = vcmp.eq.f32.partialorder %v1172_v51, 8.507059e+37 }
 0x589   :  { %v1151_v46 = vmul.f32 %v10144_v9, %v1150_v16 }
 0x58b   :  { %v1152_v20 = vadd.f32 %v10144_v9, %v1151_v46 }
 0x58c   :  { %v10146_v30 = vpop.eup %10145 }
 0x58d   :  { %v1156_v25 = vsel %vm1155_vm4, %v10144_v9, %v1152_v20  ;;  %v1164_v35 = vmul.f32 %v10146_v30, %v1129_v15  ;;  %vm1169_vm8 = vweird.f32 %v10146_v30 }
 0x58e   :  { %v1161_v34 = vsel %vm1158_vm7, %v1160_v11, %v1156_v25  ;;  %vm1170_vm10 = vmor %vm1168_vm9, %vm1169_vm8 }
 0x58f   :  { %v1162_v12 = vmul.f32 %v11312_v43, %v1161_v34  ;;  %v1165_v29 = vsub.f32 1.0, %v1164_v35 }
 0x590   :  { %v1493_v38 = vpop.permute.xlu0 %1492 }
 0x591   :  { %9428 = vmatmul.msk.f32.vlgmr.msrb.gmra.mxu0 %vm587_vm6, %v1162_v12  ;;  %9444 = vmatpush.xpose.msk.msra.mxu2 %vm444_vm5, %v1493_v38  ;;  %v1166_v49 = vmul.f32 %v10146_v30, %v1165_v29 }
 0x593   :  { %v1167_v19 = vadd.f32 %v10146_v30, %v1166_v49 }
 0x594   :  { %1527 = vrot.lane.b32.xlu0 %v11067_v6, %s10723_s9 }
 0x595   :  { %v1171_v56 = vsel %vm1170_vm10, %v10146_v30, %v1167_v19 }
 0x596   :  { %v1176_v43 = vsel %vm1173_vm11, %v1175_v52, %v1171_v56 }
 0x597   :  { %v1177_v10 = vmul.f32 %v11318_v21, %v1176_v43  ;;  %v11394_v21 = vpop.permute.xlu2 %1447 }
 0x598   :  { %v1454_v27 = vpop.permute.xlu0 %1453 }
 0x599   :  { %9440 = vmatpush.xpose.msk.msra.mxu1 %vm444_vm5, %v1454_v27  ;;  %9429 = vmatmul.msk.f32.gmra.mxu0 %vm587_vm6, %v1177_v10 }
 0x59c   :  { %9831 = vrot.lane.b32.xlu0 %v11121_v37, %s10724_s10 }
 0x59d   :  { %9441 = vmatpush.xpose.msk.msra.mxu1 %vm444_vm5, %v1452_v41  ;;  %v1413_v62 = vpop.permute.xlu1 %1412 }
 0x59e   :  { %9437 = vmatpush.xpose.msk.msra.mxu0 %vm444_vm5, %v1413_v62 }
 0x5a0   :  { %v1491_v54 = vpop.permute.xlu0 %1490 }
 0x5a1   :  { %9445 = vmatpush.xpose.msk.msra.mxu2 %vm444_vm5, %v1491_v54  ;;  %9438 = vmatmul.msk.f32.vlgmr.msra.gmra.mxu0 %vm444_vm5, %v11348_v31 }
 0x5a8   :  { %v1487_v46 = vpop.permute.xlu0 %1486 }
 0x5a9   :  { %9439 = vmatmul.msk.f32.gmra.mxu0 %vm444_vm5, %v11353_v40 }
 0x5b0   :  { %v1489_v30 = vpop.permute.xlu0 %1488 }
 0x5b3   :  { %v1141_v60 = vpop.xlane.xlu2 %1140 }
 0x5b4   :  { %10147 = vrcp.f32 %v1141_v60  ;;  %v1234_v2 = vand.u32 2147483648, %v1141_v60  ;;  %v1232_v9 = vand.u32 2147483647, %v1141_v60  ;;  %vm1228_vm13 = vweird.f32 %v1141_v60 }
 0x5b6   :  { %v1235_v31 = vor.u32 1.1754944e-38, %v1234_v2  ;;  %vm1233_vm15 = vcmp.eq.f32.partialorder %v1232_v9, 8.507059e+37 }
 0x5b8   :  { %v11407_v35 = vpop.permute.xlu0 %1449 }
 0x5ba   :  { %v10148_v53 = vpop.eup %10147 }
 0x5bb   :  { %v1224_v45 = vmul.f32 %v10148_v53, %v1141_v60  ;;  %v1532_v57 = vpop.permute.xlu2 %1531  ;;  %vm1229_vm12 = vweird.f32 %v10148_v53 }
 0x5bc   :  { %9448 = vmatpush.xpose.msk.msra.mxu3 %vm444_vm5, %v1532_v57  ;;  %vm1230_vm14 = vmor %vm1228_vm13, %vm1229_vm12 }
 0x5bd   :  { %v1225_v39 = vsub.f32 1.0, %v1224_v45 }
 0x5bf   :  { %v1226_v58 = vmul.f32 %v10148_v53, %v1225_v39 }
 0x5c1   :  { %v1227_v44 = vadd.f32 %v10148_v53, %v1226_v58 }
 0x5c3   :  { %v11399_v15 = vpop.permute.xlu2 %1525  ;;  %v1231_v16 = vsel %vm1230_vm14, %v10148_v53, %v1227_v44 }
 0x5c4   :  { %v1236_v40 = vsel %vm1233_vm15, %v1235_v31, %v1231_v16 }
 0x5c5   :  { %v1237_v17 = vmul.f32 %v11334_v13, %v1236_v40 }
 0x5c7   :  { %9433 = vmatmul.msk.f32.gmra.mxu2 %vm587_vm6, %v1237_v17 }
 0x5c8   :  { %v11405_v25 = vpop.xlane.xlu1 %1146 }
 0x5c9   :  { %vm1258_vm12 = vweird.f32 %v11405_v25 }
 0x5cb   :  { %v9827_v50 = vpop.permute.xlu2 %9826 }
 0x5cc   :  { %v9828_v20 = vunpack.i.l.bf16 %v9827_v50  ;;  %v9829_v11 = vunpack.i.h.bf16 %v9827_v50 }
 0x5ce   :  { %1782 = vmatpush.msrb.mxu0 %v9828_v20 }
 0x5cf   :  { %9446 = vmatmul.msk.f32.vlgmr.msra.gmra.mxu2 %vm444_vm5, %v1487_v46 }
 0x5d0   :  { %1783 = vmatpush.msrb.mxu0 %v9829_v11 }
 0x5d3   :  { %v1901_v51 = vpop.permute.xlu2 %1900 }
 0x5d7   :  { %9447 = vmatmul.msk.f32.gmra.mxu2 %vm444_vm5, %v1489_v30 }
 0x5e0   :  { %v1530_v34 = vpop.permute.xlu1 %1529 }
 0x5e1   :  { %9449 = vmatpush.xpose.msk.msra.mxu3 %vm444_vm5, %v1530_v34 }
 0x5e3   :  { %v1132_v13 = vpop.xlane.xlu0 %1131 }
 0x5e4   :  { %10149 = vrcp.f32 %v1132_v13  ;;  %v1189_v52 = vand.u32 2147483648, %v1132_v13  ;;  %v1187_v27 = vand.u32 2147483647, %v1132_v13  ;;  %vm1183_vm2 = vweird.f32 %v1132_v13 }
 0x5e5   :  { %10151 = vrcp.f32 %v11405_v25 }
 0x5e6   :  { %v1190_v62 = vor.u32 1.1754944e-38, %v1189_v52  ;;  %vm1188_vm4 = vcmp.eq.f32.partialorder %v1187_v27, 8.507059e+37 }
 0x5e8   :  { %v1903_v12 = vpop.permute.xlu1 %1902 }
 0x5e9   :  { %9460 = vmatpush.xpose.msk.msra.mxu0 %vm444_vm5, %v1903_v12 }
 0x5ea   :  { %v10150_v29 = vpop.eup %10149 }
 0x5eb   :  { %v1179_v38 = vmul.f32 %v10150_v29, %v1132_v13  ;;  %v1144_v48 = vpop.xlane.xlu0 %1143  ;;  %v10152_v49 = vpop.eup %10151  ;;  %vm1184_vm1 = vweird.f32 %v10150_v29  ;;  %v1262_v13 = vand.u32 2147483647, %v11405_v25 }
 0x5ec   :  { %10153 = vrcp.f32 %v1144_v48  ;;  %v1254_v56 = vmul.f32 %v10152_v49, %v11405_v25  ;;  %vm1185_vm3 = vmor %vm1183_vm2, %vm1184_vm1  ;;  %v1249_v58 = vand.u32 2147483648, %v1144_v48  ;;  %v1247_v44 = vand.u32 2147483647, %v1144_v48 }
 0x5ed   :  { %v1180_v19 = vsub.f32 1.0, %v1179_v38  ;;  %9461 = vmatpush.xpose.msk.msra.mxu0 %vm444_vm5, %v1901_v51  ;;  %vm1243_vm8 = vweird.f32 %v1144_v48  ;;  %vm1259_vm10 = vweird.f32 %v10152_v49  ;;  %vm1263_vm1 = vcmp.eq.f32.partialorder %v1262_v13, 8.507059e+37 }
 0x5ee   :  { %v1255_v54 = vsub.f32 1.0, %v1254_v56  ;;  %v1250_v17 = vor.u32 1.1754944e-38, %v1249_v58  ;;  %vm1248_vm11 = vcmp.eq.f32.partialorder %v1247_v44, 8.507059e+37  ;;  %vm1260_vm13 = vmor %vm1258_vm12, %vm1259_vm10 }
 0x5ef   :  { %v1181_v43 = vmul.f32 %v10150_v29, %v1180_v19 }
 0x5f0   :  { %v1256_v31 = vmul.f32 %v10152_v49, %v1255_v54 }
 0x5f1   :  { %v1182_v10 = vadd.f32 %v10150_v29, %v1181_v43 }
 0x5f2   :  { %v10154_v41 = vpop.eup %10153  ;;  %v1257_v20 = vadd.f32 %v10152_v49, %v1256_v31 }
 0x5f3   :  { %v1186_v60 = vsel %vm1185_vm3, %v10150_v29, %v1182_v10  ;;  %v1239_v53 = vmul.f32 %v10154_v41, %v1144_v48  ;;  %v1135_v45 = vpop.xlane.xlu0 %1134  ;;  %vm1244_vm7 = vweird.f32 %v10154_v41 }
 0x5f4   :  { %10155 = vrcp.f32 %v1135_v45  ;;  %v1191_v57 = vsel %vm1188_vm4, %v1190_v62, %v1186_v60  ;;  %vm1245_vm9 = vmor %vm1243_vm8, %vm1244_vm7  ;;  %v1204_v12 = vand.u32 2147483648, %v1135_v45  ;;  %v1202_v38 = vand.u32 2147483647, %v1135_v45 }
 0x5f5   :  { %v1240_v39 = vsub.f32 1.0, %v1239_v53  ;;  %v1192_v2 = vmul.f32 %v11360_v55, %v1191_v57  ;;  %v1264_v55 = vand.u32 2147483648, %v11405_v25  ;;  %v1261_v48 = vsel %vm1260_vm13, %v10152_v49, %v1257_v20 }
 0x5f6   :  { %vm1198_vm15 = vweird.f32 %v1135_v45  ;;  %v1205_v52 = vor.u32 1.1754944e-38, %v1204_v12  ;;  %vm1203_vm3 = vcmp.eq.f32.partialorder %v1202_v38, 8.507059e+37 }
 0x5f7   :  { %v1241_v9 = vmul.f32 %v10154_v41, %v1240_v39  ;;  %9430 = vmatmul.msk.f32.vlgmr.msrb.gmra.mxu1 %vm587_vm6, %v1192_v2  ;;  %v1265_v51 = vor.u32 1.1754944e-38, %v1264_v55 }
 0x5f9   :  { %v1242_v16 = vadd.f32 %v10154_v41, %v1241_v9  ;;  %v1266_v56 = vsel %vm1263_vm1, %v1265_v51, %v1261_v48 }
 0x5fa   :  { %v10156_v40 = vpop.eup %10155  ;;  %v1267_v27 = vmul.f32 %v11342_v63, %v1266_v56 }
 0x5fb   :  { %v1246_v46 = vsel %vm1245_vm9, %v10154_v41, %v1242_v16  ;;  %v1194_v50 = vmul.f32 %v10156_v40, %v1135_v45  ;;  %vm1199_vm14 = vweird.f32 %v10156_v40 }
 0x5fc   :  { %v1251_v11 = vsel %vm1248_vm11, %v1250_v17, %v1246_v46  ;;  %vm1200_vm2 = vmor %vm1198_vm15, %vm1199_vm14 }
 0x5fd   :  { %v1195_v30 = vsub.f32 1.0, %v1194_v50  ;;  %v1252_v34 = vmul.f32 %v11369_v36, %v1251_v11 }
 0x5ff   :  { %9434 = vmatmul.msk.f32.vlgmr.msrb.gmra.mxu3 %vm587_vm6, %v1252_v34  ;;  %v1196_v29 = vmul.f32 %v10156_v40, %v1195_v30 }
 0x601   :  { %v1197_v19 = vadd.f32 %v10156_v40, %v1196_v29 }
 0x603   :  { %v1201_v36 = vsel %vm1200_vm2, %v10156_v40, %v1197_v19 }
 0x604   :  { %v1206_v43 = vsel %vm1203_vm3, %v1205_v52, %v1201_v36 }
 0x605   :  { %v1207_v25 = vmul.f32 %v11375_v4, %v1206_v43 }
 0x606   :  { %v1528_v10 = vpop.permute.xlu0 %1527 }
 0x607   :  { %9431 = vmatmul.msk.f32.gmra.mxu1 %vm587_vm6, %v1207_v25  ;;  %9435 = vmatmul.msk.f32.gmra.mxu3 %vm587_vm6, %v1267_v27 }
 0x60e   :  { %v11425_v49 = vpop.f32.mrf.mxu0  ;;  %v9832_v41 = vpop.permute.xlu0 %9831 }
 0x60f   :  { %v9833_v62 = vunpack.i.l.bf16 %v9832_v41  ;;  %9442 = vmatmul.msk.f32.vlgmr.msra.gmra.mxu1 %vm444_vm5, %v11394_v21  ;;  %9450 = vmatmul.msk.f32.vlgmr.msra.gmra.mxu3 %vm444_vm5, %v11399_v15  ;;  %v9834_v54 = vunpack.i.h.bf16 %v9832_v41  ;;  %v11440_v15 = vpop.f32.mrf.mxu2 }
 0x611   :  { %1817 = vmatpush.msrb.mxu1 %v9833_v62 }
 0x613   :  { %1818 = vmatpush.msrb.mxu1 %v9834_v54 }
 0x616   :  { %v11431_v4 = vpop.f32.mrf.mxu0 }
 0x617   :  { %9443 = vmatmul.msk.f32.gmra.mxu1 %vm444_vm5, %v11407_v35  ;;  %9451 = vmatmul.msk.f32.gmra.mxu3 %vm444_vm5, %v1528_v10 }
 0x61e   :  { %v1441_v63 = vpop.f32.mrf.mxu0 }
 0x61f   :  { %v1564_v60 = vsel %vm587_vm6, %v1441_v63, -inf }
 0x620   :  { %1565 = vmax.xlane.f32.xlu2 %v1564_v60 }
 0x626   :  { %v1444_v53 = vpop.f32.mrf.mxu0 }
 0x627   :  { %v1567_v21 = vsel %vm587_vm6, %v1444_v53, -inf }
 0x628   :  { %1568 = vmax.xlane.f32.xlu0 %v1567_v21 }
 0x63c   :  { %9836 = vrot.lane.b32.xlu0 %v11147_v18, %s10724_s10 }
 0x644   :  { %1898 = vrot.lane.b32.xlu0 %v11051_v61, %s10726_s12 }
 0x64a   :  { %v11444_v35 = vpop.f32.mrf.mxu2 }
 0x64c   :  { %1941 = vrot.lane.b32.xlu0 %v11061_v3, %s10725_s11 }
 0x652   :  { %v1519_v45 = vpop.f32.mrf.mxu2 }
 0x653   :  { %v1576_v57 = vsel %vm587_vm6, %v1519_v45, -inf }
 0x654   :  { %1577 = vmax.xlane.f32.xlu2 %v1576_v57  ;;  %1939 = vrot.lane.b32.xlu0 %v11055_v14, %s10725_s11 }
 0x65a   :  { %v11451_v39 = vpop.f32.mrf.mxu2 }
 0x65b   :  { %v1579_v2 = vsel %vm587_vm6, %v11451_v39, -inf }
 0x65c   :  { %1580 = vmax.xlane.f32.xlu2 %v1579_v2 }
 0x674   :  { %v11455_v58 = vpop.f32.mrf.mxu1 }
 0x682   :  { %v11459_v9 = vpop.f32.mrf.mxu3 }
 0x684   :  { %v11457_v61 = vpop.f32.mrf.mxu1 }
 0x68a   :  { %v11462_v16 = vpop.f32.mrf.mxu3 }
 0x68c   :  { %v1480_v44 = vpop.f32.mrf.mxu1 }
 0x68d   :  { %v1570_v31 = vsel %vm587_vm6, %v1480_v44, -inf }
 0x68e   :  { %1571 = vmax.xlane.f32.xlu1 %v1570_v31 }
 0x692   :  { %v1558_v11 = vpop.f32.mrf.mxu3 }
 0x693   :  { %v1566_v40 = vpop.xlane.xlu2 %1565  ;;  %v1582_v55 = vsel %vm587_vm6, %v1558_v11, -inf }
 0x694   :  { %v1483_v17 = vpop.f32.mrf.mxu1  ;;  %v1588_v46 = vsub.f32 %v1441_v63, %v1566_v40 }
 0x695   :  { %v1573_v50 = vsel %vm587_vm6, %v1483_v17, -inf }
 0x696   :  { %1574 = vmax.xlane.f32.xlu0 %v1573_v50  ;;  %v1596_v20 = vmul.f32 1.442695, %v1588_v46 }
 0x698   :  { %10157 = vpow2.f32 %v1596_v20 }
 0x69a   :  { %v11482_v19 = vpop.f32.mrf.mxu3 }
 0x69b   :  { %v1569_v13 = vpop.xlane.xlu0 %1568 }
 0x69c   :  { %v1589_v43 = vsub.f32 %v1444_v53, %v1569_v13 }
 0x69e   :  { %1583 = vmax.xlane.f32.xlu0 %v1582_v55  ;;  %v11466_v30 = vpop.eup %10157  ;;  %v1598_v25 = vmul.f32 1.442695, %v1589_v43 }
 0x69f   :  { %v1612_v34 = vsel %vm587_vm6, %v11466_v30, 0.0 }
 0x6a0   :  { %1613 = vadd.xlane.f32.xlu2 %v1612_v34 }
 0x6a7   :  { %1896 = vrot.lane.b32.xlu1 %v11047_v59, %s10726_s12 }
 0x6ae   :  { %v9837_v12 = vpop.permute.xlu0 %9836 }
 0x6af   :  { %v9838_v29 = vunpack.i.l.bf16 %v9837_v12  ;;  %v9839_v38 = vunpack.i.h.bf16 %v9837_v12 }
 0x6b1   :  { %1852 = vmatpush.msrb.mxu2 %v9838_v29 }
 0x6b2   :  { %1935 = vrot.lane.b32.xlu0 %v11055_v14, %s10726_s12  ;;  %v1585_v14 = vsel %vm587_vm6, %v11482_v19, -inf }
 0x6b3   :  { %1853 = vmatpush.msrb.mxu2 %v9839_v38 }
 0x6b6   :  { %v11474_v48 = vpop.permute.xlu0 %1898 }
 0x6b8   :  { %1980 = vrot.lane.b32.xlu2 %v11073_v8, %s10725_s11 }
 0x6ba   :  { %9841 = vrot.lane.b32.xlu0 %v11133_v5, %s10724_s10 }
 0x6be   :  { %v1942_v51 = vpop.permute.xlu0 %1941 }
 0x6bf   :  { %9464 = vmatpush.xpose.msk.msra.mxu1 %vm444_vm5, %v1942_v51 }
 0x6c6   :  { %v1940_v59 = vpop.permute.xlu0 %1939 }
 0x6c7   :  { %9465 = vmatpush.xpose.msk.msra.mxu1 %vm444_vm5, %v1940_v59  ;;  %v1578_v52 = vpop.xlane.xlu2 %1577 }
 0x6c8   :  { %v1592_v56 = vsub.f32 %v1519_v45, %v1578_v52 }
 0x6ca   :  { %v1604_v36 = vmul.f32 1.442695, %v1592_v56 }
 0x6cc   :  { %10159 = vpow2.f32 %v1604_v36 }
 0x6cd   :  { %10161 = vpow2.f32 %v1598_v25 }
 0x6cf   :  { %v1581_v57 = vpop.xlane.xlu2 %1580 }
 0x6d1   :  { %1586 = vmax.xlane.f32.xlu1 %v1585_v14 }
 0x6d2   :  { %v11486_v27 = vpop.eup %10159 }
 0x6d3   :  { %v1624_v10 = vsel %vm587_vm6, %v11486_v27, 0.0  ;;  %v11490_v41 = vpop.eup %10161 }
 0x6d4   :  { %v1615_v62 = vsel %vm587_vm6, %v11490_v41, 0.0 }
 0x6e4   :  { %1625 = vadd.xlane.f32.xlu0 %v1624_v10 }
 0x6ec   :  { %1616 = vadd.xlane.f32.xlu0 %v1615_v62 }
 0x700   :  { %1978 = vrot.lane.b32.xlu0 %v11071_v7, %s10725_s11 }
 0x701   :  { %v1572_v54 = vpop.xlane.xlu1 %1571 }
 0x702   :  { %v1590_v63 = vsub.f32 %v1480_v44, %v1572_v54 }
 0x704   :  { %v1600_v60 = vmul.f32 1.442695, %v1590_v63 }
 0x706   :  { %10163 = vpow2.f32 %v1600_v60 }
 0x709   :  { %v1575_v53 = vpop.xlane.xlu0 %1574 }
 0x70a   :  { %v1591_v21 = vsub.f32 %v1483_v17, %v1575_v53  ;;  %v1593_v17 = vsub.f32 %v11451_v39, %v1581_v57 }
 0x70c   :  { %v11496_v45 = vpop.eup %10163  ;;  %v1602_v2 = vmul.f32 1.442695, %v1591_v21  ;;  %v1606_v12 = vmul.f32 1.442695, %v1593_v17 }
 0x70d   :  { %v1618_v31 = vsel %vm587_vm6, %v11496_v45, 0.0 }
 0x70e   :  { %10165 = vpow2.f32 %v1602_v2  ;;  %1619 = vadd.xlane.f32.xlu1 %v1618_v31 }
 0x711   :  { %v1584_v40 = vpop.xlane.xlu0 %1583 }
 0x712   :  { %v1594_v46 = vsub.f32 %v1558_v11, %v1584_v40 }
 0x713   :  { %v1614_v55 = vpop.xlane.xlu2 %1613 }
 0x714   :  { %v11500_v50 = vpop.eup %10165  ;;  %v1608_v20 = vmul.f32 1.442695, %v1594_v46  ;;  %10167 = vrcp.f32 %v1614_v55  ;;  %v1647_v59 = vand.u32 2147483648, %v1614_v55  ;;  %v1645_v14 = vand.u32 2147483647, %v1614_v55 }
 0x715   :  { %v1621_v44 = vsel %vm587_vm6, %v11500_v50, 0.0  ;;  %vm1641_vm7 = vweird.f32 %v1614_v55 }
 0x716   :  { %10169 = vpow2.f32 %v1608_v20  ;;  %1622 = vadd.xlane.f32.xlu1 %v1621_v44  ;;  %v1648_v39 = vor.u32 1.1754944e-38, %v1647_v59  ;;  %vm1646_vm9 = vcmp.eq.f32.partialorder %v1645_v14, 8.507059e+37 }
 0x717   :  { %10171 = vpow2.f32 %v1606_v12 }
 0x719   :  { %v1897_v21 = vpop.permute.xlu1 %1896 }
 0x71a   :  { %v10168_v34 = vpop.eup %10167 }
 0x71b   :  { %v1637_v29 = vmul.f32 %v10168_v34, %v1614_v55  ;;  %v1981_v38 = vpop.permute.xlu2 %1980  ;;  %vm1642_vm4 = vweird.f32 %v10168_v34 }
 0x71c   :  { %v11505_v13 = vpop.eup %10169  ;;  %9468 = vmatpush.xpose.msk.msra.mxu2 %vm444_vm5, %v1981_v38  ;;  %vm1643_vm8 = vmor %vm1641_vm7, %vm1642_vm4 }
 0x71d   :  { %v1630_v11 = vsel %vm587_vm6, %v11505_v13, 0.0  ;;  %v1638_v51 = vsub.f32 1.0, %v1637_v29  ;;  %v11512_v10 = vpop.eup %10171 }
 0x71e   :  { %1631 = vadd.xlane.f32.xlu2 %v1630_v11  ;;  %v1627_v54 = vsel %vm587_vm6, %v11512_v10, 0.0 }
 0x71f   :  { %v1639_v52 = vmul.f32 %v10168_v34, %v1638_v51 }
 0x721   :  { %v1640_v56 = vadd.f32 %v10168_v34, %v1639_v52 }
 0x723   :  { %v1644_v36 = vsel %vm1643_vm8, %v10168_v34, %v1640_v56 }
 0x724   :  { %v11510_v43 = vpop.permute.xlu0 %1935  ;;  %v1649_v25 = vsel %vm1646_vm9, %v1648_v39, %v1644_v36 }
 0x725   :  { %v1650_v62 = vmul.f32 %v11466_v30, %v1649_v25 }
 0x727   :  { %9452 = vmatmul.msk.f32.vlgmr.msrb.gmra.mxu0 %vm587_vm6, %v1650_v62 }
 0x72a   :  { %1628 = vadd.xlane.f32.xlu0 %v1627_v54 }
 0x72c   :  { %v9842_v63 = vpop.permute.xlu0 %9841 }
 0x72d   :  { %v9843_v60 = vunpack.i.l.bf16 %v9842_v63  ;;  %v9844_v53 = vunpack.i.h.bf16 %v9842_v63 }
 0x72f   :  { %1887 = vmatpush.msrb.mxu3 %v9843_v60 }
 0x731   :  { %1888 = vmatpush.msrb.mxu3 %v9844_v53 }
 0x736   :  { %1937 = vrot.lane.b32.xlu2 %v11061_v3, %s10726_s12 }
 0x73e   :  { %2019 = vrot.lane.b32.xlu2 %v11067_v6, %s10725_s11  ;;  %1976 = vrot.lane.b32.xlu0 %v11073_v8, %s10726_s12 }
 0x744   :  { %v1587_v30 = vpop.xlane.xlu1 %1586 }
 0x745   :  { %v1595_v57 = vsub.f32 %v11482_v19, %v1587_v30 }
 0x746   :  { %2013 = vrot.lane.b32.xlu2 %v11059_v1, %s10726_s12  ;;  %2017 = vrot.lane.b32.xlu0 %v11059_v1, %s10725_s11 }
 0x747   :  { %v1610_v2 = vmul.f32 1.442695, %v1595_v57 }
 0x749   :  { %10173 = vpow2.f32 %v1610_v2 }
 0x74e   :  { %2015 = vrot.lane.b32.xlu0 %v11067_v6, %s10726_s12 }
 0x74f   :  { %v11531_v3 = vpop.eup %10173 }
 0x750   :  { %v1633_v31 = vsel %vm587_vm6, %v11531_v3, 0.0 }
 0x751   :  { %1634 = vadd.xlane.f32.xlu1 %v1633_v31 }
 0x757   :  { %v1626_v8 = vpop.xlane.xlu0 %1625 }
 0x758   :  { %10175 = vrcp.f32 %v1626_v8  ;;  %v1707_v55 = vand.u32 2147483648, %v1626_v8  ;;  %v1705_v44 = vand.u32 2147483647, %v1626_v8  ;;  %vm1701_vm11 = vweird.f32 %v1626_v8 }
 0x75a   :  { %v1708_v34 = vor.u32 1.1754944e-38, %v1707_v55  ;;  %vm1706_vm13 = vcmp.eq.f32.partialorder %v1705_v44, 8.507059e+37 }
 0x75e   :  { %v10176_v19 = vpop.eup %10175 }
 0x75f   :  { %v1697_v40 = vmul.f32 %v10176_v19, %v1626_v8  ;;  %v1617_v46 = vpop.xlane.xlu0 %1616  ;;  %vm1702_vm10 = vweird.f32 %v10176_v19 }
 0x760   :  { %10177 = vrcp.f32 %v1617_v46  ;;  %vm1703_vm12 = vmor %vm1701_vm11, %vm1702_vm10  ;;  %v1662_v59 = vand.u32 2147483648, %v1617_v46  ;;  %v1660_v14 = vand.u32 2147483647, %v1617_v46  ;;  %vm1656_vm15 = vweird.f32 %v1617_v46 }
 0x761   :  { %v1698_v20 = vsub.f32 1.0, %v1697_v40 }
 0x762   :  { %v1663_v39 = vor.u32 1.1754944e-38, %v1662_v59  ;;  %vm1661_vm2 = vcmp.eq.f32.partialorder %v1660_v14, 8.507059e+37 }
 0x763   :  { %v1699_v1 = vmul.f32 %v10176_v19, %v1698_v20 }
 0x765   :  { %v1700_v17 = vadd.f32 %v10176_v19, %v1699_v1 }
 0x766   :  { %v10178_v6 = vpop.eup %10177 }
 0x767   :  { %v1704_v12 = vsel %vm1703_vm12, %v10176_v19, %v1700_v17  ;;  %v1652_v29 = vmul.f32 %v10178_v6, %v1617_v46  ;;  %vm1657_vm14 = vweird.f32 %v10178_v6 }
 0x768   :  { %v1709_v38 = vsel %vm1706_vm13, %v1708_v34, %v1704_v12  ;;  %vm1658_vm1 = vmor %vm1656_vm15, %vm1657_vm14 }
 0x769   :  { %v1653_v11 = vsub.f32 1.0, %v1652_v29  ;;  %v1710_v51 = vmul.f32 %v11486_v27, %v1709_v38 }
 0x76a   :  { %1974 = vrot.lane.b32.xlu1 %v11071_v7, %s10726_s12 }
 0x76b   :  { %9456 = vmatmul.msk.f32.vlgmr.msrb.gmra.mxu2 %vm587_vm6, %v1710_v51  ;;  %v1654_v52 = vmul.f32 %v10178_v6, %v1653_v11 }
 0x76d   :  { %v1655_v56 = vadd.f32 %v10178_v6, %v1654_v52 }
 0x76f   :  { %v1659_v36 = vsel %vm1658_vm1, %v10178_v6, %v1655_v56 }
 0x770   :  { %v1664_v25 = vsel %vm1661_vm2, %v1663_v39, %v1659_v36 }
 0x771   :  { %v1665_v62 = vmul.f32 %v11490_v41, %v1664_v25 }
 0x772   :  { %v1979_v54 = vpop.permute.xlu0 %1978 }
 0x773   :  { %9453 = vmatmul.msk.f32.gmra.mxu0 %vm587_vm6, %v1665_v62  ;;  %9469 = vmatpush.xpose.msk.msra.mxu2 %vm444_vm5, %v1979_v54 }
 0x77b   :  { %9462 = vmatmul.msk.f32.vlgmr.msra.gmra.mxu0 %vm444_vm5, %v1897_v21 }
 0x781   :  { %v1620_v7 = vpop.xlane.xlu1 %1619 }
 0x782   :  { %10179 = vrcp.f32 %v1620_v7  ;;  %v1677_v41 = vand.u32 2147483648, %v1620_v7  ;;  %v1675_v57 = vand.u32 2147483647, %v1620_v7  ;;  %vm1671_vm4 = vweird.f32 %v1620_v7 }
 0x783   :  { %9463 = vmatmul.msk.f32.gmra.mxu0 %vm444_vm5, %v11474_v48 }
 0x784   :  { %v1678_v21 = vor.u32 1.1754944e-38, %v1677_v41  ;;  %vm1676_vm8 = vcmp.eq.f32.partialorder %v1675_v57, 8.507059e+37 }
 0x788   :  { %v10180_v27 = vpop.eup %10179 }
 0x789   :  { %v1667_v63 = vmul.f32 %v10180_v27, %v1620_v7  ;;  %v1623_v60 = vpop.xlane.xlu1 %1622  ;;  %vm1672_vm3 = vweird.f32 %v10180_v27 }
 0x78a   :  { %10181 = vrcp.f32 %v1623_v60  ;;  %vm1673_vm7 = vmor %vm1671_vm4, %vm1672_vm3  ;;  %v1692_v55 = vand.u32 2147483648, %v1623_v60  ;;  %v1690_v44 = vand.u32 2147483647, %v1623_v60  ;;  %vm1686_vm10 = vweird.f32 %v1623_v60 }
 0x78b   :  { %v1668_v53 = vsub.f32 1.0, %v1667_v63 }
 0x78c   :  { %v1693_v29 = vor.u32 1.1754944e-38, %v1692_v55  ;;  %vm1691_vm12 = vcmp.eq.f32.partialorder %v1690_v44, 8.507059e+37 }
 0x78d   :  { %v1669_v30 = vmul.f32 %v10180_v27, %v1668_v53 }
 0x78f   :  { %v1670_v2 = vadd.f32 %v10180_v27, %v1669_v30 }
 0x790   :  { %v10182_v31 = vpop.eup %10181 }
 0x791   :  { %v1674_v8 = vsel %vm1673_vm7, %v10180_v27, %v1670_v2  ;;  %v1632_v19 = vpop.xlane.xlu2 %1631  ;;  %v1682_v40 = vmul.f32 %v10182_v31, %v1623_v60  ;;  %vm1687_vm9 = vweird.f32 %v10182_v31 }
 0x792   :  { %10183 = vrcp.f32 %v1632_v19  ;;  %v1679_v48 = vsel %vm1676_vm8, %v1678_v21, %v1674_v8  ;;  %vm1688_vm11 = vmor %vm1686_vm10, %vm1687_vm9  ;;  %v1737_v59 = vand.u32 2147483648, %v1632_v19  ;;  %v1735_v14 = vand.u32 2147483647, %v1632_v19 }
 0x793   :  { %v1683_v46 = vsub.f32 1.0, %v1682_v40  ;;  %v1680_v20 = vmul.f32 %v11496_v45, %v1679_v48  ;;  %vm1731_vm14 = vweird.f32 %v1632_v19 }
 0x794   :  { %v1738_v36 = vor.u32 1.1754944e-38, %v1737_v59  ;;  %vm1736_vm1 = vcmp.eq.f32.partialorder %v1735_v14, 8.507059e+37 }
 0x795   :  { %9454 = vmatmul.msk.f32.vlgmr.msrb.gmra.mxu1 %vm587_vm6, %v1680_v20  ;;  %v1684_v1 = vmul.f32 %v10182_v31, %v1683_v46 }
 0x797   :  { %v1685_v6 = vadd.f32 %v10182_v31, %v1684_v1 }
 0x798   :  { %v10184_v17 = vpop.eup %10183 }
 0x799   :  { %v1727_v34 = vmul.f32 %v10184_v17, %v1632_v19  ;;  %v1938_v12 = vpop.permute.xlu2 %1937  ;;  %v1689_v38 = vsel %vm1688_vm11, %v10182_v31, %v1685_v6  ;;  %vm1732_vm13 = vweird.f32 %v10184_v17 }
 0x79a   :  { %v1694_v51 = vsel %vm1691_vm12, %v1693_v29, %v1689_v38  ;;  %vm1733_vm15 = vmor %vm1731_vm14, %vm1732_vm13 }
 0x79b   :  { %v1728_v11 = vsub.f32 1.0, %v1727_v34  ;;  %v1695_v45 = vmul.f32 %v11500_v50, %v1694_v51 }
 0x79d   :  { %v1729_v52 = vmul.f32 %v10184_v17, %v1728_v11  ;;  %v1629_v56 = vpop.xlane.xlu0 %1628  ;;  %9455 = vmatmul.msk.f32.gmra.mxu1 %vm587_vm6, %v1695_v45 }
 0x79e   :  { %10185 = vrcp.f32 %v1629_v56  ;;  %v1722_v60 = vand.u32 2147483648, %v1629_v56  ;;  %v1720_v30 = vand.u32 2147483647, %v1629_v56  ;;  %vm1716_vm3 = vweird.f32 %v1629_v56 }
 0x79f   :  { %v1730_v39 = vadd.f32 %v10184_v17, %v1729_v52 }
 0x7a0   :  { %v1723_v57 = vor.u32 1.1754944e-38, %v1722_v60  ;;  %vm1721_vm7 = vcmp.eq.f32.partialorder %v1720_v30, 8.507059e+37 }
 0x7a1   :  { %v1734_v25 = vsel %vm1733_vm15, %v10184_v17, %v1730_v39  ;;  %v2020_v62 = vpop.permute.xlu2 %2019 }
 0x7a2   :  { %9472 = vmatpush.xpose.msk.msra.mxu3 %vm444_vm5, %v2020_v62  ;;  %v1739_v54 = vsel %vm1736_vm1, %v1738_v36, %v1734_v25 }
 0x7a3   :  { %v1740_v7 = vmul.f32 %v11505_v13, %v1739_v54 }
 0x7a4   :  { %v10186_v50 = vpop.eup %10185  ;;  %v11563_v38 = vpop.f32.mrf.mxu0 }
 0x7a5   :  { %v1712_v27 = vmul.f32 %v10186_v50, %v1629_v56  ;;  %9458 = vmatmul.msk.f32.vlgmr.msrb.gmra.mxu3 %vm587_vm6, %v1740_v7  ;;  %9466 = vmatmul.msk.f32.vlgmr.msra.gmra.mxu1 %vm444_vm5, %v11510_v43  ;;  %vm1717_vm2 = vweird.f32 %v10186_v50 }
 0x7a6   :  { %vm1718_vm4 = vmor %vm1716_vm3, %vm1717_vm2 }
 0x7a7   :  { %v1713_v63 = vsub.f32 1.0, %v1712_v27 }
 0x7a9   :  { %v1714_v53 = vmul.f32 %v10186_v50, %v1713_v63 }
 0x7ab   :  { %v1715_v41 = vadd.f32 %v10186_v50, %v1714_v53 }
 0x7ad   :  { %v1719_v2 = vsel %vm1718_vm4, %v10186_v50, %v1715_v41  ;;  %9467 = vmatmul.msk.f32.gmra.mxu1 %vm444_vm5, %v1938_v12  ;;  %v2014_v12 = vpop.permute.xlu2 %2013 }
 0x7ae   :  { %v1724_v13 = vsel %vm1721_vm7, %v1723_v57, %v1719_v2 }
 0x7af   :  { %v1725_v31 = vmul.f32 %v11512_v10, %v1724_v13 }
 0x7b0   :  { %v1977_v8 = vpop.permute.xlu0 %1976 }
 0x7b1   :  { %9457 = vmatmul.msk.f32.gmra.mxu2 %vm587_vm6, %v1725_v31 }
 0x7b8   :  { %v2018_v43 = vpop.permute.xlu0 %2017 }
 0x7b9   :  { %9473 = vmatpush.xpose.msk.msra.mxu3 %vm444_vm5, %v2018_v43 }
 0x7c0   :  { %v2016_v29 = vpop.permute.xlu0 %2015 }
 0x7c4   :  { %v1635_v21 = vpop.xlane.xlu1 %1634 }
 0x7c5   :  { %10187 = vrcp.f32 %v1635_v21  ;;  %v1752_v46 = vand.u32 2147483648, %v1635_v21  ;;  %v1750_v55 = vand.u32 2147483647, %v1635_v21  ;;  %vm1746_vm9 = vweird.f32 %v1635_v21 }
 0x7c7   :  { %v1753_v44 = vor.u32 1.1754944e-38, %v1752_v46  ;;  %vm1751_vm11 = vcmp.eq.f32.partialorder %v1750_v55, 8.507059e+37 }
 0x7cb   :  { %v10188_v19 = vpop.eup %10187 }
 0x7cc   :  { %v1742_v40 = vmul.f32 %v10188_v19, %v1635_v21  ;;  %vm1747_vm8 = vweird.f32 %v10188_v19 }
 0x7cd   :  { %vm1748_vm10 = vmor %vm1746_vm9, %vm1747_vm8 }
 0x7ce   :  { %v1743_v48 = vsub.f32 1.0, %v1742_v40 }
 0x7d0   :  { %v1744_v20 = vmul.f32 %v10188_v19, %v1743_v48 }
 0x7d2   :  { %v1745_v1 = vadd.f32 %v10188_v19, %v1744_v20 }
 0x7d4   :  { %v1749_v10 = vsel %vm1748_vm10, %v10188_v19, %v1745_v1 }
 0x7d5   :  { %v1754_v17 = vsel %vm1751_vm11, %v1753_v44, %v1749_v10 }
 0x7d6   :  { %v1755_v6 = vmul.f32 %v11531_v3, %v1754_v17 }
 0x7d8   :  { %9459 = vmatmul.msk.f32.gmra.mxu3 %vm587_vm6, %v1755_v6 }
 0x7dc   :  { %v1975_v34 = vpop.permute.xlu1 %1974 }
 0x7dd   :  { %9470 = vmatmul.msk.f32.vlgmr.msra.gmra.mxu2 %vm444_vm5, %v1975_v34 }
 0x7e0   :  { %9474 = vmatmul.msk.f32.vlgmr.msra.gmra.mxu3 %vm444_vm5, %v2014_v12 }
 0x7e5   :  { %9471 = vmatmul.msk.f32.gmra.mxu2 %vm444_vm5, %v1977_v8 }
 0x7e8   :  { %9475 = vmatmul.msk.f32.gmra.mxu3 %vm444_vm5, %v2016_v29 }
 0x7ee   :  { %v11576_v62 = vpop.f32.mrf.mxu2 }
 0x7f0   :  { %v11566_v11 = vpop.f32.mrf.mxu0 }
 0x7f8   :  { %v1929_v51 = vpop.f32.mrf.mxu0 }
 0x7f9   :  { %v2052_v3 = vsel %vm587_vm6, %v1929_v51, -inf }
 0x7fa   :  { %2053 = vmax.xlane.f32.xlu1 %v2052_v3 }
 0x800   :  { %v1932_v59 = vpop.f32.mrf.mxu0 }
 0x801   :  { %v2055_v45 = vsel %vm587_vm6, %v1932_v59, -inf }
 0x802   :  { %2056 = vmax.xlane.f32.xlu2 %v2055_v45 }
 0x812   :  { %v11570_v52 = vpop.f32.mrf.mxu1 }
 0x81a   :  { %v11572_v14 = vpop.f32.mrf.mxu1 }
 0x822   :  { %v1968_v56 = vpop.f32.mrf.mxu1 }
 0x823   :  { %v2058_v39 = vsel %vm587_vm6, %v1968_v56, -inf }
 0x824   :  { %2059 = vmax.xlane.f32.xlu0 %v2058_v39 }
 0x828   :  { %v11578_v54 = vpop.f32.mrf.mxu3 }
 0x82a   :  { %v1971_v36 = vpop.f32.mrf.mxu1 }
 0x82b   :  { %v2061_v25 = vsel %vm587_vm6, %v1971_v36, -inf }
 0x82c   :  { %2062 = vmax.xlane.f32.xlu1 %v2061_v25 }
 0x834   :  { %v11580_v7 = vpop.f32.mrf.mxu2 }
 0x85b   :  { %v11582_v50 = vpop.f32.mrf.mxu3 }
 0x860   :  { %v2007_v27 = vpop.f32.mrf.mxu2 }
 0x861   :  { %v2064_v63 = vsel %vm587_vm6, %v2007_v27, -inf }
 0x862   :  { %2065 = vmax.xlane.f32.xlu2 %v2064_v63 }
 0x863   :  { %v2046_v60 = vpop.f32.mrf.mxu3 }
 0x864   :  { %v2070_v53 = vsel %vm587_vm6, %v2046_v60, -inf }
 0x865   :  { %2071 = vmax.xlane.f32.xlu1 %v2070_v53 }
 0x868   :  { %v2010_v30 = vpop.f32.mrf.mxu2 }
 0x869   :  { %v2067_v41 = vsel %vm587_vm6, %v2010_v30, -inf }
 0x86a   :  { %2068 = vmax.xlane.f32.xlu0 %v2067_v41 }
 0x86b   :  { %v2049_v57 = vpop.f32.mrf.mxu3 }
 0x86c   :  { %v2073_v2 = vsel %vm587_vm6, %v2049_v57, -inf }
 0x86d   :  { %v2054_v13 = vpop.xlane.xlu1 %2053  ;;  %2074 = vmax.xlane.f32.xlu2 %v2073_v2 }
 0x86e   :  { %v2076_v31 = vsub.f32 %v1929_v51, %v2054_v13 }
 0x870   :  { %v2084_v8 = vmul.f32 1.442695, %v2076_v31 }
 0x872   :  { %10189 = vpow2.f32 %v2084_v8 }
 0x875   :  { %v2057_v43 = vpop.xlane.xlu2 %2056 }
 0x876   :  { %v2077_v21 = vsub.f32 %v1932_v59, %v2057_v43 }
 0x878   :  { %v11588_v19 = vpop.eup %10189  ;;  %v2086_v40 = vmul.f32 1.442695, %v2077_v21 }
 0x879   :  { %v2100_v48 = vsel %vm587_vm6, %v11588_v19, 0.0 }
 0x87a   :  { %10191 = vpow2.f32 %v2086_v40  ;;  %2101 = vadd.xlane.f32.xlu0 %v2100_v48 }
 0x880   :  { %v11592_v46 = vpop.eup %10191 }
 0x881   :  { %v2103_v20 = vsel %vm587_vm6, %v11592_v46, 0.0 }
 0x882   :  { %2104 = vadd.xlane.f32.xlu1 %v2103_v20 }
 0x88e   :  { %9846 = vrot.lane.b32.xlu0 %v11129_v32, %s10727_s13 }
 0x897   :  { %v2060_v55 = vpop.xlane.xlu0 %2059 }
 0x898   :  { %v2078_v1 = vsub.f32 %v1968_v56, %v2060_v55 }
 0x89a   :  { %v2088_v44 = vmul.f32 1.442695, %v2078_v1 }
 0x89c   :  { %10193 = vpow2.f32 %v2088_v44 }
 0x89f   :  { %v2063_v10 = vpop.xlane.xlu1 %2062 }
 0x8a0   :  { %v2079_v17 = vsub.f32 %v1971_v36, %v2063_v10 }
 0x8a2   :  { %v11598_v6 = vpop.eup %10193  ;;  %v2090_v34 = vmul.f32 1.442695, %v2079_v17 }
 0x8a3   :  { %v2106_v12 = vsel %vm587_vm6, %v11598_v6, 0.0 }
 0x8a4   :  { %10195 = vpow2.f32 %v2090_v34  ;;  %2107 = vadd.xlane.f32.xlu2 %v2106_v12 }
 0x8aa   :  { %v11602_v29 = vpop.eup %10195 }
 0x8ab   :  { %v2109_v51 = vsel %vm587_vm6, %v11602_v29, 0.0 }
 0x8ac   :  { %2110 = vadd.xlane.f32.xlu1 %v2109_v51 }
 0x8c5   :  { %9851 = vrot.lane.b32.xlu1 %v11121_v37, %s10727_s13 }
 0x8d5   :  { %v2066_v32 = vpop.xlane.xlu2 %2065 }
 0x8d6   :  { %v2080_v3 = vsub.f32 %v2007_v27, %v2066_v32 }
 0x8d8   :  { %v2092_v59 = vmul.f32 1.442695, %v2080_v3  ;;  %v2072_v45 = vpop.xlane.xlu1 %2071 }
 0x8d9   :  { %v2082_v56 = vsub.f32 %v2046_v60, %v2072_v45 }
 0x8da   :  { %10197 = vpow2.f32 %v2092_v59 }
 0x8db   :  { %v2096_v39 = vmul.f32 1.442695, %v2082_v56 }
 0x8dd   :  { %10199 = vpow2.f32 %v2096_v39  ;;  %v2069_v36 = vpop.xlane.xlu0 %2068 }
 0x8de   :  { %v2081_v25 = vsub.f32 %v2010_v30, %v2069_v36 }
 0x8e0   :  { %v11608_v63 = vpop.eup %10197  ;;  %v2094_v53 = vmul.f32 1.442695, %v2081_v25  ;;  %v2075_v41 = vpop.xlane.xlu2 %2074 }
 0x8e1   :  { %v2083_v2 = vsub.f32 %v2049_v57, %v2075_v41  ;;  %v2112_v13 = vsel %vm587_vm6, %v11608_v63, 0.0 }
 0x8e2   :  { %10201 = vpow2.f32 %v2094_v53  ;;  %2113 = vadd.xlane.f32.xlu2 %v2112_v13 }
 0x8e3   :  { %v11612_v37 = vpop.eup %10199  ;;  %v2098_v27 = vmul.f32 1.442695, %v2083_v2 }
 0x8e4   :  { %v2118_v60 = vsel %vm587_vm6, %v11612_v37, 0.0 }
 0x8e5   :  { %2119 = vadd.xlane.f32.xlu0 %v2118_v60  ;;  %10203 = vpow2.f32 %v2098_v27 }
 0x8e8   :  { %v11616_v31 = vpop.eup %10201 }
 0x8e9   :  { %v2115_v30 = vsel %vm587_vm6, %v11616_v31, 0.0 }
 0x8ea   :  { %2116 = vadd.xlane.f32.xlu2 %v2115_v30 }
 0x8eb   :  { %v11620_v57 = vpop.eup %10203 }
 0x8ec   :  { %v2121_v43 = vsel %vm587_vm6, %v11620_v57, 0.0 }
 0x8ed   :  { %v2102_v8 = vpop.xlane.xlu0 %2101 }
 0x8ee   :  { %10205 = vrcp.f32 %v2102_v8  ;;  %v2135_v44 = vand.u32 2147483648, %v2102_v8  ;;  %vm2129_vm13 = vweird.f32 %v2102_v8  ;;  %v2133_v17 = vand.u32 2147483647, %v2102_v8 }
 0x8ef   :  { %2122 = vadd.xlane.f32.xlu1 %v2121_v43 }
 0x8f0   :  { %v2136_v51 = vor.u32 1.1754944e-38, %v2135_v44  ;;  %vm2134_vm15 = vcmp.eq.f32.partialorder %v2133_v17, 8.507059e+37 }
 0x8f4   :  { %v10206_v21 = vpop.eup %10205 }
 0x8f5   :  { %v2125_v40 = vmul.f32 %v10206_v21, %v2102_v8  ;;  %v2105_v48 = vpop.xlane.xlu1 %2104  ;;  %vm2130_vm12 = vweird.f32 %v10206_v21 }
 0x8f6   :  { %10207 = vrcp.f32 %v2105_v48  ;;  %vm2131_vm14 = vmor %vm2129_vm13, %vm2130_vm12  ;;  %v2150_v36 = vand.u32 2147483648, %v2105_v48  ;;  %vm2144_vm2 = vweird.f32 %v2105_v48  ;;  %v2148_v53 = vand.u32 2147483647, %v2105_v48 }
 0x8f7   :  { %v2126_v20 = vsub.f32 1.0, %v2125_v40 }
 0x8f8   :  { %vm2149_vm4 = vcmp.eq.f32.partialorder %v2148_v53, 8.507059e+37 }
 0x8f9   :  { %v2127_v55 = vmul.f32 %v10206_v21, %v2126_v20  ;;  %2424 = vrot.lane.b32.xlu0 %v11563_v38, %s10728_s14 }
 0x8fb   :  { %v2128_v1 = vadd.f32 %v10206_v21, %v2127_v55 }
 0x8fc   :  { %v10208_v10 = vpop.eup %10207 }
 0x8fd   :  { %v2140_v34 = vmul.f32 %v10208_v10, %v2105_v48  ;;  %v2132_v12 = vsel %vm2131_vm14, %v10206_v21, %v2128_v1  ;;  %vm2145_vm1 = vweird.f32 %v10208_v10 }
 0x8fe   :  { %v2137_v45 = vsel %vm2134_vm15, %v2136_v51, %v2132_v12  ;;  %vm2146_vm3 = vmor %vm2144_vm2, %vm2145_vm1 }
 0x8ff   :  { %v2141_v32 = vsub.f32 1.0, %v2140_v34  ;;  %v2138_v25 = vmul.f32 %v11588_v19, %v2137_v45 }
 0x900   :  { %v9847_v3 = vpop.permute.xlu0 %9846 }
 0x901   :  { %v9848_v59 = vunpack.i.l.bf16 %v9847_v3  ;;  %2396 = vrot.lane.b32.xlu0 %v11455_v58, %s10715_s15  ;;  %v2142_v56 = vmul.f32 %v10208_v10, %v2141_v32  ;;  %v9849_v38 = vunpack.i.h.bf16 %v9847_v3  ;;  %v2151_v58 = vor.u32 1.1754944e-38, %v2150_v36 }
 0x902   :  { %9856 = vrot.lane.b32.xlu2 %v11147_v18, %s10727_s13 }
 0x903   :  { %2270 = vmatpush.msrb.mxu0 %v9848_v59  ;;  %v2143_v39 = vadd.f32 %v10208_v10, %v2142_v56 }
 0x905   :  { %2271 = vmatpush.msrb.mxu0 %v9849_v38  ;;  %v2147_v41 = vsel %vm2146_vm3, %v10208_v10, %v2143_v39 }
 0x906   :  { %9476 = vmatmul.msk.f32.vlgmr.msrb.gmra.mxu0 %vm587_vm6, %v2138_v25  ;;  %v2152_v18 = vsel %vm2149_vm4, %v2151_v58, %v2147_v41 }
 0x907   :  { %v2153_v2 = vmul.f32 %v11592_v46, %v2152_v18 }
 0x908   :  { %2426 = vrot.lane.b32.xlu1 %v11566_v11, %s10728_s14 }
 0x90a   :  { %9861 = vrot.lane.b32.xlu2 %v11133_v5, %s10727_s13 }
 0x90e   :  { %9477 = vmatmul.msk.f32.gmra.mxu0 %vm587_vm6, %v2153_v2 }
 0x912   :  { %2392 = vrot.lane.b32.xlu2 %v11425_v49, %s10715_s15 }
 0x917   :  { %v2108_v19 = vpop.xlane.xlu2 %2107 }
 0x918   :  { %10209 = vrcp.f32 %v2108_v19  ;;  %v2165_v21 = vand.u32 2147483648, %v2108_v19  ;;  %vm2159_vm8 = vweird.f32 %v2108_v19  ;;  %v2163_v40 = vand.u32 2147483647, %v2108_v19 }
 0x91a   :  { %2394 = vrot.lane.b32.xlu2 %v11431_v4, %s10715_s15  ;;  %v2166_v20 = vor.u32 1.1754944e-38, %v2165_v21  ;;  %vm2164_vm10 = vcmp.eq.f32.partialorder %v2163_v40, 8.507059e+37 }
 0x91e   :  { %v10210_v27 = vpop.eup %10209 }
 0x91f   :  { %v2111_v13 = vpop.xlane.xlu1 %2110  ;;  %v2155_v11 = vmul.f32 %v10210_v27, %v2108_v19  ;;  %vm2160_vm7 = vweird.f32 %v10210_v27 }
 0x920   :  { %10211 = vrcp.f32 %v2111_v13  ;;  %vm2161_vm9 = vmor %vm2159_vm8, %vm2160_vm7  ;;  %v2180_v17 = vand.u32 2147483648, %v2111_v13  ;;  %vm2174_vm12 = vweird.f32 %v2111_v13  ;;  %v2178_v12 = vand.u32 2147483647, %v2111_v13 }
 0x921   :  { %v2156_v60 = vsub.f32 1.0, %v2155_v11 }
 0x922   :  { %v2181_v32 = vor.u32 1.1754944e-38, %v2180_v17  ;;  %vm2179_vm14 = vcmp.eq.f32.partialorder %v2178_v12, 8.507059e+37 }
 0x923   :  { %v2157_v8 = vmul.f32 %v10210_v27, %v2156_v60 }
 0x925   :  { %v2158_v43 = vadd.f32 %v10210_v27, %v2157_v8 }
 0x926   :  { %v10212_v30 = vpop.eup %10211 }
 0x927   :  { %v2170_v5 = vmul.f32 %v10212_v30, %v2111_v13  ;;  %v2162_v49 = vsel %vm2161_vm9, %v10210_v27, %v2158_v43  ;;  %vm2175_vm11 = vweird.f32 %v10212_v30 }
 0x928   :  { %v2167_v1 = vsel %vm2164_vm10, %v2166_v20, %v2162_v49  ;;  %vm2176_vm13 = vmor %vm2174_vm12, %vm2175_vm11 }
 0x929   :  { %v2171_v46 = vsub.f32 1.0, %v2170_v5  ;;  %v2168_v34 = vmul.f32 %v11598_v6, %v2167_v1 }
 0x92b   :  { %v2172_v48 = vmul.f32 %v10212_v30, %v2171_v46 }
 0x92d   :  { %v2173_v44 = vadd.f32 %v10212_v30, %v2172_v48 }
 0x92f   :  { %v2177_v51 = vsel %vm2176_vm13, %v10212_v30, %v2173_v44 }
 0x930   :  { %v2182_v3 = vsel %vm2179_vm14, %v2181_v32, %v2177_v51 }
 0x931   :  { %v2183_v59 = vmul.f32 %v11602_v29, %v2182_v3 }
 0x937   :  { %v9852_v4 = vpop.permute.xlu1 %9851 }
 0x938   :  { %v9853_v55 = vunpack.i.l.bf16 %v9852_v4  ;;  %v9854_v10 = vunpack.i.h.bf16 %v9852_v4 }
 0x93a   :  { %2305 = vmatpush.msrb.mxu1 %v9853_v55 }
 0x93c   :  { %2306 = vmatpush.msrb.mxu1 %v9854_v10 }
 0x93d   :  { %9478 = vmatmul.msk.f32.vlgmr.msrb.gmra.mxu1 %vm587_vm6, %v2168_v34 }
 0x945   :  { %9479 = vmatmul.msk.f32.gmra.mxu1 %vm587_vm6, %v2183_v59 }
 0x955   :  { %v2114_v45 = vpop.xlane.xlu2 %2113 }
 0x956   :  { %10213 = vrcp.f32 %v2114_v45  ;;  %v2195_v53 = vand.u32 2147483648, %v2114_v45  ;;  %v2193_v18 = vand.u32 2147483647, %v2114_v45  ;;  %vm2189_vm1 = vweird.f32 %v2114_v45 }
 0x958   :  { %v2120_v56 = vpop.xlane.xlu0 %2119  ;;  %v2196_v27 = vor.u32 1.1754944e-38, %v2195_v53  ;;  %vm2194_vm3 = vcmp.eq.f32.partialorder %v2193_v18, 8.507059e+37 }
 0x959   :  { %10215 = vrcp.f32 %v2120_v56  ;;  %vm2219_vm4 = vweird.f32 %v2120_v56  ;;  %v2223_v40 = vand.u32 2147483647, %v2120_v56  ;;  %v2225_v49 = vand.u32 2147483648, %v2120_v56 }
 0x95b   :  { %v2226_v51 = vor.u32 1.1754944e-38, %v2225_v49  ;;  %vm2224_vm12 = vcmp.eq.f32.partialorder %v2223_v40, 8.507059e+37 }
 0x95c   :  { %v10214_v38 = vpop.eup %10213 }
 0x95d   :  { %v2185_v6 = vmul.f32 %v10214_v38, %v2114_v45  ;;  %v2117_v39 = vpop.xlane.xlu2 %2116  ;;  %vm2190_vm15 = vweird.f32 %v10214_v38 }
 0x95e   :  { %10217 = vrcp.f32 %v2117_v39  ;;  %vm2191_vm2 = vmor %vm2189_vm1, %vm2190_vm15  ;;  %v2210_v20 = vand.u32 2147483648, %v2117_v39  ;;  %v2208_v1 = vand.u32 2147483647, %v2117_v39  ;;  %vm2204_vm10 = vweird.f32 %v2117_v39 }
 0x95f   :  { %v10216_v36 = vpop.eup %10215  ;;  %v2186_v25 = vsub.f32 1.0, %v2185_v6 }
 0x960   :  { %v2215_v41 = vmul.f32 %v10216_v36, %v2120_v56  ;;  %vm2220_vm7 = vweird.f32 %v10216_v36  ;;  %vm2209_vm13 = vcmp.eq.f32.partialorder %v2208_v1, 8.507059e+37 }
 0x961   :  { %v2187_v58 = vmul.f32 %v10214_v38, %v2186_v25  ;;  %vm11647_vm9 = vmor %vm2219_vm4, %vm2220_vm7 }
 0x962   :  { %v2216_v2 = vsub.f32 1.0, %v2215_v41  ;;  %v2123_v29 = vpop.xlane.xlu1 %2122 }
 0x963   :  { %v2188_v19 = vadd.f32 %v10214_v38, %v2187_v58  ;;  %10219 = vrcp.f32 %v2123_v29  ;;  %vm2234_vm15 = vweird.f32 %v2123_v29  ;;  %v2238_v58 = vand.u32 2147483647, %v2123_v29 }
 0x964   :  { %v10218_v13 = vpop.eup %10217  ;;  %v2217_v11 = vmul.f32 %v10216_v36, %v2216_v2 }
 0x965   :  { %v2192_v60 = vsel %vm2191_vm2, %v10214_v38, %v2188_v19  ;;  %v2200_v30 = vmul.f32 %v10218_v13, %v2117_v39  ;;  %v9857_v8 = vpop.permute.xlu2 %9856  ;;  %vm2205_vm8 = vweird.f32 %v10218_v13  ;;  %vm2239_vm2 = vcmp.eq.f32.partialorder %v2238_v58, 8.507059e+37 }
 0x966   :  { %v9858_v5 = vunpack.i.l.bf16 %v9857_v8  ;;  %v2197_v43 = vsel %vm2194_vm3, %v2196_v27, %v2192_v60  ;;  %v2218_v46 = vadd.f32 %v10216_v36, %v2217_v11  ;;  %v9859_v48 = vunpack.i.h.bf16 %v9857_v8  ;;  %vm2206_vm11 = vmor %vm2204_vm10, %vm2205_vm8 }
 0x967   :  { %v2201_v21 = vsub.f32 1.0, %v2200_v30  ;;  %v2198_v4 = vmul.f32 %v11608_v63, %v2197_v43  ;;  %v2211_v63 = vor.u32 1.1754944e-38, %v2210_v20  ;;  %vm2496_vm3 = vcmask 195584  }
 0x968   :  { %2340 = vmatpush.msrb.mxu2 %v9858_v5  ;;  %v2222_v17 = vsel %vm11647_vm9, %v10216_v36, %v2218_v46  ;;  %v2240_v36 = vand.u32 2147483648, %v2123_v29 }
 0x969   :  { %v2202_v55 = vmul.f32 %v10218_v13, %v2201_v21  ;;  %v10220_v44 = vpop.eup %10219  ;;  %v2227_v38 = vsel %vm2224_vm12, %v2226_v51, %v2222_v17 }
 0x96a   :  { %2341 = vmatpush.msrb.mxu2 %v9859_v48  ;;  %v2230_v34 = vmul.f32 %v10220_v44, %v2123_v29  ;;  %vm2235_vm14 = vweird.f32 %v10220_v44  ;;  %v2228_v39 = vmul.f32 %v11612_v37, %v2227_v38  ;;  %v2241_v2 = vor.u32 1.1754944e-38, %v2240_v36  ;;  %v11743_v36 = vld [vmem:[#allocation2 + $0x48] ss:$0 sm:$0xff] }
 0x96b   :  { %9480 = vmatmul.msk.f32.vlgmr.msrb.gmra.mxu2 %vm587_vm6, %v2198_v4  ;;  %v2203_v12 = vadd.f32 %v10218_v13, %v2202_v55  ;;  %vm2236_vm1 = vmor %vm2234_vm15, %vm2235_vm14  ;;  %v2425_v11 = vpop.permute.xlu0 %2424  ;;  %v11717_v4 = vld [vmem:[%s14547_s0 + $0x50] sm:$0xff] }
 0x96c   :  { %v2231_v32 = vsub.f32 1.0, %v2230_v34  ;;  %v3412_v10 = vsel %vm37_vm0, %v11717_v4, 0.0 }
 0x96d   :  { %v9862_v3 = vpop.permute.xlu2 %9861  ;;  %v2207_v59 = vsel %vm2206_vm11, %v10218_v13, %v2203_v12 }
 0x96e   :  { %v9863_v45 = vunpack.i.l.bf16 %v9862_v3  ;;  %v2212_v56 = vsel %vm2209_vm13, %v2211_v63, %v2207_v59  ;;  %v2232_v6 = vmul.f32 %v10220_v44, %v2231_v32  ;;  %v9864_v25 = vunpack.i.h.bf16 %v9862_v3 }
 0x96f   :  { %v2213_v53 = vmul.f32 %v11616_v31, %v2212_v56  ;;  %v2508_v31 = vld [vmem:[#allocation2 + $0x40] sm:$0xff]  ;;  %v11734_v56 = vld [vmem:[%s14547_s0 + $0x58] sm:$0xff] }
 0x970   :  { %2375 = vmatpush.msrb.mxu3 %v9863_v45  ;;  %v2233_v41 = vadd.f32 %v10220_v44, %v2232_v6  ;;  %2547 = vmatpush.msra.mxu0 %v2508_v31  ;;  %v3415_v38 = vsel %vm37_vm0, %v11734_v56, 0.0 }
 0x972   :  { %2376 = vmatpush.msrb.mxu3 %v9864_v25  ;;  %v2237_v18 = vsel %vm2236_vm1, %v10220_v44, %v2233_v41  ;;  %v11741_v25 = vld [vmem:[%s14547_s0 + $0x60] sm:$0xff] }
 0x973   :  { %9481 = vmatmul.msk.f32.gmra.mxu2 %vm587_vm6, %v2213_v53  ;;  %9482 = vmatmul.msk.f32.vlgmr.msrb.gmra.mxu3 %vm587_vm6, %v2228_v39  ;;  %v2242_v19 = vsel %vm2239_vm2, %v2241_v2, %v2237_v18  ;;  %v2397_v48 = vpop.permute.xlu0 %2396  ;;  %v3418_v53 = vsel %vm37_vm0, %v11741_v25, 0.0  ;;  %v10669_v18 = vld [vmem:[%s14547_s0] sm:$0xff] }
 0x974   :  { %v2243_v13 = vmul.f32 %v11620_v57, %v2242_v19  ;;  %v2507_v57 = vld [vmem:[#allocation2 + $0x38] sm:$0xff]  ;;  %v2482_v55 = vsel %vm444_vm5, %v11279_v0, %v2397_v48 }
 0x975   :  { %2548 = vmatpush.msra.mxu0 %v2507_v57 }
 0x97b   :  { %9483 = vmatmul.msk.f32.gmra.mxu3 %vm587_vm6, %v2243_v13 }
 0x983   :  { %v2273_v27 = vpop.f32.mrf.mxu0 }
 0x984   :  { %2456 = vrot.lane.b32.xlu2 %v2273_v27, %s10729_s16 }
 0x98b   :  { %v2276_v37 = vpop.f32.mrf.mxu0 }
 0x98c   :  { %2458 = vrot.lane.b32.xlu2 %v2276_v37, %s10729_s16 }
 0x994   :  { %2428 = vrot.lane.b32.xlu2 %v11570_v52, %s10728_s14  ;;  %v2505_v52 = vld [vmem:[#allocation2 + $0x28] sm:$0xff] }
 0x99c   :  { %2398 = vrot.lane.b32.xlu2 %v11457_v61, %s10715_s15  ;;  %v2506_v61 = vld [vmem:[#allocation2 + $0x30] sm:$0xff] }
 0x99d   :  { %2549 = vmatpush.msra.mxu0 %v2506_v61 }
 0x99f   :  { %2550 = vmatpush.msra.mxu0 %v2505_v52  ;;  %v11765_v52 = vld [vmem:[%s14547_s0 + $0x68] sm:$0xff] }
 0x9a4   :  { %2400 = vrot.lane.b32.xlu2 %v11440_v15, %s10715_s15 }
 0x9ac   :  { %2402 = vrot.lane.b32.xlu2 %v11444_v35, %s10715_s15  ;;  %v2393_v35 = vpop.permute.xlu2 %2392 }
 0x9b4   :  { %2404 = vrot.lane.b32.xlu2 %v11459_v9, %s10715_s15  ;;  %v2395_v9 = vpop.permute.xlu2 %2394 }
 0x9ba   :  { %v2308_v29 = vpop.f32.mrf.mxu1 }
 0x9bb   :  { %2460 = vrot.lane.b32.xlu0 %v2308_v29, %s10729_s16 }
 0x9bc   :  { %2406 = vrot.lane.b32.xlu2 %v11462_v16, %s10715_s15  ;;  %v2480_v16 = vsel %vm444_vm5, %v11269_v23, %v2393_v35  ;;  %v10670_v35 = vld [vmem:[%s14547_s0 + $0x8] sm:$0xff] }
 0x9c2   :  { %v2311_v15 = vpop.f32.mrf.mxu1 }
 0x9c3   :  { %2430 = vrot.lane.b32.xlu0 %v11572_v14, %s10728_s14  ;;  %2462 = vrot.lane.b32.xlu1 %v2311_v15, %s10729_s16  ;;  %v2488_v14 = vsel %vm587_vm6, %v2480_v16, %v2425_v11 }
 0x9cb   :  { %2432 = vrot.lane.b32.xlu0 %v11576_v62, %s10728_s14  ;;  %v11691_v62 = vld [vmem:[%s14547_s0 + $0x40] sm:$0xff] }
 0x9cc   :  { %v3406_v23 = vsel %vm37_vm0, %v11691_v62, 0.0 }
 0x9d3   :  { %2434 = vrot.lane.b32.xlu0 %v11580_v7, %s10728_s14  ;;  %v2427_v7 = vpop.permute.xlu1 %2426 }
 0x9db   :  { %2436 = vrot.lane.b32.xlu0 %v11578_v54, %s10728_s14  ;;  %v2481_v54 = vsel %vm444_vm5, %v11271_v28, %v2395_v9 }
 0x9dc   :  { %v2489_v5 = vsel %vm587_vm6, %v2481_v54, %v2427_v7 }
 0x9de   :  { %v2457_v60 = vpop.permute.xlu2 %2456 }
 0x9df   :  { %v2497_v30 = vsel %vm2496_vm3, %v2488_v14, %v2457_v60  ;;  %v3421_v60 = vsel %vm37_vm0, %v11765_v52, 0.0 }
 0x9e0   :  { %9484 = vmatmul.msk.f32.vlgmr.msra.gmra.mxu0 %vm37_vm0, %v2497_v30 }
 0x9e3   :  { %2438 = vrot.lane.b32.xlu0 %v11582_v50, %s10728_s14  ;;  %v11710_v50 = vld [vmem:[%s14547_s0 + $0x48] sm:$0xff] }
 0x9e4   :  { %v3409_v49 = vsel %vm37_vm0, %v11710_v50, 0.0 }
 0x9e5   :  { %3407 = vadd.xlane.f32.xlu2 %v3406_v23 }
 0x9e6   :  { %v2459_v8 = vpop.permute.xlu2 %2458 }
 0x9e7   :  { %v2498_v43 = vsel %vm2496_vm3, %v2489_v5, %v2459_v8 }
 0x9e8   :  { %9485 = vmatmul.msk.f32.gmra.mxu0 %vm37_vm0, %v2498_v43 }
 0x9ed   :  { %3416 = vadd.xlane.f32.xlu2 %v3415_v38 }
 0x9ee   :  { %v2343_v46 = vpop.f32.mrf.mxu2  ;;  %v2429_v20 = vpop.permute.xlu2 %2428 }
 0x9ef   :  { %2464 = vrot.lane.b32.xlu1 %v2343_v46, %s10729_s16  ;;  %v2490_v1 = vsel %vm587_vm6, %v2482_v55, %v2429_v20 }
 0x9f5   :  { %3419 = vadd.xlane.f32.xlu2 %v3418_v53 }
 0x9f6   :  { %v2346_v21 = vpop.f32.mrf.mxu2  ;;  %v2378_v40 = vpop.f32.mrf.mxu3 }
 0x9f7   :  { %2466 = vrot.lane.b32.xlu1 %v2346_v21, %s10729_s16  ;;  %v2399_v34 = vpop.permute.xlu2 %2398 }
 0x9f8   :  { %v2483_v12 = vsel %vm444_vm5, %v11283_v47, %v2399_v34 }
 0x9fe   :  { %v2381_v28 = vpop.f32.mrf.mxu3 }
 0x9ff   :  { %2468 = vrot.lane.b32.xlu1 %v2378_v40, %s10729_s16  ;;  %v2401_v3 = vpop.permute.xlu2 %2400 }
 0xa00   :  { %v2484_v58 = vsel %vm444_vm5, %v11281_v33, %v2401_v3  ;;  %v10671_v3 = vld [vmem:[%s14547_s0 + $0x10] sm:$0xff] }
 0xa07   :  { %2470 = vrot.lane.b32.xlu1 %v2381_v28, %s10729_s16  ;;  %v2403_v59 = vpop.permute.xlu2 %2402 }
 0xa08   :  { %v2485_v15 = vsel %vm444_vm5, %v11285_v42, %v2403_v59 }
 0xa0d   :  { %3410 = vadd.xlane.f32.xlu0 %v3409_v49 }
 0xa0f   :  { %v2405_v45 = vpop.permute.xlu2 %2404 }
 0xa10   :  { %v2486_v7 = vsel %vm444_vm5, %v11273_v24, %v2405_v45 }
 0xa17   :  { %v2407_v6 = vpop.permute.xlu2 %2406 }
 0xa18   :  { %v2487_v28 = vsel %vm444_vm5, %v11275_v26, %v2407_v6  ;;  %v11814_v26 = vld [vmem:[%s14547_s0 + $0x78] sm:$0xff] }
 0xa2d   :  { %v2461_v44 = vpop.permute.xlu0 %2460 }
 0xa2e   :  { %v2499_v17 = vsel %vm2496_vm3, %v2490_v1, %v2461_v44 }
 0xa2f   :  { %9486 = vmatmul.msk.f32.gmra.mxu0 %vm37_vm0, %v2499_v17  ;;  %v3427_v17 = vsel %vm37_vm0, %v11814_v26, 0.0 }
 0xa31   :  { %3413 = vadd.xlane.f32.xlu1 %v3412_v10 }
 0xa35   :  { %v2431_v51 = vpop.permute.xlu0 %2430  ;;  %v2463_v63 = vpop.permute.xlu1 %2462 }
 0xa36   :  { %v2491_v32 = vsel %vm587_vm6, %v2483_v12, %v2431_v51 }
 0xa37   :  { %v2500_v0 = vsel %vm2496_vm3, %v2491_v32, %v2463_v63 }
 0xa38   :  { %9487 = vmatmul.msk.f32.gmra.mxu0 %vm37_vm0, %v2500_v0 }
 0xa3d   :  { %v2433_v47 = vpop.permute.xlu0 %2432 }
 0xa3e   :  { %v2492_v19 = vsel %vm587_vm6, %v2484_v58, %v2433_v47  ;;  %v10672_v47 = vld [vmem:[%s14547_s0 + $0x18] sm:$0xff] }
 0xa45   :  { %v2435_v37 = vpop.permute.xlu0 %2434 }
 0xa46   :  { %v2493_v11 = vsel %vm587_vm6, %v2485_v15, %v2435_v37 }
 0xa4d   :  { %v2437_v23 = vpop.permute.xlu0 %2436 }
 0xa4e   :  { %v2494_v5 = vsel %vm587_vm6, %v2486_v7, %v2437_v23 }
 0xa55   :  { %v2439_v40 = vpop.permute.xlu0 %2438 }
 0xa56   :  { %v2495_v24 = vsel %vm587_vm6, %v2487_v28, %v2439_v40 }
 0xa58   :  { %v3408_v27 = vpop.xlane.xlu2 %3407 }
 0xa59   :  { %v3430_v33 = vmul.f32 %v3408_v27, %v10781_v22 }
 0xa5b   :  { %v11775_v16 = vsub.f32 %v11691_v62, %v3430_v33  ;;  %v11789_v62 = vld [vmem:[%s14547_s0 + $0x70] sm:$0xff] }
 0xa5c   :  { %v3424_v46 = vsel %vm37_vm0, %v11789_v62, 0.0 }
 0xa5d   :  { %v2552_v39 = vpop.f32.mrf.mxu0  ;;  %v3446_v54 = vmul.f32 %v11775_v16, %v11775_v16 }
 0xa5e   :  { %v2553_v41 = vadd.f32 %v11743_v36, %v2552_v39 }
 0xa5f   :  { %v3454_v8 = vsel %vm37_vm0, %v3446_v54, 0.0 }
 0xa60   :  { %v11753_v2 = vadd.f32 %v10669_v18, %v2553_v41  ;;  %v3417_v18 = vpop.xlane.xlu2 %3416 }
 0xa61   :  { %v2465_v13 = vpop.permute.xlu1 %2464 }
 0xa62   :  { %v2586_v31 = vsel %vm37_vm0, %v11753_v2, 0.0  ;;  %v2501_v57 = vsel %vm2496_vm3, %v2492_v19, %v2465_v13 }
 0xa63   :  { %2587 = vadd.xlane.f32.xlu0 %v2586_v31  ;;  %9488 = vmatmul.msk.f32.gmra.mxu0 %vm37_vm0, %v2501_v57  ;;  %v3433_v31 = vmul.f32 %v3417_v18, %v10781_v22 }
 0xa65   :  { %v2555_v29 = vpop.f32.mrf.mxu0 }
 0xa66   :  { %v2556_v61 = vadd.f32 %v11743_v36, %v2555_v29 }
 0xa68   :  { %v11772_v9 = vadd.f32 %v10670_v35, %v2556_v61  ;;  %v10673_v61 = vld [vmem:[%s14547_s0 + $0x20] sm:$0xff]  ;;  %v11860_v35 = vsub.f32 %v11734_v56, %v3433_v31 }
 0xa69   :  { %v2467_v14 = vpop.permute.xlu1 %2466 }
 0xa6a   :  { %v2589_v30 = vsel %vm37_vm0, %v11772_v9, 0.0  ;;  %v2502_v42 = vsel %vm2496_vm3, %v2493_v11, %v2467_v14  ;;  %v3420_v14 = vpop.xlane.xlu2 %3419  ;;  %v3449_v7 = vmul.f32 %v11860_v35, %v11860_v35 }
 0xa6b   :  { %2590 = vadd.xlane.f32.xlu1 %v2589_v30  ;;  %9489 = vmatmul.msk.f32.gmra.mxu0 %vm37_vm0, %v2502_v42  ;;  %v3434_v54 = vmul.f32 %v3420_v14, %v10781_v22 }
 0xa6c   :  { %3422 = vadd.xlane.f32.xlu0 %v3421_v60 }
 0xa71   :  { %v2469_v43 = vpop.permute.xlu1 %2468 }
 0xa72   :  { %v2503_v21 = vsel %vm2496_vm3, %v2494_v5, %v2469_v43  ;;  %v11872_v5 = vsub.f32 %v11741_v25, %v3434_v54  ;;  %v3463_v43 = vsel %vm37_vm0, %v3449_v7, 0.0 }
 0xa73   :  { %3455 = vadd.xlane.f32.xlu1 %v3454_v8  ;;  %9490 = vmatmul.msk.f32.gmra.mxu0 %vm37_vm0, %v2503_v21  ;;  %v10674_v21 = vld [vmem:[%s14547_s0 + $0x28] sm:$0xff] }
 0xa74   :  { %3425 = vadd.xlane.f32.xlu0 %v3424_v46  ;;  %v3450_v25 = vmul.f32 %v11872_v5, %v11872_v5 }
 0xa79   :  { %v2471_v49 = vpop.permute.xlu1 %2470 }
 0xa7a   :  { %v2504_v48 = vsel %vm2496_vm3, %v2495_v24, %v2471_v49 }
 0xa7b   :  { %9491 = vmatmul.msk.f32.gmra.mxu0 %vm37_vm0, %v2504_v48 }
 0xa7c   :  { %3428 = vadd.xlane.f32.xlu0 %v3427_v17  ;;  %v3730_v17 = vld [vmem:[#allocation2 + $0x100] sm:$0xff] }
 0xa80   :  { %v3411_v20 = vpop.xlane.xlu0 %3410 }
 0xa81   :  { %v3431_v55 = vmul.f32 %v3411_v20, %v10781_v22 }
 0xa83   :  { %v11806_v1 = vsub.f32 %v11710_v50, %v3431_v55 }
 0xa85   :  { %v3447_v44 = vmul.f32 %v11806_v1, %v11806_v1 }
 0xa87   :  { %v3457_v10 = vsel %vm37_vm0, %v3447_v44, 0.0 }
 0xa88   :  { %3458 = vadd.xlane.f32.xlu1 %v3457_v10  ;;  %v3731_v10 = vld [vmem:[#allocation2 + $0x108] sm:$0xff] }
 0xa89   :  { %3770 = vmatpush.msra.mxu3 %v3731_v10 }
 0xa8b   :  { %3771 = vmatpush.msra.mxu3 %v3730_v17 }
 0xaa4   :  { %v3414_v34 = vpop.xlane.xlu1 %3413 }
 0xaa5   :  { %v3432_v12 = vmul.f32 %v3414_v34, %v10781_v22  ;;  %v10675_v34 = vld [vmem:[%s14547_s0 + $0x30] sm:$0xff] }
 0xaa7   :  { %v11820_v50 = vsub.f32 %v11717_v4, %v3432_v12 }
 0xaa9   :  { %v3448_v51 = vmul.f32 %v11820_v50, %v11820_v50 }
 0xaab   :  { %v3460_v63 = vsel %vm37_vm0, %v3448_v51, 0.0 }
 0xaac   :  { %3461 = vadd.xlane.f32.xlu1 %v3460_v63  ;;  %v2558_v32 = vpop.f32.mrf.mxu0  ;;  %v3466_v63 = vsel %vm37_vm0, %v3450_v25, 0.0 }
 0xaad   :  { %v2559_v0 = vadd.f32 %v11743_v36, %v2558_v32 }
 0xaaf   :  { %v11829_v59 = vadd.f32 %v10671_v3, %v2559_v0  ;;  %v3729_v0 = vld [vmem:[#allocation2 + $0xf8] sm:$0xff] }
 0xab0   :  { %3772 = vmatpush.msra.mxu3 %v3729_v0 }
 0xab1   :  { %v2592_v45 = vsel %vm37_vm0, %v11829_v59, 0.0 }
 0xab2   :  { %2593 = vadd.xlane.f32.xlu2 %v2592_v45 }
 0xab5   :  { %v2561_v4 = vpop.f32.mrf.mxu0 }
 0xab6   :  { %v2562_v38 = vadd.f32 %v11743_v36, %v2561_v4 }
 0xab8   :  { %v11837_v6 = vadd.f32 %v10672_v47, %v2562_v38  ;;  %v3728_v38 = vld [vmem:[#allocation2 + $0xf0] sm:$0xff] }
 0xab9   :  { %3773 = vmatpush.msra.mxu3 %v3728_v38 }
 0xaba   :  { %v2595_v53 = vsel %vm37_vm0, %v11837_v6, 0.0 }
 0xabb   :  { %2596 = vadd.xlane.f32.xlu2 %v2595_v53 }
 0xad6   :  { %v2588_v39 = vpop.xlane.xlu0 %2587 }
 0xad7   :  { %v2610_v41 = vmul.f32 %v2588_v39, %v10781_v22 }
 0xad9   :  { %v11843_v58 = vsub.f32 %v11753_v2, %v2610_v41 }
 0xadb   :  { %v2626_v19 = vmul.f32 %v11843_v58, %v11843_v58 }
 0xadd   :  { %v2634_v13 = vsel %vm37_vm0, %v2626_v19, 0.0 }
 0xade   :  { %2635 = vadd.xlane.f32.xlu1 %v2634_v13  ;;  %v2591_v27 = vpop.xlane.xlu1 %2590  ;;  %v10676_v13 = vld [vmem:[%s14547_s0 + $0x38] sm:$0xff] }
 0xadf   :  { %v2611_v37 = vmul.f32 %v2591_v27, %v10781_v22  ;;  %v3423_v46 = vpop.xlane.xlu0 %3422 }
 0xae0   :  { %v2564_v57 = vpop.f32.mrf.mxu0  ;;  %v3435_v49 = vmul.f32 %v3423_v46, %v10781_v22 }
 0xae1   :  { %v11851_v33 = vsub.f32 %v11772_v9, %v2611_v37  ;;  %v2565_v29 = vadd.f32 %v11743_v36, %v2564_v57 }
 0xae2   :  { %v11892_v51 = vsub.f32 %v11765_v52, %v3435_v49 }
 0xae3   :  { %v11857_v15 = vadd.f32 %v10673_v61, %v2565_v29  ;;  %v2627_v11 = vmul.f32 %v11851_v33, %v11851_v33 }
 0xae4   :  { %v3451_v47 = vmul.f32 %v11892_v51, %v11892_v51 }
 0xae5   :  { %v2598_v60 = vsel %vm37_vm0, %v11857_v15, 0.0  ;;  %v2637_v30 = vsel %vm37_vm0, %v2627_v11, 0.0 }
 0xae6   :  { %2599 = vadd.xlane.f32.xlu2 %v2598_v60  ;;  %2638 = vadd.xlane.f32.xlu1 %v2637_v30  ;;  %v3456_v42 = vpop.xlane.xlu1 %3455  ;;  %v3469_v37 = vsel %vm37_vm0, %v3451_v47, 0.0 }
 0xae7   :  { %v3478_v23 = vmul.f32 0.032258064, %v3456_v42  ;;  %v3426_v45 = vpop.xlane.xlu0 %3425 }
 0xae8   :  { %v2567_v56 = vpop.f32.mrf.mxu0  ;;  %v3436_v39 = vmul.f32 %v3426_v45, %v10781_v22 }
 0xae9   :  { %10221 = vrsqrt.f32 %v3478_v23  ;;  %v2568_v8 = vadd.f32 %v11743_v36, %v2567_v56  ;;  %vm3493_vm4 = vcmp.eq.f32.partialorder %v3478_v23, inf  ;;  %v3496_v41 = vand.u32 2147483648, %v3478_v23 }
 0xaea   :  { %vm3495_vm7 = vcmp.eq.f32.partialorder %v3478_v23, 0.0  ;;  %v11908_v29 = vsub.f32 %v11789_v62, %v3436_v39 }
 0xaeb   :  { %v11878_v40 = vadd.f32 %v10674_v21, %v2568_v8 }
 0xaec   :  { %v3452_v60 = vmul.f32 %v11908_v29, %v11908_v29 }
 0xaed   :  { %14568 = vst [vmem:[#allocation6_spill] sm:$0xff] %v11878_v40  ;;  %v2601_v28 = vsel %vm37_vm0, %v11878_v40, 0.0 }
 0xaee   :  { %3464 = vadd.xlane.f32.xlu2 %v3463_v43  ;;  %2602 = vadd.xlane.f32.xlu0 %v2601_v28  ;;  %v3472_v30 = vsel %vm37_vm0, %v3452_v60, 0.0 }
 0xaef   :  { %v10222_v24 = vpop.eup %10221 }
 0xaf0   :  { %v3487_v48 = vmul.f32 %v10222_v24, %v3478_v23  ;;  %v2570_v20 = vpop.f32.mrf.mxu0 }
 0xaf1   :  { %v2571_v55 = vadd.f32 %v11743_v36, %v2570_v20 }
 0xaf2   :  { %v3488_v44 = vmul.f32 %v10222_v24, %v3487_v48 }
 0xaf3   :  { %v11889_v12 = vadd.f32 %v10675_v34, %v2571_v55  ;;  %v11915_v55 = vld [vmem:[#allocation2 + $0x200] ss:$0 sm:$0xff]  ;;  %v11918_v34 = vld [vmem:[#allocation2 + $0x208] ss:$0 sm:$0xff] }
 0xaf4   :  { %v3489_v32 = vmul.f32 0.5, %v3488_v44 }
 0xaf5   :  { %14569 = vst [vmem:[#allocation7_spill] sm:$0xff] %v11889_v12  ;;  %v2604_v3 = vsel %vm37_vm0, %v11889_v12, 0.0 }
 0xaf6   :  { %v3490_v4 = vsub.f32 1.5, %v3489_v32  ;;  %3467 = vadd.xlane.f32.xlu2 %v3466_v63  ;;  %2605 = vadd.xlane.f32.xlu0 %v2604_v3 }
 0xaf8   :  { %v3491_v52 = vmul.f32 %v10222_v24, %v3490_v4  ;;  %v2573_v53 = vpop.f32.mrf.mxu0 }
 0xaf9   :  { %v2574_v18 = vadd.f32 %v11743_v36, %v2573_v53 }
 0xafa   :  { %v3492_v19 = vmul.f32 %v3491_v52, %v3478_v23 }
 0xafb   :  { %v11904_v27 = vadd.f32 %v10676_v13, %v2574_v18  ;;  %v3459_v57 = vpop.xlane.xlu1 %3458  ;;  %v3429_v13 = vpop.xlane.xlu0 %3428 }
 0xafc   :  { %v3494_v31 = vsel %vm3493_vm4, %v3478_v23, %v3492_v19  ;;  %v3479_v11 = vmul.f32 0.032258064, %v3459_v57 }
 0xafd   :  { %14570 = vst [vmem:[#allocation8_spill] sm:$0xff] %v11904_v27  ;;  %v3497_v61 = vsel %vm3495_vm7, %v3496_v41, %v3494_v31  ;;  %v2607_v36 = vsel %vm37_vm0, %v11904_v27, 0.0 }
 0xafe   :  { %v3582_v14 = vadd.f32 1e-06, %v3497_v61  ;;  %3470 = vadd.xlane.f32.xlu2 %v3469_v37  ;;  %10223 = vrsqrt.f32 %v3479_v11  ;;  %2608 = vadd.xlane.f32.xlu0 %v2607_v36  ;;  %vm3505_vm12 = vcmp.eq.f32.partialorder %v3479_v11, inf  ;;  %v3508_v48 = vand.u32 2147483648, %v3479_v11 }
 0xaff   :  { %vm3507_vm13 = vcmp.eq.f32.partialorder %v3479_v11, 0.0  ;;  %v3437_v36 = vmul.f32 %v3429_v13, %v10781_v22 }
 0xb00   :  { %10225 = vrcp.f32 %v3582_v14  ;;  %v3601_v56 = vand.u32 2147483648, %v3582_v14  ;;  %vm3595_vm8 = vweird.f32 %v3582_v14  ;;  %v3599_v43 = vand.u32 2147483647, %v3582_v14 }
 0xb02   :  { %v3602_v24 = vor.u32 1.1754944e-38, %v3601_v56  ;;  %vm3600_vm11 = vcmp.eq.f32.partialorder %v3599_v43, 8.507059e+37 }
 0xb04   :  { %v10224_v42 = vpop.eup %10223 }
 0xb05   :  { %v3499_v54 = vmul.f32 %v10224_v42, %v3479_v11 }
 0xb06   :  { %v10226_v23 = vpop.eup %10225  ;;  %3473 = vadd.xlane.f32.xlu0 %v3472_v30 }
 0xb07   :  { %v3591_v62 = vmul.f32 %v10226_v23, %v3582_v14  ;;  %v3500_v7 = vmul.f32 %v10224_v42, %v3499_v54  ;;  %vm3596_vm9 = vweird.f32 %v10226_v23 }
 0xb08   :  { %vm3597_vm10 = vmor %vm3595_vm8, %vm3596_vm9 }
 0xb09   :  { %v3592_v8 = vsub.f32 1.0, %v3591_v62  ;;  %v3501_v46 = vmul.f32 0.5, %v3500_v7  ;;  %v11932_v62 = vsub.f32 %v11814_v26, %v3437_v36 }
 0xb0b   :  { %v3593_v21 = vmul.f32 %v10226_v23, %v3592_v8  ;;  %v3502_v28 = vsub.f32 1.5, %v3501_v46  ;;  %v3453_v46 = vmul.f32 %v11932_v62, %v11932_v62 }
 0xb0d   :  { %v3594_v49 = vadd.f32 %v10226_v23, %v3593_v21  ;;  %v3503_v25 = vmul.f32 %v10224_v42, %v3502_v28 }
 0xb0f   :  { %v3598_v20 = vsel %vm3597_vm10, %v10226_v23, %v3594_v49  ;;  %v3504_v44 = vmul.f32 %v3503_v25, %v3479_v11  ;;  %v3475_v25 = vsel %vm37_vm0, %v3453_v46, 0.0 }
 0xb10   :  { %v3603_v10 = vsel %vm3600_vm11, %v3602_v24, %v3598_v20 }
 0xb11   :  { %v3604_v17 = vmul.f32 %v3603_v10, %v11775_v16  ;;  %v3506_v63 = vsel %vm3505_vm12, %v3479_v11, %v3504_v44 }
 0xb12   :  { %v3509_v0 = vsel %vm3507_vm13, %v3508_v48, %v3506_v63 }
 0xb13   :  { %v3711_v32 = vmul.f32 %v11915_v55, %v3604_v17  ;;  %v3583_v3 = vadd.f32 1e-06, %v3509_v0 }
 0xb15   :  { %v3720_v45 = vadd.f32 %v11918_v34, %v3711_v32  ;;  %10227 = vrcp.f32 %v3583_v3  ;;  %v3616_v47 = vand.u32 2147483648, %v3583_v3  ;;  %vm3610_vm14 = vweird.f32 %v3583_v3 }
 0xb16   :  { %v3614_v16 = vand.u32 2147483647, %v3583_v3 }
 0xb17   :  { %9516 = vmatmul.msk.f32.vlgmr.msra.gmra.mxu3 %vm37_vm0, %v3720_v45  ;;  %v3617_v18 = vor.u32 1.1754944e-38, %v3616_v47 }
 0xb18   :  { %vm3615_vm2 = vcmp.eq.f32.partialorder %v3614_v16, 8.507059e+37 }
 0xb1b   :  { %v10228_v4 = vpop.eup %10227 }
 0xb1c   :  { %v3606_v38 = vmul.f32 %v10228_v4, %v3583_v3  ;;  %vm3611_vm15 = vweird.f32 %v10228_v4 }
 0xb1d   :  { %vm3612_vm1 = vmor %vm3610_vm14, %vm3611_vm15 }
 0xb1e   :  { %v3607_v53 = vsub.f32 1.0, %v3606_v38 }
 0xb1f   :  { %v3462_v52 = vpop.xlane.xlu1 %3461 }
 0xb20   :  { %v3480_v39 = vmul.f32 0.032258064, %v3462_v52  ;;  %v3608_v41 = vmul.f32 %v10228_v4, %v3607_v53 }
 0xb22   :  { %10229 = vrsqrt.f32 %v3480_v39  ;;  %v3609_v19 = vadd.f32 %v10228_v4, %v3608_v41  ;;  %vm3517_vm4 = vcmp.eq.f32.partialorder %v3480_v39, inf  ;;  %v3520_v26 = vand.u32 2147483648, %v3480_v39 }
 0xb23   :  { %vm3519_vm7 = vcmp.eq.f32.partialorder %v3480_v39, 0.0 }
 0xb24   :  { %v3613_v37 = vsel %vm3612_vm1, %v10228_v4, %v3609_v19 }
 0xb25   :  { %v2594_v31 = vpop.xlane.xlu2 %2593  ;;  %v3618_v57 = vsel %vm3615_vm2, %v3617_v18, %v3613_v37 }
 0xb26   :  { %v2612_v61 = vmul.f32 %v2594_v31, %v10781_v22  ;;  %v3619_v11 = vmul.f32 %v3618_v57, %v11806_v1 }
 0xb28   :  { %v10230_v14 = vpop.eup %10229  ;;  %v11927_v30 = vsub.f32 %v11829_v59, %v2612_v61  ;;  %v3712_v42 = vmul.f32 %v11915_v55, %v3619_v11 }
 0xb29   :  { %v3511_v60 = vmul.f32 %v10230_v14, %v3480_v39 }
 0xb2a   :  { %v3721_v54 = vadd.f32 %v11918_v34, %v3712_v42  ;;  %v2628_v7 = vmul.f32 %v11927_v30, %v11927_v30 }
 0xb2b   :  { %v3512_v23 = vmul.f32 %v10230_v14, %v3511_v60 }
 0xb2c   :  { %9517 = vmatmul.msk.f32.gmra.mxu3 %vm37_vm0, %v3721_v54  ;;  %v2640_v1 = vsel %vm37_vm0, %v2628_v7, 0.0 }
 0xb2d   :  { %v3513_v56 = vmul.f32 0.5, %v3512_v23  ;;  %2641 = vadd.xlane.f32.xlu1 %v2640_v1 }
 0xb2e   :  { %v2597_v43 = vpop.xlane.xlu2 %2596 }
 0xb2f   :  { %v3514_v8 = vsub.f32 1.5, %v3513_v56  ;;  %v2613_v21 = vmul.f32 %v2597_v43, %v10781_v22 }
 0xb31   :  { %v3515_v28 = vmul.f32 %v10230_v14, %v3514_v8  ;;  %v11942_v24 = vsub.f32 %v11837_v6, %v2613_v21 }
 0xb33   :  { %v3516_v49 = vmul.f32 %v3515_v28, %v3480_v39  ;;  %v2629_v48 = vmul.f32 %v11942_v24, %v11942_v24 }
 0xb35   :  { %v3518_v20 = vsel %vm3517_vm4, %v3480_v39, %v3516_v49  ;;  %3476 = vadd.xlane.f32.xlu1 %v3475_v25  ;;  %v2643_v44 = vsel %vm37_vm0, %v2629_v48, 0.0 }
 0xb36   :  { %v3521_v10 = vsel %vm3519_vm7, %v3520_v26, %v3518_v20  ;;  %2644 = vadd.xlane.f32.xlu2 %v2643_v44 }
 0xb37   :  { %v3584_v17 = vadd.f32 1e-06, %v3521_v10 }
 0xb39   :  { %10231 = vrcp.f32 %v3584_v17  ;;  %v3631_v0 = vand.u32 2147483648, %v3584_v17  ;;  %vm3625_vm8 = vweird.f32 %v3584_v17  ;;  %v3629_v45 = vand.u32 2147483647, %v3584_v17 }
 0xb3b   :  { %v3632_v38 = vor.u32 1.1754944e-38, %v3631_v0  ;;  %vm3630_vm11 = vcmp.eq.f32.partialorder %v3629_v45, 8.507059e+37 }
 0xb3f   :  { %v10232_v63 = vpop.eup %10231 }
 0xb40   :  { %v3621_v32 = vmul.f32 %v10232_v63, %v3584_v17  ;;  %vm3626_vm9 = vweird.f32 %v10232_v63 }
 0xb41   :  { %vm3627_vm10 = vmor %vm3625_vm8, %vm3626_vm9 }
 0xb42   :  { %v3622_v3 = vsub.f32 1.0, %v3621_v32 }
 0xb44   :  { %v3623_v4 = vmul.f32 %v10232_v63, %v3622_v3 }
 0xb46   :  { %v3624_v47 = vadd.f32 %v10232_v63, %v3623_v4 }
 0xb48   :  { %v3628_v52 = vsel %vm3627_vm10, %v10232_v63, %v3624_v47 }
 0xb49   :  { %v3633_v53 = vsel %vm3630_vm11, %v3632_v38, %v3628_v52  ;;  %v2911_v52 = vld [vmem:[#allocation2 + $0x68] sm:$0xff] }
 0xb4a   :  { %v3634_v16 = vmul.f32 %v3633_v53, %v11820_v50  ;;  %2950 = vmatpush.msra.mxu1 %v2911_v52 }
 0xb4c   :  { %v3713_v39 = vmul.f32 %v11915_v55, %v3634_v16 }
 0xb4e   :  { %v3722_v41 = vadd.f32 %v11918_v34, %v3713_v39 }
 0xb50   :  { %9518 = vmatmul.msk.f32.gmra.mxu3 %vm37_vm0, %v3722_v41 }
 0xb51   :  { %v2636_v18 = vpop.xlane.xlu1 %2635 }
 0xb52   :  { %v2658_v19 = vmul.f32 0.032258064, %v2636_v18  ;;  %v2910_v18 = vld [vmem:[#allocation2 + $0x60] sm:$0xff] }
 0xb53   :  { %2951 = vmatpush.msra.mxu1 %v2910_v18 }
 0xb54   :  { %10233 = vrsqrt.f32 %v2658_v19  ;;  %vm2673_vm12 = vcmp.eq.f32.partialorder %v2658_v19, inf  ;;  %v2676_v49 = vand.u32 2147483648, %v2658_v19  ;;  %vm2675_vm13 = vcmp.eq.f32.partialorder %v2658_v19, 0.0 }
 0xb59   :  { %v2600_v13 = vpop.xlane.xlu2 %2599  ;;  %v2639_v37 = vpop.xlane.xlu1 %2638 }
 0xb5a   :  { %v10234_v31 = vpop.eup %10233  ;;  %v2614_v57 = vmul.f32 %v2600_v13, %v10781_v22  ;;  %v2659_v61 = vmul.f32 0.032258064, %v2639_v37 }
 0xb5b   :  { %v2667_v11 = vmul.f32 %v10234_v31, %v2658_v19 }
 0xb5c   :  { %v11954_v36 = vsub.f32 %v11857_v15, %v2614_v57  ;;  %10235 = vrsqrt.f32 %v2659_v61  ;;  %vm2685_vm14 = vcmp.eq.f32.partialorder %v2659_v61, inf  ;;  %v2688_v41 = vand.u32 2147483648, %v2659_v61  ;;  %v2908_v57 = vld [vmem:[#allocation2 + $0x50] sm:$0xff] }
 0xb5d   :  { %v2668_v50 = vmul.f32 %v10234_v31, %v2667_v11  ;;  %vm2687_vm15 = vcmp.eq.f32.partialorder %v2659_v61, 0.0 }
 0xb5e   :  { %v2630_v14 = vmul.f32 %v11954_v36, %v11954_v36 }
 0xb5f   :  { %v2669_v60 = vmul.f32 0.5, %v2668_v50 }
 0xb60   :  { %v2646_v42 = vsel %vm37_vm0, %v2630_v14, 0.0 }
 0xb61   :  { %v2670_v23 = vsub.f32 1.5, %v2669_v60  ;;  %v3465_v54 = vpop.xlane.xlu2 %3464  ;;  %2647 = vadd.xlane.f32.xlu0 %v2646_v42  ;;  %v2603_v1 = vpop.xlane.xlu0 %2602 }
 0xb62   :  { %v10236_v7 = vpop.eup %10235  ;;  %v11959_v56 = vmul.f32 0.032258064, %v3465_v54  ;;  %v2615_v46 = vmul.f32 %v2603_v1, %v10781_v22 }
 0xb63   :  { %v2671_v8 = vmul.f32 %v10234_v31, %v2670_v23  ;;  %v2679_v43 = vmul.f32 %v10236_v7, %v2659_v61  ;;  %v2909_v31 = vld [vmem:[#allocation2 + $0x58] sm:$0xff] }
 0xb64   :  { %10237 = vrsqrt.f32 %v11959_v56  ;;  %v11964_v26 = vsub.f32 %v11878_v40, %v2615_v46  ;;  %2952 = vmatpush.msra.mxu1 %v2909_v31  ;;  %vm3529_vm1 = vcmp.eq.f32.partialorder %v11959_v56, inf  ;;  %vm3531_vm2 = vcmp.eq.f32.partialorder %v11959_v56, 0.0 }
 0xb65   :  { %v2672_v21 = vmul.f32 %v2671_v8, %v2658_v19  ;;  %v2680_v28 = vmul.f32 %v10236_v7, %v2679_v43 }
 0xb66   :  { %v2631_v20 = vmul.f32 %v11964_v26, %v11964_v26  ;;  %2953 = vmatpush.msra.mxu1 %v2908_v57 }
 0xb67   :  { %v2674_v25 = vsel %vm2673_vm12, %v2658_v19, %v2672_v21  ;;  %v2681_v48 = vmul.f32 0.5, %v2680_v28  ;;  %v3532_v21 = vand.u32 2147483648, %v11959_v56 }
 0xb68   :  { %v2677_v44 = vsel %vm2675_vm13, %v2676_v49, %v2674_v25  ;;  %v2649_v32 = vsel %vm37_vm0, %v2631_v20, 0.0 }
 0xb69   :  { %v11968_v10 = vadd.f32 1e-06, %v2677_v44  ;;  %v2682_v17 = vsub.f32 1.5, %v2681_v48  ;;  %v3468_v63 = vpop.xlane.xlu2 %3467  ;;  %2650 = vadd.xlane.f32.xlu2 %v2649_v32  ;;  %v2606_v45 = vpop.xlane.xlu0 %2605 }
 0xb6a   :  { %v10238_v0 = vpop.eup %10237  ;;  %v11971_v3 = vmul.f32 0.032258064, %v3468_v63  ;;  %v2616_v47 = vmul.f32 %v2606_v45, %v10781_v22 }
 0xb6b   :  { %10239 = vrcp.f32 %v11968_v10  ;;  %v2683_v4 = vmul.f32 %v10236_v7, %v2682_v17  ;;  %v3523_v38 = vmul.f32 %v10238_v0, %v11959_v56  ;;  %v2779_v20 = vand.u32 2147483647, %v11968_v10 }
 0xb6c   :  { %10241 = vrsqrt.f32 %v11971_v3  ;;  %v11978_v39 = vsub.f32 %v11889_v12, %v2616_v47  ;;  %v2781_v44 = vand.u32 2147483648, %v11968_v10  ;;  %vm3541_vm7 = vcmp.eq.f32.partialorder %v11971_v3, inf }
 0xb6d   :  { %v2684_v53 = vmul.f32 %v2683_v4, %v2659_v61  ;;  %v3524_v16 = vmul.f32 %v10238_v0, %v3523_v38  ;;  %vm2775_vm8 = vweird.f32 %v11968_v10  ;;  %vm3543_vm9 = vcmp.eq.f32.partialorder %v11971_v3, 0.0 }
 0xb6e   :  { %v2632_v37 = vmul.f32 %v11978_v39, %v11978_v39  ;;  %vm2780_vm11 = vcmp.eq.f32.partialorder %v2779_v20, 8.507059e+37  ;;  %v2782_v18 = vor.u32 1.1754944e-38, %v2781_v44  ;;  %v3544_v31 = vand.u32 2147483648, %v11971_v3 }
 0xb6f   :  { %v2686_v19 = vsel %vm2685_vm14, %v2659_v61, %v2684_v53  ;;  %v3525_v13 = vmul.f32 0.5, %v3524_v16 }
 0xb70   :  { %v2689_v11 = vsel %vm2687_vm15, %v2688_v41, %v2686_v19  ;;  %v2652_v42 = vsel %vm37_vm0, %v2632_v37, 0.0 }
 0xb71   :  { %v10240_v50 = vpop.eup %10239  ;;  %v3526_v14 = vsub.f32 1.5, %v3525_v13  ;;  %v3471_v60 = vpop.xlane.xlu2 %3470  ;;  %v11983_v23 = vadd.f32 1e-06, %v2689_v11  ;;  %2653 = vadd.xlane.f32.xlu1 %v2652_v42  ;;  %v12018_v11 = vld [vmem:[#allocation2 + $0xd0] ss:$0 sm:$0xff] }
 0xb72   :  { %v10242_v54 = vpop.eup %10241  ;;  %v11985_v7 = vmul.f32 0.032258064, %v3471_v60  ;;  %v2609_v61 = vpop.xlane.xlu0 %2608  ;;  %v2771_v1 = vmul.f32 %v10240_v50, %v11968_v10  ;;  %vm2776_vm4 = vweird.f32 %v10240_v50 }
 0xb73   :  { %v3527_v8 = vmul.f32 %v10238_v0, %v3526_v14  ;;  %v3535_v43 = vmul.f32 %v10242_v54, %v11971_v3  ;;  %v2617_v46 = vmul.f32 %v2609_v61, %v10781_v22  ;;  %10243 = vrcp.f32 %v11983_v23  ;;  %vm2777_vm10 = vmor %vm2775_vm8, %vm2776_vm4 }
 0xb74   :  { %10245 = vrsqrt.f32 %v11985_v7  ;;  %v2772_v48 = vsub.f32 1.0, %v2771_v1  ;;  %v12025_v1 = vld [vmem:[#allocation2 + $0xd8] ss:$0 sm:$0xff]  ;;  %vm3553_vm13 = vcmp.eq.f32.partialorder %v11985_v7, inf  ;;  %vm2790_vm14 = vweird.f32 %v11983_v23 }
 0xb75   :  { %v3528_v28 = vmul.f32 %v3527_v8, %v11959_v56  ;;  %v3536_v49 = vmul.f32 %v10242_v54, %v3535_v43  ;;  %v11997_v25 = vsub.f32 %v11904_v27, %v2617_v46  ;;  %v2794_v8 = vand.u32 2147483647, %v11983_v23 }
 0xb76   :  { %v2773_v0 = vmul.f32 %v10240_v50, %v2772_v48  ;;  %vm3555_vm15 = vcmp.eq.f32.partialorder %v11985_v7, 0.0 }
 0xb77   :  { %v3530_v17 = vsel %vm3529_vm1, %v11959_v56, %v3528_v28  ;;  %v3537_v63 = vmul.f32 0.5, %v3536_v49  ;;  %v2633_v32 = vmul.f32 %v11997_v25, %v11997_v25 }
 0xb78   :  { %v3533_v45 = vsel %vm3531_vm2, %v3532_v21, %v3530_v17  ;;  %v2774_v52 = vadd.f32 %v10240_v50, %v2773_v0  ;;  %v3556_v17 = vand.u32 2147483648, %v11985_v7  ;;  %vm2795_vm2 = vcmp.eq.f32.partialorder %v2794_v8, 8.507059e+37 }
 0xb79   :  { %v10244_v4 = vpop.eup %10243  ;;  %v3538_v38 = vsub.f32 1.5, %v3537_v63  ;;  %v2655_v47 = vsel %vm37_vm0, %v2633_v32, 0.0  ;;  %v12009_v53 = vadd.f32 1e-06, %v3533_v45 }
 0xb7a   :  { %v10246_v16 = vpop.eup %10245  ;;  %2656 = vadd.xlane.f32.xlu0 %v2655_v47  ;;  %v3474_v41 = vpop.xlane.xlu0 %3473  ;;  %v2786_v10 = vmul.f32 %v10244_v4, %v11983_v23  ;;  %v2778_v37 = vsel %vm2777_vm10, %v10240_v50, %v2774_v52  ;;  %vm2791_vm12 = vweird.f32 %v10244_v4 }
 0xb7b   :  { %v3539_v56 = vmul.f32 %v10242_v54, %v3538_v38  ;;  %v3547_v19 = vmul.f32 %v10246_v16, %v11985_v7  ;;  %v12015_v13 = vmul.f32 0.032258064, %v3474_v41  ;;  %v2783_v57 = vsel %vm2780_vm11, %v2782_v18, %v2778_v37  ;;  %vm2792_vm1 = vmor %vm2790_vm14, %vm2791_vm12 }
 0xb7c   :  { %v2787_v14 = vsub.f32 1.0, %v2786_v10  ;;  %10247 = vrcp.f32 %v12009_v53  ;;  %v2796_v54 = vand.u32 2147483648, %v11983_v23  ;;  %v2784_v61 = vmul.f32 %v2783_v57, %v11843_v58 }
 0xb7d   :  { %v3540_v60 = vmul.f32 %v3539_v56, %v11971_v3  ;;  %v3548_v42 = vmul.f32 %v10246_v16, %v3547_v19  ;;  %10249 = vrsqrt.f32 %v12015_v13  ;;  %vm3640_vm4 = vweird.f32 %v12009_v53 }
 0xb7e   :  { %v2788_v50 = vmul.f32 %v10244_v4, %v2787_v14  ;;  %v2891_v21 = vmul.f32 %v12018_v11, %v2784_v61  ;;  %v2797_v48 = vor.u32 1.1754944e-38, %v2796_v54  ;;  %v3646_v52 = vand.u32 2147483648, %v12009_v53 }
 0xb7f   :  { %v3542_v43 = vsel %vm3541_vm7, %v11971_v3, %v3540_v60  ;;  %v3549_v46 = vmul.f32 0.5, %v3548_v42  ;;  %vm3565_vm10 = vcmp.eq.f32.partialorder %v12015_v13, inf }
 0xb80   :  { %v2789_v28 = vadd.f32 %v10244_v4, %v2788_v50  ;;  %v3545_v58 = vsel %vm3543_vm9, %v3544_v31, %v3542_v43  ;;  %v2900_v63 = vadd.f32 %v12025_v1, %v2891_v21  ;;  %v3647_v57 = vor.u32 1.1754944e-38, %v3646_v52 }
 0xb81   :  { %v3550_v49 = vsub.f32 1.5, %v3549_v46  ;;  %v3586_v20 = vadd.f32 1e-06, %v3545_v58  ;;  %v3568_v50 = vand.u32 2147483648, %v12015_v13 }
 0xb82   :  { %v10248_v44 = vpop.eup %10247  ;;  %v2793_v32 = vsel %vm2792_vm1, %v10244_v4, %v2789_v28  ;;  %9492 = vmatmul.msk.f32.vlgmr.msra.gmra.mxu1 %vm37_vm0, %v2900_v63 }
 0xb83   :  { %v10250_v0 = vpop.eup %10249  ;;  %v3551_v45 = vmul.f32 %v10246_v16, %v3550_v49  ;;  %v2798_v38 = vsel %vm2795_vm2, %v2797_v48, %v2793_v32  ;;  %v3636_v23 = vmul.f32 %v10248_v44, %v12009_v53  ;;  %10251 = vrcp.f32 %v3586_v20 }
 0xb84   :  { %v3559_v3 = vmul.f32 %v10250_v0, %v12015_v13  ;;  %v2799_v47 = vmul.f32 %v2798_v38, %v11851_v33  ;;  %vm3641_vm7 = vweird.f32 %v10248_v44  ;;  %v3644_v16 = vand.u32 2147483647, %v12009_v53 }
 0xb85   :  { %v3552_v41 = vmul.f32 %v3551_v45, %v11985_v7  ;;  %v3637_v4 = vsub.f32 1.0, %v3636_v23  ;;  %vm12054_vm8 = vmor %vm3640_vm4, %vm3641_vm7  ;;  %vm3655_vm11 = vweird.f32 %v3586_v20  ;;  %v3659_v58 = vand.u32 2147483647, %v3586_v20 }
 0xb86   :  { %v3560_v18 = vmul.f32 %v10250_v0, %v3559_v3  ;;  %v2892_v10 = vmul.f32 %v12018_v11, %v2799_v47  ;;  %vm3645_vm9 = vcmp.eq.f32.partialorder %v3644_v16, 8.507059e+37  ;;  %v12075_v16 = vld [vmem:[#allocation2 + $0x110] ss:$0 sm:$0xff] }
 0xb87   :  { %v3554_v56 = vsel %vm3553_vm13, %v11985_v7, %v3552_v41  ;;  %v3638_v19 = vmul.f32 %v10248_v44, %v3637_v4  ;;  %v3661_v7 = vand.u32 2147483648, %v3586_v20  ;;  %vm3567_vm13 = vcmp.eq.f32.partialorder %v12015_v13, 0.0 }
 0xb88   :  { %v3561_v37 = vmul.f32 0.5, %v3560_v18  ;;  %v2901_v33 = vadd.f32 %v12025_v1, %v2892_v10  ;;  %v3557_v14 = vsel %vm3555_vm15, %v3556_v17, %v3554_v56  ;;  %vm3660_vm15 = vcmp.eq.f32.partialorder %v3659_v58, 8.507059e+37 }
 0xb89   :  { %v3639_v60 = vadd.f32 %v10248_v44, %v3638_v19  ;;  %v3587_v42 = vadd.f32 1e-06, %v3557_v14  ;;  %v10252_v54 = vpop.eup %10251  ;;  %v3662_v63 = vor.u32 1.1754944e-38, %v3661_v7 }
 0xb8a   :  { %v3562_v61 = vsub.f32 1.5, %v3561_v37  ;;  %v3651_v8 = vmul.f32 %v10252_v54, %v3586_v20  ;;  %9493 = vmatmul.msk.f32.gmra.mxu1 %vm37_vm0, %v2901_v33  ;;  %vm3656_vm12 = vweird.f32 %v10252_v54 }
 0xb8b   :  { %v3643_v53 = vsel %vm12054_vm8, %v10248_v44, %v3639_v60  ;;  %10253 = vrcp.f32 %v3587_v42  ;;  %vm3657_vm14 = vmor %vm3655_vm11, %vm3656_vm12  ;;  %vm3670_vm1 = vweird.f32 %v3587_v42  ;;  %v3674_v3 = vand.u32 2147483647, %v3587_v42 }
 0xb8c   :  { %v3563_v43 = vmul.f32 %v10250_v0, %v3562_v61  ;;  %v3648_v46 = vsel %vm3645_vm9, %v3647_v57, %v3643_v53  ;;  %v3652_v28 = vsub.f32 1.0, %v3651_v8  ;;  %v3676_v47 = vand.u32 2147483648, %v3587_v42 }
 0xb8d   :  { %v3649_v21 = vmul.f32 %v3648_v46, %v11860_v35  ;;  %vm3675_vm7 = vcmp.eq.f32.partialorder %v3674_v3, 8.507059e+37 }
 0xb8e   :  { %v3564_v49 = vmul.f32 %v3563_v43, %v12015_v13  ;;  %v3653_v44 = vmul.f32 %v10252_v54, %v3652_v28  ;;  %v3677_v10 = vor.u32 1.1754944e-38, %v3676_v47 }
 0xb8f   :  { %v3714_v48 = vmul.f32 %v11915_v55, %v3649_v21 }
 0xb90   :  { %v3566_v17 = vsel %vm3565_vm10, %v12015_v13, %v3564_v49  ;;  %v3654_v35 = vadd.f32 %v10252_v54, %v3653_v44 }
 0xb91   :  { %v10254_v32 = vpop.eup %10253  ;;  %v3723_v0 = vadd.f32 %v11918_v34, %v3714_v48  ;;  %v3569_v45 = vsel %vm3567_vm13, %v3568_v50, %v3566_v17 }
 0xb92   :  { %v3666_v20 = vmul.f32 %v10254_v32, %v3587_v42  ;;  %v3588_v38 = vadd.f32 1e-06, %v3569_v45  ;;  %v3658_v23 = vsel %vm3657_vm14, %v10252_v54, %v3654_v35  ;;  %vm3671_vm2 = vweird.f32 %v10254_v32 }
 0xb93   :  { %9519 = vmatmul.msk.f32.gmra.mxu3 %vm37_vm0, %v3723_v0  ;;  %v3663_v52 = vsel %vm3660_vm15, %v3662_v63, %v3658_v23  ;;  %vm3672_vm4 = vmor %vm3670_vm1, %vm3671_vm2 }
 0xb94   :  { %v3667_v41 = vsub.f32 1.0, %v3666_v20  ;;  %10255 = vrcp.f32 %v3588_v38  ;;  %v3664_v13 = vmul.f32 %v3663_v52, %v11872_v5  ;;  %vm3685_vm8 = vweird.f32 %v3588_v38 }
 0xb95   :  { %v3691_v54 = vand.u32 2147483648, %v3588_v38  ;;  %v3689_v50 = vand.u32 2147483647, %v3588_v38 }
 0xb96   :  { %v3668_v4 = vmul.f32 %v10254_v32, %v3667_v41  ;;  %v3715_v18 = vmul.f32 %v11915_v55, %v3664_v13 }
 0xb97   :  { %v3692_v7 = vor.u32 1.1754944e-38, %v3691_v54  ;;  %vm3690_vm11 = vcmp.eq.f32.partialorder %v3689_v50, 8.507059e+37 }
 0xb98   :  { %v3669_v56 = vadd.f32 %v10254_v32, %v3668_v4  ;;  %v3724_v19 = vadd.f32 %v11918_v34, %v3715_v18 }
 0xb9a   :  { %v10256_v37 = vpop.eup %10255  ;;  %v3775_v33 = vpop.f32.mrf.mxu3  ;;  %v3673_v31 = vsel %vm3672_vm4, %v10254_v32, %v3669_v56 }
 0xb9b   :  { %v12080_v57 = vadd.f32 %v12075_v16, %v3775_v33  ;;  %9520 = vmatmul.msk.f32.gmra.mxu3 %vm37_vm0, %v3724_v19  ;;  %v3678_v5 = vsel %vm3675_vm7, %v3677_v10, %v3673_v31  ;;  %v3681_v14 = vmul.f32 %v10256_v37, %v3588_v38  ;;  %vm3686_vm9 = vweird.f32 %v10256_v37 }
 0xb9c   :  { %v3679_v60 = vmul.f32 %v3678_v5, %v11892_v51  ;;  %vm3687_vm10 = vmor %vm3685_vm8, %vm3686_vm9 }
 0xb9d   :  { %3801 = vrot.lane.b32.xlu0 %v12080_v57, %s10717_s3  ;;  %v3682_v42 = vsub.f32 1.0, %v3681_v14 }
 0xb9e   :  { %v3716_v61 = vmul.f32 %v11915_v55, %v3679_v60 }
 0xb9f   :  { %v3683_v53 = vmul.f32 %v10256_v37, %v3682_v42 }
 0xba0   :  { %v3725_v8 = vadd.f32 %v11918_v34, %v3716_v61  ;;  %v2642_v43 = vpop.xlane.xlu1 %2641 }
 0xba1   :  { %v3684_v46 = vadd.f32 %v10256_v37, %v3683_v53  ;;  %v2660_v21 = vmul.f32 0.032258064, %v2642_v43 }
 0xba3   :  { %9521 = vmatmul.msk.f32.gmra.mxu3 %vm37_vm0, %v3725_v8  ;;  %v3688_v51 = vsel %vm3687_vm10, %v10256_v37, %v3684_v46  ;;  %10257 = vrsqrt.f32 %v2660_v21  ;;  %vm2697_vm12 = vcmp.eq.f32.partialorder %v2660_v21, inf  ;;  %v2700_v10 = vand.u32 2147483648, %v2660_v21 }
 0xba4   :  { %v3693_v28 = vsel %vm3690_vm11, %v3692_v7, %v3688_v51  ;;  %vm2699_vm13 = vcmp.eq.f32.partialorder %v2660_v21, 0.0 }
 0xba5   :  { %v3694_v58 = vmul.f32 %v3693_v28, %v11908_v29 }
 0xba7   :  { %v3717_v49 = vmul.f32 %v11915_v55, %v3694_v58 }
 0xba8   :  { %v3477_v48 = vpop.xlane.xlu1 %3476 }
 0xba9   :  { %v10258_v44 = vpop.eup %10257  ;;  %v3485_v17 = vmul.f32 0.032258064, %v3477_v48  ;;  %v2645_v63 = vpop.xlane.xlu2 %2644  ;;  %v3726_v32 = vadd.f32 %v11918_v34, %v3717_v49 }
 0xbaa   :  { %v2691_v0 = vmul.f32 %v10258_v44, %v2660_v21  ;;  %v2661_v35 = vmul.f32 0.032258064, %v2645_v63 }
 0xbab   :  { %10259 = vrsqrt.f32 %v3485_v17  ;;  %9522 = vmatmul.msk.f32.gmra.mxu3 %vm37_vm0, %v3726_v32  ;;  %vm3577_vm14 = vcmp.eq.f32.partialorder %v3485_v17, inf  ;;  %v3580_v50 = vand.u32 2147483648, %v3485_v17  ;;  %vm3579_vm15 = vcmp.eq.f32.partialorder %v3485_v17, 0.0 }
 0xbac   :  { %v2692_v45 = vmul.f32 %v10258_v44, %v2691_v0  ;;  %10261 = vrsqrt.f32 %v2661_v35  ;;  %vm2709_vm1 = vcmp.eq.f32.partialorder %v2661_v35, inf  ;;  %v2712_v43 = vand.u32 2147483648, %v2661_v35 }
 0xbad   :  { %vm2711_vm2 = vcmp.eq.f32.partialorder %v2661_v35, 0.0 }
 0xbae   :  { %v2693_v20 = vmul.f32 0.5, %v2692_v45 }
 0xbaf   :  { %v3778_v38 = vpop.f32.mrf.mxu3 }
 0xbb0   :  { %v2694_v23 = vsub.f32 1.5, %v2693_v20  ;;  %v12094_v29 = vadd.f32 %v12075_v16, %v3778_v38 }
 0xbb1   :  { %v10260_v3 = vpop.eup %10259 }
 0xbb2   :  { %v10262_v47 = vpop.eup %10261  ;;  %v2695_v52 = vmul.f32 %v10258_v44, %v2694_v23  ;;  %v3571_v41 = vmul.f32 %v10260_v3, %v3485_v17  ;;  %3803 = vrot.lane.b32.xlu2 %v12094_v29, %s10717_s3 }
 0xbb3   :  { %v2703_v13 = vmul.f32 %v10262_v47, %v2661_v35 }
 0xbb4   :  { %v2696_v4 = vmul.f32 %v2695_v52, %v2660_v21  ;;  %v3572_v18 = vmul.f32 %v10260_v3, %v3571_v41 }
 0xbb5   :  { %v2704_v56 = vmul.f32 %v10262_v47, %v2703_v13 }
 0xbb6   :  { %v2698_v19 = vsel %vm2697_vm12, %v2660_v21, %v2696_v4  ;;  %v3573_v37 = vmul.f32 0.5, %v3572_v18 }
 0xbb7   :  { %v2705_v33 = vmul.f32 0.5, %v2704_v56  ;;  %v2701_v31 = vsel %vm2699_vm13, %v2700_v10, %v2698_v19 }
 0xbb8   :  { %v3574_v5 = vsub.f32 1.5, %v3573_v37  ;;  %v2764_v14 = vadd.f32 1e-06, %v2701_v31 }
 0xbb9   :  { %v2706_v60 = vsub.f32 1.5, %v2705_v33 }
 0xbba   :  { %v3575_v42 = vmul.f32 %v10260_v3, %v3574_v5  ;;  %10263 = vrcp.f32 %v2764_v14  ;;  %v2811_v44 = vand.u32 2147483648, %v2764_v14  ;;  %v2809_v32 = vand.u32 2147483647, %v2764_v14 }
 0xbbb   :  { %v2707_v54 = vmul.f32 %v10262_v47, %v2706_v60  ;;  %vm2805_vm7 = vweird.f32 %v2764_v14 }
 0xbbc   :  { %v3576_v61 = vmul.f32 %v3575_v42, %v3485_v17  ;;  %v2812_v45 = vor.u32 1.1754944e-38, %v2811_v44  ;;  %vm2810_vm9 = vcmp.eq.f32.partialorder %v2809_v32, 8.507059e+37  ;;  %v2994_v44 = vld [vmem:[#allocation2 + $0xb0] sm:$0xff]  ;;  %v2992_v32 = vld [vmem:[#allocation2 + $0xa0] sm:$0xff] }
 0xbbd   :  { %v2708_v53 = vmul.f32 %v2707_v54, %v2661_v35  ;;  %3030 = vmatpush.msra.mxu2 %v2994_v44 }
 0xbbe   :  { %v3578_v8 = vsel %vm3577_vm14, %v3485_v17, %v3576_v61 }
 0xbbf   :  { %v2710_v46 = vsel %vm2709_vm1, %v2661_v35, %v2708_v53  ;;  %v3581_v7 = vsel %vm3579_vm15, %v3580_v50, %v3578_v8 }
 0xbc0   :  { %v10264_v21 = vpop.eup %10263  ;;  %v3589_v51 = vadd.f32 1e-06, %v3581_v7  ;;  %v2713_v28 = vsel %vm2711_vm2, %v2712_v43, %v2710_v46 }
 0xbc1   :  { %v2801_v58 = vmul.f32 %v10264_v21, %v2764_v14  ;;  %v2765_v49 = vadd.f32 1e-06, %v2713_v28  ;;  %vm2806_vm4 = vweird.f32 %v10264_v21 }
 0xbc2   :  { %10265 = vrcp.f32 %v3589_v51  ;;  %vm2807_vm8 = vmor %vm2805_vm7, %vm2806_vm4  ;;  %v3704_v41 = vand.u32 2147483647, %v3589_v51  ;;  %v3706_v13 = vand.u32 2147483648, %v3589_v51  ;;  %vm3700_vm12 = vweird.f32 %v3589_v51 }
 0xbc3   :  { %v2802_v48 = vsub.f32 1.0, %v2801_v58  ;;  %10267 = vrcp.f32 %v2765_v49  ;;  %v2826_v56 = vand.u32 2147483648, %v2765_v49  ;;  %v2824_v37 = vand.u32 2147483647, %v2765_v49 }
 0xbc4   :  { %v3707_v5 = vor.u32 1.1754944e-38, %v3706_v13  ;;  %vm2820_vm14 = vweird.f32 %v2765_v49  ;;  %vm3705_vm15 = vcmp.eq.f32.partialorder %v3704_v41, 8.507059e+37  ;;  %v2989_v13 = vld [vmem:[#allocation2 + $0x88] sm:$0xff] }
 0xbc5   :  { %v2803_v63 = vmul.f32 %v10264_v21, %v2802_v48  ;;  %v2827_v60 = vor.u32 1.1754944e-38, %v2826_v56  ;;  %vm2825_vm2 = vcmp.eq.f32.partialorder %v2824_v37, 8.507059e+37 }
 0xbc7   :  { %v2804_v0 = vadd.f32 %v10264_v21, %v2803_v63 }
 0xbc8   :  { %v10266_v17 = vpop.eup %10265 }
 0xbc9   :  { %v10268_v20 = vpop.eup %10267  ;;  %v2808_v35 = vsel %vm2807_vm8, %v10264_v21, %v2804_v0  ;;  %v3696_v38 = vmul.f32 %v10266_v17, %v3589_v51  ;;  %vm3701_vm10 = vweird.f32 %v10266_v17 }
 0xbca   :  { %v2813_v23 = vsel %vm2810_vm9, %v2812_v45, %v2808_v35  ;;  %v2816_v3 = vmul.f32 %v10268_v20, %v2765_v49  ;;  %vm2821_vm11 = vweird.f32 %v10268_v20  ;;  %vm3702_vm13 = vmor %vm3700_vm12, %vm3701_vm10  ;;  %v2991_v35 = vld [vmem:[#allocation2 + $0x98] sm:$0xff] }
 0xbcb   :  { %v2814_v47 = vmul.f32 %v2813_v23, %v11927_v30  ;;  %v3697_v52 = vsub.f32 1.0, %v3696_v38  ;;  %vm2822_vm1 = vmor %vm2820_vm14, %vm2821_vm11 }
 0xbcc   :  { %v2817_v4 = vsub.f32 1.0, %v2816_v3 }
 0xbcd   :  { %v2893_v18 = vmul.f32 %v12018_v11, %v2814_v47  ;;  %v3698_v10 = vmul.f32 %v10266_v17, %v3697_v52  ;;  %v2990_v47 = vld [vmem:[#allocation2 + $0x90] sm:$0xff] }
 0xbce   :  { %v2818_v19 = vmul.f32 %v10268_v20, %v2817_v4 }
 0xbcf   :  { %v2902_v33 = vadd.f32 %v12025_v1, %v2893_v18  ;;  %v3699_v31 = vadd.f32 %v10266_v17, %v3698_v10 }
 0xbd0   :  { %v2819_v14 = vadd.f32 %v10268_v20, %v2818_v19  ;;  %v2988_v19 = vld [vmem:[#allocation2 + $0x80] sm:$0xff] }
 0xbd1   :  { %9494 = vmatmul.msk.f32.gmra.mxu1 %vm37_vm0, %v2902_v33  ;;  %v3703_v30 = vsel %vm3702_vm13, %v10266_v17, %v3699_v31 }
 0xbd2   :  { %v3708_v42 = vsel %vm3705_vm15, %v3707_v5, %v3703_v30  ;;  %v2823_v54 = vsel %vm2822_vm1, %v10268_v20, %v2819_v14  ;;  %v2987_v14 = vld [vmem:[#allocation2 + $0x78] sm:$0xff] }
 0xbd3   :  { %v3709_v50 = vmul.f32 %v3708_v42, %v11932_v62  ;;  %v2828_v53 = vsel %vm2825_vm2, %v2827_v60, %v2823_v54 }
 0xbd4   :  { %v2648_v61 = vpop.xlane.xlu0 %2647  ;;  %v2829_v43 = vmul.f32 %v2828_v53, %v11942_v24 }
 0xbd5   :  { %v2662_v8 = vmul.f32 0.032258064, %v2648_v61  ;;  %v3718_v46 = vmul.f32 %v11915_v55, %v3709_v50  ;;  %v2993_v55 = vld [vmem:[#allocation2 + $0xa8] sm:$0xff] }
 0xbd6   :  { %v2894_v21 = vmul.f32 %v12018_v11, %v2829_v43  ;;  %3031 = vmatpush.msra.mxu2 %v2993_v55 }
 0xbd7   :  { %10269 = vrsqrt.f32 %v2662_v8  ;;  %v3727_v7 = vadd.f32 %v11918_v34, %v3718_v46  ;;  %vm2721_vm4 = vcmp.eq.f32.partialorder %v2662_v8, inf  ;;  %v2724_v23 = vand.u32 2147483648, %v2662_v8 }
 0xbd8   :  { %v2903_v51 = vadd.f32 %v12025_v1, %v2894_v21  ;;  %3032 = vmatpush.msra.mxu2 %v2992_v32  ;;  %vm2723_vm7 = vcmp.eq.f32.partialorder %v2662_v8, 0.0 }
 0xbd9   :  { %9523 = vmatmul.msk.f32.gmra.mxu3 %vm37_vm0, %v3727_v7 }
 0xbda   :  { %9495 = vmatmul.msk.f32.gmra.mxu1 %vm37_vm0, %v2903_v51  ;;  %3033 = vmatpush.msra.mxu2 %v2991_v35 }
 0xbdc   :  { %v2651_v58 = vpop.xlane.xlu2 %2650  ;;  %3034 = vmatpush.msra.mxu2 %v2990_v47 }
 0xbdd   :  { %v10270_v28 = vpop.eup %10269  ;;  %v2663_v49 = vmul.f32 0.032258064, %v2651_v58 }
 0xbde   :  { %v2715_v62 = vmul.f32 %v10270_v28, %v2662_v8  ;;  %3035 = vmatpush.msra.mxu2 %v2989_v13 }
 0xbdf   :  { %10271 = vrsqrt.f32 %v2663_v49  ;;  %vm2733_vm8 = vcmp.eq.f32.partialorder %v2663_v49, inf  ;;  %v2736_v42 = vand.u32 2147483648, %v2663_v49  ;;  %vm2735_vm9 = vcmp.eq.f32.partialorder %v2663_v49, 0.0 }
 0xbe0   :  { %v2716_v48 = vmul.f32 %v10270_v28, %v2715_v62  ;;  %3036 = vmatpush.msra.mxu2 %v2988_v19 }
 0xbe2   :  { %v2717_v24 = vmul.f32 0.5, %v2716_v48  ;;  %3037 = vmatpush.msra.mxu2 %v2987_v14 }
 0xbe4   :  { %v2718_v63 = vsub.f32 1.5, %v2717_v24  ;;  %v2654_v34 = vpop.xlane.xlu1 %2653 }
 0xbe5   :  { %v10272_v0 = vpop.eup %10271  ;;  %v12110_v45 = vmul.f32 0.032258064, %v2654_v34 }
 0xbe6   :  { %v2719_v17 = vmul.f32 %v10270_v28, %v2718_v63  ;;  %v2727_v20 = vmul.f32 %v10272_v0, %v2663_v49 }
 0xbe7   :  { %10273 = vrsqrt.f32 %v12110_v45  ;;  %vm2745_vm11 = vcmp.eq.f32.partialorder %v12110_v45, inf  ;;  %vm2747_vm12 = vcmp.eq.f32.partialorder %v12110_v45, 0.0 }
 0xbe8   :  { %v2720_v38 = vmul.f32 %v2719_v17, %v2662_v8  ;;  %v2728_v3 = vmul.f32 %v10272_v0, %v2727_v20 }
 0xbea   :  { %v2722_v52 = vsel %vm2721_vm4, %v2662_v8, %v2720_v38  ;;  %v2729_v41 = vmul.f32 0.5, %v2728_v3 }
 0xbeb   :  { %v2725_v4 = vsel %vm2723_vm7, %v2724_v23, %v2722_v52  ;;  %v12123_v23 = vld [vmem:[#allocation2 + $0x70] ss:$0 sm:$0xff]  ;;  %vm2997_vm7 = vcmask 523264  }
 0xbec   :  { %v2766_v18 = vadd.f32 1e-06, %v2725_v4  ;;  %v2730_v10 = vsub.f32 1.5, %v2729_v41 }
 0xbed   :  { %v2657_v56 = vpop.xlane.xlu0 %2656  ;;  %v10274_v37 = vpop.eup %10273 }
 0xbee   :  { %v12113_v33 = vmul.f32 0.032258064, %v2657_v56  ;;  %10275 = vrcp.f32 %v2766_v18  ;;  %v2731_v31 = vmul.f32 %v10272_v0, %v2730_v10  ;;  %v2739_v5 = vmul.f32 %v10274_v37, %v12110_v45 }
 0xbef   :  { %v2839_v58 = vand.u32 2147483647, %v2766_v18  ;;  %v2841_v62 = vand.u32 2147483648, %v2766_v18  ;;  %vm2835_vm13 = vweird.f32 %v2766_v18 }
 0xbf0   :  { %10277 = vrsqrt.f32 %v12113_v33  ;;  %v2732_v30 = vmul.f32 %v2731_v31, %v2663_v49  ;;  %v2740_v60 = vmul.f32 %v10274_v37, %v2739_v5  ;;  %vm2757_vm1 = vcmp.eq.f32.partialorder %v12113_v33, inf }
 0xbf1   :  { %v2842_v32 = vor.u32 1.1754944e-38, %v2841_v62  ;;  %vm2840_vm15 = vcmp.eq.f32.partialorder %v2839_v58, 8.507059e+37  ;;  %v2760_v4 = vand.u32 2147483648, %v12113_v33  ;;  %vm2759_vm4 = vcmp.eq.f32.partialorder %v12113_v33, 0.0 }
 0xbf2   :  { %v2734_v54 = vsel %vm2733_vm8, %v2663_v49, %v2732_v30  ;;  %v2741_v61 = vmul.f32 0.5, %v2740_v60  ;;  %v2748_v49 = vand.u32 2147483648, %v12110_v45 }
 0xbf3   :  { %v2737_v53 = vsel %vm2735_vm9, %v2736_v42, %v2734_v54 }
 0xbf4   :  { %v10276_v50 = vpop.eup %10275  ;;  %v2742_v8 = vsub.f32 1.5, %v2741_v61  ;;  %v2767_v46 = vadd.f32 1e-06, %v2737_v53 }
 0xbf5   :  { %v2831_v43 = vmul.f32 %v10276_v50, %v2766_v18  ;;  %vm2836_vm10 = vweird.f32 %v10276_v50 }
 0xbf6   :  { %v10278_v7 = vpop.eup %10277  ;;  %v2743_v21 = vmul.f32 %v10274_v37, %v2742_v8  ;;  %10279 = vrcp.f32 %v2767_v46  ;;  %vm2837_vm14 = vmor %vm2835_vm13, %vm2836_vm10  ;;  %v2856_v56 = vand.u32 2147483648, %v2767_v46  ;;  %v2854_v31 = vand.u32 2147483647, %v2767_v46 }
 0xbf7   :  { %v2751_v51 = vmul.f32 %v10278_v7, %v12113_v33  ;;  %v2832_v28 = vsub.f32 1.0, %v2831_v43  ;;  %vm2850_vm8 = vweird.f32 %v2767_v46 }
 0xbf8   :  { %v2744_v48 = vmul.f32 %v2743_v21, %v12110_v45  ;;  %v2857_v54 = vor.u32 1.1754944e-38, %v2856_v56  ;;  %vm2855_vm10 = vcmp.eq.f32.partialorder %v2854_v31, 8.507059e+37 }
 0xbf9   :  { %v2752_v24 = vmul.f32 %v10278_v7, %v2751_v51  ;;  %v2833_v44 = vmul.f32 %v10276_v50, %v2832_v28 }
 0xbfa   :  { %v2746_v55 = vsel %vm2745_vm11, %v12110_v45, %v2744_v48 }
 0xbfb   :  { %v2753_v63 = vmul.f32 0.5, %v2752_v24  ;;  %v2834_v34 = vadd.f32 %v10276_v50, %v2833_v44  ;;  %v2749_v0 = vsel %vm2747_vm12, %v2748_v49, %v2746_v55 }
 0xbfc   :  { %v10280_v17 = vpop.eup %10279  ;;  %v2768_v38 = vadd.f32 1e-06, %v2749_v0 }
 0xbfd   :  { %v2754_v20 = vsub.f32 1.5, %v2753_v63  ;;  %v2838_v35 = vsel %vm2837_vm14, %v10276_v50, %v2834_v34  ;;  %v2846_v47 = vmul.f32 %v10280_v17, %v2767_v46  ;;  %vm2851_vm2 = vweird.f32 %v10280_v17 }
 0xbfe   :  { %v2843_v3 = vsel %vm2840_vm15, %v2842_v32, %v2838_v35  ;;  %10281 = vrcp.f32 %v2768_v38  ;;  %vm2852_vm9 = vmor %vm2850_vm8, %vm2851_vm2  ;;  %v2869_v21 = vand.u32 2147483647, %v2768_v38  ;;  %v2871_v46 = vand.u32 2147483648, %v2768_v38 }
 0xbff   :  { %v2755_v52 = vmul.f32 %v10278_v7, %v2754_v20  ;;  %v2844_v41 = vmul.f32 %v2843_v3, %v11954_v36  ;;  %v2847_v45 = vsub.f32 1.0, %v2846_v47  ;;  %v2955_v18 = vpop.f32.mrf.mxu1  ;;  %vm2865_vm12 = vweird.f32 %v2768_v38 }
 0xc00   :  { %v2956_v19 = vadd.f32 %v12123_v23, %v2955_v18  ;;  %v2872_v55 = vor.u32 1.1754944e-38, %v2871_v46  ;;  %vm2870_vm14 = vcmp.eq.f32.partialorder %v2869_v21, 8.507059e+37 }
 0xc01   :  { %v2756_v13 = vmul.f32 %v2755_v52, %v12113_v33  ;;  %v2895_v10 = vmul.f32 %v12018_v11, %v2844_v41  ;;  %v2848_v37 = vmul.f32 %v10280_v17, %v2847_v45 }
 0xc02   :  { %v2979_v14 = vmax.f32 %v2956_v19, 0.0 }
 0xc03   :  { %v2758_v5 = vsel %vm2757_vm1, %v12113_v33, %v2756_v13  ;;  %v2904_v36 = vadd.f32 %v12025_v1, %v2895_v10  ;;  %v2849_v30 = vadd.f32 %v10280_v17, %v2848_v37 }
 0xc04   :  { %v2761_v60 = vsel %vm2759_vm4, %v2760_v4, %v2758_v5  ;;  %v10282_v42 = vpop.eup %10281  ;;  %9500 = vmatmul.msk.f32.vlgmr.msra.gmra.mxu2 %vm2997_vm7, %v2979_v14 }
 0xc05   :  { %9496 = vmatmul.msk.f32.gmra.mxu1 %vm37_vm0, %v2904_v36  ;;  %v2769_v61 = vadd.f32 1e-06, %v2761_v60  ;;  %v2853_v50 = vsel %vm2852_vm9, %v10280_v17, %v2849_v30  ;;  %v2861_v53 = vmul.f32 %v10282_v42, %v2768_v38  ;;  %vm2866_vm11 = vweird.f32 %v10282_v42 }
 0xc06   :  { %v2858_v8 = vsel %vm2855_vm10, %v2857_v54, %v2853_v50  ;;  %vm2867_vm13 = vmor %vm2865_vm12, %vm2866_vm11 }
 0xc07   :  { %10283 = vrcp.f32 %v2769_v61  ;;  %v2859_v33 = vmul.f32 %v2858_v8, %v11964_v26  ;;  %v2862_v43 = vsub.f32 1.0, %v2861_v53  ;;  %v2958_v7 = vpop.f32.mrf.mxu1  ;;  %v3781_v26 = vpop.f32.mrf.mxu3  ;;  %v2886_v35 = vand.u32 2147483648, %v2769_v61 }
 0xc08   :  { %v2959_v51 = vadd.f32 %v12123_v23, %v2958_v7  ;;  %v2884_v47 = vand.u32 2147483647, %v2769_v61  ;;  %vm2880_vm1 = vweird.f32 %v2769_v61  ;;  %v12167_v5 = vadd.f32 %v12075_v16, %v3781_v26 }
 0xc09   :  { %v2896_v28 = vmul.f32 %v12018_v11, %v2859_v33  ;;  %v2863_v58 = vmul.f32 %v10282_v42, %v2862_v43  ;;  %v2887_v45 = vor.u32 1.1754944e-38, %v2886_v35 }
 0xc0a   :  { %v2980_v62 = vmax.f32 %v2959_v51, 0.0  ;;  %vm2885_vm4 = vcmp.eq.f32.partialorder %v2884_v47, 8.507059e+37 }
 0xc0b   :  { %v2905_v48 = vadd.f32 %v12025_v1, %v2896_v28  ;;  %v2864_v24 = vadd.f32 %v10282_v42, %v2863_v58 }
 0xc0c   :  { %v3804_v49 = vpop.permute.xlu2 %3803  ;;  %9501 = vmatmul.msk.f32.gmra.mxu2 %vm2997_vm7, %v2980_v62 }
 0xc0d   :  { %v10284_v44 = vpop.eup %10283  ;;  %9497 = vmatmul.msk.f32.gmra.mxu1 %vm37_vm0, %v2905_v48  ;;  %v2868_v63 = vsel %vm2867_vm13, %v10282_v42, %v2864_v24  ;;  %9524 = vmatpush.xpose.msk.msrb.mxu0 %vm444_vm5, %v3804_v49 }
 0xc0e   :  { %v2876_v34 = vmul.f32 %v10284_v44, %v2769_v61  ;;  %v2873_v32 = vsel %vm2870_vm14, %v2872_v55, %v2868_v63  ;;  %vm2881_vm15 = vweird.f32 %v10284_v44 }
 0xc0f   :  { %v3802_v0 = vpop.permute.xlu0 %3801  ;;  %v2874_v17 = vmul.f32 %v2873_v32, %v11978_v39  ;;  %vm2882_vm2 = vmor %vm2880_vm1, %vm2881_vm15 }
 0xc10   :  { %v2877_v20 = vsub.f32 1.0, %v2876_v34 }
 0xc11   :  { %v2897_v38 = vmul.f32 %v12018_v11, %v2874_v17  ;;  %9525 = vmatpush.xpose.msk.msrb.mxu0 %vm444_vm5, %v3802_v0 }
 0xc12   :  { %v2878_v3 = vmul.f32 %v10284_v44, %v2877_v20 }
 0xc13   :  { %v2906_v52 = vadd.f32 %v12025_v1, %v2897_v38 }
 0xc14   :  { %v2879_v41 = vadd.f32 %v10284_v44, %v2878_v3  ;;  %9526 = vmatmul.msk.f32.vlgmr.msrb.gmra.mxu0 %vm444_vm5, %v12080_v57 }
 0xc15   :  { %9498 = vmatmul.msk.f32.gmra.mxu1 %vm37_vm0, %v2906_v52 }
 0xc16   :  { %v3784_v39 = vpop.f32.mrf.mxu3  ;;  %v2883_v13 = vsel %vm2882_vm2, %v10284_v44, %v2879_v41 }
 0xc17   :  { %v12151_v4 = vadd.f32 %v12075_v16, %v3784_v39  ;;  %v2888_v18 = vsel %vm2885_vm4, %v2887_v45, %v2883_v13 }
 0xc18   :  { %v2889_v10 = vmul.f32 %v2888_v18, %v11997_v25 }
 0xc19   :  { %3840 = vrot.lane.b32.xlu0 %v12151_v4, %s10717_s3 }
 0xc1a   :  { %v2898_v56 = vmul.f32 %v12018_v11, %v2889_v10 }
 0xc1c   :  { %v2907_v19 = vadd.f32 %v12025_v1, %v2898_v56  ;;  %9527 = vmatmul.msk.f32.gmra.mxu0 %vm444_vm5, %v12094_v29 }
 0xc1e   :  { %9499 = vmatmul.msk.f32.gmra.mxu1 %vm37_vm0, %v2907_v19  ;;  %v3787_v37 = vpop.f32.mrf.mxu3 }
 0xc1f   :  { %v12162_v31 = vadd.f32 %v12075_v16, %v3787_v37 }
 0xc21   :  { %3875 = vrot.lane.b32.xlu2 %v12162_v31, %s10717_s3 }
 0xc26   :  { %v3790_v25 = vpop.f32.mrf.mxu3 }
 0xc27   :  { %v12170_v11 = vadd.f32 %v12075_v16, %v3790_v25 }
 0xc29   :  { %3877 = vrot.lane.b32.xlu1 %v12170_v11, %s10717_s3  ;;  %3838 = vrot.lane.b32.xlu2 %v12167_v5, %s10717_s3 }
 0xc2e   :  { %v3793_v1 = vpop.f32.mrf.mxu3 }
 0xc2f   :  { %v12177_v36 = vadd.f32 %v12075_v16, %v3793_v1 }
 0xc31   :  { %3912 = vrot.lane.b32.xlu0 %v12177_v36, %s10717_s3 }
 0xc4e   :  { %v2961_v14 = vpop.f32.mrf.mxu1 }
 0xc4f   :  { %v2962_v30 = vadd.f32 %v12123_v23, %v2961_v14 }
 0xc51   :  { %v2981_v60 = vmax.f32 %v2962_v30, 0.0 }
 0xc53   :  { %9502 = vmatmul.msk.f32.gmra.mxu2 %vm2997_vm7, %v2981_v60 }
 0xc57   :  { %v2964_v42 = vpop.f32.mrf.mxu1 }
 0xc58   :  { %v2965_v54 = vadd.f32 %v12123_v23, %v2964_v42 }
 0xc5a   :  { %v2982_v61 = vmax.f32 %v2965_v54, 0.0 }
 0xc5c   :  { %v3796_v50 = vpop.f32.mrf.mxu3  ;;  %9503 = vmatmul.msk.f32.gmra.mxu2 %vm2997_vm7, %v2982_v61 }
 0xc5d   :  { %v12186_v53 = vadd.f32 %v12075_v16, %v3796_v50 }
 0xc5f   :  { %3914 = vrot.lane.b32.xlu1 %v12186_v53, %s10717_s3 }
 0xc7b   :  { %v3876_v43 = vpop.permute.xlu2 %3875 }
 0xc82   :  { %v2967_v8 = vpop.f32.mrf.mxu1 }
 0xc83   :  { %v2968_v33 = vadd.f32 %v12123_v23, %v2967_v8  ;;  %v3839_v58 = vpop.permute.xlu2 %3838 }
 0xc85   :  { %v2983_v7 = vmax.f32 %v2968_v33, 0.0 }
 0xc87   :  { %9504 = vmatmul.msk.f32.gmra.mxu2 %vm2997_vm7, %v2983_v7  ;;  %v12224_v52 = vpop.f32.mrf.mxu2 }
 0xc8a   :  { %v2970_v46 = vpop.f32.mrf.mxu1 }
 0xc8b   :  { %v3841_v21 = vpop.permute.xlu0 %3840  ;;  %v2971_v51 = vadd.f32 %v12123_v23, %v2970_v46 }
 0xc8c   :  { %9528 = vmatpush.xpose.msk.msrb.mxu1 %vm444_vm5, %v3841_v21  ;;  %v12260_v21 = vpack.i.bf16 %v12080_v57, %v12094_v29 }
 0xc8d   :  { %v2984_v28 = vmax.f32 %v2971_v51, 0.0 }
 0xc8f   :  { %9505 = vmatmul.msk.f32.gmra.mxu2 %vm2997_vm7, %v2984_v28  ;;  %v12230_v39 = vpop.f32.mrf.mxu2 }
 0xc90   :  { %9529 = vmatpush.xpose.msk.msrb.mxu1 %vm444_vm5, %v3839_v58 }
 0xc91   :  { %v3830_v16 = vpop.f32.mrf.mxu0 }
 0xc92   :  { %v2973_v62 = vpop.f32.mrf.mxu1  ;;  %v3947_v24 = vsel %vm587_vm6, %v3830_v16, -inf }
 0xc93   :  { %9530 = vmatmul.msk.f32.vlgmr.msrb.gmra.mxu1 %vm444_vm5, %v12167_v5  ;;  %v2974_v48 = vadd.f32 %v12123_v23, %v2973_v62  ;;  %3948 = vmax.xlane.f32.xlu1 %v3947_v24 }
 0xc95   :  { %v2985_v44 = vmax.f32 %v2974_v48, 0.0 }
 0xc97   :  { %9506 = vmatmul.msk.f32.gmra.mxu2 %vm2997_vm7, %v2985_v44 }
 0xc99   :  { %v3833_v49 = vpop.f32.mrf.mxu0 }
 0xc9a   :  { %v3950_v34 = vsel %vm587_vm6, %v3833_v49, -inf }
 0xc9b   :  { %v2976_v55 = vpop.f32.mrf.mxu1  ;;  %9531 = vmatmul.msk.f32.gmra.mxu1 %vm444_vm5, %v12151_v4  ;;  %v3878_v63 = vpop.permute.xlu1 %3877  ;;  %3951 = vmax.xlane.f32.xlu2 %v3950_v34 }
 0xc9c   :  { %v2977_v26 = vadd.f32 %v12123_v23, %v2976_v55  ;;  %9532 = vmatpush.xpose.msk.msrb.mxu2 %vm444_vm5, %v3878_v63 }
 0xc9e   :  { %v2986_v32 = vmax.f32 %v2977_v26, 0.0 }
 0xca0   :  { %9507 = vmatmul.msk.f32.gmra.mxu2 %vm2997_vm7, %v2986_v32 }
 0xca1   :  { %9533 = vmatpush.xpose.msk.msrb.mxu2 %vm444_vm5, %v3876_v43 }
 0xca3   :  { %v3913_v23 = vpop.permute.xlu0 %3912 }
 0xca8   :  { %9534 = vmatmul.msk.f32.vlgmr.msrb.gmra.mxu2 %vm444_vm5, %v12162_v31 }
 0xcb0   :  { %9535 = vmatmul.msk.f32.gmra.mxu2 %vm444_vm5, %v12170_v11 }
 0xcd1   :  { %v3915_v0 = vpop.permute.xlu1 %3914 }
 0xcd2   :  { %9536 = vmatpush.xpose.msk.msrb.mxu3 %vm444_vm5, %v3915_v0 }
 0xcd6   :  { %9537 = vmatpush.xpose.msk.msrb.mxu3 %vm444_vm5, %v3913_v23  ;;  %v12232_v13 = vpop.f32.mrf.mxu2 }
 0xcd9   :  { %9538 = vmatmul.msk.f32.vlgmr.msrb.gmra.mxu3 %vm444_vm5, %v12177_v36 }
 0xcdf   :  { %v12234_v18 = vpop.f32.mrf.mxu2 }
 0xce1   :  { %9539 = vmatmul.msk.f32.gmra.mxu3 %vm444_vm5, %v12186_v53 }
 0xd06   :  { %v3949_v17 = vpop.xlane.xlu1 %3948 }
 0xd07   :  { %v3971_v20 = vsub.f32 %v3830_v16, %v3949_v17 }
 0xd09   :  { %v3979_v35 = vmul.f32 1.442695, %v3971_v20 }
 0xd0a   :  { %v12236_v10 = vpop.f32.mrf.mxu2 }
 0xd0b   :  { %10285 = vpow2.f32 %v3979_v35 }
 0xd0e   :  { %v3952_v37 = vpop.xlane.xlu2 %3951 }
 0xd0f   :  { %v3972_v25 = vsub.f32 %v3833_v49, %v3952_v37 }
 0xd10   :  { %v12218_v38 = vpop.f32.mrf.mxu1 }
 0xd11   :  { %v12220_v3 = vpop.eup %10285  ;;  %v3981_v14 = vmul.f32 1.442695, %v3972_v25  ;;  %v3953_v43 = vsel %vm587_vm6, %v12218_v38, -inf }
 0xd12   :  { %v3995_v47 = vsel %vm587_vm6, %v12220_v3, 0.0  ;;  %v12238_v56 = vpop.f32.mrf.mxu2 }
 0xd13   :  { %3996 = vadd.xlane.f32.xlu0 %v3995_v47  ;;  %14573 = vst [vmem:[#allocation9_spill] sm:$0xff] %v12238_v56  ;;  %10287 = vpow2.f32 %v3981_v14 }
 0xd18   :  { %v12226_v41 = vpop.f32.mrf.mxu1 }
 0xd19   :  { %v3956_v45 = vsel %vm587_vm6, %v12226_v41, -inf  ;;  %v12247_v54 = vpop.eup %10287 }
 0xd1a   :  { %v12240_v19 = vpop.f32.mrf.mxu2  ;;  %v3998_v50 = vsel %vm587_vm6, %v12247_v54, 0.0 }
 0xd1b   :  { %3957 = vmax.xlane.f32.xlu0 %v3956_v45  ;;  %14574 = vst [vmem:[#allocation10_spill] sm:$0xff] %v12240_v19 }
 0xd23   :  { %v12242_v1 = vpop.f32.mrf.mxu2 }
 0xd24   :  { %14575 = vst [vmem:[#allocation11_spill] sm:$0xff] %v12242_v1 }
 0xd2b   :  { %v12245_v42 = vpop.f32.mrf.mxu2 }
 0xd33   :  { %v12252_v33 = vpop.f32.mrf.mxu2 }
 0xd34   :  { %v3962_v7 = vsel %vm587_vm6, %v12252_v33, -inf }
 0xd5c   :  { %v3941_v30 = vpop.f32.mrf.mxu3 }
 0xd5d   :  { %v3965_v60 = vsel %vm587_vm6, %v3941_v30, -inf }
 0xd5e   :  { %3966 = vmax.xlane.f32.xlu1 %v3965_v60 }
 0xd64   :  { %v3944_v61 = vpop.f32.mrf.mxu3 }
 0xd65   :  { %v3968_v8 = vsel %vm587_vm6, %v3944_v61, -inf }
 0xd66   :  { %3999 = vadd.xlane.f32.xlu1 %v3998_v50  ;;  %3969 = vmax.xlane.f32.xlu2 %v3968_v8 }
 0xd6e   :  { %3954 = vmax.xlane.f32.xlu1 %v3953_v43  ;;  %3963 = vmax.xlane.f32.xlu2 %v3962_v7 }
 0xd86   :  { %9866 = vrot.lane.b32.xlu2 %v12260_v21, %s10719_s5  ;;  %v3997_v46 = vpop.xlane.xlu0 %3996 }
 0xd87   :  { %10289 = vrcp.f32 %v3997_v46  ;;  %v4030_v45 = vand.u32 2147483648, %v3997_v46  ;;  %vm4024_vm9 = vweird.f32 %v3997_v46  ;;  %v4028_v14 = vand.u32 2147483647, %v3997_v46 }
 0xd89   :  { %vm4029_vm11 = vcmp.eq.f32.partialorder %v4028_v14, 8.507059e+37 }
 0xd8d   :  { %v10290_v58 = vpop.eup %10289 }
 0xd8e   :  { %v4020_v62 = vmul.f32 %v10290_v58, %v3997_v46  ;;  %vm4025_vm8 = vweird.f32 %v10290_v58  ;;  %v3958_v43 = vpop.xlane.xlu0 %3957 }
 0xd8f   :  { %vm4026_vm10 = vmor %vm4024_vm9, %vm4025_vm8 }
 0xd90   :  { %v4021_v49 = vsub.f32 1.0, %v4020_v62  ;;  %v3974_v62 = vsub.f32 %v12226_v41, %v3958_v43 }
 0xd92   :  { %v4022_v34 = vmul.f32 %v10290_v58, %v4021_v49 }
 0xd94   :  { %v4023_v35 = vadd.f32 %v10290_v58, %v4022_v34 }
 0xd96   :  { %v4027_v60 = vsel %vm4026_vm10, %v10290_v58, %v4023_v35 }
 0xdd1   :  { %v3967_v51 = vpop.xlane.xlu1 %3966 }
 0xdd2   :  { %v3977_v28 = vsub.f32 %v3941_v30, %v3967_v51 }
 0xdd4   :  { %v3991_v16 = vmul.f32 1.442695, %v3977_v28 }
 0xdd6   :  { %10291 = vpow2.f32 %v3991_v16 }
 0xdd9   :  { %v3970_v48 = vpop.xlane.xlu2 %3969  ;;  %v4000_v24 = vpop.xlane.xlu1 %3999 }
 0xdda   :  { %v3978_v44 = vsub.f32 %v3944_v61, %v3970_v48  ;;  %10293 = vrcp.f32 %v4000_v24  ;;  %v4031_v61 = vor.u32 1.1754944e-38, %v4030_v45  ;;  %v4045_v48 = vand.u32 2147483648, %v4000_v24 }
 0xddb   :  { %vm4039_vm13 = vweird.f32 %v4000_v24 }
 0xddc   :  { %v12264_v55 = vpop.eup %10291  ;;  %v3993_v26 = vmul.f32 1.442695, %v3978_v44  ;;  %v4032_v8 = vsel %vm4029_vm11, %v4031_v61, %v4027_v60  ;;  %v4043_v44 = vand.u32 2147483647, %v4000_v24 }
 0xddd   :  { %v4013_v63 = vsel %vm587_vm6, %v12264_v55, 0.0  ;;  %v4033_v46 = vmul.f32 %v12220_v3, %v4032_v8  ;;  %v3959_v3 = vsel %vm587_vm6, %v12245_v42, -inf }
 0xdde   :  { %10295 = vpow2.f32 %v3993_v26  ;;  %4014 = vadd.xlane.f32.xlu1 %v4013_v63  ;;  %v3985_v26 = vmul.f32 1.442695, %v3974_v62  ;;  %v4046_v63 = vor.u32 1.1754944e-38, %v4045_v48  ;;  %vm4044_vm15 = vcmp.eq.f32.partialorder %v4043_v44, 8.507059e+37 }
 0xde0   :  { %v10294_v32 = vpop.eup %10293 }
 0xde1   :  { %v4035_v0 = vmul.f32 %v10294_v32, %v4000_v24  ;;  %v12268_v23 = vpop.xlane.xlu2 %3963  ;;  %v3955_v17 = vpop.xlane.xlu1 %3954  ;;  %vm4040_vm12 = vweird.f32 %v10294_v32 }
 0xde2   :  { %v3973_v20 = vsub.f32 %v12218_v38, %v3955_v17  ;;  %vm4041_vm14 = vmor %vm4039_vm13, %vm4040_vm12  ;;  %v12318_v17 = vpack.i.bf16 %v12177_v36, %v12186_v53 }
 0xde3   :  { %v4036_v37 = vsub.f32 1.0, %v4035_v0  ;;  %v12308_v0 = vpack.i.bf16 %v12167_v5, %v12151_v4 }
 0xde4   :  { %v12271_v47 = vpop.eup %10295  ;;  %v3983_v25 = vmul.f32 1.442695, %v3973_v20  ;;  %v3976_v20 = vsub.f32 %v12252_v33, %v12268_v23 }
 0xde5   :  { %v4016_v30 = vsel %vm587_vm6, %v12271_v47, 0.0  ;;  %v4037_v50 = vmul.f32 %v10294_v32, %v4036_v37 }
 0xde6   :  { %4017 = vadd.xlane.f32.xlu2 %v4016_v30  ;;  %10297 = vpow2.f32 %v3983_v25  ;;  %v3989_v35 = vmul.f32 1.442695, %v3976_v20 }
 0xde7   :  { %v4038_v28 = vadd.f32 %v10294_v32, %v4037_v50  ;;  %10299 = vpow2.f32 %v3985_v26 }
 0xde8   :  { %10301 = vpow2.f32 %v3989_v35 }
 0xde9   :  { %v9867_v38 = vpop.permute.xlu2 %9866  ;;  %v4042_v49 = vsel %vm4041_vm14, %v10294_v32, %v4038_v28 }
 0xdea   :  { %v9868_v7 = vunpack.i.l.bf16 %v9867_v38  ;;  %v9869_v51 = vunpack.i.h.bf16 %v9867_v38  ;;  %v4047_v34 = vsel %vm4044_vm15, %v4046_v63, %v4042_v49 }
 0xdeb   :  { %v4048_v41 = vmul.f32 %v12247_v54, %v4047_v34  ;;  %v12300_v54 = vpack.i.bf16 %v12162_v31, %v12170_v11 }
 0xdec   :  { %4165 = vmatpush.msra.mxu0 %v9868_v7  ;;  %v12275_v16 = vpop.eup %10297 }
 0xded   :  { %v4001_v58 = vsel %vm587_vm6, %v12275_v16, 0.0  ;;  %v12288_v24 = vpop.eup %10299 }
 0xdee   :  { %4166 = vmatpush.msra.mxu0 %v9869_v51  ;;  %4002 = vadd.xlane.f32.xlu0 %v4001_v58  ;;  %v4004_v32 = vsel %vm587_vm6, %v12288_v24, 0.0  ;;  %v12330_v45 = vpop.eup %10301 }
 0xdef   :  { %9540 = vmatmul.msk.f32.vlgmr.msra.gmra.mxu0 %vm587_vm6, %v4033_v46  ;;  %v4010_v37 = vsel %vm587_vm6, %v12330_v45, 0.0 }
 0xdf6   :  { %3960 = vmax.xlane.f32.xlu0 %v3959_v3 }
 0xdf7   :  { %4285 = vrot.lane.b32.xlu1 %v12094_v29, %s10718_s4  ;;  %9541 = vmatmul.msk.f32.gmra.mxu0 %vm587_vm6, %v4048_v41 }
 0xdfe   :  { %4005 = vadd.xlane.f32.xlu0 %v4004_v32 }
 0xdff   :  { %4283 = vrot.lane.b32.xlu1 %v12080_v57, %s10718_s4 }
 0xe07   :  { %4363 = vrot.lane.b32.xlu1 %v12170_v11, %s10718_s4 }
 0xe0f   :  { %4361 = vrot.lane.b32.xlu1 %v12162_v31, %s10718_s4 }
 0xe12   :  { %9871 = vrot.lane.b32.xlu0 %v12300_v54, %s10719_s5 }
 0xe17   :  { %4357 = vrot.lane.b32.xlu1 %v12162_v31, %s10720_s6 }
 0xe1a   :  { %9876 = vrot.lane.b32.xlu0 %v12308_v0, %s10719_s5 }
 0xe1f   :  { %4318 = vrot.lane.b32.xlu1 %v12167_v5, %s10720_s6 }
 0xe22   :  { %4279 = vrot.lane.b32.xlu0 %v12080_v57, %s10720_s6 }
 0xe2a   :  { %9881 = vrot.lane.b32.xlu0 %v12318_v17, %s10719_s5 }
 0xe32   :  { %4281 = vrot.lane.b32.xlu0 %v12094_v29, %s10720_s6 }
 0xe3a   :  { %4324 = vrot.lane.b32.xlu0 %v12151_v4, %s10718_s4 }
 0xe42   :  { %4359 = vrot.lane.b32.xlu0 %v12170_v11, %s10720_s6 }
 0xe49   :  { %4011 = vadd.xlane.f32.xlu1 %v4010_v37 }
 0xe4a   :  { %4400 = vrot.lane.b32.xlu0 %v12177_v36, %s10718_s4 }
 0xe51   :  { %v12338_v33 = vpop.xlane.xlu1 %4014 }
 0xe52   :  { %4396 = vrot.lane.b32.xlu0 %v12177_v36, %s10720_s6  ;;  %vm4114_vm14 = vweird.f32 %v12338_v33 }
 0xe59   :  { %v12352_v44 = vpop.xlane.xlu2 %4017 }
 0xe61   :  { %v4003_v23 = vpop.xlane.xlu0 %4002 }
 0xe62   :  { %4402 = vrot.lane.b32.xlu1 %v12186_v53, %s10718_s4  ;;  %v4060_v34 = vand.u32 2147483648, %v4003_v23  ;;  %vm4054_vm2 = vweird.f32 %v4003_v23  ;;  %v4058_v41 = vand.u32 2147483647, %v4003_v23 }
 0xe64   :  { %v4061_v37 = vor.u32 1.1754944e-38, %v4060_v34  ;;  %vm4059_vm8 = vcmp.eq.f32.partialorder %v4058_v41, 8.507059e+37 }
 0xe69   :  { %v4286_v25 = vpop.permute.xlu1 %4285  ;;  %v3961_v14 = vpop.xlane.xlu0 %3960 }
 0xe6a   :  { %4320 = vrot.lane.b32.xlu1 %v12151_v4, %s10720_s6  ;;  %9548 = vmatpush.xpose.msk.msrb.mxu0 %vm444_vm5, %v4286_v25  ;;  %v3975_v30 = vsub.f32 %v12245_v42, %v3961_v14 }
 0xe6c   :  { %v3987_v60 = vmul.f32 1.442695, %v3975_v30 }
 0xe6e   :  { %10303 = vpow2.f32 %v3987_v60 }
 0xe6f   :  { %10305 = vrcp.f32 %v4003_v23 }
 0xe71   :  { %v4284_v61 = vpop.permute.xlu1 %4283  ;;  %v4006_v8 = vpop.xlane.xlu0 %4005 }
 0xe72   :  { %9549 = vmatpush.xpose.msk.msrb.mxu0 %vm444_vm5, %v4284_v61  ;;  %10307 = vrcp.f32 %v4006_v8  ;;  %vm4069_vm10 = vweird.f32 %v4006_v8 }
 0xe73   :  { %10309 = vrcp.f32 %v12338_v33 }
 0xe74   :  { %v12347_v50 = vpop.eup %10303  ;;  %10311 = vrcp.f32 %v12352_v44 }
 0xe75   :  { %v4007_v38 = vsel %vm587_vm6, %v12347_v50, 0.0  ;;  %v10306_v43 = vpop.eup %10305 }
 0xe76   :  { %4008 = vadd.xlane.f32.xlu2 %v4007_v38  ;;  %v4050_v7 = vmul.f32 %v10306_v43, %v4003_v23  ;;  %vm4055_vm1 = vweird.f32 %v10306_v43 }
 0xe77   :  { %vm4056_vm4 = vmor %vm4054_vm2, %vm4055_vm1 }
 0xe78   :  { %v4051_v51 = vsub.f32 1.0, %v4050_v7  ;;  %v10308_v28 = vpop.eup %10307  ;;  %v4075_v7 = vand.u32 2147483648, %v4006_v8 }
 0xe79   :  { %v4065_v46 = vmul.f32 %v10308_v28, %v4006_v8  ;;  %v4364_v62 = vpop.permute.xlu1 %4363  ;;  %v10310_v63 = vpop.eup %10309  ;;  %vm4070_vm9 = vweird.f32 %v10308_v28 }
 0xe7a   :  { %v4052_v42 = vmul.f32 %v10306_v43, %v4051_v51  ;;  %v4110_v32 = vmul.f32 %v10310_v63, %v12338_v33  ;;  %v10312_v38 = vpop.eup %10311  ;;  %vm4071_vm11 = vmor %vm4069_vm10, %vm4070_vm9  ;;  %vm4115_vm13 = vweird.f32 %v10310_v63 }
 0xe7b   :  { %v4066_v26 = vsub.f32 1.0, %v4065_v46  ;;  %vm4116_vm15 = vmor %vm4114_vm14, %vm4115_vm13  ;;  %vm4130_vm2 = vweird.f32 %v10312_v38 }
 0xe7c   :  { %v4053_v49 = vadd.f32 %v10306_v43, %v4052_v42  ;;  %v4111_v61 = vsub.f32 1.0, %v4110_v32  ;;  %v4073_v42 = vand.u32 2147483647, %v4006_v8  ;;  %v4118_v8 = vand.u32 2147483647, %v12338_v33 }
 0xe7d   :  { %v4067_v35 = vmul.f32 %v10308_v28, %v4066_v26 }
 0xe7e   :  { %v4057_v20 = vsel %vm4056_vm4, %v10306_v43, %v4053_v49  ;;  %v4112_v46 = vmul.f32 %v10310_v63, %v4111_v61  ;;  %vm4074_vm12 = vcmp.eq.f32.partialorder %v4073_v42, 8.507059e+37  ;;  %vm4119_vm1 = vcmp.eq.f32.partialorder %v4118_v8, 8.507059e+37 }
 0xe7f   :  { %v4062_v14 = vsel %vm4059_vm8, %v4061_v37, %v4057_v20  ;;  %v4068_v23 = vadd.f32 %v10308_v28, %v4067_v35  ;;  %vm4129_vm4 = vweird.f32 %v12352_v44 }
 0xe80   :  { %v4063_v51 = vmul.f32 %v12275_v16, %v4062_v14  ;;  %v4113_v34 = vadd.f32 %v10310_v63, %v4112_v46  ;;  %v4120_v16 = vand.u32 2147483648, %v12338_v33  ;;  %vm4131_vm8 = vmor %vm4129_vm4, %vm4130_vm2 }
 0xe81   :  { %v4362_v30 = vpop.permute.xlu1 %4361 }
 0xe82   :  { %v4117_v41 = vsel %vm4116_vm15, %v10310_v63, %v4113_v34  ;;  %v4121_v20 = vor.u32 1.1754944e-38, %v4120_v16 }
 0xe84   :  { %v9872_v48 = vpop.permute.xlu0 %9871  ;;  %v4122_v37 = vsel %vm4119_vm1, %v4121_v20, %v4117_v41 }
 0xe85   :  { %v9873_v58 = vunpack.i.l.bf16 %v9872_v48  ;;  %v9874_v3 = vunpack.i.h.bf16 %v9872_v48  ;;  %v4072_v48 = vsel %vm4071_vm11, %v10308_v28, %v4068_v23  ;;  %v4123_v33 = vmul.f32 %v12264_v55, %v4122_v37 }
 0xe87   :  { %4235 = vmatpush.msra.mxu2 %v9873_v58  ;;  %v4076_v58 = vor.u32 1.1754944e-38, %v4075_v7 }
 0xe89   :  { %4236 = vmatpush.msra.mxu2 %v9874_v3  ;;  %v4077_v26 = vsel %vm4074_vm12, %v4076_v58, %v4072_v48 }
 0xe8a   :  { %v4078_v28 = vmul.f32 %v12288_v24, %v4077_v26  ;;  %v4133_v24 = vand.u32 2147483647, %v12352_v44 }
 0xe8b   :  { %9556 = vmatpush.xpose.msk.msrb.mxu2 %vm444_vm5, %v4364_v62  ;;  %v4125_v62 = vmul.f32 %v10312_v38, %v12352_v44 }
 0xe8c   :  { %v9877_v25 = vpop.permute.xlu0 %9876  ;;  %vm4134_vm9 = vcmp.eq.f32.partialorder %v4133_v24, 8.507059e+37 }
 0xe8d   :  { %v9878_v60 = vunpack.i.l.bf16 %v9877_v25  ;;  %v9879_v43 = vunpack.i.h.bf16 %v9877_v25  ;;  %v4126_v3 = vsub.f32 1.0, %v4125_v62 }
 0xe8e   :  { %4322 = vrot.lane.b32.xlu2 %v12167_v5, %s10718_s4 }
 0xe8f   :  { %9557 = vmatpush.xpose.msk.msrb.mxu2 %vm444_vm5, %v4362_v30  ;;  %4200 = vmatpush.msra.mxu1 %v9878_v60  ;;  %v4127_v32 = vmul.f32 %v10312_v38, %v4126_v3  ;;  %v4135_v30 = vand.u32 2147483648, %v12352_v44 }
 0xe91   :  { %4201 = vmatpush.msra.mxu1 %v9879_v43  ;;  %v4128_v14 = vadd.f32 %v10312_v38, %v4127_v32  ;;  %v4136_v61 = vor.u32 1.1754944e-38, %v4135_v30 }
 0xe92   :  { %9542 = vmatmul.msk.f32.vlgmr.msra.gmra.mxu1 %vm587_vm6, %v4063_v51  ;;  %v4358_v51 = vpop.permute.xlu1 %4357 }
 0xe93   :  { %v4132_v63 = vsel %vm4131_vm8, %v10312_v38, %v4128_v14 }
 0xe94   :  { %v4280_v49 = vpop.permute.xlu0 %4279  ;;  %v4137_v7 = vsel %vm4134_vm9, %v4136_v61, %v4132_v63 }
 0xe95   :  { %9550 = vmatmul.msk.f32.vlgmr.msrb.gmra.mxu0 %vm444_vm5, %v4280_v49  ;;  %v4138_v43 = vmul.f32 %v12271_v47, %v4137_v7 }
 0xe96   :  { %4398 = vrot.lane.b32.xlu2 %v12186_v53, %s10720_s6 }
 0xe9a   :  { %9543 = vmatmul.msk.f32.gmra.mxu1 %vm587_vm6, %v4078_v28  ;;  %v4319_v44 = vpop.permute.xlu1 %4318 }
 0xe9c   :  { %v9882_v35 = vpop.permute.xlu0 %9881 }
 0xe9d   :  { %v9883_v25 = vunpack.i.l.bf16 %v9882_v35  ;;  %v9884_v60 = vunpack.i.h.bf16 %v9882_v35 }
 0xe9f   :  { %4270 = vmatpush.msra.mxu3 %v9883_v25 }
 0xea1   :  { %4271 = vmatpush.msra.mxu3 %v9884_v60 }
 0xea2   :  { %9546 = vmatmul.msk.f32.vlgmr.msra.gmra.mxu3 %vm587_vm6, %v4123_v33 }
 0xea4   :  { %v4282_v23 = vpop.permute.xlu0 %4281 }
 0xea5   :  { %9551 = vmatmul.msk.f32.gmra.mxu0 %vm444_vm5, %v4282_v23 }
 0xeaa   :  { %9547 = vmatmul.msk.f32.gmra.mxu3 %vm587_vm6, %v4138_v43  ;;  %v12389_v43 = vpop.f32.mrf.mxu0 }
 0xeac   :  { %v4325_v55 = vpop.permute.xlu0 %4324 }
 0xead   :  { %9552 = vmatpush.xpose.msk.msrb.mxu1 %vm444_vm5, %v4325_v55 }
 0xeb4   :  { %v4360_v42 = vpop.permute.xlu0 %4359 }
 0xebc   :  { %v4012_v46 = vpop.xlane.xlu1 %4011  ;;  %v4401_v62 = vpop.permute.xlu0 %4400 }
 0xebd   :  { %10313 = vrcp.f32 %v4012_v46  ;;  %v4105_v60 = vand.u32 2147483648, %v4012_v46  ;;  %vm4099_vm15 = vweird.f32 %v4012_v46  ;;  %v4103_v63 = vand.u32 2147483647, %v4012_v46 }
 0xebf   :  { %v4106_v7 = vor.u32 1.1754944e-38, %v4105_v60  ;;  %vm4104_vm2 = vcmp.eq.f32.partialorder %v4103_v63, 8.507059e+37 }
 0xec3   :  { %v10314_v58 = vpop.eup %10313 }
 0xec4   :  { %v4397_v38 = vpop.permute.xlu0 %4396  ;;  %v4095_v49 = vmul.f32 %v10314_v58, %v4012_v46  ;;  %vm4100_vm13 = vweird.f32 %v10314_v58 }
 0xec5   :  { %vm4101_vm1 = vmor %vm4099_vm15, %vm4100_vm13 }
 0xec6   :  { %v4096_v34 = vsub.f32 1.0, %v4095_v49 }
 0xec8   :  { %v4097_v41 = vmul.f32 %v10314_v58, %v4096_v34 }
 0xeca   :  { %v4098_v30 = vadd.f32 %v10314_v58, %v4097_v41 }
 0xecc   :  { %v4102_v23 = vsel %vm4101_vm1, %v10314_v58, %v4098_v30 }
 0xecd   :  { %v4107_v55 = vsel %vm4104_vm2, %v4106_v7, %v4102_v23 }
 0xed4   :  { %v4403_v48 = vpop.permute.xlu1 %4402 }
 0xed5   :  { %9560 = vmatpush.xpose.msk.msrb.mxu3 %vm444_vm5, %v4403_v48 }
 0xed9   :  { %9561 = vmatpush.xpose.msk.msrb.mxu3 %vm444_vm5, %v4401_v62  ;;  %v12393_v62 = vpop.f32.mrf.mxu0 }
 0xedc   :  { %9562 = vmatmul.msk.f32.vlgmr.msrb.gmra.mxu3 %vm444_vm5, %v4397_v38  ;;  %v4321_v61 = vpop.permute.xlu1 %4320 }
 0xee9   :  { %v4009_v47 = vpop.xlane.xlu2 %4008 }
 0xeea   :  { %10315 = vrcp.f32 %v4009_v47  ;;  %v4090_v28 = vand.u32 2147483648, %v4009_v47  ;;  %v4088_v20 = vand.u32 2147483647, %v4009_v47  ;;  %vm4084_vm11 = vweird.f32 %v4009_v47 }
 0xeec   :  { %v4091_v37 = vor.u32 1.1754944e-38, %v4090_v28  ;;  %vm4089_vm14 = vcmp.eq.f32.partialorder %v4088_v20, 8.507059e+37 }
 0xef0   :  { %v10316_v26 = vpop.eup %10315 }
 0xef1   :  { %v4080_v3 = vmul.f32 %v10316_v26, %v4009_v47  ;;  %v4323_v16 = vpop.permute.xlu2 %4322  ;;  %vm4085_vm10 = vweird.f32 %v10316_v26 }
 0xef2   :  { %9553 = vmatpush.xpose.msk.msrb.mxu1 %vm444_vm5, %v4323_v16  ;;  %vm4086_vm12 = vmor %vm4084_vm11, %vm4085_vm10 }
 0xef3   :  { %v4081_v8 = vsub.f32 1.0, %v4080_v3 }
 0xef5   :  { %v4082_v32 = vmul.f32 %v10316_v26, %v4081_v8  ;;  %9554 = vmatmul.msk.f32.vlgmr.msrb.gmra.mxu1 %vm444_vm5, %v4319_v44  ;;  %v4108_v44 = vmul.f32 %v12330_v45, %v4107_v55  ;;  %v9895_v55 = vpack.i.bf16 %v12167_v5, %v12162_v31 }
 0xef7   :  { %v4083_v35 = vadd.f32 %v10316_v26, %v4082_v32 }
 0xef9   :  { %v4087_v25 = vsel %vm4086_vm12, %v10316_v26, %v4083_v35  ;;  %v4399_v14 = vpop.permute.xlu2 %4398 }
 0xefa   :  { %v4092_v33 = vsel %vm4089_vm14, %v4091_v37, %v4087_v25  ;;  %9563 = vmatmul.msk.f32.gmra.mxu3 %vm444_vm5, %v4399_v14 }
 0xefb   :  { %v4093_v24 = vmul.f32 %v12347_v50, %v4092_v33 }
 0xefd   :  { %9544 = vmatmul.msk.f32.vlgmr.msra.gmra.mxu2 %vm587_vm6, %v4093_v24  ;;  %9555 = vmatmul.msk.f32.gmra.mxu1 %vm444_vm5, %v4321_v61 }
 0xf05   :  { %9545 = vmatmul.msk.f32.gmra.mxu2 %vm587_vm6, %v4108_v44 }
 0xf0d   :  { %9558 = vmatmul.msk.f32.vlgmr.msrb.gmra.mxu2 %vm444_vm5, %v4358_v51 }
 0xf0f   :  { %v12407_v51 = vpop.f32.mrf.mxu1 }
 0xf12   :  { %v4312_v50 = vpop.f32.mrf.mxu0 }
 0xf13   :  { %v4435_v46 = vsel %vm587_vm6, %v4312_v50, -inf }
 0xf14   :  { %4436 = vmax.xlane.f32.xlu1 %v4435_v46 }
 0xf15   :  { %9559 = vmatmul.msk.f32.gmra.mxu2 %vm444_vm5, %v4360_v42 }
 0xf17   :  { %v12410_v42 = vpop.f32.mrf.mxu1 }
 0xf22   :  { %v4315_v48 = vpop.f32.mrf.mxu0 }
 0xf23   :  { %v4438_v38 = vsel %vm587_vm6, %v4315_v48, -inf }
 0xf24   :  { %4439 = vmax.xlane.f32.xlu0 %v4438_v38 }
 0xf25   :  { %v12399_v47 = vpop.f32.mrf.mxu3 }
 0xf2d   :  { %v12401_v58 = vpop.f32.mrf.mxu3 }
 0xf5f   :  { %v12403_v45 = vpop.f32.mrf.mxu3 }
 0xf60   :  { %v4453_v49 = vsel %vm587_vm6, %v12403_v45, -inf }
 0xf61   :  { %4454 = vmax.xlane.f32.xlu1 %v4453_v49 }
 0xf72   :  { %v4351_v28 = vpop.f32.mrf.mxu1 }
 0xf73   :  { %v4441_v63 = vsel %vm587_vm6, %v4351_v28, -inf }
 0xf7a   :  { %v4354_v35 = vpop.f32.mrf.mxu1 }
 0xf7b   :  { %v4444_v30 = vsel %vm587_vm6, %v4354_v35, -inf }
 0xf7d   :  { %v4432_v26 = vpop.f32.mrf.mxu3 }
 0xf7e   :  { %v4456_v34 = vsel %vm587_vm6, %v4432_v26, -inf }
 0xf7f   :  { %4457 = vmax.xlane.f32.xlu0 %v4456_v34 }
 0xf80   :  { %v12418_v14 = vpop.f32.mrf.mxu2 }
 0xf87   :  { %v4437_v3 = vpop.xlane.xlu1 %4436 }
 0xf88   :  { %v4459_v16 = vsub.f32 %v4312_v50, %v4437_v3  ;;  %v12425_v24 = vpop.f32.mrf.mxu2 }
 0xf8a   :  { %v4467_v8 = vmul.f32 1.442695, %v4459_v16 }
 0xf8c   :  { %10317 = vpow2.f32 %v4467_v8 }
 0xf90   :  { %v12428_v61 = vpop.f32.mrf.mxu2 }
 0xf92   :  { %v12412_v41 = vpop.eup %10317 }
 0xf93   :  { %4773 = vrot.lane.b32.xlu0 %v12094_v29, %s10721_s7  ;;  %v4483_v32 = vsel %vm587_vm6, %v12412_v41, 0.0 }
 0xf94   :  { %4484 = vadd.xlane.f32.xlu2 %v4483_v32 }
 0xf97   :  { %v4440_v20 = vpop.xlane.xlu0 %4439 }
 0xf98   :  { %v4460_v37 = vsub.f32 %v4315_v48, %v4440_v20  ;;  %v12430_v23 = vpop.f32.mrf.mxu2 }
 0xf99   :  { %v4450_v7 = vsel %vm587_vm6, %v12430_v23, -inf }
 0xf9a   :  { %v4469_v25 = vmul.f32 1.442695, %v4460_v37 }
 0xf9c   :  { %10319 = vpow2.f32 %v4469_v25  ;;  %4445 = vmax.xlane.f32.xlu2 %v4444_v30 }
 0xfa2   :  { %v12421_v60 = vpop.eup %10319 }
 0xfa3   :  { %v4486_v33 = vsel %vm587_vm6, %v12421_v60, 0.0 }
 0xfa4   :  { %4487 = vadd.xlane.f32.xlu1 %v4486_v33 }
 0xfac   :  { %4442 = vmax.xlane.f32.xlu1 %v4441_v63 }
 0xfbd   :  { %4451 = vmax.xlane.f32.xlu0 %v4450_v7 }
 0xfc5   :  { %9886 = vrot.lane.b32.xlu1 %v12260_v21, %s10722_s8 }
 0xfcd   :  { %9896 = vrot.lane.b32.xlu1 %v9895_v55, %s10722_s8 }
 0xfd1   :  { %4771 = vrot.lane.b32.xlu0 %v12080_v57, %s10721_s7 }
 0xfd4   :  { %v4455_v49 = vpop.xlane.xlu1 %4454 }
 0xfd5   :  { %4767 = vrot.lane.b32.xlu1 %v12080_v57, %s10723_s9 }
 0xfdd   :  { %4851 = vrot.lane.b32.xlu1 %v12170_v11, %s10721_s7 }
 0xfe5   :  { %4812 = vrot.lane.b32.xlu1 %v12151_v4, %s10721_s7 }
 0xfed   :  { %4849 = vrot.lane.b32.xlu1 %v12162_v31, %s10721_s7 }
 0xff2   :  { %v4458_v44 = vpop.xlane.xlu0 %4457 }
 0xff3   :  { %v4466_v50 = vsub.f32 %v4432_v26, %v4458_v44 }
 0xff5   :  { %v4481_v46 = vmul.f32 1.442695, %v4466_v50  ;;  %4845 = vrot.lane.b32.xlu1 %v12162_v31, %s10723_s9 }
 0xff7   :  { %10321 = vpow2.f32 %v4481_v46 }
 0xffd   :  { %v12451_v48 = vpop.eup %10321  ;;  %4847 = vrot.lane.b32.xlu1 %v12170_v11, %s10723_s9 }
 0xffe   :  { %v4504_v38 = vsel %vm587_vm6, %v12451_v48, 0.0 }
 0xfff   :  { %4505 = vadd.xlane.f32.xlu0 %v4504_v38  ;;  %v4465_v38 = vsub.f32 %v12403_v45, %v4455_v49 }
0x1005   :  { %4888 = vrot.lane.b32.xlu1 %v12177_v36, %s10721_s7 }
0x1007   :  { %v4485_v34 = vpop.xlane.xlu2 %4484 }
0x1008   :  { %10323 = vrcp.f32 %v4485_v34  ;;  %vm4512_vm8 = vweird.f32 %v4485_v34 }
0x100d   :  { %4886 = vrot.lane.b32.xlu1 %v12186_v53, %s10723_s9 }
0x100e   :  { %v10324_v8 = vpop.eup %10323 }
0x100f   :  { %v4508_v20 = vmul.f32 %v10324_v8, %v4485_v34  ;;  %v4446_v37 = vpop.xlane.xlu2 %4445  ;;  %vm4513_vm4 = vweird.f32 %v10324_v8 }
0x1010   :  { %v4462_v63 = vsub.f32 %v4354_v35, %v4446_v37  ;;  %v4447_v35 = vsel %vm587_vm6, %v12428_v61, -inf  ;;  %vm4514_vm9 = vmor %vm4512_vm8, %vm4513_vm4 }
0x1011   :  { %v4509_v30 = vsub.f32 1.0, %v4508_v20 }
0x1012   :  { %v4473_v50 = vmul.f32 1.442695, %v4462_v63 }
0x1013   :  { %v4510_v55 = vmul.f32 %v10324_v8, %v4509_v30  ;;  %v4479_v30 = vmul.f32 1.442695, %v4465_v38 }
0x1015   :  { %v4511_v46 = vadd.f32 %v10324_v8, %v4510_v55 }
0x1017   :  { %v4488_v26 = vpop.xlane.xlu1 %4487  ;;  %v4515_v20 = vsel %vm4514_vm9, %v10324_v8, %v4511_v46 }
0x1018   :  { %10325 = vrcp.f32 %v4488_v26  ;;  %vm4527_vm12 = vweird.f32 %v4488_v26  ;;  %v4531_v46 = vand.u32 2147483647, %v4488_v26 }
0x101a   :  { %vm4532_vm14 = vcmp.eq.f32.partialorder %v4531_v46, 8.507059e+37 }
0x101e   :  { %v10326_v25 = vpop.eup %10325 }
0x101f   :  { %v4443_v3 = vpop.xlane.xlu1 %4442  ;;  %v4523_v44 = vmul.f32 %v10326_v25, %v4488_v26  ;;  %vm4528_vm11 = vweird.f32 %v10326_v25 }
0x1020   :  { %v4461_v16 = vsub.f32 %v4351_v28, %v4443_v3  ;;  %v4518_v3 = vand.u32 2147483648, %v4485_v34  ;;  %vm4529_vm13 = vmor %vm4527_vm12, %vm4528_vm11 }
0x1021   :  { %v4524_v28 = vsub.f32 1.0, %v4523_v44 }
0x1022   :  { %v4471_v32 = vmul.f32 1.442695, %v4461_v16  ;;  %v4774_v16 = vpop.permute.xlu0 %4773 }
0x1023   :  { %v4525_v37 = vmul.f32 %v10326_v25, %v4524_v28 }
0x1024   :  { %10327 = vpow2.f32 %v4471_v32  ;;  %v4516_v32 = vand.u32 2147483647, %v4485_v34 }
0x1025   :  { %10329 = vpow2.f32 %v4473_v50  ;;  %v4526_v49 = vadd.f32 %v10326_v25, %v4525_v37  ;;  %v4533_v50 = vand.u32 2147483648, %v4488_v26 }
0x1026   :  { %vm4517_vm10 = vcmp.eq.f32.partialorder %v4516_v32, 8.507059e+37  ;;  %10331 = vpow2.f32 %v4479_v30 }
0x1027   :  { %v4530_v28 = vsel %vm4529_vm13, %v10326_v25, %v4526_v49  ;;  %v4534_v38 = vor.u32 1.1754944e-38, %v4533_v50  ;;  %v9890_v25 = vpack.i.bf16 %v12151_v4, %v12170_v11 }
0x1029   :  { %v4535_v32 = vsel %vm4532_vm14, %v4534_v38, %v4530_v28 }
0x102a   :  { %v12461_v33 = vpop.eup %10327  ;;  %v4536_v26 = vmul.f32 %v12421_v60, %v4535_v32 }
0x102b   :  { %v4489_v7 = vsel %vm587_vm6, %v12461_v33, 0.0  ;;  %v12468_v55 = vpop.eup %10329 }
0x102c   :  { %4490 = vadd.xlane.f32.xlu2 %v4489_v7  ;;  %v4519_v7 = vor.u32 1.1754944e-38, %v4518_v3  ;;  %v4492_v8 = vsel %vm587_vm6, %v12468_v55, 0.0  ;;  %v12475_v3 = vpop.eup %10331 }
0x102d   :  { %v4501_v37 = vsel %vm587_vm6, %v12475_v3, 0.0 }
0x102e   :  { %v4520_v44 = vsel %vm4517_vm10, %v4519_v7, %v4515_v20 }
0x102f   :  { %v4521_v27 = vmul.f32 %v12412_v41, %v4520_v44 }
0x1034   :  { %4448 = vmax.xlane.f32.xlu2 %v4447_v35  ;;  %v4452_v35 = vpop.xlane.xlu0 %4451 }
0x1037   :  { %v9887_v63 = vpop.permute.xlu1 %9886 }
0x1038   :  { %v9888_v45 = vunpack.i.l.bf16 %v9887_v63  ;;  %v9889_v34 = vunpack.i.h.bf16 %v9887_v63  ;;  %v4464_v63 = vsub.f32 %v12430_v23, %v4452_v35 }
0x103a   :  { %4653 = vmatpush.msra.mxu0 %v9888_v45  ;;  %v4477_v49 = vmul.f32 1.442695, %v4464_v63 }
0x103c   :  { %4493 = vadd.xlane.f32.xlu2 %v4492_v8  ;;  %4654 = vmatpush.msra.mxu0 %v9889_v34 }
0x103d   :  { %9564 = vmatmul.msk.f32.vlgmr.msra.gmra.mxu0 %vm587_vm6, %v4521_v27 }
0x103e   :  { %9572 = vmatpush.xpose.msk.msrb.mxu0 %vm444_vm5, %v4774_v16 }
0x103f   :  { %v12477_v41 = vpop.permute.xlu1 %9896 }
0x1040   :  { %v9899_v56 = vunpack.i.h.bf16 %v12477_v41 }
0x1043   :  { %v4772_v20 = vpop.permute.xlu0 %4771 }
0x1044   :  { %4502 = vadd.xlane.f32.xlu2 %v4501_v37  ;;  %9573 = vmatpush.xpose.msk.msrb.mxu0 %vm444_vm5, %v4772_v20 }
0x1045   :  { %9565 = vmatmul.msk.f32.gmra.mxu0 %vm587_vm6, %v4536_v26 }
0x1047   :  { %v4768_v27 = vpop.permute.xlu1 %4767 }
0x104d   :  { %9574 = vmatmul.msk.f32.vlgmr.msrb.gmra.mxu0 %vm444_vm5, %v4768_v27 }
0x104f   :  { %v4852_v28 = vpop.permute.xlu1 %4851 }
0x105c   :  { %9891 = vrot.lane.b32.xlu2 %v9890_v25, %s10722_s8 }
0x1064   :  { %4769 = vrot.lane.b32.xlu2 %v12094_v29, %s10723_s9 }
0x106c   :  { %9901 = vrot.lane.b32.xlu2 %v12318_v17, %s10722_s8 }
0x1072   :  { %v12511_v35 = vpop.xlane.xlu0 %4505 }
0x1074   :  { %4810 = vrot.lane.b32.xlu2 %v12167_v5, %s10721_s7 }
0x107c   :  { %4806 = vrot.lane.b32.xlu2 %v12167_v5, %s10723_s9 }
0x1084   :  { %4890 = vrot.lane.b32.xlu2 %v12186_v53, %s10721_s7 }
0x108c   :  { %4884 = vrot.lane.b32.xlu2 %v12177_v36, %s10723_s9 }
0x109f   :  { %v4491_v60 = vpop.xlane.xlu2 %4490 }
0x10a0   :  { %10333 = vrcp.f32 %v4491_v60  ;;  %v4548_v27 = vand.u32 2147483648, %v4491_v60  ;;  %vm4542_vm1 = vweird.f32 %v4491_v60 }
0x10a6   :  { %v10334_v7 = vpop.eup %10333 }
0x10a7   :  { %v4449_v16 = vpop.xlane.xlu2 %4448  ;;  %v4538_v45 = vmul.f32 %v10334_v7, %v4491_v60  ;;  %vm4543_vm15 = vweird.f32 %v10334_v7 }
0x10a8   :  { %v4463_v30 = vsub.f32 %v12428_v61, %v4449_v16  ;;  %v4546_v16 = vand.u32 2147483647, %v4491_v60  ;;  %vm4544_vm2 = vmor %vm4542_vm1, %vm4543_vm15 }
0x10a9   :  { %v4539_v34 = vsub.f32 1.0, %v4538_v45 }
0x10aa   :  { %v4475_v44 = vmul.f32 1.442695, %v4463_v30  ;;  %vm4547_vm4 = vcmp.eq.f32.partialorder %v4546_v16, 8.507059e+37 }
0x10ab   :  { %v4540_v38 = vmul.f32 %v10334_v7, %v4539_v34  ;;  %v4549_v34 = vor.u32 1.1754944e-38, %v4548_v27 }
0x10ac   :  { %10335 = vpow2.f32 %v4475_v44 }
0x10ad   :  { %v4541_v37 = vadd.f32 %v10334_v7, %v4540_v38 }
0x10af   :  { %v4494_v50 = vpop.xlane.xlu2 %4493  ;;  %v4545_v63 = vsel %vm4544_vm2, %v10334_v7, %v4541_v37  ;;  %v9898_v7 = vunpack.i.l.bf16 %v12477_v41  ;;  %vm4617_vm2 = vweird.f32 %v12511_v35 }
0x10b0   :  { %10337 = vrcp.f32 %v4494_v50  ;;  %v4563_v37 = vand.u32 2147483648, %v4494_v50  ;;  %vm4557_vm9 = vweird.f32 %v4494_v50  ;;  %v4561_v16 = vand.u32 2147483647, %v4494_v50 }
0x10b1   :  { %10339 = vpow2.f32 %v4477_v49  ;;  %v4813_v49 = vpop.permute.xlu1 %4812 }
0x10b2   :  { %v12502_v8 = vpop.eup %10335  ;;  %vm4562_vm11 = vcmp.eq.f32.partialorder %v4561_v16, 8.507059e+37  ;;  %v4621_v16 = vand.u32 2147483647, %v12511_v35 }
0x10b3   :  { %v4495_v46 = vsel %vm587_vm6, %v12502_v8, 0.0 }
0x10b4   :  { %4496 = vadd.xlane.f32.xlu0 %v4495_v46 }
0x10b6   :  { %v10338_v61 = vpop.eup %10337 }
0x10b7   :  { %v4553_v32 = vmul.f32 %v10338_v61, %v4494_v50  ;;  %v12506_v20 = vpop.xlane.xlu2 %4502  ;;  %v12508_v23 = vpop.eup %10339  ;;  %vm4558_vm8 = vweird.f32 %v10338_v61 }
0x10b8   :  { %10341 = vrcp.f32 %v12506_v20  ;;  %v4498_v30 = vsel %vm587_vm6, %v12508_v23, 0.0  ;;  %vm4559_vm10 = vmor %vm4557_vm9, %vm4558_vm8  ;;  %vm4602_vm13 = vweird.f32 %v12506_v20  ;;  %vm4622_vm8 = vcmp.eq.f32.partialorder %v4621_v16, 8.507059e+37 }
0x10b9   :  { %v4554_v26 = vsub.f32 1.0, %v4553_v32  ;;  %10343 = vrcp.f32 %v12511_v35  ;;  %v4550_v32 = vsel %vm4547_vm4, %v4549_v34, %v4545_v63  ;;  %v4608_v34 = vand.u32 2147483648, %v12506_v20 }
0x10ba   :  { %v12513_v25 = vpop.f32.mrf.mxu0  ;;  %v4551_v27 = vmul.f32 %v12461_v33, %v4550_v32 }
0x10bb   :  { %v4555_v44 = vmul.f32 %v10338_v61, %v4554_v26  ;;  %v4609_v32 = vor.u32 1.1754944e-38, %v4608_v34 }
0x10bc   :  { %4499 = vadd.xlane.f32.xlu0 %v4498_v30 }
0x10bd   :  { %v4556_v19 = vadd.f32 %v10338_v61, %v4555_v44  ;;  %v4564_v44 = vor.u32 1.1754944e-38, %v4563_v37 }
0x10be   :  { %v10342_v45 = vpop.eup %10341 }
0x10bf   :  { %v4598_v46 = vmul.f32 %v10342_v45, %v12506_v20  ;;  %v9892_v38 = vpop.permute.xlu2 %9891  ;;  %v12519_v40 = vpop.eup %10343  ;;  %v4560_v41 = vsel %vm4559_vm10, %v10338_v61, %v4556_v19  ;;  %vm4603_vm12 = vweird.f32 %v10342_v45  ;;  %v4606_v19 = vand.u32 2147483647, %v12506_v20 }
0x10c0   :  { %v9894_v1 = vunpack.i.h.bf16 %v9892_v38  ;;  %v9893_v12 = vunpack.i.l.bf16 %v9892_v38  ;;  %v4613_v30 = vmul.f32 %v12519_v40, %v12511_v35  ;;  %v4565_v33 = vsel %vm4562_vm11, %v4564_v44, %v4560_v41  ;;  %vm4604_vm14 = vmor %vm4602_vm13, %vm4603_vm12 }
0x10c1   :  { %v4599_v60 = vsub.f32 1.0, %v4598_v46  ;;  %v4566_v61 = vmul.f32 %v12468_v55, %v4565_v33  ;;  %vm4607_vm15 = vcmp.eq.f32.partialorder %v4606_v19, 8.507059e+37  ;;  %vm4618_vm1 = vweird.f32 %v12519_v40 }
0x10c2   :  { %v12523_v26 = vpop.f32.mrf.mxu0  ;;  %4688 = vmatpush.msra.mxu1 %v9894_v1  ;;  %4723 = vmatpush.msra.mxu2 %v9893_v12  ;;  %v4850_v1 = vpop.permute.xlu1 %4849  ;;  %v4623_v55 = vand.u32 2147483648, %v12511_v35  ;;  %vm4619_vm4 = vmor %vm4617_vm2, %vm4618_vm1 }
0x10c3   :  { %v4600_v63 = vmul.f32 %v10342_v45, %v4599_v60 }
0x10c4   :  { %4689 = vmatpush.msra.mxu1 %v9899_v56  ;;  %4724 = vmatpush.msra.mxu2 %v9898_v7  ;;  %v4614_v56 = vsub.f32 1.0, %v4613_v30 }
0x10c5   :  { %9566 = vmatmul.msk.f32.vlgmr.msra.gmra.mxu1 %vm587_vm6, %v4551_v27  ;;  %v4601_v50 = vadd.f32 %v10342_v45, %v4600_v63  ;;  %v4624_v63 = vor.u32 1.1754944e-38, %v4623_v55 }
0x10c6   :  { %9580 = vmatpush.xpose.msk.msrb.mxu2 %vm444_vm5, %v4852_v28  ;;  %9576 = vmatpush.xpose.msk.msrb.mxu1 %vm444_vm5, %v4813_v49  ;;  %v4615_v49 = vmul.f32 %v12519_v40, %v4614_v56 }
0x10c7   :  { %v4770_v12 = vpop.permute.xlu2 %4769  ;;  %v4605_v38 = vsel %vm4604_vm14, %v10342_v45, %v4601_v50 }
0x10c8   :  { %9575 = vmatmul.msk.f32.gmra.mxu0 %vm444_vm5, %v4770_v12  ;;  %v4610_v7 = vsel %vm4607_vm15, %v4609_v32, %v4605_v38  ;;  %v4616_v20 = vadd.f32 %v12519_v40, %v4615_v49 }
0x10c9   :  { %v4611_v45 = vmul.f32 %v12475_v3, %v4610_v7 }
0x10ca   :  { %9581 = vmatpush.xpose.msk.msrb.mxu2 %vm444_vm5, %v4850_v1  ;;  %v12534_v46 = vpop.f32.mrf.mxu0  ;;  %v4620_v30 = vsel %vm4619_vm4, %v12519_v40, %v4616_v20  ;;  %v12553_v41 = vpop.permute.xlu1 %4845 }
0x10cb   :  { %v4923_v28 = vsel %vm587_vm6, %v12534_v46, -inf  ;;  %v4625_v12 = vsel %vm4622_vm8, %v4624_v63, %v4620_v30 }
0x10cc   :  { %4924 = vmax.xlane.f32.xlu2 %v4923_v28  ;;  %v4626_v1 = vmul.f32 %v12451_v48, %v4625_v12 }
0x10cd   :  { %9567 = vmatmul.msk.f32.gmra.mxu1 %vm587_vm6, %v4566_v61 }
0x10cf   :  { %v9902_v60 = vpop.permute.xlu2 %9901 }
0x10d0   :  { %v9903_v37 = vunpack.i.l.bf16 %v9902_v60  ;;  %4808 = vrot.lane.b32.xlu0 %v12151_v4, %s10723_s9  ;;  %v9904_v27 = vunpack.i.h.bf16 %v9902_v60 }
0x10d2   :  { %4758 = vmatpush.msra.mxu3 %v9903_v37  ;;  %v4848_v35 = vpop.permute.xlu1 %4847 }
0x10d4   :  { %4759 = vmatpush.msra.mxu3 %v9904_v27 }
0x10d5   :  { %9570 = vmatmul.msk.f32.vlgmr.msra.gmra.mxu3 %vm587_vm6, %v4611_v45 }
0x10d7   :  { %v4811_v44 = vpop.permute.xlu2 %4810 }
0x10d8   :  { %9577 = vmatpush.xpose.msk.msrb.mxu1 %vm444_vm5, %v4811_v44 }
0x10da   :  { %v4889_v40 = vpop.permute.xlu1 %4888 }
0x10dd   :  { %9571 = vmatmul.msk.f32.gmra.mxu3 %vm587_vm6, %v4626_v1 }
0x10df   :  { %v4807_v3 = vpop.permute.xlu2 %4806 }
0x10e0   :  { %9578 = vmatmul.msk.f32.vlgmr.msrb.gmra.mxu1 %vm444_vm5, %v4807_v3 }
0x10e2   :  { %v4887_v50 = vpop.permute.xlu1 %4886 }
0x10e7   :  { %v4891_v33 = vpop.permute.xlu2 %4890 }
0x10e8   :  { %9584 = vmatpush.xpose.msk.msrb.mxu3 %vm444_vm5, %v4891_v33 }
0x10ec   :  { %9585 = vmatpush.xpose.msk.msrb.mxu3 %vm444_vm5, %v4889_v40 }
0x10ef   :  { %v4885_v56 = vpop.permute.xlu2 %4884 }
0x10f0   :  { %9586 = vmatmul.msk.f32.vlgmr.msrb.gmra.mxu3 %vm444_vm5, %v4885_v56 }
0x10f8   :  { %9587 = vmatmul.msk.f32.gmra.mxu3 %vm444_vm5, %v4887_v50 }
0x1127   :  { %v4497_v34 = vpop.xlane.xlu0 %4496 }
0x1128   :  { %10345 = vrcp.f32 %v4497_v34  ;;  %v4578_v49 = vand.u32 2147483648, %v4497_v34  ;;  %v4576_v32 = vand.u32 2147483647, %v4497_v34  ;;  %vm4572_vm10 = vweird.f32 %v4497_v34 }
0x112a   :  { %v4579_v37 = vor.u32 1.1754944e-38, %v4578_v49  ;;  %vm4577_vm12 = vcmp.eq.f32.partialorder %v4576_v32, 8.507059e+37 }
0x112e   :  { %v10346_v48 = vpop.eup %10345 }
0x112f   :  { %v4568_v19 = vmul.f32 %v10346_v48, %v4497_v34  ;;  %v4500_v28 = vpop.xlane.xlu0 %4499  ;;  %vm4573_vm9 = vweird.f32 %v10346_v48 }
0x1130   :  { %10347 = vrcp.f32 %v4500_v28  ;;  %vm4574_vm11 = vmor %vm4572_vm10, %vm4573_vm9  ;;  %v4593_v30 = vand.u32 2147483648, %v4500_v28  ;;  %v4591_v44 = vand.u32 2147483647, %v4500_v28  ;;  %vm4587_vm14 = vweird.f32 %v4500_v28 }
0x1131   :  { %v4569_v61 = vsub.f32 1.0, %v4568_v19 }
0x1132   :  { %v4594_v1 = vor.u32 1.1754944e-38, %v4593_v30  ;;  %vm4592_vm1 = vcmp.eq.f32.partialorder %v4591_v44, 8.507059e+37 }
0x1133   :  { %v4570_v38 = vmul.f32 %v10346_v48, %v4569_v61 }
0x1135   :  { %v4571_v60 = vadd.f32 %v10346_v48, %v4570_v38 }
0x1136   :  { %v10348_v7 = vpop.eup %10347 }
0x1137   :  { %v4575_v20 = vsel %vm4574_vm11, %v10346_v48, %v4571_v60  ;;  %v4583_v55 = vmul.f32 %v10348_v7, %v4500_v28  ;;  %vm4588_vm13 = vweird.f32 %v10348_v7 }
0x1138   :  { %v4580_v27 = vsel %vm4577_vm12, %v4579_v37, %v4575_v20  ;;  %vm4589_vm15 = vmor %vm4587_vm14, %vm4588_vm13 }
0x1139   :  { %v4581_v45 = vmul.f32 %v12502_v8, %v4580_v27  ;;  %v4584_v16 = vsub.f32 1.0, %v4583_v55 }
0x113b   :  { %v4585_v63 = vmul.f32 %v10348_v7, %v4584_v16  ;;  %9568 = vmatmul.msk.f32.vlgmr.msra.gmra.mxu2 %vm587_vm6, %v4581_v45 }
0x113d   :  { %v4586_v12 = vadd.f32 %v10348_v7, %v4585_v63 }
0x113f   :  { %v4925_v3 = vpop.xlane.xlu2 %4924  ;;  %v4590_v33 = vsel %vm4589_vm15, %v10348_v7, %v4586_v12 }
0x1140   :  { %v4947_v40 = vsub.f32 %v12534_v46, %v4925_v3  ;;  %v4595_v56 = vsel %vm4592_vm1, %v4594_v1, %v4590_v33 }
0x1141   :  { %v4596_v50 = vmul.f32 %v12508_v23, %v4595_v56 }
0x1142   :  { %v4955_v8 = vmul.f32 1.442695, %v4947_v40  ;;  %v4809_v34 = vpop.permute.xlu0 %4808 }
0x1143   :  { %9569 = vmatmul.msk.f32.gmra.mxu2 %vm587_vm6, %v4596_v50  ;;  %9579 = vmatmul.msk.f32.gmra.mxu1 %vm444_vm5, %v4809_v34 }
0x1144   :  { %10349 = vpow2.f32 %v4955_v8 }
0x1145   :  { %v4803_v48 = vpop.f32.mrf.mxu0 }
0x1146   :  { %v4926_v19 = vsel %vm587_vm6, %v4803_v48, -inf }
0x1147   :  { %4927 = vmax.xlane.f32.xlu1 %v4926_v19 }
0x114a   :  { %v10350_v28 = vpop.eup %10349 }
0x114b   :  { %9582 = vmatmul.msk.f32.vlgmr.msrb.gmra.mxu2 %vm444_vm5, %v12553_v41  ;;  %v4971_v46 = vsel %vm587_vm6, %v10350_v28, 0.0 }
0x114c   :  { %4972 = vadd.xlane.f32.xlu2 %v4971_v46 }
0x1153   :  { %9583 = vmatmul.msk.f32.gmra.mxu2 %vm444_vm5, %v4848_v35  ;;  %v12587_v35 = vpop.f32.mrf.mxu1 }
0x1158   :  { %v12574_v23 = vpop.f32.mrf.mxu3 }
0x115b   :  { %v12589_v60 = vpop.f32.mrf.mxu1 }
0x1160   :  { %v12578_v61 = vpop.f32.mrf.mxu3 }
0x1163   :  { %v12591_v7 = vpop.f32.mrf.mxu1 }
0x1164   :  { %9906 = vrot.lane.b32.xlu2 %v12260_v21, %s10724_s10 }
0x1173   :  { %v4917_v49 = vpop.f32.mrf.mxu3 }
0x1174   :  { %v4941_v38 = vsel %vm587_vm6, %v4917_v49, -inf }
0x1175   :  { %4942 = vmax.xlane.f32.xlu0 %v4941_v38 }
0x117b   :  { %v12581_v32 = vpop.f32.mrf.mxu3 }
0x117c   :  { %v4944_v41 = vsel %vm587_vm6, %v12581_v32, -inf }
0x117d   :  { %4945 = vmax.xlane.f32.xlu1 %v4944_v41 }
0x1196   :  { %5261 = vrot.lane.b32.xlu1 %v12094_v29, %s10725_s11 }
0x11ba   :  { %v4928_v37 = vpop.xlane.xlu1 %4927 }
0x11bb   :  { %v4948_v20 = vsub.f32 %v4803_v48, %v4928_v37 }
0x11bd   :  { %v4957_v55 = vmul.f32 1.442695, %v4948_v20 }
0x11be   :  { %v12593_v27 = vpop.f32.mrf.mxu2 }
0x11bf   :  { %10351 = vpow2.f32 %v4957_v55  ;;  %v4973_v45 = vpop.xlane.xlu2 %4972 }
0x11c0   :  { %10353 = vrcp.f32 %v4973_v45  ;;  %v12595_v16 = vpop.f32.mrf.mxu1  ;;  %v5006_v50 = vand.u32 2147483648, %v4973_v45  ;;  %v5004_v48 = vand.u32 2147483647, %v4973_v45  ;;  %vm5000_vm4 = vweird.f32 %v4973_v45 }
0x11c1   :  { %v4932_v30 = vsel %vm587_vm6, %v12595_v16, -inf }
0x11c2   :  { %4933 = vmax.xlane.f32.xlu1 %v4932_v30  ;;  %v5007_v46 = vor.u32 1.1754944e-38, %v5006_v50  ;;  %vm5005_vm9 = vcmp.eq.f32.partialorder %v5004_v48, 8.507059e+37 }
0x11c5   :  { %v12599_v63 = vpop.eup %10351 }
0x11c6   :  { %v10354_v44 = vpop.eup %10353  ;;  %v12601_v12 = vpop.f32.mrf.mxu2  ;;  %v4974_v1 = vsel %vm587_vm6, %v12599_v63, 0.0 }
0x11c7   :  { %v4996_v3 = vmul.f32 %v10354_v44, %v4973_v45  ;;  %v9907_v33 = vpop.permute.xlu2 %9906  ;;  %4975 = vadd.xlane.f32.xlu0 %v4974_v1  ;;  %vm5001_vm2 = vweird.f32 %v10354_v44 }
0x11c8   :  { %v9908_v40 = vunpack.i.l.bf16 %v9907_v33  ;;  %v9909_v8 = vunpack.i.h.bf16 %v9907_v33  ;;  %vm5002_vm8 = vmor %vm5000_vm4, %vm5001_vm2 }
0x11c9   :  { %v4997_v56 = vsub.f32 1.0, %v4996_v3  ;;  %v4929_v3 = vsel %vm587_vm6, %v12591_v7, -inf }
0x11ca   :  { %5141 = vmatpush.msra.mxu0 %v9908_v40 }
0x11cb   :  { %v4998_v34 = vmul.f32 %v10354_v44, %v4997_v56 }
0x11cc   :  { %5142 = vmatpush.msra.mxu0 %v9909_v8 }
0x11cd   :  { %v4999_v19 = vadd.f32 %v10354_v44, %v4998_v34 }
0x11ce   :  { %v4878_v38 = vpop.f32.mrf.mxu2 }
0x11cf   :  { %v5003_v41 = vsel %vm5002_vm8, %v10354_v44, %v4999_v19  ;;  %v4935_v37 = vsel %vm587_vm6, %v4878_v38, -inf }
0x11d0   :  { %v5008_v20 = vsel %vm5005_vm9, %v5007_v46, %v5003_v41  ;;  %4936 = vmax.xlane.f32.xlu2 %v4935_v37 }
0x11d1   :  { %v5009_v55 = vmul.f32 %v10350_v28, %v5008_v20 }
0x11d3   :  { %9588 = vmatmul.msk.f32.vlgmr.msra.gmra.mxu0 %vm587_vm6, %v5009_v55 }
0x11d6   :  { %v4881_v30 = vpop.f32.mrf.mxu2 }
0x11d7   :  { %v4938_v1 = vsel %vm587_vm6, %v4881_v30, -inf }
0x11d8   :  { %4939 = vmax.xlane.f32.xlu2 %v4938_v1 }
0x11db   :  { %9911 = vrot.lane.b32.xlu0 %v12308_v0, %s10724_s10 }
0x11e8   :  { %v4943_v44 = vpop.xlane.xlu0 %4942 }
0x11e9   :  { %v4953_v33 = vsub.f32 %v4917_v49, %v4943_v44 }
0x11eb   :  { %v4967_v40 = vmul.f32 1.442695, %v4953_v33 }
0x11ed   :  { %10355 = vpow2.f32 %v4967_v40 }
0x11f0   :  { %5259 = vrot.lane.b32.xlu2 %v12080_v57, %s10725_s11  ;;  %v4946_v45 = vpop.xlane.xlu1 %4945 }
0x11f1   :  { %v4954_v8 = vsub.f32 %v12581_v32, %v4946_v45 }
0x11f3   :  { %v12615_v56 = vpop.eup %10355  ;;  %v4969_v49 = vmul.f32 1.442695, %v4954_v8 }
0x11f4   :  { %v4989_v50 = vsel %vm587_vm6, %v12615_v56, 0.0 }
0x11f5   :  { %10357 = vpow2.f32 %v4969_v49 }
0x11fb   :  { %v12626_v48 = vpop.eup %10357 }
0x1205   :  { %4930 = vmax.xlane.f32.xlu0 %v4929_v3 }
0x1208   :  { %v5262_v28 = vpop.permute.xlu1 %5261 }
0x1209   :  { %9596 = vmatpush.xpose.msk.msrb.mxu0 %vm444_vm5, %v5262_v28 }
0x1219   :  { %4990 = vadd.xlane.f32.xlu2 %v4989_v50  ;;  %5255 = vrot.lane.b32.xlu0 %v12080_v57, %s10726_s12  ;;  %v4992_v57 = vsel %vm587_vm6, %v12626_v48, 0.0 }
0x1231   :  { %5294 = vrot.lane.b32.xlu2 %v12167_v5, %s10726_s12 }
0x1239   :  { %5335 = vrot.lane.b32.xlu2 %v12170_v11, %s10726_s12 }
0x123a   :  { %v4976_v34 = vpop.xlane.xlu0 %4975 }
0x123b   :  { %10359 = vrcp.f32 %v4976_v34  ;;  %v5021_v20 = vand.u32 2147483648, %v4976_v34  ;;  %v5019_v45 = vand.u32 2147483647, %v4976_v34  ;;  %vm5015_vm11 = vweird.f32 %v4976_v34 }
0x123d   :  { %v5022_v3 = vor.u32 1.1754944e-38, %v5021_v20  ;;  %vm5020_vm13 = vcmp.eq.f32.partialorder %v5019_v45, 8.507059e+37 }
0x1241   :  { %v10360_v19 = vpop.eup %10359  ;;  %5376 = vrot.lane.b32.xlu2 %v12177_v36, %s10725_s11 }
0x1242   :  { %v5011_v46 = vmul.f32 %v10360_v19, %v4976_v34  ;;  %vm5016_vm10 = vweird.f32 %v10360_v19 }
0x1243   :  { %v4937_v32 = vpop.xlane.xlu2 %4936  ;;  %4993 = vadd.xlane.f32.xlu0 %v4992_v57  ;;  %vm5017_vm12 = vmor %vm5015_vm11, %vm5016_vm10 }
0x1244   :  { %v5012_v41 = vsub.f32 1.0, %v5011_v46  ;;  %v4951_v37 = vsub.f32 %v4878_v38, %v4937_v32 }
0x1246   :  { %v5013_v55 = vmul.f32 %v10360_v19, %v5012_v41  ;;  %v4963_v1 = vmul.f32 1.442695, %v4951_v37  ;;  %v4934_v41 = vpop.xlane.xlu1 %4933 }
0x1248   :  { %10361 = vpow2.f32 %v4963_v1  ;;  %v5014_v44 = vadd.f32 %v10360_v19, %v5013_v55  ;;  %v4950_v55 = vsub.f32 %v12595_v16, %v4934_v41 }
0x124a   :  { %v5018_v33 = vsel %vm5017_vm12, %v10360_v19, %v5014_v44  ;;  %v4961_v45 = vmul.f32 1.442695, %v4950_v55 }
0x124b   :  { %v4940_v28 = vpop.xlane.xlu2 %4939  ;;  %v5023_v40 = vsel %vm5020_vm13, %v5022_v3, %v5018_v33 }
0x124c   :  { %v4952_v50 = vsub.f32 %v4881_v30, %v4940_v28  ;;  %v5024_v8 = vmul.f32 %v12599_v63, %v5023_v40 }
0x124d   :  { %v9912_v49 = vpop.permute.xlu0 %9911 }
0x124e   :  { %v12633_v46 = vpop.eup %10361  ;;  %v4965_v38 = vmul.f32 1.442695, %v4952_v50  ;;  %v9913_v57 = vunpack.i.l.bf16 %v9912_v49  ;;  %9589 = vmatmul.msk.f32.gmra.mxu0 %vm587_vm6, %v5024_v8  ;;  %v9914_v32 = vunpack.i.h.bf16 %v9912_v49 }
0x124f   :  { %v4983_v34 = vsel %vm587_vm6, %v12633_v46, 0.0 }
0x1250   :  { %10363 = vpow2.f32 %v4965_v38  ;;  %5176 = vmatpush.msra.mxu1 %v9913_v57  ;;  %4984 = vadd.xlane.f32.xlu0 %v4983_v34 }
0x1252   :  { %5177 = vmatpush.msra.mxu1 %v9914_v32 }
0x1253   :  { %v5260_v19 = vpop.permute.xlu2 %5259 }
0x1254   :  { %9597 = vmatpush.xpose.msk.msrb.mxu0 %vm444_vm5, %v5260_v19 }
0x1256   :  { %v12639_v30 = vpop.eup %10363 }
0x1257   :  { %v4986_v63 = vsel %vm587_vm6, %v12639_v30, 0.0 }
0x1258   :  { %4987 = vadd.xlane.f32.xlu0 %v4986_v63 }
0x126c   :  { %5337 = vrot.lane.b32.xlu0 %v12162_v31, %s10725_s11 }
0x1274   :  { %5372 = vrot.lane.b32.xlu0 %v12177_v36, %s10726_s12 }
0x1278   :  { %v4931_v37 = vpop.xlane.xlu0 %4930 }
0x1279   :  { %v4949_v20 = vsub.f32 %v12591_v7, %v4931_v37 }
0x127b   :  { %v4959_v1 = vmul.f32 1.442695, %v4949_v20 }
0x127d   :  { %10365 = vpow2.f32 %v4959_v1 }
0x127e   :  { %10367 = vpow2.f32 %v4961_v45 }
0x1283   :  { %v10366_v44 = vpop.eup %10365 }
0x1284   :  { %v4977_v3 = vsel %vm587_vm6, %v10366_v44, 0.0  ;;  %v12650_v33 = vpop.eup %10367 }
0x1285   :  { %4978 = vadd.xlane.f32.xlu1 %v4977_v3  ;;  %v4980_v36 = vsel %vm587_vm6, %v12650_v33, 0.0 }
0x128b   :  { %v5256_v28 = vpop.permute.xlu0 %5255 }
0x128c   :  { %9598 = vmatmul.msk.f32.vlgmr.msrb.gmra.mxu0 %vm444_vm5, %v5256_v28 }
0x128d   :  { %4981 = vadd.xlane.f32.xlu1 %v4980_v36 }
0x12a6   :  { %9916 = vrot.lane.b32.xlu1 %v12300_v54, %s10724_s10 }
0x12ae   :  { %5257 = vrot.lane.b32.xlu1 %v12094_v29, %s10726_s12 }
0x12b6   :  { %5300 = vrot.lane.b32.xlu1 %v12151_v4, %s10725_s11  ;;  %v12675_v29 = vpop.xlane.xlu0 %4993 }
0x12be   :  { %5298 = vrot.lane.b32.xlu1 %v12167_v5, %s10725_s11 }
0x12c3   :  { %v4985_v5 = vpop.xlane.xlu0 %4984 }
0x12c4   :  { %vm5060_vm12 = vweird.f32 %v4985_v5 }
0x12c6   :  { %5339 = vrot.lane.b32.xlu1 %v12170_v11, %s10725_s11  ;;  %v12677_v11 = vpop.f32.mrf.mxu0 }
0x12ce   :  { %9921 = vrot.lane.b32.xlu1 %v12318_v17, %s10724_s10  ;;  %v12679_v50 = vpop.f32.mrf.mxu0 }
0x12d6   :  { %5333 = vrot.lane.b32.xlu1 %v12162_v31, %s10726_s12 }
0x12de   :  { %5296 = vrot.lane.b32.xlu1 %v12151_v4, %s10726_s12  ;;  %v12681_v4 = vpop.xlane.xlu0 %4987 }
0x12e6   :  { %5378 = vrot.lane.b32.xlu1 %v12186_v53, %s10725_s11 }
0x12ee   :  { %5374 = vrot.lane.b32.xlu1 %v12186_v53, %s10726_s12 }
0x12f8   :  { %v4979_v7 = vpop.xlane.xlu1 %4978 }
0x12f9   :  { %10369 = vrcp.f32 %v4979_v7  ;;  %v5036_v38 = vand.u32 2147483648, %v4979_v7  ;;  %v5034_v57 = vand.u32 2147483647, %v4979_v7  ;;  %vm5030_vm15 = vweird.f32 %v4979_v7 }
0x12fa   :  { %10371 = vrcp.f32 %v4985_v5 }
0x12fb   :  { %v5037_v63 = vor.u32 1.1754944e-38, %v5036_v38  ;;  %vm5035_vm2 = vcmp.eq.f32.partialorder %v5034_v57, 8.507059e+37 }
0x12ff   :  { %v10370_v16 = vpop.eup %10369 }
0x1300   :  { %v5026_v40 = vmul.f32 %v10370_v16, %v4979_v7  ;;  %v4982_v31 = vpop.xlane.xlu1 %4981  ;;  %v10372_v49 = vpop.eup %10371  ;;  %vm5031_vm14 = vweird.f32 %v10370_v16 }
0x1301   :  { %10373 = vrcp.f32 %v4982_v31  ;;  %v5056_v34 = vmul.f32 %v10372_v49, %v4985_v5  ;;  %vm5032_vm1 = vmor %vm5030_vm15, %vm5031_vm14  ;;  %v5049_v7 = vand.u32 2147483647, %v4982_v31  ;;  %vm5045_vm8 = vweird.f32 %v4982_v31 }
0x1302   :  { %v5027_v8 = vsub.f32 1.0, %v5026_v40  ;;  %10375 = vrcp.f32 %v12681_v4  ;;  %v5051_v40 = vand.u32 2147483648, %v4982_v31  ;;  %vm5061_vm11 = vweird.f32 %v10372_v49 }
0x1303   :  { %v5057_v1 = vsub.f32 1.0, %v5056_v34  ;;  %vm5050_vm10 = vcmp.eq.f32.partialorder %v5049_v7, 8.507059e+37  ;;  %vm5062_vm13 = vmor %vm5060_vm12, %vm5061_vm11 }
0x1304   :  { %v5028_v53 = vmul.f32 %v10370_v16, %v5027_v8  ;;  %v5052_v57 = vor.u32 1.1754944e-38, %v5051_v40 }
0x1306   :  { %v5029_v32 = vadd.f32 %v10370_v16, %v5028_v53 }
0x1307   :  { %v10374_v19 = vpop.eup %10373 }
0x1308   :  { %v5033_v41 = vsel %vm5032_vm1, %v10370_v16, %v5029_v32  ;;  %v5041_v37 = vmul.f32 %v10374_v19, %v4982_v31  ;;  %v10376_v36 = vpop.eup %10375  ;;  %vm5046_vm4 = vweird.f32 %v10374_v19  ;;  %v5058_v16 = vmul.f32 %v10372_v49, %v5057_v1 }
0x1309   :  { %v5038_v20 = vsel %vm5035_vm2, %v5037_v63, %v5033_v41  ;;  %v12684_v55 = vpop.f32.mrf.mxu0  ;;  %v5071_v38 = vmul.f32 %v10376_v36, %v12681_v4  ;;  %vm5047_vm9 = vmor %vm5045_vm8, %vm5046_vm4  ;;  %vm5076_vm15 = vweird.f32 %v10376_v36  ;;  %vm5075_vm1 = vweird.f32 %v12681_v4 }
0x130a   :  { %v5039_v45 = vmul.f32 %v10366_v44, %v5038_v20  ;;  %v5042_v3 = vsub.f32 1.0, %v5041_v37  ;;  %v5411_v28 = vsel %vm587_vm6, %v12684_v55, -inf  ;;  %v5059_v32 = vadd.f32 %v10372_v49, %v5058_v16  ;;  %vm5077_vm2 = vmor %vm5075_vm1, %vm5076_vm15 }
0x130b   :  { %5412 = vmax.xlane.f32.xlu2 %v5411_v28  ;;  %v5072_v63 = vsub.f32 1.0, %v5071_v38  ;;  %v5066_v37 = vand.u32 2147483648, %v4985_v5  ;;  %v5064_v20 = vand.u32 2147483647, %v4985_v5  ;;  %v5079_v5 = vand.u32 2147483647, %v12681_v4 }
0x130c   :  { %v5043_v8 = vmul.f32 %v10374_v19, %v5042_v3  ;;  %9590 = vmatmul.msk.f32.vlgmr.msra.gmra.mxu1 %vm587_vm6, %v5039_v45  ;;  %v5063_v1 = vsel %vm5062_vm13, %v10372_v49, %v5059_v32  ;;  %vm5105_vm13 = vweird.f32 %v12675_v29 }
0x130d   :  { %v5073_v45 = vmul.f32 %v10376_v36, %v5072_v63  ;;  %v5067_v31 = vor.u32 1.1754944e-38, %v5066_v37  ;;  %vm5065_vm14 = vcmp.eq.f32.partialorder %v5064_v20, 8.507059e+37  ;;  %vm5080_vm4 = vcmp.eq.f32.partialorder %v5079_v5, 8.507059e+37 }
0x130e   :  { %v5044_v53 = vadd.f32 %v10374_v19, %v5043_v8  ;;  %v5081_v8 = vand.u32 2147483648, %v12681_v4 }
0x130f   :  { %v5068_v28 = vsel %vm5065_vm14, %v5067_v31, %v5063_v1  ;;  %v5074_v40 = vadd.f32 %v10376_v36, %v5073_v45 }
0x1310   :  { %v5048_v44 = vsel %vm5047_vm9, %v10374_v19, %v5044_v53  ;;  %v5082_v16 = vor.u32 1.1754944e-38, %v5081_v8 }
0x1311   :  { %v5053_v34 = vsel %vm5050_vm10, %v5052_v57, %v5048_v44  ;;  %v5078_v49 = vsel %vm5077_vm2, %v10376_v36, %v5074_v40  ;;  %v4991_v57 = vpop.xlane.xlu2 %4990 }
0x1312   :  { %v5054_v41 = vmul.f32 %v12650_v33, %v5053_v34  ;;  %v5069_v33 = vmul.f32 %v12633_v46, %v5068_v28  ;;  %v5083_v53 = vsel %vm5080_vm4, %v5082_v16, %v5078_v49  ;;  %10377 = vrcp.f32 %v4991_v57  ;;  %v5338_v28 = vpop.permute.xlu0 %5337 }
0x1313   :  { %v5084_v44 = vmul.f32 %v12639_v30, %v5083_v53  ;;  %10379 = vrcp.f32 %v12675_v29  ;;  %v5096_v31 = vand.u32 2147483648, %v4991_v57  ;;  %vm5090_vm9 = vweird.f32 %v4991_v57 }
0x1314   :  { %9591 = vmatmul.msk.f32.gmra.mxu1 %vm587_vm6, %v5054_v41  ;;  %v5111_v16 = vand.u32 2147483648, %v12675_v29 }
0x1315   :  { %v5097_v8 = vor.u32 1.1754944e-38, %v5096_v31 }
0x1318   :  { %v9917_v3 = vpop.permute.xlu1 %9916  ;;  %v10378_v4 = vpop.eup %10377 }
0x1319   :  { %v9918_v19 = vunpack.i.l.bf16 %v9917_v3  ;;  %v9919_v7 = vunpack.i.h.bf16 %v9917_v3  ;;  %v5086_v34 = vmul.f32 %v10378_v4, %v4991_v57  ;;  %v10380_v63 = vpop.eup %10379  ;;  %v5295_v41 = vpop.permute.xlu2 %5294  ;;  %vm5091_vm8 = vweird.f32 %v10378_v4 }
0x131a   :  { %v5101_v30 = vmul.f32 %v10380_v63, %v12675_v29  ;;  %v5094_v3 = vand.u32 2147483647, %v4991_v57  ;;  %vm5092_vm10 = vmor %vm5090_vm9, %vm5091_vm8  ;;  %vm5106_vm12 = vweird.f32 %v10380_v63  ;;  %v5109_v57 = vand.u32 2147483647, %v12675_v29 }
0x131b   :  { %5211 = vmatpush.msra.mxu2 %v9918_v19  ;;  %v5087_v32 = vsub.f32 1.0, %v5086_v34  ;;  %vm5107_vm14 = vmor %vm5105_vm13, %vm5106_vm12 }
0x131c   :  { %v5102_v45 = vsub.f32 1.0, %v5101_v30  ;;  %vm5095_vm11 = vcmp.eq.f32.partialorder %v5094_v3, 8.507059e+37  ;;  %vm5110_vm15 = vcmp.eq.f32.partialorder %v5109_v57, 8.507059e+37 }
0x131d   :  { %5212 = vmatpush.msra.mxu2 %v9919_v7  ;;  %v5088_v37 = vmul.f32 %v10378_v4, %v5087_v32 }
0x131e   :  { %9592 = vmatmul.msk.f32.vlgmr.msra.gmra.mxu2 %vm587_vm6, %v5069_v33  ;;  %v5103_v40 = vmul.f32 %v10380_v63, %v5102_v45 }
0x131f   :  { %v5089_v1 = vadd.f32 %v10378_v4, %v5088_v37 }
0x1320   :  { %v5258_v38 = vpop.permute.xlu1 %5257  ;;  %v5104_v49 = vadd.f32 %v10380_v63, %v5103_v40 }
0x1321   :  { %9599 = vmatmul.msk.f32.gmra.mxu0 %vm444_vm5, %v5258_v38  ;;  %v5093_v19 = vsel %vm5092_vm10, %v10378_v4, %v5089_v1 }
0x1322   :  { %v5098_v33 = vsel %vm5095_vm11, %v5097_v8, %v5093_v19 }
0x1323   :  { %v5099_v53 = vmul.f32 %v12615_v56, %v5098_v33  ;;  %v5336_v56 = vpop.permute.xlu2 %5335 }
0x1326   :  { %9593 = vmatmul.msk.f32.gmra.mxu2 %vm587_vm6, %v5084_v44  ;;  %v5108_v44 = vsel %vm5107_vm14, %v10380_v63, %v5104_v49 }
0x1328   :  { %v5301_v46 = vpop.permute.xlu1 %5300 }
0x1329   :  { %9600 = vmatpush.xpose.msk.msrb.mxu1 %vm444_vm5, %v5301_v46  ;;  %v5112_v46 = vor.u32 1.1754944e-38, %v5111_v16 }
0x132b   :  { %v5113_v34 = vsel %vm5110_vm15, %v5112_v46, %v5108_v44  ;;  %v5377_v63 = vpop.permute.xlu2 %5376 }
0x1330   :  { %v5299_v36 = vpop.permute.xlu1 %5298 }
0x1331   :  { %9601 = vmatpush.xpose.msk.msrb.mxu1 %vm444_vm5, %v5299_v36  ;;  %v5114_v36 = vmul.f32 %v12626_v48, %v5113_v34 }
0x1334   :  { %9602 = vmatmul.msk.f32.vlgmr.msrb.gmra.mxu1 %vm444_vm5, %v5295_v41  ;;  %v5373_v41 = vpop.permute.xlu0 %5372 }
0x1338   :  { %v5340_v20 = vpop.permute.xlu1 %5339 }
0x1339   :  { %9604 = vmatpush.xpose.msk.msrb.mxu2 %vm444_vm5, %v5340_v20 }
0x133d   :  { %9605 = vmatpush.xpose.msk.msrb.mxu2 %vm444_vm5, %v5338_v28 }
0x1340   :  { %v9922_v7 = vpop.permute.xlu1 %9921 }
0x1341   :  { %v9923_v5 = vunpack.i.l.bf16 %v9922_v7  ;;  %v9924_v38 = vunpack.i.h.bf16 %v9922_v7 }
0x1343   :  { %5246 = vmatpush.msra.mxu3 %v9923_v5 }
0x1345   :  { %5247 = vmatpush.msra.mxu3 %v9924_v38 }
0x1346   :  { %9594 = vmatmul.msk.f32.vlgmr.msra.gmra.mxu3 %vm587_vm6, %v5099_v53 }
0x1348   :  { %v5334_v4 = vpop.permute.xlu1 %5333 }
0x1349   :  { %9606 = vmatmul.msk.f32.vlgmr.msrb.gmra.mxu2 %vm444_vm5, %v5334_v4 }
0x134e   :  { %9595 = vmatmul.msk.f32.gmra.mxu3 %vm587_vm6, %v5114_v36 }
0x1350   :  { %v5297_v32 = vpop.permute.xlu1 %5296 }
0x1351   :  { %9603 = vmatmul.msk.f32.gmra.mxu1 %vm444_vm5, %v5297_v32  ;;  %9607 = vmatmul.msk.f32.gmra.mxu2 %vm444_vm5, %v5336_v56 }
0x1358   :  { %v5379_v29 = vpop.permute.xlu1 %5378 }
0x1359   :  { %9608 = vmatpush.xpose.msk.msrb.mxu3 %vm444_vm5, %v5379_v29 }
0x135d   :  { %9609 = vmatpush.xpose.msk.msrb.mxu3 %vm444_vm5, %v5377_v63 }
0x1360   :  { %9610 = vmatmul.msk.f32.vlgmr.msrb.gmra.mxu3 %vm444_vm5, %v5373_v41  ;;  %v5375_v37 = vpop.permute.xlu1 %5374 }
0x1368   :  { %9611 = vmatmul.msk.f32.gmra.mxu3 %vm444_vm5, %v5375_v37 }
0x137e   :  { %v5413_v1 = vpop.xlane.xlu2 %5412 }
0x137f   :  { %v5435_v45 = vsub.f32 %v12684_v55, %v5413_v1 }
0x1381   :  { %v5443_v3 = vmul.f32 1.442695, %v5435_v45 }
0x1383   :  { %10381 = vpow2.f32 %v5443_v3 }
0x1389   :  { %v12721_v30 = vpop.f32.mrf.mxu1  ;;  %v12728_v40 = vpop.eup %10381 }
0x138a   :  { %v5459_v7 = vsel %vm587_vm6, %v12728_v40, 0.0 }
0x1391   :  { %v12725_v31 = vpop.f32.mrf.mxu1 }
0x139e   :  { %v5291_v48 = vpop.f32.mrf.mxu0 }
0x139f   :  { %v5414_v20 = vsel %vm587_vm6, %v5291_v48, -inf }
0x13a0   :  { %5415 = vmax.xlane.f32.xlu0 %v5414_v20 }
0x13a1   :  { %v12730_v8 = vpop.f32.mrf.mxu2 }
0x13a9   :  { %v12734_v33 = vpop.f32.mrf.mxu2 }
0x13b1   :  { %v5327_v28 = vpop.f32.mrf.mxu1 }
0x13b2   :  { %v5417_v19 = vsel %vm587_vm6, %v5327_v28, -inf }
0x13b3   :  { %5418 = vmax.xlane.f32.xlu1 %v5417_v19 }
0x13bb   :  { %5460 = vadd.xlane.f32.xlu1 %v5459_v7 }
0x13c9   :  { %v12738_v38 = vpop.f32.mrf.mxu3 }
0x13cc   :  { %v5366_v5 = vpop.f32.mrf.mxu2 }
0x13cd   :  { %v5423_v55 = vsel %vm587_vm6, %v5366_v5, -inf }
0x13ce   :  { %v5330_v49 = vpop.f32.mrf.mxu1  ;;  %5424 = vmax.xlane.f32.xlu0 %v5423_v55 }
0x13cf   :  { %v5420_v16 = vsel %vm587_vm6, %v5330_v49, -inf }
0x13d0   :  { %5421 = vmax.xlane.f32.xlu2 %v5420_v16 }
0x13d1   :  { %v12741_v44 = vpop.f32.mrf.mxu3 }
0x13d4   :  { %v5369_v53 = vpop.f32.mrf.mxu2 }
0x13d5   :  { %v5426_v57 = vsel %vm587_vm6, %v5369_v53, -inf }
0x13d6   :  { %5427 = vmax.xlane.f32.xlu1 %v5426_v57 }
0x13e3   :  { %v5405_v46 = vpop.f32.mrf.mxu3 }
0x13e4   :  { %v5429_v4 = vsel %vm587_vm6, %v5405_v46, -inf }
0x13e5   :  { %5430 = vmax.xlane.f32.xlu2 %v5429_v4 }
0x13eb   :  { %v12744_v34 = vpop.f32.mrf.mxu3 }
0x13ec   :  { %v5432_v36 = vsel %vm587_vm6, %v12744_v34, -inf }
0x13ed   :  { %5433 = vmax.xlane.f32.xlu0 %v5432_v36 }
0x13ef   :  { %9926 = vrot.lane.b32.xlu1 %v12260_v21, %s10727_s13 }
0x13f7   :  { %9936 = vrot.lane.b32.xlu1 %v12300_v54, %s10727_s13 }
0x13ff   :  { %9941 = vrot.lane.b32.xlu1 %v12318_v17, %s10727_s13 }
0x1413   :  { %v5416_v56 = vpop.xlane.xlu0 %5415 }
0x1414   :  { %v5436_v32 = vsub.f32 %v5291_v48, %v5416_v56 }
0x1416   :  { %v5445_v29 = vmul.f32 1.442695, %v5436_v32 }
0x1418   :  { %10383 = vpow2.f32 %v5445_v29 }
0x141e   :  { %v12754_v63 = vpop.eup %10383 }
0x141f   :  { %v5462_v41 = vsel %vm587_vm6, %v12754_v63, 0.0 }
0x1420   :  { %5463 = vadd.xlane.f32.xlu2 %v5462_v41 }
0x1426   :  { %v5419_v37 = vpop.xlane.xlu1 %5418 }
0x1427   :  { %v5437_v20 = vsub.f32 %v5327_v28, %v5419_v37 }
0x1429   :  { %v5447_v1 = vmul.f32 1.442695, %v5437_v20 }
0x142b   :  { %10385 = vpow2.f32 %v5447_v1 }
0x142e   :  { %v5461_v17 = vpop.xlane.xlu1 %5460 }
0x142f   :  { %10387 = vrcp.f32 %v5461_v17  ;;  %vm5488_vm2 = vweird.f32 %v5461_v17 }
0x1431   :  { %v12758_v21 = vpop.eup %10385 }
0x1432   :  { %v5465_v54 = vsel %vm587_vm6, %v12758_v21, 0.0 }
0x1433   :  { %5466 = vadd.xlane.f32.xlu0 %v5465_v54 }
0x1435   :  { %v10388_v57 = vpop.eup %10387 }
0x1436   :  { %vm5489_vm1 = vweird.f32 %v10388_v57 }
0x1437   :  { %vm5490_vm4 = vmor %vm5488_vm2, %vm5489_vm1 }
0x1441   :  { %v5425_v48 = vpop.xlane.xlu0 %5424 }
0x1442   :  { %v5439_v45 = vsub.f32 %v5366_v5, %v5425_v48  ;;  %v5484_v5 = vmul.f32 %v10388_v57, %v5461_v17 }
0x1443   :  { %v5422_v3 = vpop.xlane.xlu2 %5421 }
0x1444   :  { %v5451_v19 = vmul.f32 1.442695, %v5439_v45  ;;  %v5438_v7 = vsub.f32 %v5330_v49, %v5422_v3  ;;  %v5485_v29 = vsub.f32 1.0, %v5484_v5  ;;  %v5494_v45 = vand.u32 2147483648, %v5461_v17 }
0x1445   :  { %v5492_v3 = vand.u32 2147483647, %v5461_v17 }
0x1446   :  { %10389 = vpow2.f32 %v5451_v19  ;;  %v5449_v55 = vmul.f32 1.442695, %v5438_v7  ;;  %v5486_v37 = vmul.f32 %v10388_v57, %v5485_v29  ;;  %v5495_v7 = vor.u32 1.1754944e-38, %v5494_v45 }
0x1447   :  { %vm5493_vm8 = vcmp.eq.f32.partialorder %v5492_v3, 8.507059e+37 }
0x1448   :  { %10391 = vpow2.f32 %v5449_v55  ;;  %v5487_v54 = vadd.f32 %v10388_v57, %v5486_v37 }
0x1449   :  { %v5428_v16 = vpop.xlane.xlu1 %5427 }
0x144a   :  { %v5440_v28 = vsub.f32 %v5369_v53, %v5428_v16  ;;  %v5491_v19 = vsel %vm5490_vm4, %v10388_v57, %v5487_v54 }
0x144c   :  { %v12762_v4 = vpop.eup %10389  ;;  %v5453_v36 = vmul.f32 1.442695, %v5440_v28 }
0x144d   :  { %v5471_v56 = vsel %vm587_vm6, %v12762_v4, 0.0 }
0x144e   :  { %v12766_v32 = vpop.eup %10391  ;;  %10393 = vpow2.f32 %v5453_v36  ;;  %5472 = vadd.xlane.f32.xlu0 %v5471_v56  ;;  %v5496_v36 = vsel %vm5493_vm8, %v5495_v7, %v5491_v19 }
0x144f   :  { %v5468_v49 = vsel %vm587_vm6, %v12766_v32, 0.0  ;;  %v5497_v17 = vmul.f32 %v12728_v40, %v5496_v36 }
0x1450   :  { %5469 = vadd.xlane.f32.xlu2 %v5468_v49 }
0x1454   :  { %v12770_v41 = vpop.eup %10393 }
0x1455   :  { %v5474_v53 = vsel %vm587_vm6, %v12770_v41, 0.0 }
0x1456   :  { %5475 = vadd.xlane.f32.xlu0 %v5474_v53 }
0x1458   :  { %v5431_v20 = vpop.xlane.xlu2 %5430 }
0x1459   :  { %v5441_v1 = vsub.f32 %v5405_v46, %v5431_v20 }
0x145b   :  { %v5455_v48 = vmul.f32 1.442695, %v5441_v1 }
0x145d   :  { %10395 = vpow2.f32 %v5455_v48 }
0x1460   :  { %v5434_v55 = vpop.xlane.xlu0 %5433 }
0x1461   :  { %v5442_v16 = vsub.f32 %v12744_v34, %v5434_v55  ;;  %v9927_v28 = vpop.permute.xlu1 %9926 }
0x1462   :  { %v9928_v56 = vunpack.i.l.bf16 %v9927_v28  ;;  %v9929_v49 = vunpack.i.h.bf16 %v9927_v28 }
0x1463   :  { %v12775_v5 = vpop.eup %10395  ;;  %v5457_v46 = vmul.f32 1.442695, %v5442_v16 }
0x1464   :  { %5629 = vmatpush.msra.mxu0 %v9928_v56  ;;  %v5477_v29 = vsel %vm587_vm6, %v12775_v5, 0.0 }
0x1465   :  { %10397 = vpow2.f32 %v5457_v46  ;;  %5478 = vadd.xlane.f32.xlu0 %v5477_v29 }
0x1466   :  { %5630 = vmatpush.msra.mxu0 %v9929_v49 }
0x1467   :  { %9612 = vmatmul.msk.f32.vlgmr.msra.gmra.mxu0 %vm587_vm6, %v5497_v17 }
0x1468   :  { %9931 = vrot.lane.b32.xlu2 %v12308_v0, %s10727_s13 }
0x1469   :  { %v9937_v34 = vpop.permute.xlu1 %9936 }
0x146a   :  { %v9938_v57 = vunpack.i.l.bf16 %v9937_v34  ;;  %v9939_v37 = vunpack.i.h.bf16 %v9937_v34 }
0x146b   :  { %v12783_v53 = vpop.eup %10397 }
0x146c   :  { %5699 = vmatpush.msra.mxu2 %v9938_v57  ;;  %v5480_v20 = vsel %vm587_vm6, %v12783_v53, 0.0 }
0x146d   :  { %5481 = vadd.xlane.f32.xlu0 %v5480_v20 }
0x146e   :  { %5700 = vmatpush.msra.mxu2 %v9939_v37 }
0x1470   :  { %5751 = vrot.lane.b32.xlu2 %v12513_v25, %s10715_s15 }
0x1471   :  { %v9942_v40 = vpop.permute.xlu1 %9941 }
0x1472   :  { %v9943_v1 = vunpack.i.l.bf16 %v9942_v40  ;;  %v9944_v54 = vunpack.i.h.bf16 %v9942_v40 }
0x1474   :  { %5734 = vmatpush.msra.mxu3 %v9943_v1 }
0x1476   :  { %5735 = vmatpush.msra.mxu3 %v9944_v54 }
0x1478   :  { %5753 = vrot.lane.b32.xlu2 %v12523_v26, %s10715_s15 }
0x1481   :  { %5783 = vrot.lane.b32.xlu0 %v12677_v11, %s10728_s14 }
0x1489   :  { %5755 = vrot.lane.b32.xlu0 %v12587_v35, %s10715_s15 }
0x1491   :  { %5757 = vrot.lane.b32.xlu0 %v12589_v60, %s10715_s15 }
0x1493   :  { %v5464_v0 = vpop.xlane.xlu2 %5463 }
0x1494   :  { %10399 = vrcp.f32 %v5464_v0  ;;  %v5509_v3 = vand.u32 2147483648, %v5464_v0  ;;  %v5507_v26 = vand.u32 2147483647, %v5464_v0  ;;  %vm5503_vm10 = vweird.f32 %v5464_v0 }
0x1496   :  { %v5510_v11 = vor.u32 1.1754944e-38, %v5509_v3  ;;  %vm5508_vm12 = vcmp.eq.f32.partialorder %v5507_v26, 8.507059e+37 }
0x1499   :  { %5759 = vrot.lane.b32.xlu0 %v12593_v27, %s10715_s15 }
0x149a   :  { %v10400_v25 = vpop.eup %10399 }
0x149b   :  { %v5499_v48 = vmul.f32 %v10400_v25, %v5464_v0  ;;  %vm5504_vm9 = vweird.f32 %v10400_v25 }
0x149c   :  { %vm5505_vm11 = vmor %vm5503_vm10, %vm5504_vm9 }
0x149d   :  { %v5500_v45 = vsub.f32 1.0, %v5499_v48 }
0x149f   :  { %v5501_v19 = vmul.f32 %v10400_v25, %v5500_v45 }
0x14a1   :  { %5761 = vrot.lane.b32.xlu0 %v12601_v12, %s10715_s15  ;;  %v5502_v35 = vadd.f32 %v10400_v25, %v5501_v19  ;;  %v12807_v19 = vld [vmem:[#allocation2 + $0xb8] ss:$0 sm:$0xff] }
0x14a3   :  { %v5506_v60 = vsel %vm5505_vm11, %v10400_v25, %v5502_v35 }
0x14a4   :  { %v5511_v7 = vsel %vm5508_vm12, %v5510_v11, %v5506_v60 }
0x14a5   :  { %v5512_v55 = vmul.f32 %v12754_v63, %v5511_v7 }
0x14a6   :  { %v5467_v27 = vpop.xlane.xlu0 %5466 }
0x14a7   :  { %9613 = vmatmul.msk.f32.gmra.mxu0 %vm587_vm6, %v5512_v55  ;;  %10401 = vrcp.f32 %v5467_v27  ;;  %v5524_v63 = vand.u32 2147483648, %v5467_v27  ;;  %vm5518_vm14 = vweird.f32 %v5467_v27  ;;  %v5522_v29 = vand.u32 2147483647, %v5467_v27 }
0x14a9   :  { %5763 = vrot.lane.b32.xlu0 %v12574_v23, %s10715_s15  ;;  %v5525_v34 = vor.u32 1.1754944e-38, %v5524_v63  ;;  %vm5523_vm1 = vcmp.eq.f32.partialorder %v5522_v29, 8.507059e+37 }
0x14ad   :  { %v10402_v16 = vpop.eup %10401 }
0x14ae   :  { %v5514_v12 = vmul.f32 %v10402_v16, %v5467_v27  ;;  %vm5519_vm13 = vweird.f32 %v10402_v16 }
0x14af   :  { %vm5520_vm15 = vmor %vm5518_vm14, %vm5519_vm13 }
0x14b0   :  { %v5515_v28 = vsub.f32 1.0, %v5514_v12 }
0x14b1   :  { %5765 = vrot.lane.b32.xlu0 %v12578_v61, %s10715_s15 }
0x14b2   :  { %v5516_v36 = vmul.f32 %v10402_v16, %v5515_v28 }
0x14b4   :  { %v5517_v49 = vadd.f32 %v10402_v16, %v5516_v36 }
0x14b6   :  { %v5521_v17 = vsel %vm5520_vm15, %v10402_v16, %v5517_v49 }
0x14b7   :  { %v5526_v20 = vsel %vm5523_vm1, %v5525_v34, %v5521_v17 }
0x14b8   :  { %v5527_v26 = vmul.f32 %v12758_v21, %v5526_v20  ;;  %v3040_v21 = vadd.f32 %v12807_v19, %v12224_v52 }
0x14c1   :  { %v5473_v56 = vpop.xlane.xlu0 %5472 }
0x14c2   :  { %10403 = vrcp.f32 %v5473_v56  ;;  %v5552_v0 = vand.u32 2147483647, %v5473_v56  ;;  %v5554_v25 = vand.u32 2147483648, %v5473_v56  ;;  %vm5548_vm4 = vweird.f32 %v5473_v56 }
0x14c3   :  { %v5470_v46 = vpop.xlane.xlu2 %5469 }
0x14c4   :  { %10405 = vrcp.f32 %v5470_v46  ;;  %v5539_v35 = vand.u32 2147483648, %v5470_v46  ;;  %v5537_v55 = vand.u32 2147483647, %v5470_v46  ;;  %vm5553_vm10 = vcmp.eq.f32.partialorder %v5552_v0, 8.507059e+37 }
0x14c5   :  { %v5555_v16 = vor.u32 1.1754944e-38, %v5554_v25  ;;  %vm5533_vm11 = vweird.f32 %v5470_v46 }
0x14c6   :  { %v5540_v49 = vor.u32 1.1754944e-38, %v5539_v35  ;;  %vm5538_vm13 = vcmp.eq.f32.partialorder %v5537_v55, 8.507059e+37 }
0x14c8   :  { %v10404_v23 = vpop.eup %10403 }
0x14c9   :  { %v5544_v57 = vmul.f32 %v10404_v23, %v5473_v56  ;;  %v5476_v37 = vpop.xlane.xlu0 %5475  ;;  %vm5549_vm2 = vweird.f32 %v10404_v23 }
0x14ca   :  { %v10406_v61 = vpop.eup %10405  ;;  %10407 = vrcp.f32 %v5476_v37  ;;  %vm5550_vm9 = vmor %vm5548_vm4, %vm5549_vm2  ;;  %v5569_v20 = vand.u32 2147483648, %v5476_v37  ;;  %vm5563_vm15 = vweird.f32 %v5476_v37 }
0x14cb   :  { %v5545_v40 = vsub.f32 1.0, %v5544_v57  ;;  %v5529_v1 = vmul.f32 %v10406_v61, %v5470_v46  ;;  %v9932_v54 = vpop.permute.xlu2 %9931  ;;  %vm5534_vm8 = vweird.f32 %v10406_v61  ;;  %v12816_v46 = vadd.f32 %v3040_v21, %v11753_v2 }
0x14cc   :  { %v9933_v48 = vunpack.i.l.bf16 %v9932_v54  ;;  %v9934_v11 = vunpack.i.h.bf16 %v9932_v54  ;;  %vm5535_vm12 = vmor %vm5533_vm11, %vm5534_vm8 }
0x14cd   :  { %v5546_v45 = vmul.f32 %v10404_v23, %v5545_v40  ;;  %v5530_v3 = vsub.f32 1.0, %v5529_v1 }
0x14ce   :  { %5664 = vmatpush.msra.mxu1 %v9933_v48 }
0x14cf   :  { %v5547_v60 = vadd.f32 %v10404_v23, %v5546_v45  ;;  %v5531_v7 = vmul.f32 %v10406_v61, %v5530_v3 }
0x14d0   :  { %v10408_v27 = vpop.eup %10407  ;;  %5665 = vmatpush.msra.mxu1 %v9934_v11 }
0x14d1   :  { %v5551_v12 = vsel %vm5550_vm9, %v10404_v23, %v5547_v60  ;;  %v5559_v28 = vmul.f32 %v10408_v27, %v5476_v37  ;;  %9614 = vmatmul.msk.f32.vlgmr.msra.gmra.mxu1 %vm587_vm6, %v5527_v26  ;;  %v5532_v36 = vadd.f32 %v10406_v61, %v5531_v7  ;;  %vm5564_vm14 = vweird.f32 %v10408_v27 }
0x14d2   :  { %v5556_v56 = vsel %vm5553_vm10, %v5555_v16, %v5551_v12  ;;  %v5567_v23 = vand.u32 2147483647, %v5476_v37  ;;  %vm5565_vm1 = vmor %vm5563_vm15, %vm5564_vm14 }
0x14d3   :  { %v5557_v63 = vmul.f32 %v12762_v4, %v5556_v56  ;;  %v5560_v29 = vsub.f32 1.0, %v5559_v28  ;;  %v5536_v17 = vsel %vm5535_vm12, %v10406_v61, %v5532_v36  ;;  %v5570_v4 = vor.u32 1.1754944e-38, %v5569_v20 }
0x14d4   :  { %v5541_v34 = vsel %vm5538_vm13, %v5540_v49, %v5536_v17  ;;  %v3073_v61 = vsel %vm37_vm0, %v12816_v46, 0.0  ;;  %vm5568_vm2 = vcmp.eq.f32.partialorder %v5567_v23, 8.507059e+37 }
0x14d5   :  { %v5561_v57 = vmul.f32 %v10408_v27, %v5560_v29  ;;  %9616 = vmatmul.msk.f32.vlgmr.msra.gmra.mxu2 %vm587_vm6, %v5557_v63  ;;  %v5542_v52 = vmul.f32 %v12766_v32, %v5541_v34  ;;  %v5752_v34 = vpop.permute.xlu2 %5751 }
0x14d6   :  { %v5839_v20 = vsel %vm444_vm5, %v12389_v43, %v5752_v34 }
0x14d7   :  { %v5562_v40 = vadd.f32 %v10408_v27, %v5561_v57 }
0x14d8   :  { %v5479_v1 = vpop.xlane.xlu0 %5478 }
0x14d9   :  { %10409 = vrcp.f32 %v5479_v1  ;;  %9615 = vmatmul.msk.f32.gmra.mxu1 %vm587_vm6, %v5542_v52  ;;  %v5566_v54 = vsel %vm5565_vm1, %v10408_v27, %v5562_v40  ;;  %v5584_v45 = vand.u32 2147483648, %v5479_v1  ;;  %v5582_v26 = vand.u32 2147483647, %v5479_v1 }
0x14da   :  { %v5571_v0 = vsel %vm5568_vm2, %v5570_v4, %v5566_v54  ;;  %vm5578_vm8 = vweird.f32 %v5479_v1 }
0x14db   :  { %3074 = vadd.xlane.f32.xlu0 %v3073_v61  ;;  %v5572_v2 = vmul.f32 %v12770_v41, %v5571_v0  ;;  %v5585_v7 = vor.u32 1.1754944e-38, %v5584_v45  ;;  %vm5583_vm10 = vcmp.eq.f32.partialorder %v5582_v26, 8.507059e+37 }
0x14dd   :  { %9617 = vmatmul.msk.f32.gmra.mxu2 %vm587_vm6, %v5572_v2  ;;  %v5754_v0 = vpop.permute.xlu2 %5753 }
0x14df   :  { %v10410_v32 = vpop.eup %10409 }
0x14e0   :  { %v5574_v25 = vmul.f32 %v10410_v32, %v5479_v1  ;;  %v5482_v37 = vpop.xlane.xlu0 %5481  ;;  %vm5579_vm4 = vweird.f32 %v10410_v32 }
0x14e1   :  { %10411 = vrcp.f32 %v5482_v37  ;;  %vm5580_vm9 = vmor %vm5578_vm8, %vm5579_vm4  ;;  %v5599_v28 = vand.u32 2147483648, %v5482_v37  ;;  %v5597_v21 = vand.u32 2147483647, %v5482_v37  ;;  %vm5593_vm12 = vweird.f32 %v5482_v37 }
0x14e2   :  { %v5575_v48 = vsub.f32 1.0, %v5574_v25  ;;  %v5840_v25 = vsel %vm444_vm5, %v12393_v62, %v5754_v0  ;;  %v10677_v0 = vld [vmem:[%s14547_s0 + $0x40] sm:$0xff] }
0x14e3   :  { %v5600_v49 = vor.u32 1.1754944e-38, %v5599_v28  ;;  %vm5598_vm14 = vcmp.eq.f32.partialorder %v5597_v21, 8.507059e+37 }
0x14e4   :  { %v5576_v3 = vmul.f32 %v10410_v32, %v5575_v48  ;;  %v5632_v35 = vpop.f32.mrf.mxu0 }
0x14e5   :  { %5815 = vrot.lane.b32.xlu1 %v5632_v35, %s10729_s16 }
0x14e6   :  { %v5577_v11 = vadd.f32 %v10410_v32, %v5576_v3 }
0x14e7   :  { %v10412_v60 = vpop.eup %10411 }
0x14e8   :  { %v5581_v41 = vsel %vm5580_vm9, %v10410_v32, %v5577_v11  ;;  %v5589_v55 = vmul.f32 %v10412_v60, %v5482_v37  ;;  %vm5594_vm11 = vweird.f32 %v10412_v60 }
0x14e9   :  { %v5586_v27 = vsel %vm5583_vm10, %v5585_v7, %v5581_v41  ;;  %vm5595_vm13 = vmor %vm5593_vm12, %vm5594_vm11  ;;  %v3046_v7 = vadd.f32 %v12807_v19, %v12232_v13 }
0x14ea   :  { %v5587_v16 = vmul.f32 %v12775_v5, %v5586_v27  ;;  %v5590_v12 = vsub.f32 1.0, %v5589_v55  ;;  %v5866_v5 = vld [vmem:[#allocation2 + $0x130] sm:$0xff]  ;;  %v3049_v27 = vadd.f32 %v12807_v19, %v12234_v18 }
0x14eb   :  { %5905 = vmatpush.msrb.mxu0 %v5866_v5  ;;  %v12870_v55 = vadd.f32 %v3046_v7, %v11829_v59  ;;  %v14578_v7 = vld [vmem:[#allocation10_spill] sm:$0xff] }
0x14ec   :  { %v5591_v36 = vmul.f32 %v10412_v60, %v5590_v12  ;;  %9618 = vmatmul.msk.f32.vlgmr.msra.gmra.mxu3 %vm587_vm6, %v5587_v16 }
0x14ed   :  { %5785 = vrot.lane.b32.xlu1 %v12679_v50, %s10728_s14  ;;  %v3079_v16 = vsel %vm37_vm0, %v12870_v55, 0.0 }
0x14ee   :  { %v5592_v56 = vadd.f32 %v10412_v60, %v5591_v36  ;;  %v12878_v36 = vadd.f32 %v3049_v27, %v11837_v6  ;;  %v14579_v27 = vld [vmem:[#allocation7_spill] sm:$0xff] }
0x14f0   :  { %v5596_v63 = vsel %vm5595_vm13, %v10412_v60, %v5592_v56  ;;  %v3082_v18 = vsel %vm37_vm0, %v12878_v36, 0.0 }
0x14f1   :  { %v5601_v29 = vsel %vm5598_vm14, %v5600_v49, %v5596_v63 }
0x14f2   :  { %v5602_v17 = vmul.f32 %v12783_v53, %v5601_v29  ;;  %v5863_v53 = vld [vmem:[#allocation2 + $0x118] sm:$0xff] }
0x14f3   :  { %v5784_v57 = vpop.permute.xlu0 %5783 }
0x14f4   :  { %9619 = vmatmul.msk.f32.gmra.mxu3 %vm587_vm6, %v5602_v17  ;;  %v5847_v52 = vsel %vm587_vm6, %v5839_v20, %v5784_v57 }
0x14f5   :  { %5787 = vrot.lane.b32.xlu1 %v12721_v30, %s10728_s14  ;;  %v5865_v30 = vld [vmem:[#allocation2 + $0x128] sm:$0xff] }
0x14f6   :  { %5906 = vmatpush.msrb.mxu0 %v5865_v30 }
0x14fb   :  { %v5756_v4 = vpop.permute.xlu0 %5755 }
0x14fc   :  { %v5841_v13 = vsel %vm444_vm5, %v12407_v51, %v5756_v4 }
0x14fd   :  { %5789 = vrot.lane.b32.xlu1 %v12725_v31, %s10728_s14  ;;  %v5864_v31 = vld [vmem:[#allocation2 + $0x120] sm:$0xff] }
0x14fe   :  { %5907 = vmatpush.msrb.mxu0 %v5864_v31 }
0x1500   :  { %5908 = vmatpush.msrb.mxu0 %v5863_v53 }
0x1503   :  { %v5758_v43 = vpop.permute.xlu0 %5757 }
0x1504   :  { %v5842_v51 = vsel %vm444_vm5, %v12410_v42, %v5758_v43  ;;  %v12924_v43 = vld [vmem:[#allocation2 + $0x138] ss:$0 sm:$0xff] }
0x1505   :  { %5791 = vrot.lane.b32.xlu1 %v12730_v8, %s10728_s14  ;;  %v3043_v8 = vadd.f32 %v12807_v19, %v12230_v39 }
0x150b   :  { %v5760_v32 = vpop.permute.xlu0 %5759 }
0x150c   :  { %v5843_v30 = vsel %vm444_vm5, %v12418_v14, %v5760_v32 }
0x150d   :  { %5793 = vrot.lane.b32.xlu1 %v12734_v33, %s10728_s14  ;;  %v12847_v33 = vadd.f32 %v3043_v8, %v11772_v9 }
0x1513   :  { %v5762_v26 = vpop.permute.xlu0 %5761 }
0x1514   :  { %v5844_v57 = vsel %vm444_vm5, %v12425_v24, %v5762_v26 }
0x1515   :  { %5795 = vrot.lane.b32.xlu1 %v12738_v38, %s10728_s14  ;;  %v3076_v38 = vsel %vm37_vm0, %v12847_v33, 0.0 }
0x151b   :  { %v5764_v11 = vpop.permute.xlu0 %5763 }
0x151d   :  { %5797 = vrot.lane.b32.xlu1 %v12741_v44, %s10728_s14 }
0x1523   :  { %v5766_v41 = vpop.permute.xlu0 %5765 }
0x1524   :  { %v5635_v50 = vpop.f32.mrf.mxu0  ;;  %v5846_v24 = vsel %vm444_vm5, %v12401_v58, %v5766_v41  ;;  %v3052_v58 = vadd.f32 %v12807_v19, %v12236_v10  ;;  %v3058_v41 = vadd.f32 %v12807_v19, %v14578_v7 }
0x1525   :  { %5817 = vrot.lane.b32.xlu2 %v5635_v50, %s10729_s16 }
0x1547   :  { %3077 = vadd.xlane.f32.xlu1 %v3076_v38 }
0x154e   :  { %v5667_v44 = vpop.f32.mrf.mxu1  ;;  %v3075_v12 = vpop.xlane.xlu0 %3074 }
0x154f   :  { %5819 = vrot.lane.b32.xlu2 %v5667_v44, %s10729_s16  ;;  %v3097_v28 = vmul.f32 %v3075_v12, %v10781_v22  ;;  %v14580_v12 = vld [vmem:[#allocation11_spill] sm:$0xff] }
0x1551   :  { %v12883_v59 = vsub.f32 %v12816_v46, %v3097_v28  ;;  %v3061_v28 = vadd.f32 %v12807_v19, %v14580_v12 }
0x1553   :  { %v3113_v6 = vmul.f32 %v12883_v59, %v12883_v59 }
0x1555   :  { %v3121_v46 = vsel %vm37_vm0, %v3113_v6, 0.0 }
0x1556   :  { %v5670_v23 = vpop.f32.mrf.mxu1 }
0x1557   :  { %v5816_v40 = vpop.permute.xlu1 %5815  ;;  %5821 = vrot.lane.b32.xlu2 %v5670_v23, %s10729_s16 }
0x1558   :  { %v5855_v9 = vsel %vm2496_vm3, %v5847_v52, %v5816_v40  ;;  %v5702_v39 = vpop.f32.mrf.mxu2 }
0x1559   :  { %9620 = vmatmul.msk.f32.vlgmr.msrb.gmra.mxu0 %vm37_vm0, %v5855_v9 }
0x155f   :  { %5823 = vrot.lane.b32.xlu2 %v5702_v39, %s10729_s16  ;;  %v5786_v54 = vpop.permute.xlu1 %5785 }
0x1560   :  { %v5705_v1 = vpop.f32.mrf.mxu2  ;;  %v5848_v37 = vsel %vm587_vm6, %v5840_v25, %v5786_v54  ;;  %v3067_v25 = vadd.f32 %v3052_v58, %v11857_v15  ;;  %v14577_v15 = vld [vmem:[#allocation6_spill] sm:$0xff] }
0x1567   :  { %5825 = vrot.lane.b32.xlu2 %v5705_v1, %s10729_s16  ;;  %v5788_v45 = vpop.permute.xlu1 %5787 }
0x1568   :  { %v5849_v56 = vsel %vm587_vm6, %v5841_v13, %v5788_v45 }
0x156f   :  { %v5737_v61 = vpop.f32.mrf.mxu3  ;;  %v5790_v35 = vpop.permute.xlu1 %5789 }
0x1570   :  { %5827 = vrot.lane.b32.xlu2 %v5737_v61, %s10729_s16  ;;  %v5850_v29 = vsel %vm587_vm6, %v5842_v51, %v5790_v35  ;;  %v14576_v35 = vld [vmem:[#allocation9_spill] sm:$0xff] }
0x1571   :  { %v3055_v10 = vadd.f32 %v12807_v19, %v14576_v35 }
0x1577   :  { %v5740_v2 = vpop.f32.mrf.mxu3  ;;  %v5792_v60 = vpop.permute.xlu1 %5791 }
0x1578   :  { %5829 = vrot.lane.b32.xlu2 %v5740_v2, %s10729_s16  ;;  %v5851_v31 = vsel %vm587_vm6, %v5843_v30, %v5792_v60  ;;  %v3068_v60 = vadd.f32 %v3055_v10, %v14577_v15 }
0x157f   :  { %v5818_v48 = vpop.permute.xlu2 %5817  ;;  %v5794_v62 = vpop.permute.xlu1 %5793 }
0x1580   :  { %v5856_v3 = vsel %vm2496_vm3, %v5848_v37, %v5818_v48  ;;  %v5852_v14 = vsel %vm587_vm6, %v5844_v57, %v5794_v62  ;;  %v3085_v37 = vsel %vm37_vm0, %v3067_v25, 0.0  ;;  %v3088_v62 = vsel %vm37_vm0, %v3068_v60, 0.0 }
0x1581   :  { %9621 = vmatmul.msk.f32.gmra.mxu0 %vm37_vm0, %v5856_v3  ;;  %v10678_v3 = vld [vmem:[%s14547_s0 + $0x48] sm:$0xff] }
0x1587   :  { %v5796_v21 = vpop.permute.xlu1 %5795 }
0x158f   :  { %v5798_v50 = vpop.permute.xlu1 %5797 }
0x1590   :  { %v5854_v1 = vsel %vm587_vm6, %v5846_v24, %v5798_v50 }
0x15a1   :  { %3080 = vadd.xlane.f32.xlu2 %v3079_v16  ;;  %v12954_v16 = vadd.f32 %v3058_v41, %v14579_v27  ;;  %v6267_v27 = vld [vmem:[#allocation2 + $0x148] sm:$0xff] }
0x15a3   :  { %v3091_v13 = vsel %vm37_vm0, %v12954_v16, 0.0 }
0x15a9   :  { %3083 = vadd.xlane.f32.xlu2 %v3082_v18  ;;  %v5820_v49 = vpop.permute.xlu2 %5819 }
0x15aa   :  { %v5857_v63 = vsel %vm2496_vm3, %v5849_v56, %v5820_v49  ;;  %v14581_v49 = vld [vmem:[#allocation8_spill] sm:$0xff] }
0x15ab   :  { %9622 = vmatmul.msk.f32.gmra.mxu0 %vm37_vm0, %v5857_v63  ;;  %v12965_v63 = vadd.f32 %v3061_v28, %v14581_v49  ;;  %v6266_v28 = vld [vmem:[#allocation2 + $0x140] sm:$0xff] }
0x15ad   :  { %v3094_v19 = vsel %vm37_vm0, %v12965_v63, 0.0 }
0x15b1   :  { %3122 = vadd.xlane.f32.xlu2 %v3121_v46  ;;  %v5822_v17 = vpop.permute.xlu2 %5821 }
0x15b2   :  { %v5858_v5 = vsel %vm2496_vm3, %v5850_v29, %v5822_v17 }
0x15b3   :  { %9623 = vmatmul.msk.f32.gmra.mxu0 %vm37_vm0, %v5858_v5 }
0x15b9   :  { %v5824_v53 = vpop.permute.xlu2 %5823 }
0x15ba   :  { %v5859_v8 = vsel %vm2496_vm3, %v5851_v31, %v5824_v53  ;;  %v3078_v42 = vpop.xlane.xlu1 %3077  ;;  %v10679_v31 = vld [vmem:[%s14547_s0 + $0x50] sm:$0xff] }
0x15bb   :  { %v3098_v38 = vmul.f32 %v3078_v42, %v10781_v22  ;;  %9624 = vmatmul.msk.f32.gmra.mxu0 %vm37_vm0, %v5859_v8 }
0x15bd   :  { %v12905_v44 = vsub.f32 %v12847_v33, %v3098_v38  ;;  %v5845_v33 = vsel %vm444_vm5, %v12399_v47, %v5764_v11 }
0x15be   :  { %v5853_v40 = vsel %vm587_vm6, %v5845_v33, %v5796_v21 }
0x15bf   :  { %v3114_v34 = vmul.f32 %v12905_v44, %v12905_v44 }
0x15c1   :  { %v5826_v20 = vpop.permute.xlu2 %5825  ;;  %v3124_v23 = vsel %vm37_vm0, %v3114_v34, 0.0 }
0x15c2   :  { %v5860_v52 = vsel %vm2496_vm3, %v5852_v14, %v5826_v20  ;;  %3125 = vadd.xlane.f32.xlu2 %v3124_v23 }
0x15c3   :  { %9625 = vmatmul.msk.f32.gmra.mxu0 %vm37_vm0, %v5860_v52  ;;  %v6269_v52 = vld [vmem:[#allocation2 + $0x158] sm:$0xff] }
0x15c4   :  { %6308 = vmatpush.msrb.mxu1 %v6269_v52 }
0x15ca   :  { %v5828_v9 = vpop.permute.xlu2 %5827 }
0x15cb   :  { %v5861_v39 = vsel %vm2496_vm3, %v5853_v40, %v5828_v9  ;;  %v6268_v40 = vld [vmem:[#allocation2 + $0x150] sm:$0xff] }
0x15cc   :  { %9626 = vmatmul.msk.f32.gmra.mxu0 %vm37_vm0, %v5861_v39  ;;  %6309 = vmatpush.msrb.mxu1 %v6268_v40  ;;  %v9945_v39 = vpack.i.bf16 %v6268_v40, %v6269_v52  ;;  %v10684_v40 = vld [vmem:[%s14547_s0 + $0x78] sm:$0xff] }
0x15ce   :  { %6310 = vmatpush.msrb.mxu1 %v6267_v27 }
0x15d0   :  { %6311 = vmatpush.msrb.mxu1 %v6266_v28 }
0x15d2   :  { %v5830_v4 = vpop.permute.xlu2 %5829 }
0x15d3   :  { %v5862_v61 = vsel %vm2496_vm3, %v5854_v1, %v5830_v4 }
0x15d4   :  { %9627 = vmatmul.msk.f32.gmra.mxu0 %vm37_vm0, %v5862_v61 }
0x15d6   :  { %v5910_v47 = vpop.f32.mrf.mxu0 }
0x15d7   :  { %v5911_v54 = vadd.f32 %v12924_v43, %v5910_v47 }
0x15d9   :  { %v12931_v2 = vadd.f32 %v10677_v0, %v5911_v54 }
0x15db   :  { %v5944_v32 = vsel %vm37_vm0, %v12931_v2, 0.0 }
0x15dc   :  { %5945 = vadd.xlane.f32.xlu0 %v5944_v32 }
0x15e4   :  { %3086 = vadd.xlane.f32.xlu0 %v3085_v37 }
0x15fe   :  { %v5913_v48 = vpop.f32.mrf.mxu0 }
0x15ff   :  { %v5914_v45 = vadd.f32 %v12924_v43, %v5913_v48 }
0x1601   :  { %v12943_v26 = vadd.f32 %v10678_v3, %v5914_v45 }
0x1603   :  { %v5947_v11 = vsel %vm37_vm0, %v12943_v26, 0.0 }
0x1604   :  { %5948 = vadd.xlane.f32.xlu1 %v5947_v11  ;;  %v10680_v11 = vld [vmem:[%s14547_s0 + $0x58] sm:$0xff] }
0x160c   :  { %3089 = vadd.xlane.f32.xlu1 %v3088_v62 }
0x1614   :  { %v3081_v21 = vpop.xlane.xlu2 %3080  ;;  %3092 = vadd.xlane.f32.xlu1 %v3091_v13  ;;  %v10681_v13 = vld [vmem:[%s14547_s0 + $0x60] sm:$0xff] }
0x1615   :  { %v3099_v18 = vmul.f32 %v3081_v21, %v10781_v22 }
0x1617   :  { %v12962_v56 = vsub.f32 %v12870_v55, %v3099_v18 }
0x1619   :  { %v3115_v6 = vmul.f32 %v12962_v56, %v12962_v56 }
0x161b   :  { %v3127_v51 = vsel %vm37_vm0, %v3115_v6, 0.0 }
0x161c   :  { %3128 = vadd.xlane.f32.xlu2 %v3127_v51  ;;  %v3084_v46 = vpop.xlane.xlu2 %3083  ;;  %3095 = vadd.xlane.f32.xlu1 %v3094_v19 }
0x161d   :  { %v3100_v29 = vmul.f32 %v3084_v46, %v10781_v22 }
0x161f   :  { %v12974_v17 = vsub.f32 %v12878_v36, %v3100_v29  ;;  %v10682_v29 = vld [vmem:[%s14547_s0 + $0x68] sm:$0xff] }
0x1621   :  { %v3116_v55 = vmul.f32 %v12974_v17, %v12974_v17 }
0x1623   :  { %v3130_v50 = vsel %vm37_vm0, %v3116_v55, 0.0 }
0x1624   :  { %3131 = vadd.xlane.f32.xlu2 %v3130_v50  ;;  %v13008_v0 = vpop.xlane.xlu2 %3122 }
0x1628   :  { %v5916_v5 = vpop.f32.mrf.mxu0 }
0x1629   :  { %v5917_v30 = vadd.f32 %v12924_v43, %v5916_v5 }
0x162b   :  { %v12983_v53 = vadd.f32 %v10679_v31, %v5917_v30 }
0x162d   :  { %v5950_v8 = vsel %vm37_vm0, %v12983_v53, 0.0 }
0x162e   :  { %5951 = vadd.xlane.f32.xlu2 %v5950_v8  ;;  %v10683_v8 = vld [vmem:[%s14547_s0 + $0x70] sm:$0xff] }
0x1630   :  { %v5919_v61 = vpop.f32.mrf.mxu0 }
0x1631   :  { %v5920_v45 = vadd.f32 %v12924_v43, %v5919_v61 }
0x1633   :  { %v13024_v15 = vadd.f32 %v10680_v11, %v5920_v45 }
0x1635   :  { %v13017_v35 = vpop.xlane.xlu2 %3125  ;;  %v5953_v7 = vsel %vm37_vm0, %v13024_v15, 0.0 }
0x1638   :  { %v5922_v48 = vpop.f32.mrf.mxu0 }
0x1640   :  { %v5925_v41 = vpop.f32.mrf.mxu0 }
0x1641   :  { %v5926_v49 = vadd.f32 %v12924_v43, %v5925_v41 }
0x1643   :  { %v13048_v55 = vadd.f32 %v10682_v29, %v5926_v49 }
0x1645   :  { %14583 = vst [vmem:[#allocation6_spill] sm:$0xff] %v13048_v55  ;;  %v5959_v30 = vsel %vm37_vm0, %v13048_v55, 0.0 }
0x1649   :  { %v5928_v19 = vpop.f32.mrf.mxu0 }
0x164a   :  { %v5929_v5 = vadd.f32 %v12924_v43, %v5928_v19 }
0x164f   :  { %v5946_v36 = vpop.xlane.xlu0 %5945 }
0x1650   :  { %v5968_v42 = vmul.f32 %v5946_v36, %v10781_v22  ;;  %v13059_v36 = vadd.f32 %v10683_v8, %v5929_v5 }
0x1652   :  { %v12989_v38 = vsub.f32 %v12931_v2, %v5968_v42  ;;  %14584 = vst [vmem:[#allocation10_spill] sm:$0xff] %v13059_v36 }
0x1654   :  { %v5984_v34 = vmul.f32 %v12989_v38, %v12989_v38 }
0x1656   :  { %v5992_v57 = vsel %vm37_vm0, %v5984_v34, 0.0  ;;  %v5931_v34 = vpop.f32.mrf.mxu0 }
0x1657   :  { %5993 = vadd.xlane.f32.xlu1 %v5992_v57  ;;  %v3087_v14 = vpop.xlane.xlu0 %3086 }
0x1658   :  { %v3101_v20 = vmul.f32 %v3087_v14, %v10781_v22  ;;  %v5932_v14 = vadd.f32 %v12924_v43, %v5931_v34 }
0x165a   :  { %v12995_v23 = vsub.f32 %v3067_v25, %v3101_v20  ;;  %v5962_v20 = vsel %vm37_vm0, %v13059_v36, 0.0 }
0x165c   :  { %v3117_v33 = vmul.f32 %v12995_v23, %v12995_v23 }
0x165e   :  { %v3133_v9 = vsel %vm37_vm0, %v3117_v33, 0.0 }
0x165f   :  { %3134 = vadd.xlane.f32.xlu2 %v3133_v9  ;;  %v13074_v9 = vadd.f32 %v10684_v40, %v5932_v14  ;;  %v13093_v40 = vld [vmem:[#allocation2 + $0x210] ss:$0 sm:$0xff] }
0x1661   :  { %14585 = vst [vmem:[#allocation7_spill] sm:$0xff] %v13074_v9 }
0x1677   :  { %v5949_v24 = vpop.xlane.xlu1 %5948  ;;  %9946 = vrot.lane.b32.xlu2 %v9945_v39, %s10717_s3  ;;  %v5965_v39 = vsel %vm37_vm0, %v13074_v9, 0.0 }
0x1678   :  { %v5969_v1 = vmul.f32 %v5949_v24, %v10781_v22 }
0x167a   :  { %v13003_v4 = vsub.f32 %v12943_v26, %v5969_v1 }
0x167c   :  { %v5985_v47 = vmul.f32 %v13003_v4, %v13003_v4 }
0x167e   :  { %v5995_v54 = vsel %vm37_vm0, %v5985_v47, 0.0 }
0x167f   :  { %v3090_v58 = vpop.xlane.xlu1 %3089  ;;  %5996 = vadd.xlane.f32.xlu1 %v5995_v54 }
0x1680   :  { %v3102_v32 = vmul.f32 %v3090_v58, %v10781_v22 }
0x1682   :  { %v13011_v25 = vsub.f32 %v3068_v60, %v3102_v32  ;;  %v5923_v60 = vadd.f32 %v12924_v43, %v5922_v48  ;;  %v9950_v43 = vpack.i.bf16 %v6266_v28, %v6267_v27  ;;  %v13084_v27 = vmul.f32 0.032258064, %v13017_v35 }
0x1684   :  { %v3118_v37 = vmul.f32 %v13011_v25, %v13011_v25  ;;  %v13034_v21 = vadd.f32 %v10681_v13, %v5923_v60  ;;  %vm3172_vm14 = vcmp.eq.f32.partialorder %v13084_v27, inf }
0x1686   :  { %v3136_v3 = vsel %vm37_vm0, %v3118_v37, 0.0  ;;  %14582 = vst [vmem:[#allocation9_spill] sm:$0xff] %v13034_v21  ;;  %v5956_v6 = vsel %vm37_vm0, %v13034_v21, 0.0  ;;  %v13080_v37 = vmul.f32 0.032258064, %v13008_v0 }
0x1687   :  { %v13019_v10 = vpop.xlane.xlu1 %3092  ;;  %3137 = vadd.xlane.f32.xlu0 %v3136_v3 }
0x1688   :  { %vm3160_vm10 = vcmp.eq.f32.partialorder %v13080_v37, inf  ;;  %vm3162_vm11 = vcmp.eq.f32.partialorder %v13080_v37, 0.0 }
0x168f   :  { %v13029_v62 = vpop.xlane.xlu2 %3128  ;;  %5954 = vadd.xlane.f32.xlu0 %v5953_v7  ;;  %v3096_v12 = vpop.xlane.xlu1 %3095 }
0x1690   :  { %v3104_v18 = vmul.f32 %v3096_v12, %v10781_v22  ;;  %v13089_v19 = vmul.f32 0.032258064, %v13029_v62 }
0x1692   :  { %v13041_v51 = vsub.f32 %v12965_v63, %v3104_v18 }
0x1694   :  { %v3120_v50 = vmul.f32 %v13041_v51, %v13041_v51 }
0x1696   :  { %v3142_v63 = vsel %vm37_vm0, %v3120_v50, 0.0 }
0x1697   :  { %5957 = vadd.xlane.f32.xlu0 %v5956_v6  ;;  %v13043_v46 = vpop.xlane.xlu2 %3131 }
0x169f   :  { %5960 = vadd.xlane.f32.xlu0 %v5959_v30 }
0x16a0   :  { %3143 = vadd.xlane.f32.xlu2 %v3142_v63 }
0x16a1   :  { %v5952_v31 = vpop.xlane.xlu2 %5951 }
0x16a2   :  { %v5970_v42 = vmul.f32 %v5952_v31, %v10781_v22 }
0x16a4   :  { %v13063_v57 = vsub.f32 %v12983_v53, %v5970_v42 }
0x16a6   :  { %v5986_v52 = vmul.f32 %v13063_v57, %v13063_v57 }
0x16a7   :  { %5963 = vadd.xlane.f32.xlu0 %v5962_v20 }
0x16a8   :  { %v5998_v33 = vsel %vm37_vm0, %v5986_v52, 0.0 }
0x16a9   :  { %5999 = vadd.xlane.f32.xlu1 %v5998_v33 }
0x16af   :  { %5966 = vadd.xlane.f32.xlu0 %v5965_v39 }
0x16c3   :  { %9951 = vrot.lane.b32.xlu0 %v9950_v43, %s10717_s3  ;;  %v13096_v43 = vld [vmem:[#allocation2 + $0x218] ss:$0 sm:$0xff] }
0x16ca   :  { %v5994_v24 = vpop.xlane.xlu1 %5993 }
0x16cb   :  { %v6016_v1 = vmul.f32 0.032258064, %v5994_v24 }
0x16cd   :  { %10413 = vrsqrt.f32 %v6016_v1  ;;  %vm6031_vm15 = vcmp.eq.f32.partialorder %v6016_v1, inf  ;;  %v6034_v3 = vand.u32 2147483648, %v6016_v1  ;;  %vm6033_vm1 = vcmp.eq.f32.partialorder %v6016_v1, 0.0 }
0x16ce   :  { %10415 = vrsqrt.f32 %v13080_v37 }
0x16d2   :  { %v3135_v28 = vpop.xlane.xlu2 %3134 }
0x16d3   :  { %v10414_v61 = vpop.eup %10413 }
0x16d4   :  { %v6025_v47 = vmul.f32 %v10414_v61, %v6016_v1  ;;  %v10416_v41 = vpop.eup %10415 }
0x16d5   :  { %v3154_v12 = vmul.f32 %v10416_v41, %v13080_v37 }
0x16d6   :  { %v6026_v54 = vmul.f32 %v10414_v61, %v6025_v47 }
0x16d7   :  { %v3155_v18 = vmul.f32 %v10416_v41, %v3154_v12 }
0x16d8   :  { %v6027_v58 = vmul.f32 0.5, %v6026_v54  ;;  %v13100_v54 = vmul.f32 0.032258064, %v13043_v46 }
0x16d9   :  { %v3156_v5 = vmul.f32 0.5, %v3155_v18 }
0x16da   :  { %v6028_v32 = vsub.f32 1.5, %v6027_v58  ;;  %v9947_v30 = vpop.permute.xlu2 %9946 }
0x16db   :  { %v9949_v31 = vunpack.i.h.bf16 %v9947_v30  ;;  %v9948_v8 = vunpack.i.l.bf16 %v9947_v30  ;;  %v3157_v62 = vsub.f32 1.5, %v3156_v5 }
0x16dc   :  { %v6029_v48 = vmul.f32 %v10414_v61, %v6028_v32 }
0x16dd   :  { %6393 = vmatpush.msrb.mxu2 %v9948_v8  ;;  %v3158_v24 = vmul.f32 %v10416_v41, %v3157_v62 }
0x16de   :  { %v6030_v45 = vmul.f32 %v6029_v48, %v6016_v1 }
0x16df   :  { %6394 = vmatpush.msrb.mxu2 %v9949_v31  ;;  %v3103_v31 = vmul.f32 %v13019_v10, %v10781_v22 }
0x16e0   :  { %v6032_v11 = vsel %vm6031_vm15, %v6016_v1, %v6030_v45  ;;  %v3159_v45 = vmul.f32 %v3158_v24, %v13080_v37  ;;  %vm3174_vm15 = vcmp.eq.f32.partialorder %v13084_v27, 0.0 }
0x16e1   :  { %v6035_v60 = vsel %vm6033_vm1, %v6034_v3, %v6032_v11  ;;  %v13127_v10 = vsub.f32 %v12954_v16, %v3103_v31  ;;  %v3175_v16 = vand.u32 2147483648, %v13084_v27  ;;  %vm3184_vm1 = vcmp.eq.f32.partialorder %v13089_v19, inf }
0x16e2   :  { %v6120_v7 = vadd.f32 1e-06, %v6035_v60  ;;  %v3161_v46 = vsel %vm3160_vm10, %v13080_v37, %v3159_v45 }
0x16e4   :  { %10417 = vrcp.f32 %v6120_v7  ;;  %v6139_v6 = vand.u32 2147483648, %v6120_v7  ;;  %v6137_v50 = vand.u32 2147483647, %v6120_v7  ;;  %vm6133_vm4 = vweird.f32 %v6120_v7 }
0x16e5   :  { %10419 = vrsqrt.f32 %v13084_v27 }
0x16e6   :  { %v6140_v34 = vor.u32 1.1754944e-38, %v6139_v6  ;;  %10421 = vrsqrt.f32 %v13089_v19  ;;  %vm6138_vm9 = vcmp.eq.f32.partialorder %v6137_v50, 8.507059e+37 }
0x16ea   :  { %v10418_v0 = vpop.eup %10417 }
0x16eb   :  { %v6129_v13 = vmul.f32 %v10418_v0, %v6120_v7  ;;  %vm6134_vm2 = vweird.f32 %v10418_v0  ;;  %v10420_v35 = vpop.eup %10419 }
0x16ec   :  { %vm6135_vm8 = vmor %vm6133_vm4, %vm6134_vm2  ;;  %v3166_v52 = vmul.f32 %v10420_v35, %v13084_v27  ;;  %v10422_v47 = vpop.eup %10421  ;;  %vm3186_vm2 = vcmp.eq.f32.partialorder %v13089_v19, 0.0 }
0x16ed   :  { %v6130_v49 = vsub.f32 1.0, %v6129_v13  ;;  %v3178_v11 = vmul.f32 %v10422_v47, %v13089_v19 }
0x16ee   :  { %v3167_v1 = vmul.f32 %v10420_v35, %v3166_v52 }
0x16ef   :  { %v6131_v29 = vmul.f32 %v10418_v0, %v6130_v49  ;;  %v3179_v41 = vmul.f32 %v10422_v47, %v3178_v11  ;;  %v3119_v11 = vmul.f32 %v13127_v10, %v13127_v10 }
0x16f0   :  { %v3168_v3 = vmul.f32 0.5, %v3167_v1 }
0x16f1   :  { %v6132_v63 = vadd.f32 %v10418_v0, %v6131_v29  ;;  %v13111_v29 = vmul.f32 0.032258064, %v3135_v28  ;;  %v3180_v30 = vmul.f32 0.5, %v3179_v41  ;;  %v3139_v41 = vsel %vm37_vm0, %v3119_v11, 0.0 }
0x16f2   :  { %v5997_v42 = vpop.xlane.xlu1 %5996  ;;  %v3169_v7 = vsub.f32 1.5, %v3168_v3 }
0x16f3   :  { %v6017_v14 = vmul.f32 0.032258064, %v5997_v42  ;;  %v6136_v20 = vsel %vm6135_vm8, %v10418_v0, %v6132_v63  ;;  %v3163_v0 = vand.u32 2147483648, %v13080_v37  ;;  %v3181_v62 = vsub.f32 1.5, %v3180_v30 }
0x16f4   :  { %v6141_v33 = vsel %vm6138_vm9, %v6140_v34, %v6136_v20  ;;  %v3170_v5 = vmul.f32 %v10420_v35, %v3169_v7 }
0x16f5   :  { %10423 = vrsqrt.f32 %v6017_v14  ;;  %v6142_v39 = vmul.f32 %v6141_v33, %v12989_v38  ;;  %v3164_v6 = vsel %vm3162_vm11, %v3163_v0, %v3161_v46  ;;  %vm6043_vm12 = vcmp.eq.f32.partialorder %v6017_v14, inf }
0x16f6   :  { %10425 = vrsqrt.f32 %v13100_v54  ;;  %v13119_v42 = vadd.f32 1e-06, %v3164_v6  ;;  %v6046_v28 = vand.u32 2147483648, %v6017_v14  ;;  %v3171_v20 = vmul.f32 %v3170_v5, %v13084_v27 }
0x16f7   :  { %v6249_v61 = vmul.f32 %v13093_v40, %v6142_v39  ;;  %10427 = vrsqrt.f32 %v13111_v29  ;;  %vm6045_vm13 = vcmp.eq.f32.partialorder %v6017_v14, 0.0  ;;  %v3182_v45 = vmul.f32 %v10422_v47, %v3181_v62 }
0x16f8   :  { %10429 = vrcp.f32 %v13119_v42  ;;  %vm3196_vm11 = vcmp.eq.f32.partialorder %v13100_v54, inf }
0x16f9   :  { %v6258_v32 = vadd.f32 %v13096_v43, %v6249_v61 }
0x16fa   :  { %v3138_v58 = vpop.xlane.xlu0 %3137 }
0x16fb   :  { %v10424_v48 = vpop.eup %10423  ;;  %9628 = vmatmul.msk.f32.vlgmr.msrb.gmra.mxu1 %vm37_vm0, %v6258_v32  ;;  %v13132_v32 = vmul.f32 0.032258064, %v3138_v58 }
0x16fc   :  { %v6037_v38 = vmul.f32 %v10424_v48, %v6017_v14  ;;  %v10426_v49 = vpop.eup %10425 }
0x16fd   :  { %v3190_v37 = vmul.f32 %v10426_v49, %v13100_v54 }
0x16fe   :  { %v6038_v60 = vmul.f32 %v10424_v48, %v6037_v38 }
0x16ff   :  { %v3191_v24 = vmul.f32 %v10426_v49, %v3190_v37 }
0x1700   :  { %v6039_v12 = vmul.f32 0.5, %v6038_v60  ;;  %v3183_v60 = vmul.f32 %v3182_v45, %v13089_v19 }
0x1701   :  { %v3192_v38 = vmul.f32 0.5, %v3191_v24 }
0x1702   :  { %v6040_v13 = vsub.f32 1.5, %v6039_v12  ;;  %v5955_v18 = vpop.xlane.xlu0 %5954  ;;  %v3185_v6 = vsel %vm3184_vm1, %v13089_v19, %v3183_v60  ;;  %vm3208_vm1 = vcmp.eq.f32.partialorder %v13111_v29, inf }
0x1703   :  { %v5971_v50 = vmul.f32 %v5955_v18, %v10781_v22  ;;  %v3193_v0 = vsub.f32 1.5, %v3192_v38 }
0x1704   :  { %v6041_v63 = vmul.f32 %v10424_v48, %v6040_v13  ;;  %v3173_v48 = vsel %vm3172_vm14, %v13084_v27, %v3171_v20  ;;  %vm3262_vm14 = vweird.f32 %v13119_v42 }
0x1705   :  { %v13117_v8 = vsub.f32 %v13024_v15, %v5971_v50  ;;  %v3176_v58 = vsel %vm3174_vm15, %v3175_v16, %v3173_v48 }
0x1706   :  { %v6042_v34 = vmul.f32 %v6041_v63, %v6017_v14  ;;  %v13152_v13 = vadd.f32 1e-06, %v3176_v58  ;;  %v3187_v63 = vand.u32 2147483648, %v13089_v19 }
0x1707   :  { %v5987_v35 = vmul.f32 %v13117_v8, %v13117_v8 }
0x1708   :  { %v6044_v52 = vsel %vm6043_vm12, %v6017_v14, %v6042_v34  ;;  %v13135_v14 = vpop.eup %10427  ;;  %vm3198_vm12 = vcmp.eq.f32.partialorder %v13100_v54, 0.0 }
0x1709   :  { %v6001_v33 = vsel %vm37_vm0, %v5987_v35, 0.0  ;;  %v6047_v39 = vsel %vm6045_vm13, %v6046_v28, %v6044_v52  ;;  %v3202_v47 = vmul.f32 %v13135_v14, %v13111_v29  ;;  %v13146_v46 = vpop.eup %10429  ;;  %v3194_v28 = vmul.f32 %v10426_v49, %v3193_v0 }
0x170a   :  { %6002 = vadd.xlane.f32.xlu1 %v6001_v33  ;;  %v5958_v1 = vpop.xlane.xlu0 %5957  ;;  %v6121_v61 = vadd.f32 1e-06, %v6047_v39  ;;  %v3258_v5 = vmul.f32 %v13146_v46, %v13119_v42  ;;  %v3188_v52 = vsel %vm3186_vm2, %v3187_v63, %v3185_v6  ;;  %vm3263_vm13 = vweird.f32 %v13146_v46 }
0x170b   :  { %v5972_v3 = vmul.f32 %v5958_v1, %v10781_v22  ;;  %v3203_v50 = vmul.f32 %v13135_v14, %v3202_v47  ;;  %v3195_v19 = vmul.f32 %v3194_v28, %v13100_v54  ;;  %vm13217_vm15 = vmor %vm3262_vm14, %vm3263_vm13  ;;  %vm3210_vm2 = vcmp.eq.f32.partialorder %v13111_v29, 0.0 }
0x170c   :  { %10431 = vrcp.f32 %v6121_v61  ;;  %v6154_v35 = vand.u32 2147483648, %v6121_v61  ;;  %v6152_v62 = vand.u32 2147483647, %v6121_v61  ;;  %vm6148_vm8 = vweird.f32 %v6121_v61 }
0x170d   :  { %10433 = vrsqrt.f32 %v13132_v32  ;;  %v13149_v7 = vsub.f32 %v13034_v21, %v5972_v3  ;;  %v3204_v33 = vmul.f32 0.5, %v3203_v50  ;;  %v3259_v16 = vsub.f32 1.0, %v3258_v5 }
0x170e   :  { %10435 = vrcp.f32 %v13152_v13  ;;  %v6155_v45 = vor.u32 1.1754944e-38, %v6154_v35  ;;  %v13174_v3 = vadd.f32 1e-06, %v3188_v52  ;;  %vm6153_vm10 = vcmp.eq.f32.partialorder %v6152_v62, 8.507059e+37 }
0x170f   :  { %v5988_v37 = vmul.f32 %v13149_v7, %v13149_v7  ;;  %v3205_v60 = vsub.f32 1.5, %v3204_v33  ;;  %v3197_v6 = vsel %vm3196_vm11, %v13100_v54, %v3195_v19  ;;  %v3260_v50 = vmul.f32 %v13146_v46, %v3259_v16 }
0x1710   :  { %10437 = vrcp.f32 %v13174_v3  ;;  %v3199_v5 = vand.u32 2147483648, %v13100_v54  ;;  %vm3222_vm13 = vcmp.eq.f32.partialorder %v13132_v32, 0.0 }
0x1711   :  { %v6004_v1 = vsel %vm37_vm0, %v5988_v37, 0.0  ;;  %v3261_v52 = vadd.f32 %v13146_v46, %v3260_v50 }
0x1712   :  { %v10432_v12 = vpop.eup %10431  ;;  %3140 = vadd.xlane.f32.xlu1 %v3139_v41  ;;  %v5961_v27 = vpop.xlane.xlu0 %5960  ;;  %v3200_v35 = vsel %vm3198_vm12, %v3199_v5, %v3197_v6 }
0x1713   :  { %v6144_v18 = vmul.f32 %v10432_v12, %v6121_v61  ;;  %v13159_v30 = vpop.eup %10433  ;;  %v5973_v31 = vmul.f32 %v5961_v27, %v10781_v22  ;;  %vm6149_vm4 = vweird.f32 %v10432_v12  ;;  %v13212_v19 = vadd.f32 1e-06, %v3200_v35 }
0x1714   :  { %v3214_v39 = vmul.f32 %v13159_v30, %v13132_v32  ;;  %vm6150_vm9 = vmor %vm6148_vm8, %vm6149_vm4  ;;  %v13177_v58 = vpop.eup %10435 }
0x1715   :  { %v6145_v34 = vsub.f32 1.0, %v6144_v18  ;;  %v13170_v24 = vsub.f32 %v13048_v55, %v5973_v31  ;;  %v3273_v63 = vmul.f32 %v13177_v58, %v13152_v13  ;;  %v3206_v31 = vmul.f32 %v13135_v14, %v3205_v60 }
0x1716   :  { %v3215_v61 = vmul.f32 %v13159_v30, %v3214_v39  ;;  %v13207_v39 = vpop.eup %10437  ;;  %v3265_v60 = vsel %vm13217_vm15, %v13146_v46, %v3261_v52  ;;  %v3211_v46 = vand.u32 2147483648, %v13111_v29  ;;  %vm3278_vm8 = vweird.f32 %v13177_v58 }
0x1717   :  { %v6146_v20 = vmul.f32 %v10432_v12, %v6145_v34  ;;  %v5989_v18 = vmul.f32 %v13170_v24, %v13170_v24  ;;  %v3274_v33 = vsub.f32 1.0, %v3273_v63 }
0x1718   :  { %v3216_v37 = vmul.f32 0.5, %v3215_v61  ;;  %v3266_v61 = vand.u32 2147483647, %v13119_v42 }
0x1719   :  { %v6147_v48 = vadd.f32 %v10432_v12, %v6146_v20  ;;  %v6007_v28 = vsel %vm37_vm0, %v5989_v18, 0.0  ;;  %v3288_v18 = vmul.f32 %v13207_v39, %v13174_v3 }
0x171a   :  { %6005 = vadd.xlane.f32.xlu1 %v6004_v1  ;;  %v5964_v49 = vpop.xlane.xlu0 %5963  ;;  %v3207_v1 = vmul.f32 %v3206_v31, %v13111_v29  ;;  %vm3267_vm4 = vcmp.eq.f32.partialorder %v3266_v61, 8.507059e+37 }
0x171b   :  { %v5974_v11 = vmul.f32 %v5964_v49, %v10781_v22  ;;  %v6151_v38 = vsel %vm6150_vm9, %v10432_v12, %v6147_v48  ;;  %v3217_v48 = vsub.f32 1.5, %v3216_v37  ;;  %v3283_v37 = vand.u32 2147483648, %v13152_v13 }
0x171c   :  { %v6000_v47 = vpop.xlane.xlu1 %5999  ;;  %v6156_v41 = vsel %vm6153_vm10, %v6155_v45, %v6151_v38  ;;  %v3289_v35 = vsub.f32 1.0, %v3288_v18  ;;  %vm3277_vm9 = vweird.f32 %v13152_v13  ;;  %vm3220_vm10 = vcmp.eq.f32.partialorder %v13132_v32, inf }
0x171d   :  { %v13182_v0 = vsub.f32 %v13059_v36, %v5974_v11  ;;  %v13184_v27 = vmul.f32 0.032258064, %v6000_v47  ;;  %v6157_v12 = vmul.f32 %v6156_v41, %v13003_v4  ;;  %v3268_v11 = vand.u32 2147483648, %v13119_v42  ;;  %vm13250_vm11 = vmor %vm3277_vm9, %vm3278_vm8 }
0x171e   :  { %v3275_v41 = vmul.f32 %v13177_v58, %v3274_v33  ;;  %v3218_v6 = vmul.f32 %v13159_v30, %v3217_v48  ;;  %v3284_v33 = vor.u32 1.1754944e-38, %v3283_v37  ;;  %v3290_v16 = vmul.f32 %v13207_v39, %v3289_v35 }
0x171f   :  { %10439 = vrsqrt.f32 %v13184_v27  ;;  %v5990_v4 = vmul.f32 %v13182_v0, %v13182_v0  ;;  %v6250_v34 = vmul.f32 %v13093_v40, %v6157_v12  ;;  %v3209_v12 = vsel %vm3208_vm1, %v13111_v29, %v3207_v1 }
0x1720   :  { %10441 = vrcp.f32 %v13212_v19  ;;  %v3269_v5 = vor.u32 1.1754944e-38, %v3268_v11  ;;  %v3219_v30 = vmul.f32 %v3218_v6, %v13132_v32  ;;  %v3223_v11 = vand.u32 2147483648, %v13132_v32  ;;  %v13273_v6 = vld [vmem:[#allocation2 + $0xe8] ss:$0 sm:$0xff] }
0x1721   :  { %v6010_v20 = vsel %vm37_vm0, %v5990_v4, 0.0  ;;  %v6259_v62 = vadd.f32 %v13096_v43, %v6250_v34  ;;  %v3212_v4 = vsel %vm3210_vm2, %v3211_v46, %v3209_v12  ;;  %vm6055_vm12 = vcmp.eq.f32.partialorder %v13184_v27, inf }
0x1722   :  { %6008 = vadd.xlane.f32.xlu1 %v6007_v28  ;;  %v5967_v54 = vpop.xlane.xlu0 %5966  ;;  %6011 = vadd.xlane.f32.xlu0 %v6010_v20  ;;  %v3270_v31 = vsel %vm3267_vm4, %v3269_v5, %v3265_v60  ;;  %v3276_v28 = vadd.f32 %v13177_v58, %v3275_v41  ;;  %v13246_v29 = vadd.f32 1e-06, %v3212_v4  ;;  %v3221_v1 = vsel %vm3220_vm10, %v13132_v32, %v3219_v30 }
0x1723   :  { %v5975_v14 = vmul.f32 %v5967_v54, %v10781_v22  ;;  %9629 = vmatmul.msk.f32.gmra.mxu1 %vm37_vm0, %v6259_v62  ;;  %v3271_v62 = vmul.f32 %v3270_v31, %v12883_v59  ;;  %v6058_v59 = vand.u32 2147483648, %v13184_v27  ;;  %vm6057_vm14 = vcmp.eq.f32.partialorder %v13184_v27, 0.0 }
0x1724   :  { %10443 = vrcp.f32 %v13246_v29  ;;  %v3224_v61 = vsel %vm3222_vm13, %v3223_v11, %v3221_v1  ;;  %vm3293_vm1 = vweird.f32 %v13207_v39  ;;  %v3298_v5 = vand.u32 2147483648, %v13174_v3 }
0x1725   :  { %v10440_v49 = vpop.eup %10439  ;;  %v13215_v45 = vsub.f32 %v13074_v9, %v5975_v14  ;;  %v3281_v14 = vand.u32 2147483647, %v13152_v13  ;;  %vm3292_vm2 = vweird.f32 %v13174_v3  ;;  %v3296_v37 = vand.u32 2147483647, %v13174_v3 }
0x1726   :  { %v6049_v38 = vmul.f32 %v10440_v49, %v13184_v27  ;;  %v13243_v20 = vpop.eup %10441  ;;  %vm3294_vm4 = vmor %vm3292_vm2, %vm3293_vm1  ;;  %vm3307_vm10 = vweird.f32 %v13212_v19  ;;  %v3313_v11 = vand.u32 2147483648, %v13212_v19 }
0x1727   :  { %v5991_v47 = vmul.f32 %v13215_v45, %v13215_v45  ;;  %v3303_v13 = vmul.f32 %v13243_v20, %v13212_v19  ;;  %vm3282_vm15 = vcmp.eq.f32.partialorder %v3281_v14, 8.507059e+37  ;;  %vm3297_vm8 = vcmp.eq.f32.partialorder %v3296_v37, 8.507059e+37  ;;  %v13296_v14 = vld [vmem:[#allocation2 + $0x160] ss:$0 sm:$0xff] }
0x1728   :  { %v6050_v50 = vmul.f32 %v10440_v49, %v6049_v38  ;;  %v13264_v38 = vld [vmem:[#allocation2 + $0xe0] ss:$0 sm:$0xff]  ;;  %vm3308_vm9 = vweird.f32 %v13243_v20  ;;  %v3328_v37 = vand.u32 2147483648, %v13246_v29 }
0x1729   :  { %v6013_v42 = vsel %vm37_vm0, %v5991_v47, 0.0  ;;  %v3378_v12 = vmul.f32 %v13264_v38, %v3271_v62  ;;  %v3304_v46 = vsub.f32 1.0, %v3303_v13 }
0x172a   :  { %v6051_v63 = vmul.f32 0.5, %v6050_v50  ;;  %6014 = vadd.xlane.f32.xlu1 %v6013_v42  ;;  %v3291_v50 = vadd.f32 %v13207_v39, %v3290_v16 }
0x172b   :  { %v3387_v4 = vadd.f32 %v13273_v6, %v3378_v12 }
0x172c   :  { %v6052_v34 = vsub.f32 1.5, %v6051_v63  ;;  %v13281_v63 = vpop.eup %10443  ;;  %v3295_v30 = vsel %vm3294_vm4, %v13207_v39, %v3291_v50  ;;  %v3314_v50 = vor.u32 1.1754944e-38, %v3313_v11  ;;  %vm3322_vm4 = vweird.f32 %v13246_v29 }
0x172d   :  { %v3318_v35 = vmul.f32 %v13281_v63, %v13246_v29  ;;  %vm3323_vm2 = vweird.f32 %v13281_v63 }
0x172e   :  { %v6053_v54 = vmul.f32 %v10440_v49, %v6052_v34  ;;  %v3280_v49 = vsel %vm13250_vm11, %v13177_v58, %v3276_v28  ;;  %v3305_v34 = vmul.f32 %v13243_v20, %v3304_v46  ;;  %v3299_v28 = vor.u32 1.1754944e-38, %v3298_v5 }
0x172f   :  { %v3285_v47 = vsel %vm3282_vm15, %v3284_v33, %v3280_v49  ;;  %v3319_v1 = vsub.f32 1.0, %v3318_v35  ;;  %v3329_v35 = vor.u32 1.1754944e-38, %v3328_v37 }
0x1730   :  { %v6054_v48 = vmul.f32 %v6053_v54, %v13184_v27  ;;  %v3286_v42 = vmul.f32 %v3285_v47, %v12905_v44  ;;  %v3300_v3 = vsel %vm3297_vm8, %v3299_v28, %v3295_v30  ;;  %v3306_v52 = vadd.f32 %v13243_v20, %v3305_v34  ;;  %vm3324_vm8 = vmor %vm3322_vm4, %vm3323_vm2 }
0x1731   :  { %v3301_v49 = vmul.f32 %v3300_v3, %v12962_v56  ;;  %v3320_v47 = vmul.f32 %v13281_v63, %v3319_v1  ;;  %v3326_v34 = vand.u32 2147483647, %v13246_v29 }
0x1732   :  { %v6056_v60 = vsel %vm6055_vm12, %v13184_v27, %v6054_v48  ;;  %v13277_v27 = vadd.f32 1e-06, %v3224_v61  ;;  %v3379_v44 = vmul.f32 %v13264_v38, %v3286_v42  ;;  %vm13303_vm12 = vmor %vm3307_vm10, %vm3308_vm9 }
0x1733   :  { %v6059_v58 = vsel %vm6057_vm14, %v6058_v59, %v6056_v60  ;;  %v3310_v61 = vsel %vm13303_vm12, %v13243_v20, %v3306_v52  ;;  %v3380_v12 = vmul.f32 %v13264_v38, %v3301_v49  ;;  %v3321_v5 = vadd.f32 %v13281_v63, %v3320_v47 }
0x1734   :  { %v6122_v41 = vadd.f32 1e-06, %v6059_v58  ;;  %v3388_v39 = vadd.f32 %v13273_v6, %v3379_v44  ;;  %v3311_v58 = vand.u32 2147483647, %v13212_v19  ;;  %vm3327_vm9 = vcmp.eq.f32.partialorder %v3326_v34, 8.507059e+37 }
0x1735   :  { %v9952_v18 = vpop.permute.xlu0 %9951  ;;  %v3325_v44 = vsel %vm3324_vm8, %v13281_v63, %v3321_v5  ;;  %v3343_v29 = vand.u32 2147483648, %v13277_v27  ;;  %v3341_v63 = vand.u32 2147483647, %v13277_v27 }
0x1736   :  { %v9953_v32 = vunpack.i.l.bf16 %v9952_v18  ;;  %10445 = vrcp.f32 %v6122_v41  ;;  %v9954_v31 = vunpack.i.h.bf16 %v9952_v18  ;;  %v6169_v16 = vand.u32 2147483648, %v6122_v41 }
0x1737   :  { %10447 = vrcp.f32 %v13277_v27  ;;  %v6167_v13 = vand.u32 2147483647, %v6122_v41  ;;  %vm6163_vm13 = vweird.f32 %v6122_v41  ;;  %vm3312_vm1 = vcmp.eq.f32.partialorder %v3311_v58, 8.507059e+37 }
0x1738   :  { %6395 = vmatpush.msrb.mxu2 %v9953_v32  ;;  %v6170_v19 = vor.u32 1.1754944e-38, %v6169_v16  ;;  %v3315_v46 = vsel %vm3312_vm1, %v3314_v50, %v3310_v61  ;;  %v3344_v1 = vor.u32 1.1754944e-38, %v3343_v29 }
0x1739   :  { %vm6168_vm15 = vcmp.eq.f32.partialorder %v6167_v13, 8.507059e+37  ;;  %v3316_v30 = vmul.f32 %v3315_v46, %v12974_v17  ;;  %v3330_v17 = vsel %vm3327_vm9, %v3329_v35, %v3325_v44 }
0x173a   :  { %6396 = vmatpush.msrb.mxu2 %v9954_v31  ;;  %v3389_v31 = vadd.f32 %v13273_v6, %v3380_v12  ;;  %v3331_v52 = vmul.f32 %v3330_v17, %v12995_v23 }
0x173b   :  { %9636 = vmatmul.msk.f32.vlgmr.msrb.gmra.mxu2 %vm37_vm0, %v3387_v4 }
0x173c   :  { %v10446_v54 = vpop.eup %10445  ;;  %v3382_v49 = vmul.f32 %v13264_v38, %v3331_v52 }
0x173d   :  { %v6159_v62 = vmul.f32 %v10446_v54, %v6122_v41  ;;  %v13298_v48 = vpop.eup %10447  ;;  %vm6164_vm11 = vweird.f32 %v10446_v54 }
0x173e   :  { %v3333_v18 = vmul.f32 %v13298_v48, %v13277_v27  ;;  %vm6165_vm14 = vmor %vm6163_vm13, %vm6164_vm11  ;;  %vm3338_vm10 = vweird.f32 %v13298_v48  ;;  %vm3337_vm11 = vweird.f32 %v13277_v27  ;;  %vm3342_vm13 = vcmp.eq.f32.partialorder %v3341_v63, 8.507059e+37 }
0x173f   :  { %v6160_v33 = vsub.f32 1.0, %v6159_v62  ;;  %vm3339_vm12 = vmor %vm3337_vm11, %vm3338_vm10 }
0x1740   :  { %v3334_v41 = vsub.f32 1.0, %v3333_v18 }
0x1741   :  { %v6161_v59 = vmul.f32 %v10446_v54, %v6160_v33 }
0x1742   :  { %v3335_v28 = vmul.f32 %v13298_v48, %v3334_v41 }
0x1743   :  { %9637 = vmatmul.msk.f32.gmra.mxu2 %vm37_vm0, %v3388_v39  ;;  %6354 = vrot.lane.b32.xlu1 %v13296_v14, %s10717_s3  ;;  %v6162_v56 = vadd.f32 %v10446_v54, %v6161_v59  ;;  %v3144_v39 = vpop.xlane.xlu2 %3143  ;;  %v3391_v59 = vadd.f32 %v13273_v6, %v3382_v49 }
0x1744   :  { %v3336_v3 = vadd.f32 %v13298_v48, %v3335_v28  ;;  %v3152_v16 = vmul.f32 0.032258064, %v3144_v39 }
0x1745   :  { %v6166_v32 = vsel %vm6165_vm14, %v10446_v54, %v6162_v56  ;;  %v3381_v54 = vmul.f32 %v13264_v38, %v3316_v30 }
0x1746   :  { %v6171_v20 = vsel %vm6168_vm15, %v6170_v19, %v6166_v32  ;;  %v3340_v33 = vsel %vm3339_vm12, %v13298_v48, %v3336_v3  ;;  %10449 = vrsqrt.f32 %v3152_v16  ;;  %vm3244_vm14 = vcmp.eq.f32.partialorder %v3152_v16, inf }
0x1747   :  { %v6172_v42 = vmul.f32 %v6171_v20, %v13063_v57  ;;  %v3390_v62 = vadd.f32 %v13273_v6, %v3381_v54  ;;  %v3345_v11 = vsel %vm3342_vm13, %v3344_v1, %v3340_v33  ;;  %v3247_v19 = vand.u32 2147483648, %v3152_v16 }
0x1748   :  { %v3346_v23 = vmul.f32 %v3345_v11, %v13011_v25  ;;  %vm3246_vm15 = vcmp.eq.f32.partialorder %v3152_v16, 0.0 }
0x1749   :  { %v6251_v4 = vmul.f32 %v13093_v40, %v6172_v42 }
0x174a   :  { %v3383_v27 = vmul.f32 %v13264_v38, %v3346_v23 }
0x174b   :  { %9638 = vmatmul.msk.f32.gmra.mxu2 %vm37_vm0, %v3389_v31  ;;  %v6260_v57 = vadd.f32 %v13096_v43, %v6251_v4 }
0x174c   :  { %v10450_v13 = vpop.eup %10449  ;;  %v3392_v60 = vadd.f32 %v13273_v6, %v3383_v27 }
0x174d   :  { %9630 = vmatmul.msk.f32.gmra.mxu1 %vm37_vm0, %v6260_v57  ;;  %v3238_v58 = vmul.f32 %v10450_v13, %v3152_v16 }
0x174f   :  { %v3239_v48 = vmul.f32 %v10450_v13, %v3238_v58 }
0x1751   :  { %v3240_v61 = vmul.f32 0.5, %v3239_v48 }
0x1753   :  { %9639 = vmatmul.msk.f32.gmra.mxu2 %vm37_vm0, %v3390_v62  ;;  %v3241_v56 = vsub.f32 1.5, %v3240_v61 }
0x1755   :  { %v3242_v47 = vmul.f32 %v10450_v13, %v3241_v56 }
0x1757   :  { %v3243_v18 = vmul.f32 %v3242_v47, %v3152_v16 }
0x1759   :  { %v3245_v12 = vsel %vm3244_vm14, %v3152_v16, %v3243_v18 }
0x175a   :  { %v3248_v32 = vsel %vm3246_vm15, %v3247_v19, %v3245_v12 }
0x175b   :  { %9640 = vmatmul.msk.f32.gmra.mxu2 %vm37_vm0, %v3391_v59  ;;  %v13349_v20 = vadd.f32 1e-06, %v3248_v32 }
0x175d   :  { %v3373_v56 = vand.u32 2147483648, %v13349_v20  ;;  %vm3367_vm10 = vweird.f32 %v13349_v20 }
0x1763   :  { %9641 = vmatmul.msk.f32.gmra.mxu2 %vm37_vm0, %v3392_v60 }
0x177d   :  { %v6003_v25 = vpop.xlane.xlu1 %6002 }
0x177e   :  { %v6019_v50 = vmul.f32 0.032258064, %v6003_v25 }
0x1780   :  { %10451 = vrsqrt.f32 %v6019_v50  ;;  %vm6067_vm1 = vcmp.eq.f32.partialorder %v6019_v50, inf  ;;  %v6070_v29 = vand.u32 2147483648, %v6019_v50  ;;  %vm6069_vm2 = vcmp.eq.f32.partialorder %v6019_v50, 0.0 }
0x1781   :  { %10453 = vrcp.f32 %v13349_v20 }
0x1785   :  { %v3141_v46 = vpop.xlane.xlu1 %3140 }
0x1786   :  { %v10452_v42 = vpop.eup %10451  ;;  %v3151_v5 = vmul.f32 0.032258064, %v3141_v46 }
0x1787   :  { %v6061_v41 = vmul.f32 %v10452_v42, %v6019_v50  ;;  %v13352_v37 = vpop.eup %10453 }
0x1788   :  { %10455 = vrsqrt.f32 %v3151_v5  ;;  %v3363_v28 = vmul.f32 %v13352_v37, %v13349_v20  ;;  %vm3232_vm4 = vcmp.eq.f32.partialorder %v3151_v5, inf  ;;  %v3235_v61 = vand.u32 2147483648, %v3151_v5 }
0x1789   :  { %v6062_v31 = vmul.f32 %v10452_v42, %v6061_v41  ;;  %vm3368_vm8 = vweird.f32 %v13352_v37  ;;  %vm3234_vm9 = vcmp.eq.f32.partialorder %v3151_v5, 0.0 }
0x178a   :  { %v3364_v62 = vsub.f32 1.0, %v3363_v28  ;;  %vm13383_vm11 = vmor %vm3367_vm10, %vm3368_vm8 }
0x178b   :  { %v6063_v4 = vmul.f32 0.5, %v6062_v31 }
0x178c   :  { %v3365_v23 = vmul.f32 %v13352_v37, %v3364_v62 }
0x178d   :  { %v6064_v30 = vsub.f32 1.5, %v6063_v4  ;;  %v6006_v34 = vpop.xlane.xlu1 %6005  ;;  %v3371_v4 = vand.u32 2147483647, %v13349_v20 }
0x178e   :  { %v10456_v57 = vpop.eup %10455  ;;  %v13354_v44 = vmul.f32 0.032258064, %v6006_v34  ;;  %v13373_v12 = vadd.f32 %v13352_v37, %v3365_v23 }
0x178f   :  { %v6065_v35 = vmul.f32 %v10452_v42, %v6064_v30  ;;  %v3226_v54 = vmul.f32 %v10456_v57, %v3151_v5  ;;  %v13388_v30 = vor.u32 1.1754944e-38, %v3373_v56 }
0x1790   :  { %10457 = vrsqrt.f32 %v13354_v44  ;;  %vm6079_vm12 = vcmp.eq.f32.partialorder %v13354_v44, inf  ;;  %vm6081_vm13 = vcmp.eq.f32.partialorder %v13354_v44, 0.0 }
0x1791   :  { %v6066_v17 = vmul.f32 %v6065_v35, %v6019_v50  ;;  %v3227_v3 = vmul.f32 %v10456_v57, %v3226_v54  ;;  %v3370_v35 = vsel %vm13383_vm11, %v13352_v37, %v13373_v12 }
0x1793   :  { %v6068_v52 = vsel %vm6067_vm1, %v6019_v50, %v6066_v17  ;;  %v3228_v63 = vmul.f32 0.5, %v3227_v3  ;;  %v6082_v3 = vand.u32 2147483648, %v13354_v44 }
0x1794   :  { %v6071_v39 = vsel %vm6069_vm2, %v6070_v29, %v6068_v52 }
0x1795   :  { %v3229_v33 = vsub.f32 1.5, %v3228_v63  ;;  %v6009_v1 = vpop.xlane.xlu1 %6008  ;;  %v13359_v49 = vadd.f32 1e-06, %v6071_v39  ;;  %v6012_v59 = vpop.xlane.xlu0 %6011 }
0x1796   :  { %v10458_v16 = vpop.eup %10457  ;;  %v13361_v11 = vmul.f32 0.032258064, %v6009_v1  ;;  %v13365_v60 = vmul.f32 0.032258064, %v6012_v59 }
0x1797   :  { %v3230_v27 = vmul.f32 %v10456_v57, %v3229_v33  ;;  %v6073_v13 = vmul.f32 %v10458_v16, %v13354_v44  ;;  %10459 = vrcp.f32 %v13359_v49  ;;  %v6182_v39 = vand.u32 2147483647, %v13359_v49 }
0x1798   :  { %10461 = vrsqrt.f32 %v13361_v11  ;;  %vm6091_vm14 = vcmp.eq.f32.partialorder %v13361_v11, inf  ;;  %v6094_v52 = vand.u32 2147483648, %v13361_v11  ;;  %v6184_v33 = vand.u32 2147483648, %v13359_v49 }
0x1799   :  { %v3231_v58 = vmul.f32 %v3230_v27, %v3151_v5  ;;  %v6074_v48 = vmul.f32 %v10458_v16, %v6073_v13  ;;  %10463 = vrsqrt.f32 %v13365_v60  ;;  %vm6093_vm15 = vcmp.eq.f32.partialorder %v13361_v11, 0.0 }
0x179a   :  { %vm6103_vm2 = vcmp.eq.f32.partialorder %v13365_v60, inf  ;;  %vm6178_vm8 = vweird.f32 %v13359_v49  ;;  %vm6183_vm10 = vcmp.eq.f32.partialorder %v6182_v39, 8.507059e+37 }
0x179b   :  { %v3233_v47 = vsel %vm3232_vm4, %v3151_v5, %v3231_v58  ;;  %v6075_v18 = vmul.f32 0.5, %v6074_v48  ;;  %vm6105_vm4 = vcmp.eq.f32.partialorder %v13365_v60, 0.0 }
0x179c   :  { %v3236_v19 = vsel %vm3234_vm9, %v3235_v61, %v3233_v47 }
0x179d   :  { %v10460_v25 = vpop.eup %10459  ;;  %v6076_v50 = vsub.f32 1.5, %v6075_v18  ;;  %v6015_v32 = vpop.xlane.xlu1 %6014  ;;  %v13375_v46 = vadd.f32 1e-06, %v3236_v19  ;;  %v6185_v18 = vor.u32 1.1754944e-38, %v6184_v33 }
0x179e   :  { %v10462_v42 = vpop.eup %10461  ;;  %v13378_v41 = vmul.f32 0.032258064, %v6015_v32  ;;  %v6174_v31 = vmul.f32 %v10460_v25, %v13359_v49  ;;  %vm6179_vm1 = vweird.f32 %v10460_v25 }
0x179f   :  { %v10464_v34 = vpop.eup %10463  ;;  %v6077_v57 = vmul.f32 %v10458_v16, %v6076_v50  ;;  %v6085_v28 = vmul.f32 %v10462_v42, %v13361_v11  ;;  %10465 = vrcp.f32 %v13375_v46  ;;  %vm6180_vm9 = vmor %vm6178_vm8, %vm6179_vm1  ;;  %v3358_v49 = vand.u32 2147483648, %v13375_v46 }
0x17a0   :  { %v6097_v54 = vmul.f32 %v10464_v34, %v13365_v60  ;;  %10467 = vrsqrt.f32 %v13378_v41  ;;  %v6175_v62 = vsub.f32 1.0, %v6174_v31  ;;  %vm6117_vm11 = vcmp.eq.f32.partialorder %v13378_v41, 0.0 }
0x17a1   :  { %v6078_v17 = vmul.f32 %v6077_v57, %v13354_v44  ;;  %v6086_v29 = vmul.f32 %v10462_v42, %v6085_v28 }
0x17a2   :  { %v6098_v63 = vmul.f32 %v10464_v34, %v6097_v54  ;;  %v6176_v59 = vmul.f32 %v10460_v25, %v6175_v62 }
0x17a3   :  { %v6080_v1 = vsel %vm6079_vm12, %v13354_v44, %v6078_v17  ;;  %v6087_v16 = vmul.f32 0.5, %v6086_v29  ;;  %v6106_v17 = vand.u32 2147483648, %v13365_v60 }
0x17a4   :  { %v6099_v23 = vmul.f32 0.5, %v6098_v63  ;;  %v6083_v27 = vsel %vm6081_vm13, %v6082_v3, %v6080_v1  ;;  %v6177_v48 = vadd.f32 %v10460_v25, %v6176_v59  ;;  %vm3352_vm13 = vweird.f32 %v13375_v46 }
0x17a5   :  { %v10466_v13 = vpop.eup %10465  ;;  %v6088_v58 = vsub.f32 1.5, %v6087_v16  ;;  %v13413_v61 = vadd.f32 1e-06, %v6083_v27  ;;  %v3359_v1 = vor.u32 1.1754944e-38, %v3358_v49 }
0x17a6   :  { %v10468_v56 = vpop.eup %10467  ;;  %v6100_v47 = vsub.f32 1.5, %v6099_v23  ;;  %v3348_v19 = vmul.f32 %v10466_v13, %v13375_v46  ;;  %v6181_v31 = vsel %vm6180_vm9, %v10460_v25, %v6177_v48  ;;  %vm3353_vm12 = vweird.f32 %v10466_v13 }
0x17a7   :  { %v6089_v50 = vmul.f32 %v10462_v42, %v6088_v58  ;;  %v6109_v32 = vmul.f32 %v10468_v56, %v13378_v41  ;;  %10469 = vrcp.f32 %v13413_v61  ;;  %v6186_v57 = vsel %vm6183_vm10, %v6185_v18, %v6181_v31  ;;  %vm3354_vm1 = vmor %vm3352_vm13, %vm3353_vm12 }
0x17a8   :  { %v6101_v44 = vmul.f32 %v10464_v34, %v6100_v47  ;;  %v3349_v28 = vsub.f32 1.0, %v3348_v19  ;;  %v6187_v29 = vmul.f32 %v6186_v57, %v13117_v8  ;;  %v3356_v25 = vand.u32 2147483647, %v13375_v46 }
0x17a9   :  { %v6090_v54 = vmul.f32 %v6089_v50, %v13361_v11  ;;  %v6110_v3 = vmul.f32 %v10468_v56, %v6109_v32  ;;  %v6118_v50 = vand.u32 2147483648, %v13378_v41  ;;  %v6199_v20 = vand.u32 2147483648, %v13413_v61 }
0x17aa   :  { %v6102_v62 = vmul.f32 %v6101_v44, %v13365_v60  ;;  %v3350_v42 = vmul.f32 %v10466_v13, %v3349_v28  ;;  %v6252_v39 = vmul.f32 %v13093_v40, %v6187_v29  ;;  %vm6193_vm8 = vweird.f32 %v13413_v61 }
0x17ab   :  { %v6092_v34 = vsel %vm6091_vm14, %v13361_v11, %v6090_v54  ;;  %v6111_v63 = vmul.f32 0.5, %v6110_v3  ;;  %vm3357_vm14 = vcmp.eq.f32.partialorder %v3356_v25, 8.507059e+37  ;;  %v6200_v44 = vor.u32 1.1754944e-38, %v6199_v20 }
0x17ac   :  { %v6104_v33 = vsel %vm6103_vm2, %v13365_v60, %v6102_v62  ;;  %v3351_v8 = vadd.f32 %v10466_v13, %v3350_v42  ;;  %v6095_v16 = vsel %vm6093_vm15, %v6094_v52, %v6092_v34  ;;  %v6261_v27 = vadd.f32 %v13096_v43, %v6252_v39 }
0x17ad   :  { %v10470_v59 = vpop.eup %10469  ;;  %v6112_v23 = vsub.f32 1.5, %v6111_v63  ;;  %v13435_v58 = vadd.f32 1e-06, %v6095_v16  ;;  %v6107_v48 = vsel %vm6105_vm4, %v6106_v17, %v6104_v33  ;;  %vm3372_vm15 = vcmp.eq.f32.partialorder %v3371_v4, 8.507059e+37 }
0x17ae   :  { %v3355_v46 = vsel %vm3354_vm1, %v10466_v13, %v3351_v8  ;;  %v6189_v47 = vmul.f32 %v10470_v59, %v13413_v61  ;;  %v13440_v18 = vadd.f32 1e-06, %v6107_v48  ;;  %9631 = vmatmul.msk.f32.gmra.mxu1 %vm37_vm0, %v6261_v27  ;;  %vm6115_vm2 = vcmp.eq.f32.partialorder %v13378_v41, inf }
0x17af   :  { %v6113_v19 = vmul.f32 %v10468_v56, %v6112_v23  ;;  %v3360_v11 = vsel %vm3357_vm14, %v3359_v1, %v3355_v46  ;;  %10471 = vrcp.f32 %v13435_v58  ;;  %v3375_v13 = vsel %vm3372_vm15, %v13388_v30, %v3370_v35 }
0x17b0   :  { %v3361_v60 = vmul.f32 %v3360_v11, %v13127_v10  ;;  %v6190_v52 = vsub.f32 1.0, %v6189_v47  ;;  %10473 = vrcp.f32 %v13440_v18  ;;  %vm6194_vm4 = vweird.f32 %v10470_v59 }
0x17b1   :  { %v6114_v56 = vmul.f32 %v6113_v19, %v13378_v41  ;;  %v6197_v10 = vand.u32 2147483647, %v13413_v61  ;;  %v3376_v37 = vmul.f32 %v3375_v13, %v13041_v51  ;;  %vm6195_vm9 = vmor %vm6193_vm8, %vm6194_vm4  ;;  %v6212_v29 = vand.u32 2147483647, %v13435_v58 }
0x17b2   :  { %v3384_v4 = vmul.f32 %v13264_v38, %v3361_v60  ;;  %v6191_v32 = vmul.f32 %v10470_v59, %v6190_v52  ;;  %v6214_v62 = vand.u32 2147483648, %v13435_v58  ;;  %vm6208_vm13 = vweird.f32 %v13435_v58  ;;  %v10686_v52 = vld [vmem:[#allocation2 + $0x218] ss:$0 sm:$0xff] }
0x17b3   :  { %v6116_v5 = vsel %vm6115_vm2, %v13378_v41, %v6114_v56  ;;  %vm6198_vm10 = vcmp.eq.f32.partialorder %v6197_v10, 8.507059e+37  ;;  %v3385_v51 = vmul.f32 %v13264_v38, %v3376_v37  ;;  %v6227_v38 = vand.u32 2147483647, %v13440_v18 }
0x17b4   :  { %v3393_v12 = vadd.f32 %v13273_v6, %v3384_v4  ;;  %v6192_v30 = vadd.f32 %v10470_v59, %v6191_v32  ;;  %v6119_v35 = vsel %vm6117_vm11, %v6118_v50, %v6116_v5  ;;  %v6215_v16 = vor.u32 1.1754944e-38, %v6214_v62 }
0x17b5   :  { %v10472_v31 = vpop.eup %10471  ;;  %v13465_v57 = vadd.f32 1e-06, %v6119_v35  ;;  %v3394_v63 = vadd.f32 %v13273_v6, %v3385_v51  ;;  %vm6223_vm15 = vweird.f32 %v13440_v18  ;;  %vm6213_vm2 = vcmp.eq.f32.partialorder %v6212_v29, 8.507059e+37 }
0x17b6   :  { %9642 = vmatmul.msk.f32.gmra.mxu2 %vm37_vm0, %v3393_v12  ;;  %v6196_v28 = vsel %vm6195_vm9, %v10470_v59, %v6192_v30  ;;  %v6204_v49 = vmul.f32 %v10472_v31, %v13435_v58  ;;  %v10474_v41 = vpop.eup %10473  ;;  %vm6209_vm12 = vweird.f32 %v10472_v31  ;;  %vm6228_vm11 = vcmp.eq.f32.partialorder %v6227_v38, 8.507059e+37  ;;  %v6313_v30 = vpop.f32.mrf.mxu1 }
0x17b7   :  { %v6201_v54 = vsel %vm6198_vm10, %v6200_v44, %v6196_v28  ;;  %10475 = vrcp.f32 %v13465_v57  ;;  %v6219_v3 = vmul.f32 %v10474_v41, %v13440_v18  ;;  %vm6224_vm1 = vweird.f32 %v10474_v41  ;;  %vm6210_vm14 = vmor %vm6208_vm13, %vm6209_vm12 }
0x17b8   :  { %v6202_v61 = vmul.f32 %v6201_v54, %v13149_v7  ;;  %v6205_v17 = vsub.f32 1.0, %v6204_v49  ;;  %v6229_v7 = vand.u32 2147483648, %v13440_v18  ;;  %vm6225_vm4 = vmor %vm6223_vm15, %vm6224_vm1  ;;  %v10685_v18 = vld [vmem:[#allocation2 + $0x210] ss:$0 sm:$0xff]  ;;  %vm6238_vm9 = vweird.f32 %v13465_v57 }
0x17b9   :  { %v6220_v34 = vsub.f32 1.0, %v6219_v3  ;;  %v6244_v60 = vand.u32 2147483648, %v13465_v57  ;;  %v6242_v20 = vand.u32 2147483647, %v13465_v57  ;;  %v13501_v44 = vadd.f32 %v13296_v14, %v6313_v30 }
0x17ba   :  { %v6253_v42 = vmul.f32 %v13093_v40, %v6202_v61  ;;  %v6206_v25 = vmul.f32 %v10472_v31, %v6205_v17 }
0x17bb   :  { %v6221_v8 = vmul.f32 %v10474_v41, %v6220_v34  ;;  %v6245_v5 = vor.u32 1.1754944e-38, %v6244_v60  ;;  %vm6243_vm12 = vcmp.eq.f32.partialorder %v6242_v20, 8.507059e+37 }
0x17bc   :  { %v6262_v39 = vadd.f32 %v13096_v43, %v6253_v42  ;;  %v6207_v33 = vadd.f32 %v10472_v31, %v6206_v25  ;;  %v6230_v43 = vor.u32 1.1754944e-38, %v6229_v7 }
0x17bd   :  { %v10476_v1 = vpop.eup %10475  ;;  %v6222_v59 = vadd.f32 %v10474_v41, %v6221_v8 }
0x17be   :  { %9632 = vmatmul.msk.f32.gmra.mxu1 %vm37_vm0, %v6262_v39  ;;  %v6398_v40 = vpop.f32.mrf.mxu2  ;;  %9643 = vmatmul.msk.f32.gmra.mxu2 %vm37_vm0, %v3394_v63  ;;  %v6211_v6 = vsel %vm6210_vm14, %v10472_v31, %v6207_v33  ;;  %v6234_v23 = vmul.f32 %v10476_v1, %v13465_v57  ;;  %vm6239_vm8 = vweird.f32 %v10476_v1  ;;  %v6316_v49 = vpop.f32.mrf.mxu1 }
0x17bf   :  { %v6216_v27 = vsel %vm6213_vm2, %v6215_v16, %v6211_v6  ;;  %v6226_v48 = vsel %vm6225_vm4, %v10474_v41, %v6222_v59  ;;  %vm6240_vm10 = vmor %vm6238_vm9, %vm6239_vm8  ;;  %v13507_v54 = vadd.f32 %v13296_v14, %v6316_v49 }
0x17c0   :  { %v6217_v58 = vmul.f32 %v6216_v27, %v13170_v24  ;;  %v6235_v46 = vsub.f32 1.0, %v6234_v23  ;;  %v6231_v47 = vsel %vm6228_vm11, %v6230_v43, %v6226_v48  ;;  %v6355_v24 = vpop.permute.xlu1 %6354 }
0x17c1   :  { %v6232_v56 = vmul.f32 %v6231_v47, %v13182_v0  ;;  %v13495_v0 = vadd.f32 %v6398_v40, %v6355_v24 }
0x17c2   :  { %v6254_v19 = vmul.f32 %v10685_v18, %v6217_v58  ;;  %v6236_v11 = vmul.f32 %v10476_v1, %v6235_v46 }
0x17c3   :  { %v6255_v37 = vmul.f32 %v10685_v18, %v6232_v56 }
0x17c4   :  { %v6263_v13 = vadd.f32 %v10686_v52, %v6254_v19  ;;  %v6237_v50 = vadd.f32 %v10476_v1, %v6236_v11 }
0x17c5   :  { %v6264_v35 = vadd.f32 %v10686_v52, %v6255_v37 }
0x17c6   :  { %9633 = vmatmul.msk.f32.gmra.mxu1 %vm37_vm0, %v6263_v13  ;;  %v6401_v4 = vpop.f32.mrf.mxu2  ;;  %v6241_v32 = vsel %vm6240_vm10, %v10476_v1, %v6237_v50 }
0x17c7   :  { %v13491_v10 = vadd.f32 %v6401_v4, %v6355_v24  ;;  %v6246_v12 = vsel %vm6243_vm12, %v6245_v5, %v6241_v32 }
0x17c8   :  { %v6247_v31 = vmul.f32 %v6246_v12, %v13215_v45 }
0x17c9   :  { %9644 = vmatpush.xpose.msk.msrb.mxu3 %vm444_vm5, %v13491_v10  ;;  %v13592_v20 = vpack.i.bf16 %v13495_v0, %v13491_v10 }
0x17ca   :  { %v6256_v28 = vmul.f32 %v10685_v18, %v6247_v31  ;;  %v6319_v61 = vpop.f32.mrf.mxu1 }
0x17cb   :  { %v13521_v3 = vadd.f32 %v13296_v14, %v6319_v61 }
0x17cc   :  { %v6265_v41 = vadd.f32 %v10686_v52, %v6256_v28 }
0x17cd   :  { %9645 = vmatpush.xpose.msk.msrb.mxu3 %vm444_vm5, %v13495_v0 }
0x17ce   :  { %9634 = vmatmul.msk.f32.gmra.mxu1 %vm37_vm0, %v6264_v35  ;;  %v6404_v57 = vpop.f32.mrf.mxu2 }
0x17cf   :  { %v13516_v17 = vadd.f32 %v6404_v57, %v6355_v24 }
0x17d0   :  { %9646 = vmatmul.msk.f32.vlgmr.msrb.gmra.mxu3 %vm444_vm5, %v13501_v44 }
0x17d6   :  { %9635 = vmatmul.msk.f32.gmra.mxu1 %vm37_vm0, %v6265_v41  ;;  %v6407_v45 = vpop.f32.mrf.mxu2 }
0x17d7   :  { %v13510_v51 = vadd.f32 %v6407_v45, %v6355_v24 }
0x17d8   :  { %9647 = vmatmul.msk.f32.gmra.mxu3 %vm444_vm5, %v13507_v54 }
0x17d9   :  { %9648 = vmatpush.xpose.msk.msra.mxu3 %vm444_vm5, %v13510_v51  ;;  %v13606_v32 = vpack.i.bf16 %v13516_v17, %v13510_v51 }
0x17dd   :  { %9649 = vmatpush.xpose.msk.msra.mxu3 %vm444_vm5, %v13516_v17 }
0x17de   :  { %v6410_v29 = vpop.f32.mrf.mxu2 }
0x17df   :  { %v13529_v25 = vadd.f32 %v6410_v29, %v6355_v24 }
0x17e0   :  { %9650 = vmatmul.msk.f32.vlgmr.msra.gmra.mxu3 %vm444_vm5, %v13521_v3 }
0x17e6   :  { %v6413_v62 = vpop.f32.mrf.mxu2 }
0x17e7   :  { %v13525_v42 = vadd.f32 %v6413_v62, %v6355_v24 }
0x17e9   :  { %9652 = vmatpush.xpose.msk.msrb.mxu3 %vm444_vm5, %v13525_v42 }
0x17ed   :  { %9653 = vmatpush.xpose.msk.msrb.mxu3 %vm444_vm5, %v13529_v25 }
0x182b   :  { %v6322_v34 = vpop.f32.mrf.mxu1 }
0x182c   :  { %v13534_v63 = vadd.f32 %v13296_v14, %v6322_v34 }
0x182e   :  { %9651 = vmatmul.msk.f32.gmra.mxu3 %vm444_vm5, %v13534_v63 }
0x1839   :  { %v6416_v38 = vpop.f32.mrf.mxu2 }
0x183a   :  { %v13550_v40 = vadd.f32 %v6416_v38, %v6355_v24 }
0x183b   :  { %v6325_v7 = vpop.f32.mrf.mxu1 }
0x183c   :  { %v13539_v39 = vadd.f32 %v13296_v14, %v6325_v7 }
0x183e   :  { %9654 = vmatmul.msk.f32.vlgmr.msrb.gmra.mxu3 %vm444_vm5, %v13539_v39 }
0x1841   :  { %v6419_v33 = vpop.f32.mrf.mxu2 }
0x1842   :  { %v13543_v8 = vadd.f32 %v6419_v33, %v6355_v24  ;;  %v13598_v24 = vpack.i.bf16 %v13529_v25, %v13525_v42 }
0x1843   :  { %v6328_v1 = vpop.f32.mrf.mxu1 }
0x1844   :  { %v13546_v16 = vadd.f32 %v13296_v14, %v6328_v1  ;;  %9656 = vmatpush.xpose.msk.msra.mxu3 %vm444_vm5, %v13543_v8 }
0x1846   :  { %9655 = vmatmul.msk.f32.gmra.mxu3 %vm444_vm5, %v13546_v16 }
0x1848   :  { %9657 = vmatpush.xpose.msk.msra.mxu3 %vm444_vm5, %v13550_v40 }
0x184b   :  { %v6331_v6 = vpop.f32.mrf.mxu1 }
0x184c   :  { %v13557_v59 = vadd.f32 %v13296_v14, %v6331_v6 }
0x184e   :  { %9658 = vmatmul.msk.f32.vlgmr.msra.gmra.mxu3 %vm444_vm5, %v13557_v59 }
0x1853   :  { %v6334_v23 = vpop.f32.mrf.mxu1  ;;  %v6451_v27 = vpop.f32.mrf.mxu3 }
0x1854   :  { %v13562_v43 = vadd.f32 %v13296_v14, %v6334_v23  ;;  %v6562_v58 = vsel %vm587_vm6, %v6451_v27, -inf }
0x1855   :  { %6563 = vmax.xlane.f32.xlu2 %v6562_v58 }
0x1856   :  { %9659 = vmatmul.msk.f32.gmra.mxu3 %vm444_vm5, %v13562_v43 }
0x185b   :  { %v6454_v48 = vpop.f32.mrf.mxu3 }
0x185c   :  { %v6565_v46 = vsel %vm587_vm6, %v6454_v48, -inf }
0x185d   :  { %6566 = vmax.xlane.f32.xlu1 %v6565_v46 }
0x1863   :  { %v13602_v4 = vpop.f32.mrf.mxu3 }
0x1864   :  { %v6568_v28 = vsel %vm587_vm6, %v13602_v4, -inf }
0x1876   :  { %6900 = vrot.lane.b32.xlu1 %v13491_v10, %s10720_s6 }
0x187e   :  { %6898 = vrot.lane.b32.xlu1 %v13495_v0, %s10720_s6 }
0x1886   :  { %6978 = vrot.lane.b32.xlu1 %v13525_v42, %s10720_s6 }
0x188e   :  { %6976 = vrot.lane.b32.xlu1 %v13529_v25, %s10720_s6 }
0x1896   :  { %6939 = vrot.lane.b32.xlu1 %v13510_v51, %s10720_s6 }
0x189e   :  { %6933 = vrot.lane.b32.xlu1 %v13521_v3, %s10720_s6 }
0x18a6   :  { %7017 = vrot.lane.b32.xlu1 %v13543_v8, %s10720_s6 }
0x18b1   :  { %v13610_v5 = vpop.f32.mrf.mxu3 }
0x18b2   :  { %v6571_v49 = vsel %vm587_vm6, %v13610_v5, -inf }
0x18c1   :  { %v13612_v37 = vpop.f32.mrf.mxu3 }
0x18c2   :  { %v6574_v12 = vsel %vm587_vm6, %v13612_v37, -inf }
0x18c8   :  { %v6564_v14 = vpop.xlane.xlu2 %6563 }
0x18c9   :  { %v6586_v47 = vsub.f32 %v6451_v27, %v6564_v14  ;;  %v13616_v30 = vpop.f32.mrf.mxu3 }
0x18ca   :  { %v6577_v35 = vsel %vm587_vm6, %v13616_v30, -inf }
0x18cb   :  { %v6594_v18 = vmul.f32 1.442695, %v6586_v47 }
0x18cd   :  { %10477 = vpow2.f32 %v6594_v18 }
0x18d0   :  { %v6567_v19 = vpop.xlane.xlu1 %6566 }
0x18d1   :  { %v6587_v11 = vsub.f32 %v6454_v48, %v6567_v19  ;;  %v13620_v31 = vpop.f32.mrf.mxu3 }
0x18d2   :  { %v6580_v57 = vsel %vm587_vm6, %v13620_v31, -inf }
0x18d3   :  { %v13582_v60 = vpop.eup %10477  ;;  %v6596_v52 = vmul.f32 1.442695, %v6587_v11 }
0x18d4   :  { %v6610_v13 = vsel %vm587_vm6, %v13582_v60, 0.0 }
0x18d5   :  { %10479 = vpow2.f32 %v6596_v52  ;;  %6611 = vadd.xlane.f32.xlu0 %v6610_v13 }
0x18db   :  { %v13586_v56 = vpop.eup %10479 }
0x18dc   :  { %v6613_v50 = vsel %vm587_vm6, %v13586_v56, 0.0 }
0x18dd   :  { %6614 = vadd.xlane.f32.xlu2 %v6613_v50 }
0x18e8   :  { %v6901_v41 = vpop.permute.xlu1 %6900 }
0x18e9   :  { %9956 = vrot.lane.b32.xlu0 %v13592_v20, %s10717_s3 }
0x18f0   :  { %v6899_v45 = vpop.permute.xlu1 %6898 }
0x18f5   :  { %9961 = vrot.lane.b32.xlu2 %v13598_v24, %s10717_s3 }
0x18f8   :  { %v6979_v38 = vpop.permute.xlu1 %6978 }
0x18fd   :  { %9966 = vrot.lane.b32.xlu2 %v13606_v32, %s10717_s3 }
0x1900   :  { %v6977_v19 = vpop.permute.xlu1 %6976 }
0x1913   :  { %6575 = vmax.xlane.f32.xlu0 %v6574_v12 }
0x191b   :  { %6578 = vmax.xlane.f32.xlu0 %v6577_v35 }
0x1923   :  { %6581 = vmax.xlane.f32.xlu0 %v6580_v57 }
0x1926   :  { %6569 = vmax.xlane.f32.xlu2 %v6568_v28 }
0x192e   :  { %6572 = vmax.xlane.f32.xlu2 %v6571_v49 }
0x1937   :  { %6972 = vrot.lane.b32.xlu0 %v13539_v39, %s10720_s6 }
0x1948   :  { %v6612_v61 = vpop.xlane.xlu0 %6611 }
0x1949   :  { %10481 = vrcp.f32 %v6612_v61  ;;  %v6645_v6 = vand.u32 2147483648, %v6612_v61  ;;  %vm6639_vm1 = vweird.f32 %v6612_v61  ;;  %v6643_v27 = vand.u32 2147483647, %v6612_v61 }
0x194b   :  { %v6646_v47 = vor.u32 1.1754944e-38, %v6645_v6  ;;  %vm6644_vm15 = vcmp.eq.f32.partialorder %v6643_v27, 8.507059e+37  ;;  %v6940_v6 = vpop.permute.xlu1 %6939 }
0x194f   :  { %v10482_v29 = vpop.eup %10481 }
0x1950   :  { %v6635_v62 = vmul.f32 %v10482_v29, %v6612_v61  ;;  %v6615_v34 = vpop.xlane.xlu2 %6614  ;;  %vm6640_vm13 = vweird.f32 %v10482_v29 }
0x1951   :  { %10483 = vrcp.f32 %v6615_v34  ;;  %vm6641_vm14 = vmor %vm6639_vm1, %vm6640_vm13  ;;  %v6660_v35 = vand.u32 2147483648, %v6615_v34  ;;  %vm6654_vm4 = vweird.f32 %v6615_v34  ;;  %v6658_v61 = vand.u32 2147483647, %v6615_v34 }
0x1952   :  { %v6636_v7 = vsub.f32 1.0, %v6635_v62 }
0x1953   :  { %vm6659_vm8 = vcmp.eq.f32.partialorder %v6658_v61, 8.507059e+37  ;;  %v13676_v61 = vpack.i.bf16 %v13550_v40, %v13543_v8 }
0x1954   :  { %v6637_v33 = vmul.f32 %v10482_v29, %v6636_v7 }
0x1956   :  { %v6638_v1 = vadd.f32 %v10482_v29, %v6637_v33  ;;  %v6661_v33 = vor.u32 1.1754944e-38, %v6660_v35 }
0x1957   :  { %v10484_v23 = vpop.eup %10483 }
0x1958   :  { %v6650_v58 = vmul.f32 %v10484_v23, %v6615_v34  ;;  %v9962_v48 = vpop.permute.xlu2 %9961  ;;  %v6642_v46 = vsel %vm6641_vm14, %v10482_v29, %v6638_v1  ;;  %vm6655_vm2 = vweird.f32 %v10484_v23 }
0x1959   :  { %v9963_v14 = vunpack.i.l.bf16 %v9962_v48  ;;  %v9964_v11 = vunpack.i.h.bf16 %v9962_v48  ;;  %v6647_v13 = vsel %vm6644_vm15, %v6646_v47, %v6642_v46  ;;  %vm6656_vm11 = vmor %vm6654_vm4, %vm6655_vm2 }
0x195a   :  { %v6651_v18 = vsub.f32 1.0, %v6650_v58  ;;  %v6648_v49 = vmul.f32 %v13582_v60, %v6647_v13 }
0x195b   :  { %v9957_v52 = vpop.permute.xlu0 %9956  ;;  %6850 = vmatpush.msra.mxu2 %v9963_v14 }
0x195c   :  { %v6652_v50 = vmul.f32 %v10484_v23, %v6651_v18  ;;  %v9958_v12 = vunpack.i.l.bf16 %v9957_v52  ;;  %v9959_v57 = vunpack.i.h.bf16 %v9957_v52 }
0x195d   :  { %6851 = vmatpush.msra.mxu2 %v9964_v11 }
0x195e   :  { %6780 = vmatpush.msra.mxu0 %v9958_v12  ;;  %v6653_v28 = vadd.f32 %v10484_v23, %v6652_v50 }
0x195f   :  { %9676 = vmatpush.xpose.msk.msrb.mxu2 %vm444_vm5, %v6979_v38 }
0x1960   :  { %6781 = vmatpush.msra.mxu0 %v9959_v57  ;;  %v9967_v29 = vpop.permute.xlu2 %9966  ;;  %v6657_v7 = vsel %vm6656_vm11, %v10484_v23, %v6653_v28  ;;  %v13666_v28 = vpop.f32.mrf.mxu3 }
0x1961   :  { %v9968_v62 = vunpack.i.l.bf16 %v9967_v29  ;;  %9660 = vmatmul.msk.f32.vlgmr.msra.gmra.mxu0 %vm587_vm6, %v6648_v49  ;;  %v9969_v1 = vunpack.i.h.bf16 %v9967_v29  ;;  %v6662_v38 = vsel %vm6659_vm8, %v6661_v33, %v6657_v7  ;;  %v6583_v49 = vsel %vm587_vm6, %v13666_v28, -inf  ;;  %v13688_v29 = vpop.permute.xlu1 %6933 }
0x1962   :  { %9668 = vmatpush.xpose.msk.msrb.mxu0 %vm444_vm5, %v6901_v41  ;;  %v6663_v60 = vmul.f32 %v13586_v56, %v6662_v38 }
0x1963   :  { %9677 = vmatpush.xpose.msk.msrb.mxu2 %vm444_vm5, %v6977_v19  ;;  %6815 = vmatpush.msra.mxu1 %v9968_v62 }
0x1965   :  { %6816 = vmatpush.msra.mxu1 %v9969_v1 }
0x1966   :  { %9669 = vmatpush.xpose.msk.msrb.mxu0 %vm444_vm5, %v6899_v45 }
0x1967   :  { %9672 = vmatpush.xpose.msk.msrb.mxu1 %vm444_vm5, %v6940_v6 }
0x1969   :  { %9661 = vmatmul.msk.f32.gmra.mxu0 %vm587_vm6, %v6663_v60  ;;  %v13692_v7 = vpop.permute.xlu1 %7017 }
0x1986   :  { %v6576_v34 = vpop.xlane.xlu0 %6575 }
0x1987   :  { %v6590_v23 = vsub.f32 %v13612_v37, %v6576_v34 }
0x1989   :  { %v6602_v41 = vmul.f32 1.442695, %v6590_v23 }
0x198b   :  { %10485 = vpow2.f32 %v6602_v41 }
0x198e   :  { %v6579_v27 = vpop.xlane.xlu0 %6578 }
0x198f   :  { %v6591_v58 = vsub.f32 %v13616_v30, %v6579_v27 }
0x1991   :  { %v13641_v48 = vpop.eup %10485  ;;  %v6604_v46 = vmul.f32 1.442695, %v6591_v58 }
0x1992   :  { %v6622_v45 = vsel %vm587_vm6, %v13641_v48, 0.0 }
0x1993   :  { %10487 = vpow2.f32 %v6604_v46  ;;  %6623 = vadd.xlane.f32.xlu0 %v6622_v45 }
0x1996   :  { %v6582_v14 = vpop.xlane.xlu0 %6581 }
0x1997   :  { %v6592_v56 = vsub.f32 %v13620_v31, %v6582_v14 }
0x1999   :  { %v13646_v47 = vpop.eup %10487  ;;  %v6606_v18 = vmul.f32 1.442695, %v6592_v56  ;;  %v6570_v37 = vpop.xlane.xlu2 %6569 }
0x199a   :  { %v6588_v19 = vsub.f32 %v13602_v4, %v6570_v37  ;;  %v6625_v30 = vsel %vm587_vm6, %v13646_v47, 0.0 }
0x199b   :  { %10489 = vpow2.f32 %v6606_v18  ;;  %6626 = vadd.xlane.f32.xlu1 %v6625_v30 }
0x199c   :  { %v6598_v11 = vmul.f32 1.442695, %v6588_v19 }
0x199e   :  { %10491 = vpow2.f32 %v6598_v11 }
0x19a1   :  { %v13651_v52 = vpop.eup %10489  ;;  %v6573_v13 = vpop.xlane.xlu2 %6572 }
0x19a2   :  { %v6589_v50 = vsub.f32 %v13610_v5, %v6573_v13  ;;  %v6628_v31 = vsel %vm587_vm6, %v13651_v52, 0.0 }
0x19a3   :  { %6629 = vadd.xlane.f32.xlu1 %v6628_v31 }
0x19a4   :  { %v13656_v12 = vpop.eup %10491  ;;  %v6600_v35 = vmul.f32 1.442695, %v6589_v50 }
0x19a5   :  { %v6616_v4 = vsel %vm587_vm6, %v13656_v12, 0.0 }
0x19a6   :  { %10493 = vpow2.f32 %v6600_v35  ;;  %6617 = vadd.xlane.f32.xlu2 %v6616_v4 }
0x19a7   :  { %7015 = vrot.lane.b32.xlu0 %v13550_v40, %s10720_s6 }
0x19a9   :  { %v13690_v62 = vpop.permute.xlu0 %6972 }
0x19ac   :  { %v13662_v57 = vpop.eup %10493 }
0x19ad   :  { %v6619_v5 = vsel %vm587_vm6, %v13662_v57, 0.0 }
0x19ae   :  { %6620 = vadd.xlane.f32.xlu2 %v6619_v5 }
0x19b6   :  { %6584 = vmax.xlane.f32.xlu2 %v6583_v49 }
0x19bc   :  { %7011 = vrot.lane.b32.xlu1 %v13557_v59, %s10720_s6 }
0x19ce   :  { %6894 = vrot.lane.b32.xlu2 %v13501_v44, %s10720_s6 }
0x19d6   :  { %9971 = vrot.lane.b32.xlu2 %v13676_v61, %s10717_s3 }
0x19de   :  { %6896 = vrot.lane.b32.xlu2 %v13507_v54, %s10720_s6 }
0x19e6   :  { %6937 = vrot.lane.b32.xlu2 %v13516_v17, %s10720_s6 }
0x19ee   :  { %6974 = vrot.lane.b32.xlu2 %v13546_v16, %s10720_s6 }
0x19f6   :  { %6935 = vrot.lane.b32.xlu2 %v13534_v63, %s10720_s6 }
0x1a06   :  { %v6624_v33 = vpop.xlane.xlu0 %6623 }
0x1a07   :  { %10495 = vrcp.f32 %v6624_v33  ;;  %v6705_v34 = vand.u32 2147483648, %v6624_v33  ;;  %v6703_v41 = vand.u32 2147483647, %v6624_v33  ;;  %vm6699_vm10 = vweird.f32 %v6624_v33 }
0x1a09   :  { %v6706_v46 = vor.u32 1.1754944e-38, %v6705_v34  ;;  %vm6704_vm13 = vcmp.eq.f32.partialorder %v6703_v41, 8.507059e+37 }
0x1a0d   :  { %v10496_v1 = vpop.eup %10495 }
0x1a0e   :  { %v6695_v38 = vmul.f32 %v10496_v1, %v6624_v33  ;;  %v6627_v6 = vpop.xlane.xlu1 %6626  ;;  %vm6700_vm9 = vweird.f32 %v10496_v1 }
0x1a0f   :  { %10497 = vrcp.f32 %v6627_v6  ;;  %vm6701_vm12 = vmor %vm6699_vm10, %vm6700_vm9  ;;  %v6720_v19 = vand.u32 2147483648, %v6627_v6  ;;  %v6718_v13 = vand.u32 2147483647, %v6627_v6  ;;  %vm6714_vm14 = vweird.f32 %v6627_v6 }
0x1a10   :  { %v6696_v60 = vsub.f32 1.0, %v6695_v38 }
0x1a11   :  { %v6721_v35 = vor.u32 1.1754944e-38, %v6720_v19  ;;  %vm6719_vm2 = vcmp.eq.f32.partialorder %v6718_v13, 8.507059e+37 }
0x1a12   :  { %v6697_v23 = vmul.f32 %v10496_v1, %v6696_v60 }
0x1a14   :  { %v6698_v27 = vadd.f32 %v10496_v1, %v6697_v23 }
0x1a15   :  { %v10498_v58 = vpop.eup %10497 }
0x1a16   :  { %v6702_v45 = vsel %vm6701_vm12, %v10496_v1, %v6698_v27  ;;  %v6710_v14 = vmul.f32 %v10498_v58, %v6627_v6  ;;  %vm6715_vm1 = vweird.f32 %v10498_v58  ;;  %v13696_v50 = vpop.xlane.xlu1 %6629 }
0x1a17   :  { %v6707_v56 = vsel %vm6704_vm13, %v6706_v46, %v6702_v45  ;;  %vm6716_vm15 = vmor %vm6714_vm14, %vm6715_vm1 }
0x1a18   :  { %v6708_v18 = vmul.f32 %v13641_v48, %v6707_v56  ;;  %v6711_v37 = vsub.f32 1.0, %v6710_v14 }
0x1a19   :  { %v6618_v30 = vpop.xlane.xlu2 %6617 }
0x1a1a   :  { %v6712_v11 = vmul.f32 %v10498_v58, %v6711_v37  ;;  %10499 = vrcp.f32 %v6618_v30  ;;  %9664 = vmatmul.msk.f32.vlgmr.msra.gmra.mxu2 %vm587_vm6, %v6708_v18  ;;  %v6675_v34 = vand.u32 2147483648, %v6618_v30  ;;  %v6673_v23 = vand.u32 2147483647, %v6618_v30 }
0x1a1b   :  { %10501 = vrcp.f32 %v13696_v50  ;;  %vm6669_vm11 = vweird.f32 %v6618_v30 }
0x1a1c   :  { %v6713_v31 = vadd.f32 %v10498_v58, %v6712_v11  ;;  %v6676_v46 = vor.u32 1.1754944e-38, %v6675_v34  ;;  %vm6674_vm9 = vcmp.eq.f32.partialorder %v6673_v23, 8.507059e+37  ;;  %v6735_v34 = vand.u32 2147483648, %v13696_v50 }
0x1a1e   :  { %v6717_v4 = vsel %vm6716_vm15, %v10498_v58, %v6713_v31  ;;  %vm6729_vm15 = vweird.f32 %v13696_v50 }
0x1a1f   :  { %v6722_v48 = vsel %vm6719_vm2, %v6721_v35, %v6717_v4 }
0x1a20   :  { %v10500_v5 = vpop.eup %10499  ;;  %v6723_v49 = vmul.f32 %v13646_v47, %v6722_v48 }
0x1a21   :  { %v6665_v33 = vmul.f32 %v10500_v5, %v6618_v30  ;;  %v6621_v1 = vpop.xlane.xlu2 %6620  ;;  %v10502_v60 = vpop.eup %10501  ;;  %vm6670_vm4 = vweird.f32 %v10500_v5 }
0x1a22   :  { %10503 = vrcp.f32 %v6621_v1  ;;  %9665 = vmatmul.msk.f32.gmra.mxu2 %vm587_vm6, %v6723_v49  ;;  %v6725_v41 = vmul.f32 %v10502_v60, %v13696_v50  ;;  %vm6671_vm8 = vmor %vm6669_vm11, %vm6670_vm4  ;;  %v6690_v13 = vand.u32 2147483648, %v6621_v1  ;;  %v6688_v35 = vand.u32 2147483647, %v6621_v1 }
0x1a23   :  { %v6666_v38 = vsub.f32 1.0, %v6665_v33  ;;  %vm6684_vm12 = vweird.f32 %v6621_v1  ;;  %vm6730_vm14 = vweird.f32 %v10502_v60 }
0x1a24   :  { %v6726_v37 = vsub.f32 1.0, %v6725_v41  ;;  %vm6689_vm1 = vcmp.eq.f32.partialorder %v6688_v35, 8.507059e+37  ;;  %vm6731_vm2 = vmor %vm6729_vm15, %vm6730_vm14  ;;  %v6736_v41 = vor.u32 1.1754944e-38, %v6735_v34 }
0x1a25   :  { %v6667_v6 = vmul.f32 %v10500_v5, %v6666_v38 }
0x1a26   :  { %v6727_v4 = vmul.f32 %v10502_v60, %v6726_v37 }
0x1a27   :  { %v6668_v27 = vadd.f32 %v10500_v5, %v6667_v6 }
0x1a28   :  { %v10504_v58 = vpop.eup %10503 }
0x1a29   :  { %v6672_v45 = vsel %vm6671_vm8, %v10500_v5, %v6668_v27  ;;  %v6680_v47 = vmul.f32 %v10504_v58, %v6621_v1  ;;  %v6585_v14 = vpop.xlane.xlu2 %6584  ;;  %vm6685_vm10 = vweird.f32 %v10504_v58  ;;  %v6733_v1 = vand.u32 2147483647, %v13696_v50 }
0x1a2a   :  { %v6677_v56 = vsel %vm6674_vm9, %v6676_v46, %v6672_v45  ;;  %v6593_v18 = vsub.f32 %v13666_v28, %v6585_v14  ;;  %9678 = vmatmul.msk.f32.vlgmr.msrb.gmra.mxu2 %vm444_vm5, %v13690_v62  ;;  %vm6686_vm13 = vmor %vm6684_vm12, %vm6685_vm10  ;;  %v6691_v28 = vor.u32 1.1754944e-38, %v6690_v13  ;;  %v6728_v62 = vadd.f32 %v10502_v60, %v6727_v4 }
0x1a2b   :  { %v6678_v19 = vmul.f32 %v13656_v12, %v6677_v56  ;;  %v6681_v11 = vsub.f32 1.0, %v6680_v47  ;;  %vm6734_vm4 = vcmp.eq.f32.partialorder %v6733_v1, 8.507059e+37  ;;  %v7016_v47 = vpop.permute.xlu0 %7015 }
0x1a2c   :  { %v6608_v31 = vmul.f32 1.442695, %v6593_v18  ;;  %v6732_v23 = vsel %vm6731_vm2, %v10502_v60, %v6728_v62 }
0x1a2d   :  { %v6682_v30 = vmul.f32 %v10504_v58, %v6681_v11  ;;  %9662 = vmatmul.msk.f32.vlgmr.msra.gmra.mxu1 %vm587_vm6, %v6678_v19 }
0x1a2e   :  { %10505 = vpow2.f32 %v6608_v31 }
0x1a2f   :  { %v6683_v48 = vadd.f32 %v10504_v58, %v6682_v30 }
0x1a31   :  { %v6895_v5 = vpop.permute.xlu2 %6894  ;;  %v6687_v49 = vsel %vm6686_vm13, %v10504_v58, %v6683_v48  ;;  %v6737_v58 = vsel %vm6734_vm4, %v6736_v41, %v6732_v23 }
0x1a32   :  { %9670 = vmatmul.msk.f32.vlgmr.msrb.gmra.mxu0 %vm444_vm5, %v6895_v5  ;;  %v6692_v12 = vsel %vm6689_vm1, %v6691_v28, %v6687_v49  ;;  %v6738_v45 = vmul.f32 %v13651_v52, %v6737_v58 }
0x1a33   :  { %v6693_v33 = vmul.f32 %v13662_v57, %v6692_v12 }
0x1a34   :  { %v10506_v38 = vpop.eup %10505 }
0x1a35   :  { %9663 = vmatmul.msk.f32.gmra.mxu1 %vm587_vm6, %v6693_v33  ;;  %v6631_v6 = vsel %vm587_vm6, %v10506_v38, 0.0  ;;  %v7012_v33 = vpop.permute.xlu1 %7011 }
0x1a36   :  { %6632 = vadd.xlane.f32.xlu0 %v6631_v6 }
0x1a39   :  { %v9972_v27 = vpop.permute.xlu2 %9971 }
0x1a3a   :  { %v9973_v46 = vunpack.i.l.bf16 %v9972_v27  ;;  %v9974_v57 = vunpack.i.h.bf16 %v9972_v27 }
0x1a3c   :  { %6885 = vmatpush.msrb.mxu3 %v9973_v46 }
0x1a3e   :  { %6886 = vmatpush.msrb.mxu3 %v9974_v57 }
0x1a3f   :  { %9666 = vmatmul.msk.f32.vlgmr.msrb.gmra.mxu3 %vm587_vm6, %v6738_v45 }
0x1a40   :  { %9680 = vmatpush.xpose.msk.msra.mxu3 %vm444_vm5, %v13692_v7  ;;  %v13727_v7 = vpop.f32.mrf.mxu0 }
0x1a41   :  { %v6897_v50 = vpop.permute.xlu2 %6896 }
0x1a42   :  { %9671 = vmatmul.msk.f32.gmra.mxu0 %vm444_vm5, %v6897_v50 }
0x1a44   :  { %9681 = vmatpush.xpose.msk.msra.mxu3 %vm444_vm5, %v7016_v47 }
0x1a48   :  { %v13729_v56 = vpop.f32.mrf.mxu0 }
0x1a49   :  { %v6938_v60 = vpop.permute.xlu2 %6937 }
0x1a4a   :  { %7013 = vrot.lane.b32.xlu0 %v13562_v43, %s10720_s6  ;;  %9673 = vmatpush.xpose.msk.msrb.mxu1 %vm444_vm5, %v6938_v60 }
0x1a4d   :  { %9674 = vmatmul.msk.f32.vlgmr.msrb.gmra.mxu1 %vm444_vm5, %v13688_v29 }
0x1a51   :  { %v6975_v52 = vpop.permute.xlu2 %6974 }
0x1a52   :  { %9679 = vmatmul.msk.f32.gmra.mxu2 %vm444_vm5, %v6975_v52 }
0x1a59   :  { %v6936_v14 = vpop.permute.xlu2 %6935 }
0x1a5a   :  { %9675 = vmatmul.msk.f32.gmra.mxu1 %vm444_vm5, %v6936_v14 }
0x1a9d   :  { %v13738_v1 = vpop.f32.mrf.mxu2 }
0x1aa5   :  { %v13740_v6 = vpop.f32.mrf.mxu2 }
0x1aa9   :  { %v6633_v18 = vpop.xlane.xlu0 %6632 }
0x1aaa   :  { %10507 = vrcp.f32 %v6633_v18  ;;  %v6750_v29 = vand.u32 2147483648, %v6633_v18  ;;  %v6748_v35 = vand.u32 2147483647, %v6633_v18  ;;  %vm6744_vm8 = vweird.f32 %v6633_v18 }
0x1aac   :  { %v6751_v48 = vor.u32 1.1754944e-38, %v6750_v29  ;;  %vm6749_vm10 = vcmp.eq.f32.partialorder %v6748_v35, 8.507059e+37  ;;  %v9985_v35 = vpack.i.bf16 %v13516_v17, %v13529_v25 }
0x1aaf   :  { %v6927_v37 = vpop.f32.mrf.mxu0 }
0x1ab0   :  { %v10508_v19 = vpop.eup %10507  ;;  %v7050_v11 = vsel %vm587_vm6, %v6927_v37, -inf }
0x1ab1   :  { %v6740_v13 = vmul.f32 %v10508_v19, %v6633_v18  ;;  %7051 = vmax.xlane.f32.xlu2 %v7050_v11  ;;  %vm6745_vm11 = vweird.f32 %v10508_v19  ;;  %v13771_v11 = vpop.f32.mrf.mxu1 }
0x1ab2   :  { %vm6746_vm9 = vmor %vm6744_vm8, %vm6745_vm11 }
0x1ab3   :  { %v6741_v31 = vsub.f32 1.0, %v6740_v13 }
0x1ab5   :  { %v6742_v30 = vmul.f32 %v10508_v19, %v6741_v31 }
0x1ab7   :  { %v6743_v4 = vadd.f32 %v10508_v19, %v6742_v30 }
0x1ab9   :  { %v6747_v28 = vsel %vm6746_vm9, %v10508_v19, %v6743_v4  ;;  %v13777_v31 = vpop.f32.mrf.mxu1 }
0x1aba   :  { %v6752_v5 = vsel %vm6749_vm10, %v6751_v48, %v6747_v28 }
0x1abb   :  { %v6753_v49 = vmul.f32 %v10506_v38, %v6752_v5  ;;  %v13742_v38 = vpop.f32.mrf.mxu2 }
0x1abc   :  { %v7014_v34 = vpop.permute.xlu0 %7013 }
0x1abd   :  { %9667 = vmatmul.msk.f32.gmra.mxu3 %vm587_vm6, %v6753_v49 }
0x1abf   :  { %v6930_v12 = vpop.f32.mrf.mxu0 }
0x1ac0   :  { %v7053_v62 = vsel %vm587_vm6, %v6930_v12, -inf }
0x1ac1   :  { %7054 = vmax.xlane.f32.xlu1 %v7053_v62 }
0x1ac2   :  { %v13762_v14 = vpop.f32.mrf.mxu3 }
0x1ac5   :  { %9682 = vmatmul.msk.f32.vlgmr.msra.gmra.mxu3 %vm444_vm5, %v7012_v33 }
0x1aca   :  { %v13786_v4 = vpop.f32.mrf.mxu1 }
0x1acd   :  { %9683 = vmatmul.msk.f32.gmra.mxu3 %vm444_vm5, %v7014_v34 }
0x1ad5   :  { %v13744_v23 = vpop.f32.mrf.mxu2 }
0x1ad6   :  { %v7065_v41 = vsel %vm587_vm6, %v13744_v23, -inf }
0x1ad7   :  { %v13788_v48 = vpop.f32.mrf.mxu1 }
0x1ad8   :  { %v7059_v28 = vsel %vm587_vm6, %v13788_v48, -inf }
0x1ada   :  { %7388 = vrot.lane.b32.xlu1 %v13491_v10, %s10723_s9 }
0x1b04   :  { %7066 = vmax.xlane.f32.xlu1 %v7065_v41 }
0x1b1d   :  { %7382 = vrot.lane.b32.xlu1 %v13501_v44, %s10723_s9 }
0x1b24   :  { %v7052_v27 = vpop.xlane.xlu2 %7051 }
0x1b25   :  { %v7074_v58 = vsub.f32 %v6927_v37, %v7052_v27  ;;  %7384 = vrot.lane.b32.xlu1 %v13507_v54, %s10723_s9  ;;  %v9980_v37 = vpack.i.bf16 %v13510_v51, %v13525_v42 }
0x1b27   :  { %v7082_v46 = vmul.f32 1.442695, %v7074_v58 }
0x1b29   :  { %10509 = vpow2.f32 %v7082_v46 }
0x1b2d   :  { %9991 = vrot.lane.b32.xlu1 %v13676_v61, %s10718_s4 }
0x1b2f   :  { %v13754_v57 = vpop.eup %10509 }
0x1b30   :  { %v7098_v45 = vsel %vm587_vm6, %v13754_v57, 0.0 }
0x1b31   :  { %7099 = vadd.xlane.f32.xlu0 %v7098_v45 }
0x1b34   :  { %v7055_v50 = vpop.xlane.xlu1 %7054 }
0x1b35   :  { %v7075_v47 = vsub.f32 %v6930_v12, %v7055_v50  ;;  %7425 = vrot.lane.b32.xlu1 %v13516_v17, %s10723_s9  ;;  %v7056_v12 = vsel %vm587_vm6, %v13786_v4, -inf }
0x1b37   :  { %v7084_v60 = vmul.f32 1.442695, %v7075_v47 }
0x1b39   :  { %10511 = vpow2.f32 %v7084_v60 }
0x1b3f   :  { %v13760_v52 = vpop.eup %10511 }
0x1b40   :  { %v7101_v18 = vsel %vm587_vm6, %v13760_v52, 0.0  ;;  %v13769_v19 = vpop.f32.mrf.mxu3 }
0x1b41   :  { %7102 = vadd.xlane.f32.xlu2 %v7101_v18 }
0x1b45   :  { %9981 = vrot.lane.b32.xlu0 %v9980_v37, %s10718_s4 }
0x1b48   :  { %v13773_v13 = vpop.f32.mrf.mxu3 }
0x1b49   :  { %v7068_v33 = vsel %vm587_vm6, %v13773_v13, -inf }
0x1b4c   :  { %v7389_v5 = vpop.permute.xlu1 %7388 }
0x1b50   :  { %v13779_v29 = vpop.f32.mrf.mxu3 }
0x1b51   :  { %v7071_v30 = vsel %vm587_vm6, %v13779_v29, -inf }
0x1b59   :  { %9976 = vrot.lane.b32.xlu2 %v13592_v20, %s10718_s4 }
0x1b5f   :  { %7072 = vmax.xlane.f32.xlu1 %v7071_v30 }
0x1b61   :  { %9986 = vrot.lane.b32.xlu2 %v9985_v35, %s10718_s4 }
0x1b6f   :  { %7060 = vmax.xlane.f32.xlu0 %v7059_v28 }
0x1b77   :  { %v13794_v49 = vpop.xlane.xlu1 %7066 }
0x1b78   :  { %7421 = vrot.lane.b32.xlu1 %v13521_v3, %s10723_s9 }
0x1b8a   :  { %7057 = vmax.xlane.f32.xlu2 %v7056_v12 }
0x1b8f   :  { %v13798_v62 = vpop.permute.xlu1 %7382 }
0x1b92   :  { %7069 = vmax.xlane.f32.xlu2 %v7068_v33 }
0x1b97   :  { %v13802_v34 = vpop.permute.xlu1 %7384 }
0x1b9f   :  { %v9992_v41 = vpop.permute.xlu1 %9991 }
0x1ba0   :  { %v9993_v27 = vunpack.i.l.bf16 %v9992_v41  ;;  %v9994_v58 = vunpack.i.h.bf16 %v9992_v41 }
0x1ba2   :  { %7373 = vmatpush.msrb.mxu3 %v9993_v27 }
0x1ba4   :  { %v7100_v46 = vpop.xlane.xlu0 %7099  ;;  %7374 = vmatpush.msrb.mxu3 %v9994_v58 }
0x1ba5   :  { %10513 = vrcp.f32 %v7100_v46  ;;  %v7133_v30 = vand.u32 2147483648, %v7100_v46  ;;  %vm7127_vm13 = vweird.f32 %v7100_v46  ;;  %v7131_v28 = vand.u32 2147483647, %v7100_v46 }
0x1ba7   :  { %v7134_v58 = vor.u32 1.1754944e-38, %v7133_v30  ;;  %vm7132_vm14 = vcmp.eq.f32.partialorder %v7131_v28, 8.507059e+37 }
0x1baa   :  { %7386 = vrot.lane.b32.xlu2 %v13495_v0, %s10723_s9 }
0x1bab   :  { %v10514_v45 = vpop.eup %10513 }
0x1bac   :  { %v7123_v50 = vmul.f32 %v10514_v45, %v7100_v46  ;;  %vm7128_vm12 = vweird.f32 %v10514_v45 }
0x1bad   :  { %vm7129_vm1 = vmor %vm7127_vm13, %vm7128_vm12 }
0x1bae   :  { %v7124_v47 = vsub.f32 1.0, %v7123_v50 }
0x1bb0   :  { %v7125_v60 = vmul.f32 %v10514_v45, %v7124_v47 }
0x1bb2   :  { %v7126_v37 = vadd.f32 %v10514_v45, %v7125_v60 }
0x1bb4   :  { %v7103_v18 = vpop.xlane.xlu2 %7102  ;;  %v7130_v41 = vsel %vm7129_vm1, %v10514_v45, %v7126_v37 }
0x1bb5   :  { %10515 = vrcp.f32 %v7103_v18  ;;  %v7135_v47 = vsel %vm7132_vm14, %v7134_v58, %v7130_v41  ;;  %v7148_v60 = vand.u32 2147483648, %v7103_v18  ;;  %vm7142_vm2 = vweird.f32 %v7103_v18 }
0x1bb6   :  { %v7136_v21 = vmul.f32 %v13754_v57, %v7135_v47  ;;  %v13810_v57 = vpop.permute.xlu1 %7425 }
0x1bb7   :  { %v9982_v35 = vpop.permute.xlu0 %9981  ;;  %v7149_v37 = vor.u32 1.1754944e-38, %v7148_v60 }
0x1bb8   :  { %v9984_v12 = vunpack.i.h.bf16 %v9982_v35  ;;  %v9983_v33 = vunpack.i.l.bf16 %v9982_v35  ;;  %v7146_v35 = vand.u32 2147483647, %v7103_v18 }
0x1bba   :  { %7303 = vmatpush.msra.mxu1 %v9984_v12  ;;  %7338 = vmatpush.msra.mxu2 %v9983_v33  ;;  %vm7147_vm11 = vcmp.eq.f32.partialorder %v7146_v35, 8.507059e+37 }
0x1bbb   :  { %v10516_v27 = vpop.eup %10515 }
0x1bbc   :  { %v7138_v9 = vmul.f32 %v10516_v27, %v7103_v18  ;;  %v9977_v50 = vpop.permute.xlu2 %9976  ;;  %vm7143_vm15 = vweird.f32 %v10516_v27 }
0x1bbd   :  { %v9978_v36 = vunpack.i.l.bf16 %v9977_v50  ;;  %v9979_v22 = vunpack.i.h.bf16 %v9977_v50  ;;  %vm7144_vm4 = vmor %vm7142_vm2, %vm7143_vm15 }
0x1bbe   :  { %v7139_v55 = vsub.f32 1.0, %v7138_v9 }
0x1bbf   :  { %7268 = vmatpush.msra.mxu0 %v9978_v36 }
0x1bc0   :  { %v7140_v46 = vmul.f32 %v10516_v27, %v7139_v55 }
0x1bc1   :  { %7269 = vmatpush.msra.mxu0 %v9979_v22 }
0x1bc2   :  { %v7141_v45 = vadd.f32 %v10516_v27, %v7140_v46  ;;  %9684 = vmatmul.msk.f32.vlgmr.msra.gmra.mxu0 %vm587_vm6, %v7136_v21 }
0x1bc3   :  { %9692 = vmatpush.xpose.msk.msrb.mxu0 %vm444_vm5, %v7389_v5 }
0x1bc4   :  { %v9987_v30 = vpop.permute.xlu2 %9986  ;;  %v7145_v9 = vsel %vm7144_vm4, %v10516_v27, %v7141_v45 }
0x1bc5   :  { %v9989_v28 = vunpack.i.h.bf16 %v9987_v30  ;;  %v9988_v12 = vunpack.i.l.bf16 %v9987_v30  ;;  %v7150_v36 = vsel %vm7147_vm11, %v7149_v37, %v7145_v9 }
0x1bc6   :  { %v7151_v55 = vmul.f32 %v13760_v52, %v7150_v36 }
0x1bc7   :  { %7304 = vmatpush.msra.mxu1 %v9989_v28  ;;  %7339 = vmatpush.msra.mxu2 %v9988_v12 }
0x1bca   :  { %9685 = vmatmul.msk.f32.gmra.mxu0 %vm587_vm6, %v7151_v55 }
0x1bd2   :  { %v7073_v22 = vpop.xlane.xlu1 %7072 }
0x1bd3   :  { %v7081_v21 = vsub.f32 %v13779_v29, %v7073_v22 }
0x1bd5   :  { %v7096_v18 = vmul.f32 1.442695, %v7081_v21 }
0x1bd7   :  { %10517 = vpow2.f32 %v7096_v18 }
0x1bdd   :  { %v13814_v5 = vpop.eup %10517 }
0x1bde   :  { %v7119_v33 = vsel %vm587_vm6, %v13814_v5, 0.0 }
0x1bdf   :  { %7120 = vadd.xlane.f32.xlu2 %v7119_v33 }
0x1be2   :  { %v7061_v41 = vpop.xlane.xlu0 %7060 }
0x1be3   :  { %v7077_v58 = vsub.f32 %v13788_v48, %v7061_v41  ;;  %v7062_v48 = vsel %vm587_vm6, %v13742_v38, -inf }
0x1be5   :  { %v7088_v29 = vmul.f32 1.442695, %v7077_v58 }
0x1bf7   :  { %7423 = vrot.lane.b32.xlu2 %v13534_v63, %s10723_s9 }
0x1bfd   :  { %v7058_v52 = vpop.xlane.xlu2 %7057 }
0x1bfe   :  { %v7076_v27 = vsub.f32 %v13786_v4, %v7058_v52 }
0x1c00   :  { %v7086_v50 = vmul.f32 1.442695, %v7076_v27 }
0x1c02   :  { %10519 = vpow2.f32 %v7086_v50 }
0x1c03   :  { %10521 = vpow2.f32 %v7088_v29 }
0x1c05   :  { %v7070_v47 = vpop.xlane.xlu2 %7069 }
0x1c08   :  { %v10520_v60 = vpop.eup %10519 }
0x1c09   :  { %v7104_v46 = vsel %vm587_vm6, %v10520_v60, 0.0  ;;  %v10522_v45 = vpop.eup %10521 }
0x1c0a   :  { %7105 = vadd.xlane.f32.xlu0 %v7104_v46  ;;  %v7107_v4 = vsel %vm587_vm6, %v10522_v45, 0.0 }
0x1c0d   :  { %v7387_v35 = vpop.permute.xlu2 %7386 }
0x1c0e   :  { %9693 = vmatpush.xpose.msk.msrb.mxu0 %vm444_vm5, %v7387_v35  ;;  %v7079_v35 = vsub.f32 %v13744_v23, %v13794_v49 }
0x1c11   :  { %9694 = vmatmul.msk.f32.vlgmr.msrb.gmra.mxu0 %vm444_vm5, %v13798_v62  ;;  %v7080_v62 = vsub.f32 %v13773_v13, %v7070_v47 }
0x1c12   :  { %7108 = vadd.xlane.f32.xlu0 %v7107_v4 }
0x1c19   :  { %9695 = vmatmul.msk.f32.gmra.mxu0 %vm444_vm5, %v13802_v34  ;;  %v7094_v34 = vmul.f32 1.442695, %v7080_v62 }
0x1c1a   :  { %7063 = vmax.xlane.f32.xlu0 %v7062_v48 }
0x1c1b   :  { %10523 = vpow2.f32 %v7094_v34 }
0x1c21   :  { %v13842_v37 = vpop.eup %10523 }
0x1c22   :  { %v7116_v30 = vsel %vm587_vm6, %v13842_v37, 0.0 }
0x1c2e   :  { %7466 = vrot.lane.b32.xlu0 %v13525_v42, %s10723_s9 }
0x1c36   :  { %7427 = vrot.lane.b32.xlu0 %v13510_v51, %s10723_s9 }
0x1c3e   :  { %7464 = vrot.lane.b32.xlu0 %v13529_v25, %s10723_s9 }
0x1c46   :  { %7460 = vrot.lane.b32.xlu0 %v13539_v39, %s10723_s9 }
0x1c4e   :  { %7462 = vrot.lane.b32.xlu0 %v13546_v16, %s10723_s9 }
0x1c78   :  { %7117 = vadd.xlane.f32.xlu0 %v7116_v30 }
0x1c7d   :  { %v7106_v9 = vpop.xlane.xlu0 %7105 }
0x1c7e   :  { %10525 = vrcp.f32 %v7106_v9  ;;  %v7163_v22 = vand.u32 2147483648, %v7106_v9  ;;  %v7161_v18 = vand.u32 2147483647, %v7106_v9  ;;  %vm7157_vm9 = vweird.f32 %v7106_v9 }
0x1c80   :  { %v7164_v41 = vor.u32 1.1754944e-38, %v7163_v22  ;;  %vm7162_vm12 = vcmp.eq.f32.partialorder %v7161_v18, 8.507059e+37 }
0x1c84   :  { %v10526_v28 = vpop.eup %10525 }
0x1c85   :  { %v7153_v12 = vmul.f32 %v10526_v28, %v7106_v9  ;;  %v7109_v36 = vpop.xlane.xlu0 %7108  ;;  %vm7158_vm8 = vweird.f32 %v10526_v28  ;;  %v7092_v9 = vmul.f32 1.442695, %v7079_v35 }
0x1c86   :  { %10527 = vrcp.f32 %v7109_v36  ;;  %vm7159_vm10 = vmor %vm7157_vm9, %vm7158_vm8  ;;  %v7178_v4 = vand.u32 2147483648, %v7109_v36  ;;  %v7176_v34 = vand.u32 2147483647, %v7109_v36  ;;  %vm7172_vm1 = vweird.f32 %v7109_v36 }
0x1c87   :  { %v7154_v55 = vsub.f32 1.0, %v7153_v12 }
0x1c88   :  { %vm7177_vm15 = vcmp.eq.f32.partialorder %v7176_v34, 8.507059e+37 }
0x1c89   :  { %v7155_v21 = vmul.f32 %v10526_v28, %v7154_v55  ;;  %v13861_v55 = vpop.f32.mrf.mxu0 }
0x1c8b   :  { %v7156_v13 = vadd.f32 %v10526_v28, %v7155_v21 }
0x1c8c   :  { %v10528_v33 = vpop.eup %10527  ;;  %7503 = vrot.lane.b32.xlu0 %v13550_v40, %s10723_s9 }
0x1c8d   :  { %v7160_v52 = vsel %vm7159_vm10, %v10526_v28, %v7156_v13  ;;  %v7168_v27 = vmul.f32 %v10528_v33, %v7109_v36  ;;  %v7064_v58 = vpop.xlane.xlu0 %7063  ;;  %vm7173_vm13 = vweird.f32 %v10528_v33  ;;  %v7179_v28 = vor.u32 1.1754944e-38, %v7178_v4  ;;  %v7121_v13 = vpop.xlane.xlu2 %7120 }
0x1c8e   :  { %v7165_v50 = vsel %vm7162_vm12, %v7164_v41, %v7160_v52  ;;  %v7078_v29 = vsub.f32 %v13742_v38, %v7064_v58  ;;  %vm7174_vm14 = vmor %vm7172_vm1, %vm7173_vm13  ;;  %vm7232_vm10 = vweird.f32 %v7121_v13 }
0x1c8f   :  { %v7166_v47 = vmul.f32 %v10520_v60, %v7165_v50  ;;  %v7169_v46 = vsub.f32 1.0, %v7168_v27 }
0x1c90   :  { %v7090_v48 = vmul.f32 1.442695, %v7078_v29 }
0x1c91   :  { %v7170_v62 = vmul.f32 %v10528_v33, %v7169_v46  ;;  %9686 = vmatmul.msk.f32.vlgmr.msra.gmra.mxu1 %vm587_vm6, %v7166_v47 }
0x1c92   :  { %10529 = vpow2.f32 %v7090_v48 }
0x1c93   :  { %v7171_v30 = vadd.f32 %v10528_v33, %v7170_v62  ;;  %10531 = vpow2.f32 %v7092_v9 }
0x1c94   :  { %7501 = vrot.lane.b32.xlu0 %v13562_v43, %s10723_s9  ;;  %10533 = vrcp.f32 %v7121_v13 }
0x1c95   :  { %v7175_v38 = vsel %vm7174_vm14, %v10528_v33, %v7171_v30  ;;  %v7422_v33 = vpop.permute.xlu1 %7421  ;;  %v7424_v27 = vpop.permute.xlu2 %7423 }
0x1c96   :  { %v7180_v60 = vsel %vm7177_vm15, %v7179_v28, %v7175_v38 }
0x1c97   :  { %v7181_v23 = vmul.f32 %v10522_v45, %v7180_v60  ;;  %v13866_v45 = vpop.f32.mrf.mxu0 }
0x1c98   :  { %v13854_v49 = vpop.eup %10529 }
0x1c99   :  { %9687 = vmatmul.msk.f32.gmra.mxu1 %vm587_vm6, %v7181_v23  ;;  %v7110_v12 = vsel %vm587_vm6, %v13854_v49, 0.0  ;;  %v13859_v36 = vpop.eup %10531 }
0x1c9a   :  { %7111 = vadd.xlane.f32.xlu1 %v7110_v12  ;;  %v7113_v21 = vsel %vm587_vm6, %v13859_v36, 0.0  ;;  %v10534_v46 = vpop.eup %10533 }
0x1c9b   :  { %v7228_v35 = vmul.f32 %v10534_v46, %v7121_v13  ;;  %vm7233_vm8 = vweird.f32 %v10534_v46 }
0x1c9c   :  { %vm7234_vm12 = vmor %vm7232_vm10, %vm7233_vm8 }
0x1c9f   :  { %v13871_v41 = vpop.f32.mrf.mxu0 }
0x1ca0   :  { %v7467_v22 = vpop.permute.xlu0 %7466 }
0x1ca1   :  { %9700 = vmatpush.xpose.msk.msrb.mxu2 %vm444_vm5, %v7467_v22  ;;  %v7236_v22 = vand.u32 2147483647, %v7121_v13 }
0x1ca2   :  { %7114 = vadd.xlane.f32.xlu1 %v7113_v21 }
0x1ca3   :  { %vm7237_vm13 = vcmp.eq.f32.partialorder %v7236_v22, 8.507059e+37 }
0x1ca7   :  { %v13876_v58 = vpop.f32.mrf.mxu0 }
0x1ca8   :  { %v7428_v18 = vpop.permute.xlu0 %7427  ;;  %v7541_v50 = vsel %vm587_vm6, %v13876_v58, -inf }
0x1ca9   :  { %9696 = vmatpush.xpose.msk.msrb.mxu1 %vm444_vm5, %v7428_v18 }
0x1cad   :  { %9697 = vmatpush.xpose.msk.msrb.mxu1 %vm444_vm5, %v13810_v57 }
0x1cb0   :  { %v7465_v52 = vpop.permute.xlu0 %7464  ;;  %9698 = vmatmul.msk.f32.vlgmr.msrb.gmra.mxu1 %vm444_vm5, %v7422_v33 }
0x1cb1   :  { %9701 = vmatpush.xpose.msk.msrb.mxu2 %vm444_vm5, %v7465_v52 }
0x1cb8   :  { %9699 = vmatmul.msk.f32.gmra.mxu1 %vm444_vm5, %v7424_v27  ;;  %v13886_v57 = vpop.permute.xlu0 %7460 }
0x1cbb   :  { %7505 = vrot.lane.b32.xlu1 %v13543_v8, %s10723_s9 }
0x1cbe   :  { %7542 = vmax.xlane.f32.xlu0 %v7541_v50 }
0x1cc0   :  { %v13892_v29 = vpop.permute.xlu0 %7462 }
0x1cc3   :  { %7499 = vrot.lane.b32.xlu1 %v13557_v59, %s10723_s9 }
0x1cd2   :  { %7876 = vrot.lane.b32.xlu0 %v13491_v10, %s10726_s12  ;;  %v7538_v10 = vsel %vm587_vm6, %v13871_v41, -inf }
0x1cda   :  { %7870 = vrot.lane.b32.xlu0 %v13501_v44, %s10726_s12  ;;  %v7229_v44 = vsub.f32 1.0, %v7228_v35 }
0x1cdc   :  { %v7230_v30 = vmul.f32 %v10534_v46, %v7229_v44 }
0x1cde   :  { %v7231_v60 = vadd.f32 %v10534_v46, %v7230_v30 }
0x1ce0   :  { %v7235_v18 = vsel %vm7234_vm12, %v10534_v46, %v7231_v60 }
0x1ce2   :  { %10006 = vrot.lane.b32.xlu0 %v13598_v24, %s10721_s7 }
0x1cea   :  { %7872 = vrot.lane.b32.xlu0 %v13507_v54, %s10726_s12 }
0x1ceb   :  { %v7118_v47 = vpop.xlane.xlu0 %7117 }
0x1cec   :  { %10535 = vrcp.f32 %v7118_v47  ;;  %v7223_v34 = vand.u32 2147483648, %v7118_v47  ;;  %v7221_v54 = vand.u32 2147483647, %v7118_v47  ;;  %vm7217_vm4 = vweird.f32 %v7118_v47 }
0x1ced   :  { %7539 = vmax.xlane.f32.xlu1 %v7538_v10 }
0x1cee   :  { %v7224_v38 = vor.u32 1.1754944e-38, %v7223_v34  ;;  %vm7222_vm9 = vcmp.eq.f32.partialorder %v7221_v54, 8.507059e+37 }
0x1cf2   :  { %v10536_v4 = vpop.eup %10535  ;;  %7915 = vrot.lane.b32.xlu0 %v13510_v51, %s10726_s12  ;;  %v7238_v51 = vand.u32 2147483648, %v7121_v13 }
0x1cf3   :  { %v7213_v48 = vmul.f32 %v10536_v4, %v7118_v47  ;;  %vm7218_vm2 = vweird.f32 %v10536_v4 }
0x1cf4   :  { %vm7219_vm11 = vmor %vm7217_vm4, %vm7218_vm2  ;;  %v7239_v33 = vor.u32 1.1754944e-38, %v7238_v51 }
0x1cf5   :  { %v7214_v62 = vsub.f32 1.0, %v7213_v48 }
0x1cf6   :  { %v7240_v52 = vsel %vm7237_vm13, %v7239_v33, %v7235_v18 }
0x1cf7   :  { %v7215_v9 = vmul.f32 %v10536_v4, %v7214_v62  ;;  %v7241_v27 = vmul.f32 %v13814_v5, %v7240_v52 }
0x1cf9   :  { %v7216_v28 = vadd.f32 %v10536_v4, %v7215_v9 }
0x1cfa   :  { %7913 = vrot.lane.b32.xlu0 %v13516_v17, %s10726_s12 }
0x1cfb   :  { %v7220_v23 = vsel %vm7219_vm11, %v10536_v4, %v7216_v28 }
0x1cfc   :  { %v7225_v12 = vsel %vm7222_vm9, %v7224_v38, %v7220_v23 }
0x1cfd   :  { %v7226_v21 = vmul.f32 %v13842_v37, %v7225_v12 }
0x1cfe   :  { %v7504_v9 = vpop.permute.xlu0 %7503 }
0x1cff   :  { %9690 = vmatmul.msk.f32.vlgmr.msrb.gmra.mxu3 %vm587_vm6, %v7226_v21 }
0x1d06   :  { %v7502_v52 = vpop.permute.xlu0 %7501 }
0x1d07   :  { %9691 = vmatmul.msk.f32.gmra.mxu3 %vm587_vm6, %v7241_v27 }
0x1d0d   :  { %v7112_v17 = vpop.xlane.xlu1 %7111 }
0x1d0e   :  { %10537 = vrcp.f32 %v7112_v17  ;;  %v7193_v35 = vand.u32 2147483648, %v7112_v17  ;;  %v7191_v4 = vand.u32 2147483647, %v7112_v17  ;;  %vm7187_vm14 = vweird.f32 %v7112_v17  ;;  %v13906_v46 = vpop.f32.mrf.mxu1 }
0x1d10   :  { %v7194_v5 = vor.u32 1.1754944e-38, %v7193_v35  ;;  %vm7192_vm2 = vcmp.eq.f32.partialorder %v7191_v4, 8.507059e+37 }
0x1d14   :  { %v10538_v50 = vpop.eup %10537 }
0x1d15   :  { %v7183_v47 = vmul.f32 %v10538_v50, %v7112_v17  ;;  %v7115_v10 = vpop.xlane.xlu1 %7114  ;;  %vm7188_vm1 = vweird.f32 %v10538_v50 }
0x1d16   :  { %10539 = vrcp.f32 %v7115_v10  ;;  %vm7189_vm15 = vmor %vm7187_vm14, %vm7188_vm1  ;;  %v7208_v38 = vand.u32 2147483648, %v7115_v10  ;;  %v7206_v23 = vand.u32 2147483647, %v7115_v10  ;;  %vm7202_vm11 = vweird.f32 %v7115_v10  ;;  %v13910_v22 = vpop.f32.mrf.mxu1 }
0x1d17   :  { %v7184_v13 = vsub.f32 1.0, %v7183_v47 }
0x1d18   :  { %v7209_v12 = vor.u32 1.1754944e-38, %v7208_v38  ;;  %vm7207_vm9 = vcmp.eq.f32.partialorder %v7206_v23, 8.507059e+37 }
0x1d19   :  { %v7185_v37 = vmul.f32 %v10538_v50, %v7184_v13 }
0x1d1b   :  { %v7186_v44 = vadd.f32 %v10538_v50, %v7185_v37 }
0x1d1c   :  { %v10540_v48 = vpop.eup %10539 }
0x1d1d   :  { %v7190_v62 = vsel %vm7189_vm15, %v10538_v50, %v7186_v44  ;;  %v7198_v34 = vmul.f32 %v10540_v48, %v7115_v10  ;;  %vm7203_vm4 = vweird.f32 %v10540_v48 }
0x1d1e   :  { %v7195_v30 = vsel %vm7192_vm2, %v7194_v5, %v7190_v62  ;;  %vm7204_vm8 = vmor %vm7202_vm11, %vm7203_vm4 }
0x1d1f   :  { %v7196_v54 = vmul.f32 %v13854_v49, %v7195_v30  ;;  %v7199_v28 = vsub.f32 1.0, %v7198_v34 }
0x1d21   :  { %v7200_v60 = vmul.f32 %v10540_v48, %v7199_v28  ;;  %9688 = vmatmul.msk.f32.vlgmr.msra.gmra.mxu2 %vm587_vm6, %v7196_v54 }
0x1d23   :  { %v7201_v51 = vadd.f32 %v10540_v48, %v7200_v60 }
0x1d25   :  { %v7205_v21 = vsel %vm7204_vm8, %v10540_v48, %v7201_v51 }
0x1d26   :  { %v7210_v18 = vsel %vm7207_vm9, %v7209_v12, %v7205_v21 }
0x1d27   :  { %v7211_v33 = vmul.f32 %v13859_v36, %v7210_v18 }
0x1d29   :  { %9689 = vmatmul.msk.f32.gmra.mxu2 %vm587_vm6, %v7211_v33 }
0x1d2d   :  { %v13914_v49 = vpop.f32.mrf.mxu1  ;;  %v7506_v27 = vpop.permute.xlu1 %7505 }
0x1d2e   :  { %9704 = vmatpush.xpose.msk.msra.mxu3 %vm444_vm5, %v7506_v27 }
0x1d31   :  { %v7543_v17 = vpop.xlane.xlu0 %7542  ;;  %9702 = vmatmul.msk.f32.vlgmr.msrb.gmra.mxu2 %vm444_vm5, %v13886_v57 }
0x1d32   :  { %v7563_v50 = vsub.f32 %v13876_v58, %v7543_v17  ;;  %9705 = vmatpush.xpose.msk.msra.mxu3 %vm444_vm5, %v7504_v9  ;;  %v7544_v9 = vsel %vm587_vm6, %v13914_v49, -inf }
0x1d34   :  { %v7572_v47 = vmul.f32 1.442695, %v7563_v50 }
0x1d35   :  { %v13921_v10 = vpop.f32.mrf.mxu1  ;;  %v7500_v36 = vpop.permute.xlu1 %7499 }
0x1d36   :  { %10541 = vpow2.f32 %v7572_v47  ;;  %9706 = vmatmul.msk.f32.vlgmr.msra.gmra.mxu3 %vm444_vm5, %v7500_v36  ;;  %v7547_v13 = vsel %vm587_vm6, %v13921_v10, -inf }
0x1d37   :  { %7548 = vmax.xlane.f32.xlu0 %v7547_v13 }
0x1d39   :  { %9703 = vmatmul.msk.f32.gmra.mxu2 %vm444_vm5, %v13892_v29 }
0x1d3c   :  { %v13928_v35 = vpop.eup %10541 }
0x1d3d   :  { %v7589_v58 = vsel %vm587_vm6, %v13928_v35, 0.0 }
0x1d3e   :  { %7590 = vadd.xlane.f32.xlu2 %v7589_v58  ;;  %9707 = vmatmul.msk.f32.gmra.mxu3 %vm444_vm5, %v7502_v52 }
0x1d44   :  { %v13933_v57 = vpop.permute.xlu0 %7876 }
0x1d4c   :  { %v13935_v37 = vpop.permute.xlu0 %7870 }
0x1d54   :  { %v10007_v4 = vpop.permute.xlu0 %10006 }
0x1d55   :  { %v10008_v44 = vunpack.i.l.bf16 %v10007_v4  ;;  %v10009_v48 = vunpack.i.h.bf16 %v10007_v4 }
0x1d56   :  { %10001 = vrot.lane.b32.xlu2 %v13606_v32, %s10721_s7 }
0x1d57   :  { %7826 = vmatpush.msra.mxu2 %v10008_v44 }
0x1d59   :  { %7827 = vmatpush.msra.mxu2 %v10009_v48 }
0x1d5c   :  { %v13956_v38 = vpop.permute.xlu0 %7872 }
0x1d60   :  { %v7540_v29 = vpop.xlane.xlu1 %7539 }
0x1d61   :  { %v7562_v5 = vsub.f32 %v13871_v41, %v7540_v29 }
0x1d63   :  { %v7570_v62 = vmul.f32 1.442695, %v7562_v5 }
0x1d64   :  { %v7916_v21 = vpop.permute.xlu0 %7915 }
0x1d65   :  { %10543 = vpow2.f32 %v7570_v62 }
0x1d6b   :  { %v13940_v34 = vpop.eup %10543 }
0x1d6c   :  { %v7586_v30 = vsel %vm587_vm6, %v13940_v34, 0.0  ;;  %v7914_v47 = vpop.permute.xlu0 %7913 }
0x1d6d   :  { %7587 = vadd.xlane.f32.xlu1 %v7586_v30 }
0x1d7f   :  { %7545 = vmax.xlane.f32.xlu2 %v7544_v9 }
0x1d82   :  { %v13952_v41 = vpop.f32.mrf.mxu3 }
0x1d86   :  { %9996 = vrot.lane.b32.xlu1 %v13592_v20, %s10721_s7 }
0x1d8a   :  { %v13958_v60 = vpop.f32.mrf.mxu3 }
0x1d8e   :  { %7874 = vrot.lane.b32.xlu1 %v13495_v0, %s10726_s12 }
0x1da4   :  { %v13950_v54 = vpop.f32.mrf.mxu2 }
0x1daa   :  { %v7549_v5 = vpop.xlane.xlu0 %7548 }
0x1dac   :  { %v13954_v28 = vpop.f32.mrf.mxu2 }
0x1db1   :  { %v13960_v23 = vpop.xlane.xlu2 %7590 }
0x1db2   :  { %vm7630_vm15 = vweird.f32 %v13960_v23 }
0x1db4   :  { %v13962_v51 = vpop.f32.mrf.mxu2 }
0x1db5   :  { %v7550_v12 = vsel %vm587_vm6, %v13962_v51, -inf }
0x1db8   :  { %7551 = vmax.xlane.f32.xlu1 %v7550_v12 }
0x1db9   :  { %v10002_v0 = vpop.permute.xlu2 %10001  ;;  %v13966_v18 = vpop.f32.mrf.mxu3 }
0x1dba   :  { %v10003_v33 = vunpack.i.l.bf16 %v10002_v0  ;;  %v7556_v52 = vsel %vm587_vm6, %v13966_v18, -inf  ;;  %v10004_v27 = vunpack.i.h.bf16 %v10002_v0 }
0x1dbb   :  { %7557 = vmax.xlane.f32.xlu2 %v7556_v52 }
0x1dbc   :  { %v13970_v17 = vpop.f32.mrf.mxu2  ;;  %7791 = vmatpush.msra.mxu1 %v10003_v33 }
0x1dbd   :  { %v7553_v50 = vsel %vm587_vm6, %v13970_v17, -inf }
0x1dbe   :  { %7792 = vmatpush.msra.mxu1 %v10004_v27 }
0x1dc0   :  { %9720 = vmatpush.xpose.msk.msrb.mxu1 %vm444_vm5, %v7916_v21  ;;  %7554 = vmax.xlane.f32.xlu1 %v7553_v50 }
0x1dc4   :  { %9721 = vmatpush.xpose.msk.msrb.mxu1 %vm444_vm5, %v7914_v47 }
0x1dd3   :  { %7952 = vrot.lane.b32.xlu2 %v13529_v25, %s10726_s12 }
0x1dd9   :  { %7909 = vrot.lane.b32.xlu1 %v13521_v3, %s10726_s12 }
0x1de0   :  { %v7588_v36 = vpop.xlane.xlu1 %7587 }
0x1de1   :  { %10545 = vrcp.f32 %v7588_v36  ;;  %7950 = vrot.lane.b32.xlu1 %v13546_v16, %s10726_s12  ;;  %v7621_v3 = vand.u32 2147483648, %v7588_v36  ;;  %vm7615_vm12 = vweird.f32 %v7588_v36  ;;  %v7619_v12 = vand.u32 2147483647, %v7588_v36 }
0x1de2   :  { %10547 = vrcp.f32 %v13960_v23  ;;  %v7565_v16 = vsub.f32 %v13921_v10, %v7549_v5  ;;  %v7634_v10 = vand.u32 2147483647, %v13960_v23 }
0x1de3   :  { %v7622_v52 = vor.u32 1.1754944e-38, %v7621_v3  ;;  %vm7620_vm1 = vcmp.eq.f32.partialorder %v7619_v12, 8.507059e+37 }
0x1de4   :  { %v7576_v50 = vmul.f32 1.442695, %v7565_v16  ;;  %vm7635_vm4 = vcmp.eq.f32.partialorder %v7634_v10, 8.507059e+37 }
0x1de7   :  { %v10546_v13 = vpop.eup %10545 }
0x1de8   :  { %v7611_v58 = vmul.f32 %v10546_v13, %v7588_v36  ;;  %v10548_v44 = vpop.eup %10547  ;;  %vm7616_vm10 = vweird.f32 %v10546_v13 }
0x1de9   :  { %v7626_v48 = vmul.f32 %v10548_v44, %v13960_v23  ;;  %vm7617_vm13 = vmor %vm7615_vm12, %vm7616_vm10  ;;  %vm7631_vm14 = vweird.f32 %v10548_v44 }
0x1dea   :  { %v7612_v4 = vsub.f32 1.0, %v7611_v58  ;;  %vm7632_vm2 = vmor %vm7630_vm15, %vm7631_vm14 }
0x1deb   :  { %v7627_v62 = vsub.f32 1.0, %v7626_v48  ;;  %v7636_v48 = vand.u32 2147483648, %v13960_v23 }
0x1dec   :  { %v7613_v29 = vmul.f32 %v10546_v13, %v7612_v4 }
0x1ded   :  { %v7628_v0 = vmul.f32 %v10548_v44, %v7627_v62  ;;  %v7637_v62 = vor.u32 1.1754944e-38, %v7636_v48 }
0x1dee   :  { %v7614_v25 = vadd.f32 %v10546_v13, %v7613_v29 }
0x1def   :  { %v7629_v4 = vadd.f32 %v10548_v44, %v7628_v0 }
0x1df0   :  { %v7618_v33 = vsel %vm7617_vm13, %v10546_v13, %v7614_v25 }
0x1df1   :  { %v7623_v47 = vsel %vm7620_vm1, %v7622_v52, %v7618_v33  ;;  %v7633_v5 = vsel %vm7632_vm2, %v10548_v44, %v7629_v4  ;;  %v7535_v44 = vpop.f32.mrf.mxu3 }
0x1df2   :  { %v7546_v30 = vpop.xlane.xlu2 %7545  ;;  %v7624_v36 = vmul.f32 %v13940_v34, %v7623_v47  ;;  %v7638_v25 = vsel %vm7635_vm4, %v7637_v62, %v7633_v5 }
0x1df3   :  { %v7564_v9 = vsub.f32 %v13914_v49, %v7546_v30  ;;  %v7639_v30 = vmul.f32 %v13928_v35, %v7638_v25 }
0x1df5   :  { %v7574_v21 = vmul.f32 1.442695, %v7564_v9 }
0x1df7   :  { %10549 = vpow2.f32 %v7574_v21 }
0x1df8   :  { %v9997_v27 = vpop.permute.xlu1 %9996  ;;  %10551 = vpow2.f32 %v7576_v50 }
0x1df9   :  { %v9998_v58 = vunpack.i.l.bf16 %v9997_v27  ;;  %v9999_v49 = vunpack.i.h.bf16 %v9997_v27 }
0x1dfb   :  { %7756 = vmatpush.msra.mxu0 %v9998_v58 }
0x1dfd   :  { %v13990_v13 = vpop.eup %10549  ;;  %7757 = vmatpush.msra.mxu0 %v9999_v49 }
0x1dfe   :  { %9708 = vmatmul.msk.f32.vlgmr.msra.gmra.mxu0 %vm587_vm6, %v7624_v36  ;;  %v7592_v29 = vsel %vm587_vm6, %v13990_v13, 0.0  ;;  %v13997_v34 = vpop.eup %10551 }
0x1dff   :  { %9716 = vmatpush.xpose.msk.msrb.mxu0 %vm444_vm5, %v13933_v57  ;;  %7593 = vadd.xlane.f32.xlu0 %v7592_v29  ;;  %v7595_v3 = vsel %vm587_vm6, %v13997_v34, 0.0  ;;  %v7559_v57 = vsel %vm587_vm6, %v7535_v44, -inf }
0x1e00   :  { %v7875_v23 = vpop.permute.xlu1 %7874 }
0x1e03   :  { %9717 = vmatpush.xpose.msk.msrb.mxu0 %vm444_vm5, %v7875_v23 }
0x1e06   :  { %9709 = vmatmul.msk.f32.gmra.mxu0 %vm587_vm6, %v7639_v30 }
0x1e07   :  { %7596 = vadd.xlane.f32.xlu0 %v7595_v3 }
0x1e0e   :  { %9718 = vmatmul.msk.f32.vlgmr.msrb.gmra.mxu0 %vm444_vm5, %v13935_v37 }
0x1e0f   :  { %7560 = vmax.xlane.f32.xlu0 %v7559_v57 }
0x1e16   :  { %9719 = vmatmul.msk.f32.gmra.mxu0 %vm444_vm5, %v13956_v38 }
0x1e23   :  { %7954 = vrot.lane.b32.xlu0 %v13525_v42, %s10726_s12 }
0x1e2b   :  { %10011 = vrot.lane.b32.xlu0 %v13676_v61, %s10721_s7  ;;  %v7552_v35 = vpop.xlane.xlu1 %7551 }
0x1e2c   :  { %v7566_v9 = vsub.f32 %v13962_v51, %v7552_v35 }
0x1e2e   :  { %v7578_v12 = vmul.f32 1.442695, %v7566_v9  ;;  %v7558_v16 = vpop.xlane.xlu2 %7557 }
0x1e2f   :  { %v7568_v21 = vsub.f32 %v13966_v18, %v7558_v16 }
0x1e30   :  { %10553 = vpow2.f32 %v7578_v12 }
0x1e31   :  { %v7582_v37 = vmul.f32 1.442695, %v7568_v21 }
0x1e33   :  { %10555 = vpow2.f32 %v7582_v37  ;;  %7948 = vrot.lane.b32.xlu0 %v13539_v39, %s10726_s12  ;;  %v7555_v38 = vpop.xlane.xlu1 %7554 }
0x1e34   :  { %v7567_v0 = vsub.f32 %v13970_v17, %v7555_v38 }
0x1e36   :  { %v14018_v42 = vpop.eup %10553  ;;  %v7580_v33 = vmul.f32 1.442695, %v7567_v0 }
0x1e37   :  { %v7598_v52 = vsel %vm587_vm6, %v14018_v42, 0.0 }
0x1e38   :  { %10557 = vpow2.f32 %v7580_v33  ;;  %7599 = vadd.xlane.f32.xlu2 %v7598_v52 }
0x1e39   :  { %v14022_v51 = vpop.eup %10555 }
0x1e3a   :  { %v7604_v18 = vsel %vm587_vm6, %v14022_v51, 0.0 }
0x1e3b   :  { %7911 = vrot.lane.b32.xlu0 %v13534_v63, %s10726_s12  ;;  %7605 = vadd.xlane.f32.xlu1 %v7604_v18 }
0x1e3e   :  { %v14028_v39 = vpop.eup %10557 }
0x1e3f   :  { %v7601_v17 = vsel %vm587_vm6, %v14028_v39, 0.0 }
0x1e40   :  { %7602 = vadd.xlane.f32.xlu2 %v7601_v17 }
0x1e43   :  { %7993 = vrot.lane.b32.xlu0 %v13543_v8, %s10726_s12 }
0x1e4b   :  { %7989 = vrot.lane.b32.xlu0 %v13562_v43, %s10726_s12  ;;  %v7910_v17 = vpop.permute.xlu1 %7909 }
0x1e54   :  { %7987 = vrot.lane.b32.xlu1 %v13557_v59, %s10726_s12 }
0x1e72   :  { %v7594_v27 = vpop.xlane.xlu0 %7593 }
0x1e73   :  { %10559 = vrcp.f32 %v7594_v27  ;;  %v7651_v48 = vand.u32 2147483648, %v7594_v27  ;;  %v7649_v10 = vand.u32 2147483647, %v7594_v27  ;;  %vm7645_vm8 = vweird.f32 %v7594_v27 }
0x1e75   :  { %v7652_v43 = vor.u32 1.1754944e-38, %v7651_v48  ;;  %vm7650_vm10 = vcmp.eq.f32.partialorder %v7649_v10, 8.507059e+37  ;;  %v14059_v48 = vpop.permute.xlu1 %7950 }
0x1e79   :  { %v10560_v50 = vpop.eup %10559 }
0x1e7a   :  { %v7641_v63 = vmul.f32 %v10560_v50, %v7594_v27  ;;  %v7597_v47 = vpop.xlane.xlu0 %7596  ;;  %vm7646_vm11 = vweird.f32 %v10560_v50 }
0x1e7b   :  { %10561 = vrcp.f32 %v7597_v47  ;;  %v14038_v58 = vpop.f32.mrf.mxu0  ;;  %vm7647_vm9 = vmor %vm7645_vm8, %vm7646_vm11  ;;  %v7666_v57 = vand.u32 2147483648, %v7597_v47  ;;  %v7664_v12 = vand.u32 2147483647, %v7597_v47  ;;  %vm7660_vm13 = vweird.f32 %v7597_v47 }
0x1e7c   :  { %v7642_v4 = vsub.f32 1.0, %v7641_v63 }
0x1e7d   :  { %v7667_v21 = vor.u32 1.1754944e-38, %v7666_v57  ;;  %vm7665_vm14 = vcmp.eq.f32.partialorder %v7664_v12, 8.507059e+37 }
0x1e7e   :  { %v7643_v49 = vmul.f32 %v10560_v50, %v7642_v4 }
0x1e80   :  { %v7644_v8 = vadd.f32 %v10560_v50, %v7643_v49 }
0x1e81   :  { %v10562_v36 = vpop.eup %10561 }
0x1e82   :  { %v7648_v29 = vsel %vm7647_vm9, %v10560_v50, %v7644_v8  ;;  %v7656_v59 = vmul.f32 %v10562_v36, %v7597_v47  ;;  %v7561_v5 = vpop.xlane.xlu0 %7560  ;;  %vm7661_vm12 = vweird.f32 %v10562_v36 }
0x1e83   :  { %v7653_v62 = vsel %vm7650_vm10, %v7652_v43, %v7648_v29  ;;  %v7569_v23 = vsub.f32 %v7535_v44, %v7561_v5  ;;  %v14040_v25 = vpop.f32.mrf.mxu0  ;;  %vm7662_vm1 = vmor %vm7660_vm13, %vm7661_vm12 }
0x1e84   :  { %v7654_v30 = vmul.f32 %v13990_v13, %v7653_v62  ;;  %v7657_v3 = vsub.f32 1.0, %v7656_v59 }
0x1e85   :  { %v7584_v35 = vmul.f32 1.442695, %v7569_v23 }
0x1e86   :  { %v7658_v9 = vmul.f32 %v10562_v36, %v7657_v3  ;;  %9710 = vmatmul.msk.f32.vlgmr.msra.gmra.mxu1 %vm587_vm6, %v7654_v30 }
0x1e87   :  { %10563 = vpow2.f32 %v7584_v35 }
0x1e88   :  { %v7659_v16 = vadd.f32 %v10562_v36, %v7658_v9 }
0x1e8a   :  { %v7663_v37 = vsel %vm7662_vm1, %v10562_v36, %v7659_v16 }
0x1e8b   :  { %v14044_v44 = vpop.f32.mrf.mxu0  ;;  %v7668_v38 = vsel %vm7665_vm14, %v7667_v21, %v7663_v37 }
0x1e8c   :  { %v7669_v13 = vmul.f32 %v13997_v34, %v7668_v38  ;;  %v7953_v34 = vpop.permute.xlu2 %7952 }
0x1e8d   :  { %v14047_v0 = vpop.eup %10563 }
0x1e8e   :  { %9711 = vmatmul.msk.f32.gmra.mxu1 %vm587_vm6, %v7669_v13  ;;  %v7607_v33 = vsel %vm587_vm6, %v14047_v0, 0.0 }
0x1e8f   :  { %7608 = vadd.xlane.f32.xlu2 %v7607_v33 }
0x1e93   :  { %v14052_v52 = vpop.f32.mrf.mxu0 }
0x1e94   :  { %v8029_v18 = vsel %vm587_vm6, %v14052_v52, -inf }
0x1e95   :  { %v7955_v27 = vpop.permute.xlu0 %7954  ;;  %8030 = vmax.xlane.f32.xlu1 %v8029_v18 }
0x1e96   :  { %9722 = vmatmul.msk.f32.vlgmr.msrb.gmra.mxu1 %vm444_vm5, %v7910_v17  ;;  %9724 = vmatpush.xpose.msk.msrb.mxu2 %vm444_vm5, %v7955_v27 }
0x1e9a   :  { %9725 = vmatpush.xpose.msk.msrb.mxu2 %vm444_vm5, %v7953_v34 }
0x1e9d   :  { %v10012_v50 = vpop.permute.xlu0 %10011 }
0x1e9e   :  { %v10013_v63 = vunpack.i.l.bf16 %v10012_v50  ;;  %v10014_v47 = vunpack.i.h.bf16 %v10012_v50 }
0x1ea0   :  { %7861 = vmatpush.msrb.mxu3 %v10013_v63 }
0x1ea2   :  { %7862 = vmatpush.msrb.mxu3 %v10014_v47 }
0x1ea5   :  { %v7949_v4 = vpop.permute.xlu0 %7948 }
0x1ea7   :  { %7991 = vrot.lane.b32.xlu2 %v13550_v40, %s10726_s12 }
0x1eab   :  { %v7600_v49 = vpop.xlane.xlu2 %7599 }
0x1eac   :  { %10565 = vrcp.f32 %v7600_v49  ;;  %v7681_v23 = vand.u32 2147483648, %v7600_v49  ;;  %v7679_v40 = vand.u32 2147483647, %v7600_v49  ;;  %vm7675_vm2 = vweird.f32 %v7600_v49 }
0x1ead   :  { %v7912_v10 = vpop.permute.xlu0 %7911 }
0x1eae   :  { %9723 = vmatmul.msk.f32.gmra.mxu1 %vm444_vm5, %v7912_v10  ;;  %v7606_v8 = vpop.xlane.xlu1 %7605  ;;  %v7682_v16 = vor.u32 1.1754944e-38, %v7681_v23  ;;  %vm7680_vm8 = vcmp.eq.f32.partialorder %v7679_v40, 8.507059e+37 }
0x1eaf   :  { %10567 = vrcp.f32 %v7606_v8  ;;  %v7711_v9 = vand.u32 2147483648, %v7606_v8  ;;  %v7709_v37 = vand.u32 2147483647, %v7606_v8  ;;  %vm7705_vm9 = vweird.f32 %v7606_v8 }
0x1eb1   :  { %v7712_v27 = vor.u32 1.1754944e-38, %v7711_v9  ;;  %vm7710_vm12 = vcmp.eq.f32.partialorder %v7709_v37, 8.507059e+37 }
0x1eb2   :  { %v10566_v36 = vpop.eup %10565 }
0x1eb3   :  { %v7671_v43 = vmul.f32 %v10566_v36, %v7600_v49  ;;  %v7603_v29 = vpop.xlane.xlu2 %7602  ;;  %vm7676_vm15 = vweird.f32 %v10566_v36 }
0x1eb4   :  { %10569 = vrcp.f32 %v7603_v29  ;;  %vm7677_vm4 = vmor %vm7675_vm2, %vm7676_vm15  ;;  %v7696_v63 = vand.u32 2147483648, %v7603_v29  ;;  %v7694_v10 = vand.u32 2147483647, %v7603_v29  ;;  %vm7690_vm1 = vweird.f32 %v7603_v29 }
0x1eb5   :  { %v10568_v59 = vpop.eup %10567  ;;  %v7672_v5 = vsub.f32 1.0, %v7671_v43  ;;  %v7994_v62 = vpop.permute.xlu0 %7993 }
0x1eb6   :  { %v7701_v30 = vmul.f32 %v10568_v59, %v7606_v8  ;;  %9728 = vmatpush.xpose.msk.msra.mxu3 %vm444_vm5, %v7994_v62  ;;  %vm7706_vm11 = vweird.f32 %v10568_v59  ;;  %v7697_v8 = vor.u32 1.1754944e-38, %v7696_v63  ;;  %vm7695_vm15 = vcmp.eq.f32.partialorder %v7694_v10, 8.507059e+37 }
0x1eb7   :  { %v7673_v3 = vmul.f32 %v10566_v36, %v7672_v5  ;;  %vm7707_vm10 = vmor %vm7705_vm9, %vm7706_vm11  ;;  %v8026_v62 = vsel %vm587_vm6, %v14044_v44, -inf }
0x1eb8   :  { %v7702_v57 = vsub.f32 1.0, %v7701_v30 }
0x1eb9   :  { %v7674_v35 = vadd.f32 %v10566_v36, %v7673_v3 }
0x1eba   :  { %v10570_v12 = vpop.eup %10569  ;;  %v7703_v21 = vmul.f32 %v10568_v59, %v7702_v57 }
0x1ebb   :  { %v7678_v38 = vsel %vm7677_vm4, %v10566_v36, %v7674_v35  ;;  %v7686_v13 = vmul.f32 %v10570_v12, %v7603_v29  ;;  %vm7691_vm13 = vweird.f32 %v10570_v12 }
0x1ebc   :  { %v7683_v33 = vsel %vm7680_vm8, %v7682_v16, %v7678_v38  ;;  %v7704_v18 = vadd.f32 %v10568_v59, %v7703_v21  ;;  %vm7692_vm14 = vmor %vm7690_vm1, %vm7691_vm13 }
0x1ebd   :  { %v7684_v17 = vmul.f32 %v14018_v42, %v7683_v33  ;;  %v7687_v34 = vsub.f32 1.0, %v7686_v13  ;;  %v7990_v33 = vpop.permute.xlu0 %7989 }
0x1ebe   :  { %v7708_v50 = vsel %vm7707_vm10, %v10568_v59, %v7704_v18 }
0x1ebf   :  { %v7713_v47 = vsel %vm7710_vm12, %v7712_v27, %v7708_v50  ;;  %v7688_v49 = vmul.f32 %v10570_v12, %v7687_v34  ;;  %9712 = vmatmul.msk.f32.vlgmr.msra.gmra.mxu2 %vm587_vm6, %v7684_v17 }
0x1ec0   :  { %v7714_v36 = vmul.f32 %v14022_v51, %v7713_v47 }
0x1ec1   :  { %v7689_v43 = vadd.f32 %v10570_v12, %v7688_v49 }
0x1ec2   :  { %9714 = vmatmul.msk.f32.vlgmr.msrb.gmra.mxu3 %vm587_vm6, %v7714_v36 }
0x1ec3   :  { %v7693_v42 = vsel %vm7692_vm14, %v10570_v12, %v7689_v43 }
0x1ec4   :  { %v7698_v5 = vsel %vm7695_vm15, %v7697_v8, %v7693_v42 }
0x1ec5   :  { %v7699_v59 = vmul.f32 %v14028_v39, %v7698_v5 }
0x1ec6   :  { %v7988_v13 = vpop.permute.xlu1 %7987 }
0x1ec7   :  { %9713 = vmatmul.msk.f32.gmra.mxu2 %vm587_vm6, %v7699_v59 }
0x1ecf   :  { %9726 = vmatmul.msk.f32.vlgmr.msrb.gmra.mxu2 %vm444_vm5, %v7949_v4 }
0x1ed0   :  { %8027 = vmax.xlane.f32.xlu2 %v8026_v62 }
0x1ed7   :  { %9727 = vmatmul.msk.f32.gmra.mxu2 %vm444_vm5, %v14059_v48 }
0x1f02   :  { %v7609_v51 = vpop.xlane.xlu2 %7608 }
0x1f03   :  { %10571 = vrcp.f32 %v7609_v51  ;;  %v14076_v29 = vpop.f32.mrf.mxu1  ;;  %v7726_v4 = vand.u32 2147483648, %v7609_v51  ;;  %v7724_v35 = vand.u32 2147483647, %v7609_v51  ;;  %vm7720_vm4 = vweird.f32 %v7609_v51 }
0x1f05   :  { %v7727_v48 = vor.u32 1.1754944e-38, %v7726_v4  ;;  %vm7725_vm8 = vcmp.eq.f32.partialorder %v7724_v35, 8.507059e+37 }
0x1f08   :  { %v8031_v42 = vpop.xlane.xlu1 %8030 }
0x1f09   :  { %v10572_v23 = vpop.eup %10571  ;;  %v8051_v5 = vsub.f32 %v14052_v52, %v8031_v42 }
0x1f0a   :  { %v7716_v30 = vmul.f32 %v10572_v23, %v7609_v51  ;;  %v7992_v3 = vpop.permute.xlu2 %7991  ;;  %vm7721_vm2 = vweird.f32 %v10572_v23 }
0x1f0b   :  { %v14078_v40 = vpop.f32.mrf.mxu1  ;;  %9729 = vmatpush.xpose.msk.msra.mxu3 %vm444_vm5, %v7992_v3  ;;  %vm7722_vm11 = vmor %vm7720_vm4, %vm7721_vm2  ;;  %v8060_v62 = vmul.f32 1.442695, %v8051_v5 }
0x1f0c   :  { %v7717_v39 = vsub.f32 1.0, %v7716_v30 }
0x1f0e   :  { %v7718_v57 = vmul.f32 %v10572_v23, %v7717_v39 }
0x1f10   :  { %v7719_v9 = vadd.f32 %v10572_v23, %v7718_v57 }
0x1f12   :  { %v7723_v12 = vsel %vm7722_vm11, %v10572_v23, %v7719_v9 }
0x1f13   :  { %v7942_v16 = vpop.f32.mrf.mxu1  ;;  %v7728_v21 = vsel %vm7725_vm8, %v7727_v48, %v7723_v12 }
0x1f14   :  { %v8032_v37 = vsel %vm587_vm6, %v7942_v16, -inf  ;;  %v7729_v38 = vmul.f32 %v14047_v0, %v7728_v21 }
0x1f15   :  { %8033 = vmax.xlane.f32.xlu0 %v8032_v37 }
0x1f16   :  { %9715 = vmatmul.msk.f32.gmra.mxu3 %vm587_vm6, %v7729_v38 }
0x1f1e   :  { %9730 = vmatmul.msk.f32.vlgmr.msra.gmra.mxu3 %vm444_vm5, %v7988_v13 }
0x1f26   :  { %9731 = vmatmul.msk.f32.gmra.mxu3 %vm444_vm5, %v7990_v33 }
0x1f2b   :  { %v7945_v18 = vpop.f32.mrf.mxu1 }
0x1f2c   :  { %v8035_v17 = vsel %vm587_vm6, %v7945_v18, -inf }
0x1f2d   :  { %8036 = vmax.xlane.f32.xlu2 %v8035_v17 }
0x1f42   :  { %v14087_v27 = vpop.f32.mrf.mxu2 }
0x1f43   :  { %v8028_v50 = vpop.xlane.xlu2 %8027 }
0x1f44   :  { %v8050_v0 = vsub.f32 %v14044_v44, %v8028_v50 }
0x1f45   :  { %v14104_v44 = vpop.f32.mrf.mxu3 }
0x1f46   :  { %v8058_v49 = vmul.f32 1.442695, %v8050_v0 }
0x1f48   :  { %10573 = vpow2.f32 %v8058_v49 }
0x1f49   :  { %10575 = vpow2.f32 %v8060_v62 }
0x1f4a   :  { %v14089_v34 = vpop.f32.mrf.mxu2 }
0x1f4e   :  { %v14094_v43 = vpop.eup %10573 }
0x1f4f   :  { %v8074_v8 = vsel %vm587_vm6, %v14094_v43, 0.0  ;;  %v14113_v4 = vpop.eup %10575 }
0x1f50   :  { %v8077_v35 = vsel %vm587_vm6, %v14113_v4, 0.0 }
0x1f52   :  { %v7981_v63 = vpop.f32.mrf.mxu2 }
0x1f53   :  { %v8038_v47 = vsel %vm587_vm6, %v7981_v63, -inf }
0x1f54   :  { %8039 = vmax.xlane.f32.xlu1 %v8038_v47 }
0x1f5a   :  { %v7984_v10 = vpop.f32.mrf.mxu2 }
0x1f5b   :  { %v8041_v36 = vsel %vm587_vm6, %v7984_v10, -inf }
0x1f5c   :  { %8042 = vmax.xlane.f32.xlu0 %v8041_v36 }
0x1f64   :  { %8075 = vadd.xlane.f32.xlu0 %v8074_v8 }
0x1f78   :  { %10016 = vrot.lane.b32.xlu0 %v13592_v20, %s10725_s11 }
0x1f80   :  { %10026 = vrot.lane.b32.xlu0 %v13598_v24, %s10725_s11 }
0x1f88   :  { %10031 = vrot.lane.b32.xlu0 %v13676_v61, %s10725_s11  ;;  %v8034_v51 = vpop.xlane.xlu0 %8033 }
0x1f89   :  { %v8052_v23 = vsub.f32 %v7942_v16, %v8034_v51 }
0x1f8b   :  { %v8062_v61 = vmul.f32 1.442695, %v8052_v23 }
0x1f8d   :  { %10577 = vpow2.f32 %v8062_v61 }
0x1f93   :  { %v14121_v9 = vpop.eup %10577 }
0x1f94   :  { %v8080_v12 = vsel %vm587_vm6, %v14121_v9, 0.0 }
0x1f99   :  { %v14107_v59 = vpop.f32.mrf.mxu3 }
0x1fa0   :  { %v8037_v30 = vpop.xlane.xlu2 %8036 }
0x1fa1   :  { %v8053_v3 = vsub.f32 %v7945_v18, %v8037_v30  ;;  %v14109_v20 = vpop.f32.mrf.mxu3 }
0x1fa2   :  { %v8044_v24 = vsel %vm587_vm6, %v14109_v20, -inf }
0x1fa3   :  { %8045 = vmax.xlane.f32.xlu2 %v8044_v24  ;;  %v8064_v39 = vmul.f32 1.442695, %v8053_v3 }
0x1fa5   :  { %10579 = vpow2.f32 %v8064_v39 }
0x1fa9   :  { %v14115_v52 = vpop.f32.mrf.mxu3 }
0x1faa   :  { %v8047_v57 = vsel %vm587_vm6, %v14115_v52, -inf }
0x1fab   :  { %8048 = vmax.xlane.f32.xlu1 %v8047_v57  ;;  %8078 = vadd.xlane.f32.xlu2 %v8077_v35  ;;  %v14123_v48 = vpop.eup %10579 }
0x1fac   :  { %v8083_v16 = vsel %vm587_vm6, %v14123_v48, 0.0 }
0x1fb3   :  { %8081 = vadd.xlane.f32.xlu1 %v8080_v12  ;;  %8084 = vadd.xlane.f32.xlu2 %v8083_v16 }
0x1fc7   :  { %v8040_v21 = vpop.xlane.xlu1 %8039 }
0x1fc8   :  { %v8054_v37 = vsub.f32 %v7981_v63, %v8040_v21 }
0x1fca   :  { %v8066_v38 = vmul.f32 1.442695, %v8054_v37 }
0x1fcb   :  { %10021 = vrot.lane.b32.xlu2 %v13606_v32, %s10725_s11 }
0x1fcc   :  { %10581 = vpow2.f32 %v8066_v38 }
0x1fcf   :  { %v8043_v13 = vpop.xlane.xlu0 %8042 }
0x1fd0   :  { %v8055_v33 = vsub.f32 %v7984_v10, %v8043_v13 }
0x1fd2   :  { %v14131_v18 = vpop.eup %10581  ;;  %v8068_v17 = vmul.f32 1.442695, %v8055_v33 }
0x1fd3   :  { %8366 = vrot.lane.b32.xlu2 %v13861_v55, %s10715_s15  ;;  %v8086_v50 = vsel %vm587_vm6, %v14131_v18, 0.0 }
0x1fd4   :  { %10583 = vpow2.f32 %v8068_v17  ;;  %8087 = vadd.xlane.f32.xlu1 %v8086_v50 }
0x1fd7   :  { %v8076_v0 = vpop.xlane.xlu0 %8075 }
0x1fd8   :  { %10585 = vrcp.f32 %v8076_v0  ;;  %v8109_v8 = vand.u32 2147483648, %v8076_v0  ;;  %vm8103_vm10 = vweird.f32 %v8076_v0  ;;  %v8107_v42 = vand.u32 2147483647, %v8076_v0 }
0x1fda   :  { %v14137_v63 = vpop.eup %10583  ;;  %v8110_v62 = vor.u32 1.1754944e-38, %v8109_v8  ;;  %vm8108_vm13 = vcmp.eq.f32.partialorder %v8107_v42, 8.507059e+37 }
0x1fdb   :  { %8368 = vrot.lane.b32.xlu2 %v13866_v45, %s10715_s15  ;;  %v8089_v32 = vsel %vm587_vm6, %v14137_v63, 0.0 }
0x1fdc   :  { %8090 = vadd.xlane.f32.xlu1 %v8089_v32 }
0x1fde   :  { %v10586_v47 = vpop.eup %10585 }
0x1fdf   :  { %v8099_v49 = vmul.f32 %v10586_v47, %v8076_v0  ;;  %vm8104_vm9 = vweird.f32 %v10586_v47 }
0x1fe0   :  { %vm8105_vm12 = vmor %vm8103_vm10, %vm8104_vm9 }
0x1fe1   :  { %v8100_v10 = vsub.f32 1.0, %v8099_v49 }
0x1fe3   :  { %v8101_v55 = vmul.f32 %v10586_v47, %v8100_v10 }
0x1fe5   :  { %v8102_v36 = vadd.f32 %v10586_v47, %v8101_v55 }
0x1fe7   :  { %v8106_v5 = vsel %vm8105_vm12, %v10586_v47, %v8102_v36 }
0x1fe8   :  { %v8111_v23 = vsel %vm8108_vm13, %v8110_v62, %v8106_v5 }
0x1fe9   :  { %v8112_v3 = vmul.f32 %v14094_v43, %v8111_v23 }
0x1fea   :  { %v10017_v51 = vpop.permute.xlu0 %10016 }
0x1feb   :  { %v10018_v45 = vunpack.i.l.bf16 %v10017_v51  ;;  %v10019_v30 = vunpack.i.h.bf16 %v10017_v51 }
0x1fed   :  { %8244 = vmatpush.msra.mxu0 %v10018_v45 }
0x1fef   :  { %8245 = vmatpush.msra.mxu0 %v10019_v30 }
0x1ff0   :  { %9732 = vmatmul.msk.f32.vlgmr.msra.gmra.mxu0 %vm587_vm6, %v8112_v3 }
0x1ff2   :  { %v10027_v24 = vpop.permute.xlu0 %10026 }
0x1ff3   :  { %v10028_v61 = vunpack.i.l.bf16 %v10027_v24  ;;  %v10029_v39 = vunpack.i.h.bf16 %v10027_v24 }
0x1ff5   :  { %8314 = vmatpush.msra.mxu2 %v10028_v61 }
0x1ff7   :  { %8315 = vmatpush.msra.mxu2 %v10029_v39 }
0x1ffa   :  { %v10032_v57 = vpop.permute.xlu0 %10031 }
0x1ffb   :  { %v10033_v35 = vunpack.i.l.bf16 %v10032_v57  ;;  %v10034_v12 = vunpack.i.h.bf16 %v10032_v57 }
0x1ffd   :  { %8349 = vmatpush.msrb.mxu3 %v10033_v35 }
0x1fff   :  { %8350 = vmatpush.msrb.mxu3 %v10034_v12 }
0x2016   :  { %v8046_v16 = vpop.xlane.xlu2 %8045 }
0x2017   :  { %v8056_v21 = vsub.f32 %v14109_v20, %v8046_v16 }
0x2019   :  { %v8070_v37 = vmul.f32 1.442695, %v8056_v21 }
0x201b   :  { %10587 = vpow2.f32 %v8070_v37 }
0x201e   :  { %v8079_v38 = vpop.xlane.xlu2 %8078  ;;  %v8049_v43 = vpop.xlane.xlu1 %8048 }
0x201f   :  { %10589 = vrcp.f32 %v8079_v38  ;;  %v8057_v13 = vsub.f32 %v14115_v52, %v8049_v43  ;;  %v8124_v52 = vand.u32 2147483648, %v8079_v38  ;;  %v8122_v36 = vand.u32 2147483647, %v8079_v38 }
0x2020   :  { %vm8118_vm14 = vweird.f32 %v8079_v38 }
0x2021   :  { %v14147_v33 = vpop.eup %10587  ;;  %v8072_v17 = vmul.f32 1.442695, %v8057_v13  ;;  %v8125_v51 = vor.u32 1.1754944e-38, %v8124_v52  ;;  %vm8123_vm2 = vcmp.eq.f32.partialorder %v8122_v36, 8.507059e+37 }
0x2022   :  { %v8092_v50 = vsel %vm587_vm6, %v14147_v33, 0.0 }
0x2023   :  { %8093 = vadd.xlane.f32.xlu1 %v8092_v50  ;;  %10591 = vpow2.f32 %v8072_v17 }
0x2025   :  { %v10590_v0 = vpop.eup %10589 }
0x2026   :  { %v8114_v32 = vmul.f32 %v10590_v0, %v8079_v38  ;;  %v8085_v47 = vpop.xlane.xlu2 %8084  ;;  %v8082_v49 = vpop.xlane.xlu1 %8081  ;;  %vm8119_vm1 = vweird.f32 %v10590_v0 }
0x2027   :  { %10593 = vrcp.f32 %v8085_v47  ;;  %vm8120_vm15 = vmor %vm8118_vm14, %vm8119_vm1  ;;  %v8139_v16 = vand.u32 2147483648, %v8082_v49  ;;  %v8137_v38 = vand.u32 2147483647, %v8082_v49  ;;  %vm8133_vm11 = vweird.f32 %v8082_v49 }
0x2028   :  { %v8115_v20 = vsub.f32 1.0, %v8114_v32  ;;  %10595 = vrcp.f32 %v8082_v49  ;;  %vm8148_vm12 = vweird.f32 %v8085_v47 }
0x2029   :  { %v14151_v10 = vpop.eup %10591  ;;  %v8140_v13 = vor.u32 1.1754944e-38, %v8139_v16  ;;  %vm8138_vm10 = vcmp.eq.f32.partialorder %v8137_v38, 8.507059e+37 }
0x202a   :  { %v8116_v55 = vmul.f32 %v10590_v0, %v8115_v20  ;;  %v8095_v8 = vsel %vm587_vm6, %v14151_v10, 0.0 }
0x202b   :  { %8096 = vadd.xlane.f32.xlu1 %v8095_v8 }
0x202c   :  { %v8117_v42 = vadd.f32 %v10590_v0, %v8116_v55 }
0x202d   :  { %v10594_v5 = vpop.eup %10593 }
0x202e   :  { %v10596_v62 = vpop.eup %10595  ;;  %v8144_v23 = vmul.f32 %v10594_v5, %v8085_v47  ;;  %v10022_v45 = vpop.permute.xlu2 %10021  ;;  %v8121_v30 = vsel %vm8120_vm15, %v10590_v0, %v8117_v42  ;;  %vm8149_vm9 = vweird.f32 %v10594_v5  ;;  %v8154_v0 = vand.u32 2147483648, %v8085_v47 }
0x202f   :  { %v8129_v3 = vmul.f32 %v10596_v62, %v8082_v49  ;;  %v10023_v24 = vunpack.i.l.bf16 %v10022_v45  ;;  %v8126_v39 = vsel %vm8123_vm2, %v8125_v51, %v8121_v30  ;;  %v10024_v35 = vunpack.i.h.bf16 %v10022_v45  ;;  %vm8150_vm13 = vmor %vm8148_vm12, %vm8149_vm9 }
0x2030   :  { %v8145_v61 = vsub.f32 1.0, %v8144_v23  ;;  %v8127_v12 = vmul.f32 %v14113_v4, %v8126_v39  ;;  %vm8134_vm4 = vweird.f32 %v10596_v62  ;;  %v8152_v4 = vand.u32 2147483647, %v8085_v47 }
0x2031   :  { %v8130_v57 = vsub.f32 1.0, %v8129_v3  ;;  %8279 = vmatpush.msra.mxu1 %v10023_v24  ;;  %vm8135_vm8 = vmor %vm8133_vm11, %vm8134_vm4  ;;  %v8155_v52 = vor.u32 1.1754944e-38, %v8154_v0 }
0x2032   :  { %v8146_v21 = vmul.f32 %v10594_v5, %v8145_v61  ;;  %9733 = vmatmul.msk.f32.gmra.mxu0 %vm587_vm6, %v8127_v12  ;;  %vm8153_vm1 = vcmp.eq.f32.partialorder %v8152_v4, 8.507059e+37 }
0x2033   :  { %v8131_v37 = vmul.f32 %v10596_v62, %v8130_v57  ;;  %8280 = vmatpush.msra.mxu1 %v10024_v35 }
0x2034   :  { %v8147_v17 = vadd.f32 %v10594_v5, %v8146_v21 }
0x2035   :  { %v8132_v43 = vadd.f32 %v10596_v62, %v8131_v37 }
0x2036   :  { %v8151_v55 = vsel %vm8150_vm13, %v10594_v5, %v8147_v17 }
0x2037   :  { %v8136_v50 = vsel %vm8135_vm8, %v10596_v62, %v8132_v43  ;;  %v8156_v36 = vsel %vm8153_vm1, %v8155_v52, %v8151_v55 }
0x2038   :  { %v8141_v32 = vsel %vm8138_vm10, %v8140_v13, %v8136_v50  ;;  %v8157_v49 = vmul.f32 %v14123_v48, %v8156_v36 }
0x2039   :  { %v8142_v20 = vmul.f32 %v14121_v9, %v8141_v32 }
0x203b   :  { %9734 = vmatmul.msk.f32.vlgmr.msra.gmra.mxu1 %vm587_vm6, %v8142_v20 }
0x2043   :  { %9735 = vmatmul.msk.f32.gmra.mxu1 %vm587_vm6, %v8157_v49 }
0x2044   :  { %8398 = vrot.lane.b32.xlu1 %v14038_v58, %s10728_s14 }
0x2047   :  { %v8088_v8 = vpop.xlane.xlu1 %8087 }
0x2048   :  { %10597 = vrcp.f32 %v8088_v8  ;;  %v8169_v51 = vand.u32 2147483648, %v8088_v8  ;;  %v8167_v5 = vand.u32 2147483647, %v8088_v8  ;;  %vm8163_vm15 = vweird.f32 %v8088_v8 }
0x204a   :  { %v8170_v48 = vor.u32 1.1754944e-38, %v8169_v51  ;;  %vm8168_vm4 = vcmp.eq.f32.partialorder %v8167_v5, 8.507059e+37  ;;  %v8480_v5 = vld [vmem:[#allocation2 + $0x178] sm:$0xff] }
0x204e   :  { %v10598_v42 = vpop.eup %10597 }
0x204f   :  { %v8159_v47 = vmul.f32 %v10598_v42, %v8088_v8  ;;  %v8091_v62 = vpop.xlane.xlu1 %8090  ;;  %vm8164_vm14 = vweird.f32 %v10598_v42 }
0x2050   :  { %10599 = vrcp.f32 %v8091_v62  ;;  %vm8165_vm2 = vmor %vm8163_vm15, %vm8164_vm14  ;;  %v8184_v57 = vand.u32 2147483648, %v8091_v62  ;;  %v8182_v12 = vand.u32 2147483647, %v8091_v62  ;;  %vm8178_vm8 = vweird.f32 %v8091_v62 }
0x2051   :  { %v8160_v9 = vsub.f32 1.0, %v8159_v47 }
0x2052   :  { %v8185_v21 = vor.u32 1.1754944e-38, %v8184_v57  ;;  %vm8183_vm10 = vcmp.eq.f32.partialorder %v8182_v12, 8.507059e+37 }
0x2053   :  { %v8161_v23 = vmul.f32 %v10598_v42, %v8160_v9 }
0x2055   :  { %v8162_v45 = vadd.f32 %v10598_v42, %v8161_v23  ;;  %v8481_v23 = vld [vmem:[#allocation2 + $0x180] sm:$0xff] }
0x2056   :  { %v10600_v30 = vpop.eup %10599  ;;  %8520 = vmatpush.msrb.mxu0 %v8481_v23 }
0x2057   :  { %v8166_v3 = vsel %vm8165_vm2, %v10598_v42, %v8162_v45  ;;  %v8174_v24 = vmul.f32 %v10600_v30, %v8091_v62  ;;  %vm8179_vm11 = vweird.f32 %v10600_v30  ;;  %v8479_v45 = vld [vmem:[#allocation2 + $0x170] sm:$0xff] }
0x2058   :  { %v8171_v58 = vsel %vm8168_vm4, %v8170_v48, %v8166_v3  ;;  %vm8180_vm9 = vmor %vm8178_vm8, %vm8179_vm11  ;;  %8521 = vmatpush.msrb.mxu0 %v8480_v5 }
0x2059   :  { %v8172_v61 = vmul.f32 %v14131_v18, %v8171_v58  ;;  %v8175_v39 = vsub.f32 1.0, %v8174_v24 }
0x205a   :  { %8522 = vmatpush.msrb.mxu0 %v8479_v45 }
0x205b   :  { %v8176_v35 = vmul.f32 %v10600_v30, %v8175_v39  ;;  %9736 = vmatmul.msk.f32.vlgmr.msra.gmra.mxu2 %vm587_vm6, %v8172_v61 }
0x205d   :  { %v8177_v16 = vadd.f32 %v10600_v30, %v8176_v35 }
0x205f   :  { %v8181_v37 = vsel %vm8180_vm9, %v10600_v30, %v8177_v16 }
0x2060   :  { %v8186_v38 = vsel %vm8183_vm10, %v8185_v21, %v8181_v37 }
0x2061   :  { %v8187_v43 = vmul.f32 %v14137_v63, %v8186_v38 }
0x2063   :  { %9737 = vmatmul.msk.f32.gmra.mxu2 %vm587_vm6, %v8187_v43 }
0x206d   :  { %v8247_v13 = vpop.f32.mrf.mxu0 }
0x206e   :  { %8430 = vrot.lane.b32.xlu0 %v8247_v13, %s10729_s16 }
0x2076   :  { %8400 = vrot.lane.b32.xlu0 %v14040_v25, %s10728_s14 }
0x207e   :  { %8370 = vrot.lane.b32.xlu0 %v13906_v46, %s10715_s15 }
0x2086   :  { %8372 = vrot.lane.b32.xlu0 %v13910_v22, %s10715_s15 }
0x208e   :  { %8374 = vrot.lane.b32.xlu0 %v13950_v54, %s10715_s15 }
0x2096   :  { %8376 = vrot.lane.b32.xlu0 %v13954_v28, %s10715_s15  ;;  %v8094_v18 = vpop.xlane.xlu1 %8093 }
0x2097   :  { %10601 = vrcp.f32 %v8094_v18  ;;  %v8199_v46 = vand.u32 2147483648, %v8094_v18  ;;  %v8197_v22 = vand.u32 2147483647, %v8094_v18  ;;  %vm8193_vm13 = vweird.f32 %v8094_v18 }
0x2099   :  { %v8200_v54 = vor.u32 1.1754944e-38, %v8199_v46  ;;  %vm8198_vm14 = vcmp.eq.f32.partialorder %v8197_v22, 8.507059e+37 }
0x209d   :  { %v10602_v63 = vpop.eup %10601 }
0x209e   :  { %v8189_v17 = vmul.f32 %v10602_v63, %v8094_v18  ;;  %8378 = vrot.lane.b32.xlu0 %v13952_v41, %s10715_s15  ;;  %v8097_v25 = vpop.xlane.xlu1 %8096  ;;  %vm8194_vm12 = vweird.f32 %v10602_v63 }
0x209f   :  { %10603 = vrcp.f32 %v8097_v25  ;;  %vm8195_vm1 = vmor %vm8193_vm13, %vm8194_vm12  ;;  %v8214_v36 = vand.u32 2147483648, %v8097_v25  ;;  %v8212_v8 = vand.u32 2147483647, %v8097_v25  ;;  %vm8208_vm2 = vweird.f32 %v8097_v25 }
0x20a0   :  { %v8190_v50 = vsub.f32 1.0, %v8189_v17 }
0x20a1   :  { %v8215_v47 = vor.u32 1.1754944e-38, %v8214_v36  ;;  %vm8213_vm11 = vcmp.eq.f32.partialorder %v8212_v8, 8.507059e+37 }
0x20a2   :  { %v8191_v0 = vmul.f32 %v10602_v63, %v8190_v50 }
0x20a4   :  { %v8192_v32 = vadd.f32 %v10602_v63, %v8191_v0 }
0x20a5   :  { %v10604_v4 = vpop.eup %10603 }
0x20a6   :  { %v8196_v28 = vsel %vm8195_vm1, %v10602_v63, %v8192_v32  ;;  %8380 = vrot.lane.b32.xlu0 %v13958_v60, %s10715_s15  ;;  %v8204_v55 = vmul.f32 %v10604_v4, %v8097_v25  ;;  %vm8209_vm15 = vweird.f32 %v10604_v4 }
0x20a7   :  { %v8201_v20 = vsel %vm8198_vm14, %v8200_v54, %v8196_v28  ;;  %vm8210_vm4 = vmor %vm8208_vm2, %vm8209_vm15 }
0x20a8   :  { %v8202_v41 = vmul.f32 %v14147_v33, %v8201_v20  ;;  %v8205_v52 = vsub.f32 1.0, %v8204_v55 }
0x20aa   :  { %9738 = vmatmul.msk.f32.vlgmr.msrb.gmra.mxu3 %vm587_vm6, %v8202_v41  ;;  %v8206_v49 = vmul.f32 %v10604_v4, %v8205_v52 }
0x20ac   :  { %v8207_v42 = vadd.f32 %v10604_v4, %v8206_v49 }
0x20ae   :  { %v8211_v62 = vsel %vm8210_vm4, %v10604_v4, %v8207_v42 }
0x20af   :  { %v8250_v9 = vpop.f32.mrf.mxu0  ;;  %v8216_v51 = vsel %vm8213_vm11, %v8215_v47, %v8211_v62 }
0x20b0   :  { %8432 = vrot.lane.b32.xlu2 %v8250_v9, %s10729_s16  ;;  %v8217_v60 = vmul.f32 %v14151_v10, %v8216_v51  ;;  %v8478_v10 = vld [vmem:[#allocation2 + $0x168] sm:$0xff] }
0x20b1   :  { %8523 = vmatpush.msrb.mxu0 %v8478_v10 }
0x20b2   :  { %9739 = vmatmul.msk.f32.gmra.mxu3 %vm587_vm6, %v8217_v60 }
0x20b6   :  { %v8399_v48 = vpop.permute.xlu1 %8398 }
0x20b8   :  { %v8282_v33 = vpop.f32.mrf.mxu1  ;;  %8402 = vrot.lane.b32.xlu2 %v14076_v29, %s10728_s14  ;;  %v8367_v29 = vpop.permute.xlu2 %8366 }
0x20b9   :  { %8434 = vrot.lane.b32.xlu1 %v8282_v33, %s10729_s16  ;;  %v8454_v24 = vsel %vm444_vm5, %v13727_v7, %v8367_v29 }
0x20c0   :  { %v8285_v30 = vpop.f32.mrf.mxu1  ;;  %8404 = vrot.lane.b32.xlu2 %v14078_v40, %s10728_s14  ;;  %v8462_v40 = vsel %vm587_vm6, %v8454_v24, %v8399_v48 }
0x20c1   :  { %8436 = vrot.lane.b32.xlu1 %v8285_v30, %s10729_s16 }
0x20c8   :  { %8406 = vrot.lane.b32.xlu2 %v14087_v27, %s10728_s14 }
0x20d0   :  { %8408 = vrot.lane.b32.xlu2 %v14089_v34, %s10728_s14  ;;  %v8369_v34 = vpop.permute.xlu2 %8368 }
0x20d1   :  { %v8455_v7 = vsel %vm444_vm5, %v13729_v56, %v8369_v34 }
0x20d8   :  { %8410 = vrot.lane.b32.xlu2 %v14104_v44, %s10728_s14 }
0x20de   :  { %v8317_v3 = vpop.f32.mrf.mxu2 }
0x20df   :  { %8438 = vrot.lane.b32.xlu1 %v8317_v3, %s10729_s16 }
0x20e0   :  { %v8431_v58 = vpop.permute.xlu0 %8430  ;;  %8412 = vrot.lane.b32.xlu2 %v14107_v59, %s10728_s14 }
0x20e1   :  { %v8470_v61 = vsel %vm2496_vm3, %v8462_v40, %v8431_v58 }
0x20e2   :  { %9740 = vmatmul.msk.f32.vlgmr.msrb.gmra.mxu0 %vm37_vm0, %v8470_v61 }
0x20e6   :  { %v8320_v27 = vpop.f32.mrf.mxu2 }
0x20e7   :  { %8440 = vrot.lane.b32.xlu1 %v8320_v27, %s10729_s16 }
0x20e8   :  { %v8401_v44 = vpop.permute.xlu0 %8400 }
0x20e9   :  { %v8463_v39 = vsel %vm587_vm6, %v8455_v7, %v8401_v44  ;;  %v14594_v44 = vld [vmem:[#allocation9_spill] sm:$0xff] }
0x20f0   :  { %v8371_v12 = vpop.permute.xlu0 %8370 }
0x20f1   :  { %v8456_v59 = vsel %vm444_vm5, %v13771_v11, %v8371_v12 }
0x20f8   :  { %v8373_v43 = vpop.permute.xlu0 %8372 }
0x20f9   :  { %v8457_v18 = vsel %vm444_vm5, %v13777_v31, %v8373_v43 }
0x2100   :  { %v8375_v50 = vpop.permute.xlu0 %8374 }
0x2101   :  { %v8458_v0 = vsel %vm444_vm5, %v13738_v1, %v8375_v50  ;;  %v14235_v1 = vld [vmem:[#allocation2 + $0x188] ss:$0 sm:$0xff] }
0x2102   :  { %v14597_v50 = vld [vmem:[#allocation10_spill] sm:$0xff] }
0x2108   :  { %v8377_v54 = vpop.permute.xlu0 %8376 }
0x2109   :  { %v8459_v28 = vsel %vm444_vm5, %v13740_v6, %v8377_v54 }
0x210a   :  { %v8433_v57 = vpop.permute.xlu2 %8432 }
0x210b   :  { %v8471_v35 = vsel %vm2496_vm3, %v8463_v39, %v8433_v57 }
0x210c   :  { %9741 = vmatmul.msk.f32.gmra.mxu0 %vm37_vm0, %v8471_v35  ;;  %v14595_v35 = vld [vmem:[#allocation5_spill] sm:$0xff] }
0x2110   :  { %v8379_v9 = vpop.permute.xlu0 %8378 }
0x2112   :  { %v8403_v16 = vpop.permute.xlu2 %8402 }
0x2113   :  { %v8464_v21 = vsel %vm587_vm6, %v8456_v59, %v8403_v16  ;;  %v14596_v59 = vld [vmem:[#allocation6_spill] sm:$0xff] }
0x2118   :  { %v8381_v5 = vpop.permute.xlu0 %8380 }
0x211a   :  { %v8405_v13 = vpop.permute.xlu2 %8404 }
0x211b   :  { %v8465_v63 = vsel %vm587_vm6, %v8457_v18, %v8405_v13 }
0x2122   :  { %v8407_v46 = vpop.permute.xlu2 %8406 }
0x2123   :  { %v8466_v22 = vsel %vm587_vm6, %v8458_v0, %v8407_v46 }
0x212a   :  { %v8409_v4 = vpop.permute.xlu2 %8408 }
0x212b   :  { %v8435_v37 = vpop.permute.xlu1 %8434  ;;  %v8467_v20 = vsel %vm587_vm6, %v8459_v28, %v8409_v4 }
0x212c   :  { %v8472_v38 = vsel %vm2496_vm3, %v8464_v21, %v8435_v37 }
0x212d   :  { %9742 = vmatmul.msk.f32.gmra.mxu0 %vm37_vm0, %v8472_v38  ;;  %v8352_v56 = vpop.f32.mrf.mxu3 }
0x212e   :  { %8442 = vrot.lane.b32.xlu1 %v8352_v56, %s10729_s16 }
0x2132   :  { %v8411_v51 = vpop.permute.xlu2 %8410 }
0x2133   :  { %v8437_v17 = vpop.permute.xlu1 %8436 }
0x2134   :  { %v8473_v11 = vsel %vm2496_vm3, %v8465_v63, %v8437_v17 }
0x2135   :  { %9743 = vmatmul.msk.f32.gmra.mxu0 %vm37_vm0, %v8473_v11  ;;  %v8355_v25 = vpop.f32.mrf.mxu3 }
0x2136   :  { %8444 = vrot.lane.b32.xlu1 %v8355_v25, %s10729_s16 }
0x213a   :  { %v8413_v45 = vpop.permute.xlu2 %8412 }
0x2151   :  { %v8439_v32 = vpop.permute.xlu1 %8438 }
0x2152   :  { %v8474_v31 = vsel %vm2496_vm3, %v8466_v22, %v8439_v32 }
0x2153   :  { %9744 = vmatmul.msk.f32.gmra.mxu0 %vm37_vm0, %v8474_v31 }
0x2159   :  { %v8441_v55 = vpop.permute.xlu1 %8440 }
0x215a   :  { %v8475_v41 = vsel %vm2496_vm3, %v8467_v20, %v8441_v55  ;;  %v14598_v20 = vld [vmem:[#allocation7_spill] sm:$0xff] }
0x215b   :  { %9745 = vmatmul.msk.f32.gmra.mxu0 %vm37_vm0, %v8475_v41 }
0x215f   :  { %v8525_v52 = vpop.f32.mrf.mxu0 }
0x2160   :  { %v8526_v36 = vadd.f32 %v14235_v1, %v8525_v52 }
0x2162   :  { %v14239_v49 = vadd.f32 %v8526_v36, %v12931_v2  ;;  %v8460_v2 = vsel %vm444_vm5, %v13762_v14, %v8379_v9 }
0x2163   :  { %v8468_v60 = vsel %vm587_vm6, %v8460_v2, %v8411_v51  ;;  %v8884_v2 = vld [vmem:[#allocation2 + $0x1a8] sm:$0xff] }
0x2164   :  { %v8559_v8 = vsel %vm37_vm0, %v14239_v49, 0.0  ;;  %8923 = vmatpush.msrb.mxu1 %v8884_v2 }
0x2165   :  { %8560 = vadd.xlane.f32.xlu0 %v8559_v8 }
0x2189   :  { %v8528_v6 = vpop.f32.mrf.mxu0 }
0x218a   :  { %v8529_v42 = vadd.f32 %v14235_v1, %v8528_v6 }
0x218c   :  { %v14245_v47 = vadd.f32 %v8529_v42, %v12943_v26  ;;  %v8461_v26 = vsel %vm444_vm5, %v13769_v19, %v8381_v5 }
0x218d   :  { %v8469_v30 = vsel %vm587_vm6, %v8461_v26, %v8413_v45 }
0x218e   :  { %v8562_v62 = vsel %vm37_vm0, %v14245_v47, 0.0 }
0x218f   :  { %8563 = vadd.xlane.f32.xlu2 %v8562_v62 }
0x21a0   :  { %v8443_v33 = vpop.permute.xlu1 %8442 }
0x21a1   :  { %v8476_v23 = vsel %vm2496_vm3, %v8468_v60, %v8443_v33 }
0x21a2   :  { %9746 = vmatmul.msk.f32.gmra.mxu0 %vm37_vm0, %v8476_v23 }
0x21a8   :  { %v8445_v10 = vpop.permute.xlu1 %8444 }
0x21a9   :  { %v8477_v29 = vsel %vm2496_vm3, %v8469_v30, %v8445_v10 }
0x21aa   :  { %v8531_v48 = vpop.f32.mrf.mxu0  ;;  %9747 = vmatmul.msk.f32.gmra.mxu0 %vm37_vm0, %v8477_v29 }
0x21ab   :  { %v8532_v14 = vadd.f32 %v14235_v1, %v8531_v48 }
0x21ad   :  { %v14261_v3 = vadd.f32 %v8532_v14, %v12983_v53 }
0x21af   :  { %v8565_v24 = vsel %vm37_vm0, %v14261_v3, 0.0 }
0x21b0   :  { %8566 = vadd.xlane.f32.xlu1 %v8565_v24 }
0x21b2   :  { %v8534_v40 = vpop.f32.mrf.mxu0 }
0x21b3   :  { %v8535_v19 = vadd.f32 %v14235_v1, %v8534_v40 }
0x21b5   :  { %v14267_v58 = vadd.f32 %v8535_v19, %v13024_v15 }
0x21b7   :  { %v8568_v61 = vsel %vm37_vm0, %v14267_v58, 0.0 }
0x21b8   :  { %8569 = vadd.xlane.f32.xlu0 %v8568_v61 }
0x21d0   :  { %v8537_v27 = vpop.f32.mrf.mxu0 }
0x21d1   :  { %v8538_v34 = vadd.f32 %v14235_v1, %v8537_v27 }
0x21d3   :  { %v14273_v53 = vadd.f32 %v8538_v34, %v14594_v44 }
0x21d5   :  { %v8571_v7 = vsel %vm37_vm0, %v14273_v53, 0.0 }
0x21d6   :  { %8572 = vadd.xlane.f32.xlu2 %v8571_v7 }
0x21d8   :  { %v8561_v39 = vpop.xlane.xlu0 %8560  ;;  %v8540_v57 = vpop.f32.mrf.mxu0 }
0x21d9   :  { %v8583_v12 = vmul.f32 %v8561_v39, %v14595_v35  ;;  %v8541_v15 = vadd.f32 %v14235_v1, %v8540_v57  ;;  %v8883_v57 = vld [vmem:[#allocation2 + $0x1a0] sm:$0xff] }
0x21da   :  { %8924 = vmatpush.msrb.mxu1 %v8883_v57 }
0x21db   :  { %v14280_v16 = vsub.f32 %v14239_v49, %v8583_v12  ;;  %v14283_v21 = vadd.f32 %v8541_v15, %v14596_v59  ;;  %v8882_v12 = vld [vmem:[#allocation2 + $0x198] sm:$0xff]  ;;  %v8881_v15 = vld [vmem:[#allocation2 + $0x190] sm:$0xff] }
0x21dc   :  { %8925 = vmatpush.msrb.mxu1 %v8882_v12 }
0x21dd   :  { %v8574_v37 = vsel %vm37_vm0, %v14283_v21, 0.0  ;;  %v8599_v38 = vmul.f32 %v14280_v16, %v14280_v16 }
0x21de   :  { %8575 = vadd.xlane.f32.xlu1 %v8574_v37  ;;  %8926 = vmatpush.msrb.mxu1 %v8881_v15 }
0x21df   :  { %v8607_v56 = vsel %vm37_vm0, %v8599_v38, 0.0 }
0x21e0   :  { %8608 = vadd.xlane.f32.xlu0 %v8607_v56 }
0x2202   :  { %v8564_v43 = vpop.xlane.xlu2 %8563 }
0x2203   :  { %v8584_v13 = vmul.f32 %v8564_v43, %v14595_v35 }
0x2205   :  { %v14292_v18 = vsub.f32 %v14245_v47, %v8584_v13 }
0x2207   :  { %v8600_v63 = vmul.f32 %v14292_v18, %v14292_v18 }
0x2209   :  { %v8610_v17 = vsel %vm37_vm0, %v8600_v63, 0.0 }
0x220a   :  { %8611 = vadd.xlane.f32.xlu1 %v8610_v17 }
0x221f   :  { %v8543_v11 = vpop.f32.mrf.mxu0 }
0x2220   :  { %v8544_v25 = vadd.f32 %v14235_v1, %v8543_v11 }
0x2222   :  { %v14299_v46 = vadd.f32 %v8544_v25, %v14597_v50  ;;  %v14337_v25 = vld [vmem:[#allocation2 + $0x220] ss:$0 sm:$0xff] }
0x2223   :  { %v8567_v0 = vpop.xlane.xlu1 %8566 }
0x2224   :  { %v8585_v22 = vmul.f32 %v8567_v0, %v14595_v35  ;;  %v8577_v32 = vsel %vm37_vm0, %v14299_v46, 0.0 }
0x2225   :  { %8578 = vadd.xlane.f32.xlu2 %v8577_v32  ;;  %v14340_v32 = vld [vmem:[#allocation2 + $0x228] ss:$0 sm:$0xff] }
0x2226   :  { %v14305_v31 = vsub.f32 %v14261_v3, %v8585_v22 }
0x2227   :  { %v8546_v54 = vpop.f32.mrf.mxu0 }
0x2228   :  { %v8601_v4 = vmul.f32 %v14305_v31, %v14305_v31  ;;  %v8547_v28 = vadd.f32 %v14235_v1, %v8546_v54 }
0x222a   :  { %v14311_v55 = vadd.f32 %v8547_v28, %v14598_v20  ;;  %v8613_v36 = vsel %vm37_vm0, %v8601_v4, 0.0 }
0x222b   :  { %v8570_v41 = vpop.xlane.xlu0 %8569 }
0x222c   :  { %v8586_v52 = vmul.f32 %v8570_v41, %v14595_v35  ;;  %v8580_v8 = vsel %vm37_vm0, %v14311_v55, 0.0 }
0x222d   :  { %8614 = vadd.xlane.f32.xlu2 %v8613_v36  ;;  %8581 = vadd.xlane.f32.xlu0 %v8580_v8 }
0x222e   :  { %v14318_v6 = vsub.f32 %v14267_v58, %v8586_v52 }
0x2230   :  { %v8602_v42 = vmul.f32 %v14318_v6, %v14318_v6 }
0x2232   :  { %v8616_v1 = vsel %vm37_vm0, %v8602_v42, 0.0 }
0x2233   :  { %8617 = vadd.xlane.f32.xlu1 %v8616_v1 }
0x2249   :  { %v8573_v62 = vpop.xlane.xlu2 %8572 }
0x224a   :  { %v8587_v9 = vmul.f32 %v8573_v62, %v14595_v35 }
0x224c   :  { %v14325_v51 = vsub.f32 %v14273_v53, %v8587_v9 }
0x224e   :  { %v8603_v60 = vmul.f32 %v14325_v51, %v14325_v51 }
0x2250   :  { %v8619_v33 = vsel %vm37_vm0, %v8603_v60, 0.0 }
0x2251   :  { %8620 = vadd.xlane.f32.xlu0 %v8619_v33  ;;  %v8576_v23 = vpop.xlane.xlu1 %8575 }
0x2252   :  { %v8588_v5 = vmul.f32 %v8576_v23, %v14595_v35 }
0x2253   :  { %v8609_v45 = vpop.xlane.xlu0 %8608 }
0x2254   :  { %v14332_v26 = vsub.f32 %v14283_v21, %v8588_v5  ;;  %v8631_v30 = vmul.f32 0.032258064, %v8609_v45 }
0x2256   :  { %10605 = vrsqrt.f32 %v8631_v30  ;;  %v8604_v10 = vmul.f32 %v14332_v26, %v14332_v26  ;;  %vm8646_vm5 = vcmp.eq.f32.partialorder %v8631_v30, inf  ;;  %v8649_v34 = vand.u32 2147483648, %v8631_v30 }
0x2257   :  { %vm8648_vm6 = vcmp.eq.f32.partialorder %v8631_v30, 0.0 }
0x2258   :  { %v8622_v29 = vsel %vm37_vm0, %v8604_v10, 0.0 }
0x2259   :  { %8623 = vadd.xlane.f32.xlu2 %v8622_v29 }
0x225c   :  { %v10606_v48 = vpop.eup %10605 }
0x225d   :  { %v8640_v14 = vmul.f32 %v10606_v48, %v8631_v30 }
0x225f   :  { %v8641_v24 = vmul.f32 %v10606_v48, %v8640_v14 }
0x2261   :  { %v8642_v40 = vmul.f32 0.5, %v8641_v24 }
0x2263   :  { %v8643_v19 = vsub.f32 1.5, %v8642_v40 }
0x2265   :  { %v8644_v61 = vmul.f32 %v10606_v48, %v8643_v19 }
0x2267   :  { %v8645_v27 = vmul.f32 %v8644_v61, %v8631_v30 }
0x2269   :  { %v8647_v44 = vsel %vm8646_vm5, %v8631_v30, %v8645_v27 }
0x226a   :  { %v8650_v7 = vsel %vm8648_vm6, %v8649_v34, %v8647_v44 }
0x226b   :  { %v8735_v39 = vadd.f32 1e-06, %v8650_v7 }
0x226d   :  { %10607 = vrcp.f32 %v8735_v39  ;;  %v8754_v56 = vand.u32 2147483648, %v8735_v39  ;;  %v8752_v13 = vand.u32 2147483647, %v8735_v39  ;;  %vm8748_vm8 = vweird.f32 %v8735_v39 }
0x226f   :  { %v8755_v17 = vor.u32 1.1754944e-38, %v8754_v56  ;;  %vm8753_vm10 = vcmp.eq.f32.partialorder %v8752_v13, 8.507059e+37 }
0x2273   :  { %v10608_v59 = vpop.eup %10607 }
0x2274   :  { %v8744_v37 = vmul.f32 %v10608_v59, %v8735_v39  ;;  %vm8749_vm3 = vweird.f32 %v10608_v59 }
0x2275   :  { %vm8750_vm9 = vmor %vm8748_vm8, %vm8749_vm3 }
0x2276   :  { %v8745_v38 = vsub.f32 1.0, %v8744_v37 }
0x2278   :  { %v8746_v43 = vmul.f32 %v10608_v59, %v8745_v38 }
0x227a   :  { %v8747_v63 = vadd.f32 %v10608_v59, %v8746_v43 }
0x227c   :  { %v8751_v11 = vsel %vm8750_vm9, %v10608_v59, %v8747_v63 }
0x227d   :  { %v8756_v50 = vsel %vm8753_vm10, %v8755_v17, %v8751_v11  ;;  %v8612_v0 = vpop.xlane.xlu1 %8611 }
0x227e   :  { %v8757_v22 = vmul.f32 %v8756_v50, %v14280_v16  ;;  %v8632_v54 = vmul.f32 0.032258064, %v8612_v0 }
0x2280   :  { %v8864_v4 = vmul.f32 %v14337_v25, %v8757_v22  ;;  %10609 = vrsqrt.f32 %v8632_v54  ;;  %vm8658_vm12 = vcmp.eq.f32.partialorder %v8632_v54, inf  ;;  %v8661_v62 = vand.u32 2147483648, %v8632_v54 }
0x2281   :  { %vm8660_vm13 = vcmp.eq.f32.partialorder %v8632_v54, 0.0 }
0x2282   :  { %v8873_v28 = vadd.f32 %v14340_v32, %v8864_v4 }
0x2284   :  { %9748 = vmatmul.msk.f32.vlgmr.msrb.gmra.mxu1 %vm37_vm0, %v8873_v28 }
0x2286   :  { %v10610_v20 = vpop.eup %10609 }
0x2287   :  { %v8652_v41 = vmul.f32 %v10610_v20, %v8632_v54 }
0x2289   :  { %v8653_v52 = vmul.f32 %v10610_v20, %v8652_v41 }
0x228b   :  { %v8654_v36 = vmul.f32 0.5, %v8653_v52 }
0x228d   :  { %v8655_v8 = vsub.f32 1.5, %v8654_v36 }
0x228f   :  { %v8656_v42 = vmul.f32 %v10610_v20, %v8655_v8 }
0x2291   :  { %v8657_v1 = vmul.f32 %v8656_v42, %v8632_v54 }
0x2293   :  { %v8659_v16 = vsel %vm8658_vm12, %v8632_v54, %v8657_v1 }
0x2294   :  { %v8662_v9 = vsel %vm8660_vm13, %v8661_v62, %v8659_v16 }
0x2295   :  { %v8736_v2 = vadd.f32 1e-06, %v8662_v9 }
0x2297   :  { %10611 = vrcp.f32 %v8736_v2  ;;  %v8769_v27 = vand.u32 2147483648, %v8736_v2  ;;  %v8767_v34 = vand.u32 2147483647, %v8736_v2  ;;  %vm8763_vm14 = vweird.f32 %v8736_v2 }
0x2298   :  { %v8579_v60 = vpop.xlane.xlu2 %8578 }
0x2299   :  { %v8589_v33 = vmul.f32 %v8579_v60, %v14595_v35  ;;  %v8770_v59 = vor.u32 1.1754944e-38, %v8769_v27  ;;  %vm8768_vm2 = vcmp.eq.f32.partialorder %v8767_v34, 8.507059e+37 }
0x229b   :  { %v14347_v23 = vsub.f32 %v14299_v46, %v8589_v33 }
0x229d   :  { %v8605_v5 = vmul.f32 %v14347_v23, %v14347_v23  ;;  %v10612_v45 = vpop.eup %10611 }
0x229e   :  { %v8759_v10 = vmul.f32 %v10612_v45, %v8736_v2  ;;  %vm8764_vm1 = vweird.f32 %v10612_v45 }
0x229f   :  { %v8625_v30 = vsel %vm37_vm0, %v8605_v5, 0.0  ;;  %vm8765_vm15 = vmor %vm8763_vm14, %vm8764_vm1 }
0x22a0   :  { %8626 = vadd.xlane.f32.xlu1 %v8625_v30  ;;  %v8615_v29 = vpop.xlane.xlu2 %8614  ;;  %v8582_v48 = vpop.xlane.xlu0 %8581  ;;  %v8760_v24 = vsub.f32 1.0, %v8759_v10 }
0x22a1   :  { %v8633_v14 = vmul.f32 0.032258064, %v8615_v29  ;;  %v8590_v40 = vmul.f32 %v8582_v48, %v14595_v35 }
0x22a2   :  { %v8761_v61 = vmul.f32 %v10612_v45, %v8760_v24 }
0x22a3   :  { %10613 = vrsqrt.f32 %v8633_v14  ;;  %v14354_v19 = vsub.f32 %v14311_v55, %v8590_v40  ;;  %vm8670_vm4 = vcmp.eq.f32.partialorder %v8633_v14, inf  ;;  %v8673_v41 = vand.u32 2147483648, %v8633_v14 }
0x22a4   :  { %v8762_v39 = vadd.f32 %v10612_v45, %v8761_v61  ;;  %vm8672_vm11 = vcmp.eq.f32.partialorder %v8633_v14, 0.0 }
0x22a5   :  { %v8606_v7 = vmul.f32 %v14354_v19, %v14354_v19 }
0x22a6   :  { %v8618_v44 = vpop.xlane.xlu1 %8617  ;;  %v8766_v15 = vsel %vm8765_vm15, %v10612_v45, %v8762_v39 }
0x22a7   :  { %v8634_v57 = vmul.f32 0.032258064, %v8618_v44  ;;  %v8628_v12 = vsel %vm37_vm0, %v8606_v7, 0.0  ;;  %v8771_v56 = vsel %vm8768_vm2, %v8770_v59, %v8766_v15 }
0x22a8   :  { %8629 = vadd.xlane.f32.xlu0 %v8628_v12  ;;  %v8772_v43 = vmul.f32 %v8771_v56, %v14292_v18 }
0x22a9   :  { %v10614_v37 = vpop.eup %10613  ;;  %10615 = vrsqrt.f32 %v8634_v57  ;;  %vm8682_vm5 = vcmp.eq.f32.partialorder %v8634_v57, inf  ;;  %v8685_v62 = vand.u32 2147483648, %v8634_v57  ;;  %vm8684_vm6 = vcmp.eq.f32.partialorder %v8634_v57, 0.0 }
0x22aa   :  { %v8664_v38 = vmul.f32 %v10614_v37, %v8633_v14  ;;  %v8865_v63 = vmul.f32 %v14337_v25, %v8772_v43 }
0x22ac   :  { %v8665_v13 = vmul.f32 %v10614_v37, %v8664_v38  ;;  %v8874_v50 = vadd.f32 %v14340_v32, %v8865_v63 }
0x22ae   :  { %v8666_v17 = vmul.f32 0.5, %v8665_v13  ;;  %9749 = vmatmul.msk.f32.gmra.mxu1 %vm37_vm0, %v8874_v50 }
0x22af   :  { %v10616_v11 = vpop.eup %10615 }
0x22b0   :  { %v8667_v0 = vsub.f32 1.5, %v8666_v17  ;;  %v8676_v22 = vmul.f32 %v10616_v11, %v8634_v57 }
0x22b2   :  { %v8668_v54 = vmul.f32 %v10614_v37, %v8667_v0  ;;  %v8677_v4 = vmul.f32 %v10616_v11, %v8676_v22 }
0x22b4   :  { %v8669_v28 = vmul.f32 %v8668_v54, %v8633_v14  ;;  %v8678_v20 = vmul.f32 0.5, %v8677_v4  ;;  %v8967_v4 = vld [vmem:[#allocation2 + $0x1f0] sm:$0xff] }
0x22b5   :  { %9002 = vmatpush.msrb.mxu2 %v8967_v4 }
0x22b6   :  { %v8671_v52 = vsel %vm8670_vm4, %v8633_v14, %v8669_v28  ;;  %v8679_v18 = vsub.f32 1.5, %v8678_v20  ;;  %v8966_v28 = vld [vmem:[#allocation2 + $0x1e8] sm:$0xff] }
0x22b7   :  { %v8674_v36 = vsel %vm8672_vm11, %v8673_v41, %v8671_v52  ;;  %9003 = vmatpush.msrb.mxu2 %v8966_v28 }
0x22b8   :  { %v8737_v8 = vadd.f32 1e-06, %v8674_v36  ;;  %v8680_v42 = vmul.f32 %v10616_v11, %v8679_v18  ;;  %v8965_v18 = vld [vmem:[#allocation2 + $0x1e0] sm:$0xff] }
0x22b9   :  { %9004 = vmatpush.msrb.mxu2 %v8965_v18 }
0x22ba   :  { %10617 = vrcp.f32 %v8737_v8  ;;  %v8681_v1 = vmul.f32 %v8680_v42, %v8634_v57  ;;  %v8784_v29 = vand.u32 2147483648, %v8737_v8  ;;  %v8782_v14 = vand.u32 2147483647, %v8737_v8 }
0x22bb   :  { %vm8778_vm8 = vweird.f32 %v8737_v8 }
0x22bc   :  { %v8683_v16 = vsel %vm8682_vm5, %v8634_v57, %v8681_v1  ;;  %v8785_v61 = vor.u32 1.1754944e-38, %v8784_v29  ;;  %vm8783_vm10 = vcmp.eq.f32.partialorder %v8782_v14, 8.507059e+37  ;;  %v8962_v14 = vld [vmem:[#allocation2 + $0x1c8] sm:$0xff] }
0x22bd   :  { %v8686_v9 = vsel %vm8684_vm6, %v8685_v62, %v8683_v16 }
0x22be   :  { %v8738_v2 = vadd.f32 1e-06, %v8686_v9 }
0x22c0   :  { %v10618_v60 = vpop.eup %10617  ;;  %10619 = vrcp.f32 %v8738_v2  ;;  %v8799_v57 = vand.u32 2147483648, %v8738_v2  ;;  %v8797_v59 = vand.u32 2147483647, %v8738_v2  ;;  %vm8793_vm13 = vweird.f32 %v8738_v2 }
0x22c1   :  { %v8774_v33 = vmul.f32 %v10618_v60, %v8737_v8  ;;  %vm8779_vm3 = vweird.f32 %v10618_v60 }
0x22c2   :  { %vm8780_vm9 = vmor %vm8778_vm8, %vm8779_vm3  ;;  %v8800_v63 = vor.u32 1.1754944e-38, %v8799_v57  ;;  %vm8798_vm14 = vcmp.eq.f32.partialorder %v8797_v59, 8.507059e+37 }
0x22c3   :  { %v8775_v5 = vsub.f32 1.0, %v8774_v33  ;;  %v8963_v33 = vld [vmem:[#allocation2 + $0x1d0] sm:$0xff] }
0x22c4   :  { %v8621_v45 = vpop.xlane.xlu0 %8620 }
0x22c5   :  { %v8635_v30 = vmul.f32 0.032258064, %v8621_v45  ;;  %v8776_v10 = vmul.f32 %v10618_v60, %v8775_v5 }
0x22c6   :  { %v10620_v48 = vpop.eup %10619 }
0x22c7   :  { %10621 = vrsqrt.f32 %v8635_v30  ;;  %v8777_v24 = vadd.f32 %v10618_v60, %v8776_v10  ;;  %v8789_v40 = vmul.f32 %v10620_v48, %v8738_v2  ;;  %vm8794_vm12 = vweird.f32 %v10620_v48 }
0x22c8   :  { %vm8795_vm1 = vmor %vm8793_vm13, %vm8794_vm12  ;;  %vm8694_vm15 = vcmp.eq.f32.partialorder %v8635_v30, inf  ;;  %v8697_v8 = vand.u32 2147483648, %v8635_v30  ;;  %vm8696_vm2 = vcmp.eq.f32.partialorder %v8635_v30, 0.0 }
0x22c9   :  { %v8781_v27 = vsel %vm8780_vm9, %v10618_v60, %v8777_v24  ;;  %v8790_v34 = vsub.f32 1.0, %v8789_v40  ;;  %v8964_v60 = vld [vmem:[#allocation2 + $0x1d8] sm:$0xff]  ;;  %v8961_v24 = vld [vmem:[#allocation2 + $0x1c0] sm:$0xff] }
0x22ca   :  { %v8786_v44 = vsel %vm8783_vm10, %v8785_v61, %v8781_v27  ;;  %9005 = vmatpush.msrb.mxu2 %v8964_v60  ;;  %v8960_v27 = vld [vmem:[#allocation2 + $0x1b8] sm:$0xff] }
0x22cb   :  { %v8787_v7 = vmul.f32 %v8786_v44, %v14305_v31  ;;  %v8791_v39 = vmul.f32 %v10620_v48, %v8790_v34 }
0x22cc   :  { %v8624_v15 = vpop.xlane.xlu2 %8623  ;;  %9006 = vmatpush.msrb.mxu2 %v8963_v33 }
0x22cd   :  { %v10622_v12 = vpop.eup %10621  ;;  %v8636_v38 = vmul.f32 0.032258064, %v8624_v15  ;;  %v8866_v56 = vmul.f32 %v14337_v25, %v8787_v7  ;;  %v8792_v43 = vadd.f32 %v10620_v48, %v8791_v39 }
0x22ce   :  { %v8688_v37 = vmul.f32 %v10622_v12, %v8635_v30  ;;  %9007 = vmatpush.msrb.mxu2 %v8962_v14 }
0x22cf   :  { %10623 = vrsqrt.f32 %v8636_v38  ;;  %v8875_v17 = vadd.f32 %v14340_v32, %v8866_v56  ;;  %v8796_v11 = vsel %vm8795_vm1, %v10620_v48, %v8792_v43  ;;  %vm8706_vm4 = vcmp.eq.f32.partialorder %v8636_v38, inf }
0x22d0   :  { %v8689_v13 = vmul.f32 %v10622_v12, %v8688_v37  ;;  %v8801_v50 = vsel %vm8798_vm14, %v8800_v63, %v8796_v11  ;;  %v8709_v10 = vand.u32 2147483648, %v8636_v38  ;;  %vm8708_vm11 = vcmp.eq.f32.partialorder %v8636_v38, 0.0  ;;  %9008 = vmatpush.msrb.mxu2 %v8961_v24 }
0x22d1   :  { %9750 = vmatmul.msk.f32.gmra.mxu1 %vm37_vm0, %v8875_v17  ;;  %v8802_v0 = vmul.f32 %v8801_v50, %v14318_v6 }
0x22d2   :  { %v8690_v31 = vmul.f32 0.5, %v8689_v13  ;;  %9009 = vmatpush.msrb.mxu2 %v8960_v27 }
0x22d3   :  { %v8867_v54 = vmul.f32 %v14337_v25, %v8802_v0 }
0x22d4   :  { %v8691_v22 = vsub.f32 1.5, %v8690_v31 }
0x22d5   :  { %v10624_v20 = vpop.eup %10623  ;;  %v8876_v1 = vadd.f32 %v14340_v32, %v8867_v54 }
0x22d6   :  { %v8692_v41 = vmul.f32 %v10622_v12, %v8691_v22  ;;  %v8700_v52 = vmul.f32 %v10624_v20, %v8636_v38 }
0x22d8   :  { %v8693_v36 = vmul.f32 %v8692_v41, %v8635_v30  ;;  %v8701_v42 = vmul.f32 %v10624_v20, %v8700_v52 }
0x22d9   :  { %9751 = vmatmul.msk.f32.gmra.mxu1 %vm37_vm0, %v8876_v1 }
0x22da   :  { %v8695_v62 = vsel %vm8694_vm15, %v8635_v30, %v8693_v36  ;;  %v8702_v16 = vmul.f32 0.5, %v8701_v42 }
0x22db   :  { %v8698_v6 = vsel %vm8696_vm2, %v8697_v8, %v8695_v62 }
0x22dc   :  { %v8739_v9 = vadd.f32 1e-06, %v8698_v6  ;;  %v8703_v2 = vsub.f32 1.5, %v8702_v16 }
0x22de   :  { %10625 = vrcp.f32 %v8739_v9  ;;  %v8704_v5 = vmul.f32 %v10624_v20, %v8703_v2  ;;  %v8814_v44 = vand.u32 2147483648, %v8739_v9  ;;  %v8812_v39 = vand.u32 2147483647, %v8739_v9  ;;  %v14379_v20 = vld [vmem:[#allocation2 + $0x1b0] ss:$0 sm:$0xff] }
0x22df   :  { %vm8808_vm6 = vweird.f32 %v8739_v9 }
0x22e0   :  { %v8705_v45 = vmul.f32 %v8704_v5, %v8636_v38  ;;  %v8815_v12 = vor.u32 1.1754944e-38, %v8814_v44  ;;  %vm8813_vm8 = vcmp.eq.f32.partialorder %v8812_v39, 8.507059e+37 }
0x22e2   :  { %v8707_v29 = vsel %vm8706_vm4, %v8636_v38, %v8705_v45 }
0x22e3   :  { %v8710_v30 = vsel %vm8708_vm11, %v8709_v10, %v8707_v29 }
0x22e4   :  { %v10626_v48 = vpop.eup %10625  ;;  %v8740_v40 = vadd.f32 1e-06, %v8710_v30 }
0x22e5   :  { %v8804_v61 = vmul.f32 %v10626_v48, %v8739_v9  ;;  %vm8809_vm5 = vweird.f32 %v10626_v48 }
0x22e6   :  { %10627 = vrcp.f32 %v8740_v40  ;;  %vm8810_vm3 = vmor %vm8808_vm6, %vm8809_vm5  ;;  %v8829_v63 = vand.u32 2147483648, %v8740_v40  ;;  %v8827_v11 = vand.u32 2147483647, %v8740_v40  ;;  %vm8823_vm10 = vweird.f32 %v8740_v40 }
0x22e7   :  { %v8805_v34 = vsub.f32 1.0, %v8804_v61 }
0x22e8   :  { %v8830_v0 = vor.u32 1.1754944e-38, %v8829_v63  ;;  %vm8828_vm13 = vcmp.eq.f32.partialorder %v8827_v11, 8.507059e+37 }
0x22e9   :  { %v8806_v7 = vmul.f32 %v10626_v48, %v8805_v34 }
0x22eb   :  { %v8807_v57 = vadd.f32 %v10626_v48, %v8806_v7 }
0x22ec   :  { %v10628_v15 = vpop.eup %10627 }
0x22ed   :  { %v8811_v59 = vsel %vm8810_vm3, %v10626_v48, %v8807_v57  ;;  %v8819_v38 = vmul.f32 %v10628_v15, %v8740_v40  ;;  %vm8824_vm9 = vweird.f32 %v10628_v15 }
0x22ee   :  { %v8816_v37 = vsel %vm8813_vm8, %v8815_v12, %v8811_v59  ;;  %vm8825_vm12 = vmor %vm8823_vm10, %vm8824_vm9 }
0x22ef   :  { %v8817_v56 = vmul.f32 %v8816_v37, %v14325_v51  ;;  %v8820_v43 = vsub.f32 1.0, %v8819_v38 }
0x22f1   :  { %v8868_v13 = vmul.f32 %v14337_v25, %v8817_v56  ;;  %v8821_v17 = vmul.f32 %v10628_v15, %v8820_v43 }
0x22f3   :  { %v8877_v31 = vadd.f32 %v14340_v32, %v8868_v13  ;;  %v8822_v50 = vadd.f32 %v10628_v15, %v8821_v17 }
0x22f5   :  { %9752 = vmatmul.msk.f32.gmra.mxu1 %vm37_vm0, %v8877_v31  ;;  %v8826_v22 = vsel %vm8825_vm12, %v10628_v15, %v8822_v50 }
0x22f6   :  { %v8831_v54 = vsel %vm8828_vm13, %v8830_v0, %v8826_v22 }
0x22f7   :  { %v8832_v51 = vmul.f32 %v8831_v54, %v14332_v26 }
0x22f9   :  { %v8869_v4 = vmul.f32 %v14337_v25, %v8832_v51 }
0x22fb   :  { %v8878_v28 = vadd.f32 %v14340_v32, %v8869_v4 }
0x22fd   :  { %9753 = vmatmul.msk.f32.gmra.mxu1 %vm37_vm0, %v8878_v28 }
0x2301   :  { %v8928_v41 = vpop.f32.mrf.mxu1 }
0x2302   :  { %v8929_v52 = vadd.f32 %v14379_v20, %v8928_v41 }
0x2304   :  { %v8952_v18 = vmax.f32 %v8929_v52, 0.0 }
0x2306   :  { %9756 = vmatmul.msk.f32.vlgmr.msrb.gmra.mxu2 %vm2997_vm7, %v8952_v18 }
0x2313   :  { %v8627_v36 = vpop.xlane.xlu1 %8626 }
0x2314   :  { %v8637_v8 = vmul.f32 0.032258064, %v8627_v36 }
0x2316   :  { %10629 = vrsqrt.f32 %v8637_v8  ;;  %vm8718_vm1 = vcmp.eq.f32.partialorder %v8637_v8, inf  ;;  %v8721_v45 = vand.u32 2147483648, %v8637_v8  ;;  %vm8720_vm14 = vcmp.eq.f32.partialorder %v8637_v8, 0.0 }
0x231b   :  { %v8630_v1 = vpop.xlane.xlu0 %8629 }
0x231c   :  { %v10630_v42 = vpop.eup %10629  ;;  %v8638_v62 = vmul.f32 0.032258064, %v8630_v1 }
0x231d   :  { %v8712_v26 = vmul.f32 %v10630_v42, %v8637_v8 }
0x231e   :  { %10631 = vrsqrt.f32 %v8638_v62  ;;  %vm8730_vm15 = vcmp.eq.f32.partialorder %v8638_v62, inf  ;;  %v8733_v44 = vand.u32 2147483648, %v8638_v62  ;;  %vm8732_vm2 = vcmp.eq.f32.partialorder %v8638_v62, 0.0 }
0x231f   :  { %v8713_v6 = vmul.f32 %v10630_v42, %v8712_v26 }
0x2321   :  { %v8714_v16 = vmul.f32 0.5, %v8713_v6 }
0x2323   :  { %v8715_v9 = vsub.f32 1.5, %v8714_v16 }
0x2324   :  { %v10632_v2 = vpop.eup %10631 }
0x2325   :  { %v8716_v60 = vmul.f32 %v10630_v42, %v8715_v9  ;;  %v8724_v33 = vmul.f32 %v10632_v2, %v8638_v62 }
0x2327   :  { %v8717_v5 = vmul.f32 %v8716_v60, %v8637_v8  ;;  %v8725_v10 = vmul.f32 %v10632_v2, %v8724_v33 }
0x2329   :  { %v8719_v29 = vsel %vm8718_vm1, %v8637_v8, %v8717_v5  ;;  %v8726_v30 = vmul.f32 0.5, %v8725_v10 }
0x232a   :  { %v8722_v48 = vsel %vm8720_vm14, %v8721_v45, %v8719_v29  ;;  %v10056_v45 = vld [vmem:[#allocation2 + $0x1f8] ss:$0 sm:$0xff] }
0x232b   :  { %v8741_v14 = vadd.f32 1e-06, %v8722_v48  ;;  %v8727_v24 = vsub.f32 1.5, %v8726_v30  ;;  %v8931_v61 = vpop.f32.mrf.mxu1 }
0x232c   :  { %v8932_v27 = vadd.f32 %v14379_v20, %v8931_v61 }
0x232d   :  { %10633 = vrcp.f32 %v8741_v14  ;;  %v8728_v40 = vmul.f32 %v10632_v2, %v8727_v24  ;;  %v8844_v38 = vand.u32 2147483648, %v8741_v14  ;;  %v8842_v43 = vand.u32 2147483647, %v8741_v14 }
0x232e   :  { %v8953_v7 = vmax.f32 %v8932_v27, 0.0  ;;  %vm8838_vm11 = vweird.f32 %v8741_v14 }
0x232f   :  { %v8729_v34 = vmul.f32 %v8728_v40, %v8638_v62  ;;  %v8845_v63 = vor.u32 1.1754944e-38, %v8844_v38  ;;  %vm8843_vm6 = vcmp.eq.f32.partialorder %v8842_v43, 8.507059e+37 }
0x2330   :  { %9757 = vmatmul.msk.f32.gmra.mxu2 %vm2997_vm7, %v8953_v7 }
0x2331   :  { %v8731_v39 = vsel %vm8730_vm15, %v8638_v62, %v8729_v34 }
0x2332   :  { %v8734_v12 = vsel %vm8732_vm2, %v8733_v44, %v8731_v39 }
0x2333   :  { %v10634_v57 = vpop.eup %10633  ;;  %v8742_v15 = vadd.f32 1e-06, %v8734_v12 }
0x2334   :  { %v8834_v59 = vmul.f32 %v10634_v57, %v8741_v14  ;;  %vm8839_vm4 = vweird.f32 %v10634_v57 }
0x2335   :  { %10635 = vrcp.f32 %v8742_v15  ;;  %vm8840_vm5 = vmor %vm8838_vm11, %vm8839_vm4  ;;  %v8859_v51 = vand.u32 2147483648, %v8742_v15  ;;  %v8857_v28 = vand.u32 2147483647, %v8742_v15  ;;  %vm8853_vm8 = vweird.f32 %v8742_v15 }
0x2336   :  { %v8835_v37 = vsub.f32 1.0, %v8834_v59 }
0x2337   :  { %v8860_v18 = vor.u32 1.1754944e-38, %v8859_v51  ;;  %vm8858_vm10 = vcmp.eq.f32.partialorder %v8857_v28, 8.507059e+37 }
0x2338   :  { %v8836_v56 = vmul.f32 %v10634_v57, %v8835_v37 }
0x233a   :  { %v8837_v13 = vadd.f32 %v10634_v57, %v8836_v56 }
0x233b   :  { %v10636_v17 = vpop.eup %10635 }
0x233c   :  { %v8841_v11 = vsel %vm8840_vm5, %v10634_v57, %v8837_v13  ;;  %v8849_v50 = vmul.f32 %v10636_v17, %v8742_v15  ;;  %vm8854_vm3 = vweird.f32 %v10636_v17 }
0x233d   :  { %v8846_v31 = vsel %vm8843_vm6, %v8845_v63, %v8841_v11  ;;  %vm8855_vm9 = vmor %vm8853_vm8, %vm8854_vm3 }
0x233e   :  { %v8847_v0 = vmul.f32 %v8846_v31, %v14347_v23  ;;  %v8850_v22 = vsub.f32 1.0, %v8849_v50 }
0x2340   :  { %v8870_v54 = vmul.f32 %v14337_v25, %v8847_v0  ;;  %v8851_v4 = vmul.f32 %v10636_v17, %v8850_v22 }
0x2342   :  { %v8879_v41 = vadd.f32 %v14340_v32, %v8870_v54  ;;  %v8852_v52 = vadd.f32 %v10636_v17, %v8851_v4 }
0x2344   :  { %9754 = vmatmul.msk.f32.gmra.mxu1 %vm37_vm0, %v8879_v41  ;;  %v8856_v36 = vsel %vm8855_vm9, %v10636_v17, %v8852_v52 }
0x2345   :  { %v8861_v8 = vsel %vm8858_vm10, %v8860_v18, %v8856_v36 }
0x2346   :  { %v8862_v23 = vmul.f32 %v8861_v8, %v14354_v19 }
0x2348   :  { %v8871_v42 = vmul.f32 %v14337_v25, %v8862_v23 }
0x234a   :  { %v8880_v1 = vadd.f32 %v14340_v32, %v8871_v42 }
0x234c   :  { %9755 = vmatmul.msk.f32.gmra.mxu1 %vm37_vm0, %v8880_v1 }
0x234e   :  { %v8934_v26 = vpop.f32.mrf.mxu1 }
0x234f   :  { %v8935_v62 = vadd.f32 %v14379_v20, %v8934_v26 }
0x2351   :  { %v8954_v6 = vmax.f32 %v8935_v62, 0.0 }
0x2353   :  { %9758 = vmatmul.msk.f32.gmra.mxu2 %vm2997_vm7, %v8954_v6 }
0x2356   :  { %v8937_v16 = vpop.f32.mrf.mxu1 }
0x2357   :  { %v8938_v9 = vadd.f32 %v14379_v20, %v8937_v16 }
0x2359   :  { %v8955_v2 = vmax.f32 %v8938_v9, 0.0 }
0x235b   :  { %9759 = vmatmul.msk.f32.gmra.mxu2 %vm2997_vm7, %v8955_v2 }
0x2372   :  { %v8940_v60 = vpop.f32.mrf.mxu1 }
0x2373   :  { %v8941_v19 = vadd.f32 %v14379_v20, %v8940_v60 }
0x2375   :  { %v8956_v25 = vmax.f32 %v8941_v19, 0.0 }
0x2377   :  { %9760 = vmatmul.msk.f32.gmra.mxu2 %vm2997_vm7, %v8956_v25 }
0x237a   :  { %v8943_v32 = vpop.f32.mrf.mxu1 }
0x237b   :  { %v8944_v33 = vadd.f32 %v14379_v20, %v8943_v32 }
0x237d   :  { %v8957_v5 = vmax.f32 %v8944_v33, 0.0 }
0x237f   :  { %9761 = vmatmul.msk.f32.gmra.mxu2 %vm2997_vm7, %v8957_v5 }
0x2389   :  { %v9011_v10 = vpop.f32.mrf.mxu2 }
0x238a   :  { %v9012_v29 = vadd.f32 %v10056_v45, %v9011_v10 }
0x238c   :  { %v9035_v48 = vadd.f32 %v9012_v29, %v14239_v49 }
0x238e   :  { %v9045_v30 = vsel %vm37_vm0, %v9035_v48, 0.0 }
0x238f   :  { %9046 = vadd.xlane.f32.xlu2 %v9045_v30 }
0x23b3   :  { %v9014_v14 = vpop.f32.mrf.mxu2 }
0x23b4   :  { %v9015_v24 = vadd.f32 %v10056_v45, %v9014_v14 }
0x23b6   :  { %v9036_v40 = vadd.f32 %v9015_v24, %v14245_v47 }
0x23b8   :  { %v9048_v61 = vsel %vm37_vm0, %v9036_v40, 0.0 }
0x23b9   :  { %9049 = vadd.xlane.f32.xlu1 %v9048_v61 }
0x23c1   :  { %v8946_v27 = vpop.f32.mrf.mxu1 }
0x23c2   :  { %v8947_v34 = vadd.f32 %v14379_v20, %v8946_v27 }
0x23c4   :  { %v8958_v44 = vmax.f32 %v8947_v34, 0.0 }
0x23c6   :  { %9762 = vmatmul.msk.f32.gmra.mxu2 %vm2997_vm7, %v8958_v44 }
0x23c9   :  { %v8949_v7 = vpop.f32.mrf.mxu1 }
0x23ca   :  { %v8950_v39 = vadd.f32 %v14379_v20, %v8949_v7 }
0x23cc   :  { %v8959_v49 = vmax.f32 %v8950_v39, 0.0 }
0x23ce   :  { %9763 = vmatmul.msk.f32.gmra.mxu2 %vm2997_vm7, %v8959_v49 }
0x23d6   :  { %v9017_v57 = vpop.f32.mrf.mxu2 }
0x23d7   :  { %v9018_v12 = vadd.f32 %v10056_v45, %v9017_v57 }
0x23d9   :  { %v9037_v15 = vadd.f32 %v9018_v12, %v14261_v3 }
0x23db   :  { %v9051_v47 = vsel %vm37_vm0, %v9037_v15, 0.0 }
0x23dc   :  { %9052 = vadd.xlane.f32.xlu0 %v9051_v47 }
0x23de   :  { %v9020_v59 = vpop.f32.mrf.mxu2 }
0x23df   :  { %v9021_v37 = vadd.f32 %v10056_v45, %v9020_v59 }
0x23e1   :  { %v9038_v38 = vadd.f32 %v9021_v37, %v14267_v58 }
0x23e3   :  { %v9054_v56 = vsel %vm37_vm0, %v9038_v38, 0.0 }
0x23e4   :  { %9055 = vadd.xlane.f32.xlu2 %v9054_v56 }
0x23fa   :  { %v9023_v43 = vpop.f32.mrf.mxu2 }
0x23fb   :  { %v9024_v13 = vadd.f32 %v10056_v45, %v9023_v43 }
0x23fd   :  { %v9039_v20 = vadd.f32 %v9024_v13, %v14273_v53 }
0x23ff   :  { %v9057_v63 = vsel %vm37_vm0, %v9039_v20, 0.0 }
0x2400   :  { %9058 = vadd.xlane.f32.xlu1 %v9057_v63 }
0x2402   :  { %v9047_v17 = vpop.xlane.xlu2 %9046  ;;  %v9026_v11 = vpop.f32.mrf.mxu2 }
0x2403   :  { %v9069_v3 = vmul.f32 %v9047_v17, %v14595_v35  ;;  %v9027_v31 = vadd.f32 %v10056_v45, %v9026_v11  ;;  %v14463_v17 = vld [vmem:[#allocation2 + $0x230] ss:$0 sm:$0xff] }
0x2405   :  { %v9040_v50 = vadd.f32 %v9027_v31, %v14283_v21  ;;  %v14417_v0 = vsub.f32 %v9035_v48, %v9069_v3  ;;  %v14465_v31 = vld [vmem:[#allocation2 + $0x238] ss:$0 sm:$0xff] }
0x2407   :  { %v9060_v58 = vsel %vm37_vm0, %v9040_v50, 0.0  ;;  %v9085_v22 = vmul.f32 %v14417_v0, %v14417_v0 }
0x2408   :  { %9061 = vadd.xlane.f32.xlu0 %v9060_v58 }
0x2409   :  { %v9093_v53 = vsel %vm37_vm0, %v9085_v22, 0.0 }
0x2410   :  { %9094 = vadd.xlane.f32.xlu0 %v9093_v53 }
0x242c   :  { %v9050_v54 = vpop.xlane.xlu1 %9049 }
0x242d   :  { %v9070_v4 = vmul.f32 %v9050_v54, %v14595_v35 }
0x242f   :  { %v14427_v21 = vsub.f32 %v9036_v40, %v9070_v4 }
0x2431   :  { %v9086_v8 = vmul.f32 %v14427_v21, %v14427_v21 }
0x2449   :  { %v9029_v51 = vpop.f32.mrf.mxu2 }
0x244a   :  { %v9030_v28 = vadd.f32 %v10056_v45, %v9029_v51 }
0x244c   :  { %v14425_v41 = vadd.f32 %v9030_v28, %v14299_v46  ;;  %v9096_v46 = vsel %vm37_vm0, %v9086_v8, 0.0 }
0x244e   :  { %v9063_v52 = vsel %vm37_vm0, %v14425_v41, 0.0 }
0x244f   :  { %9064 = vadd.xlane.f32.xlu2 %v9063_v52  ;;  %v9053_v18 = vpop.xlane.xlu0 %9052 }
0x2450   :  { %v9071_v23 = vmul.f32 %v9053_v18, %v14595_v35 }
0x2451   :  { %v9032_v36 = vpop.f32.mrf.mxu2 }
0x2452   :  { %v9033_v42 = vadd.f32 %v10056_v45, %v9032_v36  ;;  %v14438_v26 = vsub.f32 %v9037_v15, %v9071_v23 }
0x2454   :  { %v14435_v1 = vadd.f32 %v9033_v42, %v14311_v55  ;;  %v9087_v9 = vmul.f32 %v14438_v26, %v14438_v26 }
0x2456   :  { %v9066_v62 = vsel %vm37_vm0, %v14435_v1, 0.0  ;;  %v9099_v60 = vsel %vm37_vm0, %v9087_v9, 0.0 }
0x2457   :  { %9097 = vadd.xlane.f32.xlu2 %v9096_v46  ;;  %9067 = vadd.xlane.f32.xlu1 %v9066_v62  ;;  %v9056_v6 = vpop.xlane.xlu2 %9055 }
0x2458   :  { %v9072_v16 = vmul.f32 %v9056_v6, %v14595_v35 }
0x245a   :  { %v14445_v2 = vsub.f32 %v9038_v38, %v9072_v16 }
0x245c   :  { %v9088_v55 = vmul.f32 %v14445_v2, %v14445_v2 }
0x245e   :  { %v9102_v19 = vsel %vm37_vm0, %v9088_v55, 0.0 }
0x245f   :  { %9100 = vadd.xlane.f32.xlu1 %v9099_v60  ;;  %9103 = vadd.xlane.f32.xlu0 %v9102_v19 }
0x2473   :  { %v9059_v25 = vpop.xlane.xlu1 %9058 }
0x2474   :  { %v9073_v32 = vmul.f32 %v9059_v25, %v14595_v35 }
0x2476   :  { %v14452_v33 = vsub.f32 %v9039_v20, %v9073_v32 }
0x2478   :  { %v9089_v5 = vmul.f32 %v14452_v33, %v14452_v33 }
0x247a   :  { %v9105_v45 = vsel %vm37_vm0, %v9089_v5, 0.0 }
0x247b   :  { %9106 = vadd.xlane.f32.xlu2 %v9105_v45  ;;  %v9062_v10 = vpop.xlane.xlu0 %9061 }
0x247c   :  { %v9074_v29 = vmul.f32 %v9062_v10, %v14595_v35 }
0x247e   :  { %v14458_v48 = vsub.f32 %v9040_v50, %v9074_v29 }
0x2480   :  { %v9090_v30 = vmul.f32 %v14458_v48, %v14458_v48 }
0x2482   :  { %v9108_v14 = vsel %vm37_vm0, %v9090_v30, 0.0 }
0x2483   :  { %v9095_v24 = vpop.xlane.xlu0 %9094  ;;  %9109 = vadd.xlane.f32.xlu1 %v9108_v14 }
0x2484   :  { %v9117_v40 = vmul.f32 0.032258064, %v9095_v24 }
0x2486   :  { %10637 = vrsqrt.f32 %v9117_v40  ;;  %vm9132_vm7 = vcmp.eq.f32.partialorder %v9117_v40, inf  ;;  %v9135_v57 = vand.u32 2147483648, %v9117_v40  ;;  %vm9134_vm12 = vcmp.eq.f32.partialorder %v9117_v40, 0.0 }
0x248c   :  { %v10638_v61 = vpop.eup %10637 }
0x248d   :  { %v9126_v27 = vmul.f32 %v10638_v61, %v9117_v40 }
0x248f   :  { %v9127_v34 = vmul.f32 %v10638_v61, %v9126_v27 }
0x2491   :  { %v9128_v44 = vmul.f32 0.5, %v9127_v34 }
0x2493   :  { %v9129_v7 = vsub.f32 1.5, %v9128_v44 }
0x2495   :  { %v9130_v39 = vmul.f32 %v10638_v61, %v9129_v7 }
0x2497   :  { %v9131_v49 = vmul.f32 %v9130_v39, %v9117_v40 }
0x2499   :  { %v9133_v12 = vsel %vm9132_vm7, %v9117_v40, %v9131_v49 }
0x249a   :  { %v9136_v15 = vsel %vm9134_vm12, %v9135_v57, %v9133_v12 }
0x249b   :  { %v9221_v47 = vadd.f32 1e-06, %v9136_v15 }
0x249d   :  { %10639 = vrcp.f32 %v9221_v47  ;;  %v9240_v56 = vand.u32 2147483648, %v9221_v47  ;;  %v9238_v13 = vand.u32 2147483647, %v9221_v47  ;;  %vm9234_vm1 = vweird.f32 %v9221_v47 }
0x249f   :  { %v9241_v63 = vor.u32 1.1754944e-38, %v9240_v56  ;;  %vm9239_vm15 = vcmp.eq.f32.partialorder %v9238_v13, 8.507059e+37 }
0x24a3   :  { %v10640_v59 = vpop.eup %10639 }
0x24a4   :  { %v9230_v37 = vmul.f32 %v10640_v59, %v9221_v47  ;;  %vm9235_vm13 = vweird.f32 %v10640_v59 }
0x24a5   :  { %vm9236_vm14 = vmor %vm9234_vm1, %vm9235_vm13 }
0x24a6   :  { %v9231_v38 = vsub.f32 1.0, %v9230_v37 }
0x24a8   :  { %v9232_v43 = vmul.f32 %v10640_v59, %v9231_v38 }
0x24aa   :  { %v9233_v20 = vadd.f32 %v10640_v59, %v9232_v43 }
0x24ac   :  { %v9237_v11 = vsel %vm9236_vm14, %v10640_v59, %v9233_v20 }
0x24ad   :  { %v9242_v3 = vsel %vm9239_vm15, %v9241_v63, %v9237_v11 }
0x24ae   :  { %v9243_v50 = vmul.f32 %v9242_v3, %v14417_v0 }
0x24b0   :  { %v9350_v58 = vmul.f32 %v14463_v17, %v9243_v50 }
0x24b2   :  { %v9359_v22 = vadd.f32 %v14465_v31, %v9350_v58 }
0x24b4   :  { %9367 = vst.msk [vmem:[%s14549_s2] sm:$0xff] %vm37_vm0, %v9359_v22 }
0x24c2   :  { %v9065_v53 = vpop.xlane.xlu2 %9064 }
0x24c3   :  { %v9075_v54 = vmul.f32 %v9065_v53, %v14595_v35 }
0x24c5   :  { %v14476_v51 = vsub.f32 %v14425_v41, %v9075_v54 }
0x24c7   :  { %v9091_v4 = vmul.f32 %v14476_v51, %v14476_v51 }
0x24c9   :  { %v9111_v0 = vsel %vm37_vm0, %v9091_v4, 0.0 }
0x24ca   :  { %9112 = vadd.xlane.f32.xlu0 %v9111_v0  ;;  %v9098_v28 = vpop.xlane.xlu2 %9097  ;;  %v9068_v18 = vpop.xlane.xlu1 %9067 }
0x24cb   :  { %v9118_v52 = vmul.f32 0.032258064, %v9098_v28  ;;  %v9076_v36 = vmul.f32 %v9068_v18, %v14595_v35 }
0x24cd   :  { %10641 = vrsqrt.f32 %v9118_v52  ;;  %v14483_v8 = vsub.f32 %v14435_v1, %v9076_v36  ;;  %vm9144_vm2 = vcmp.eq.f32.partialorder %v9118_v52, inf  ;;  %v9147_v10 = vand.u32 2147483648, %v9118_v52 }
0x24ce   :  { %vm9146_vm4 = vcmp.eq.f32.partialorder %v9118_v52, 0.0 }
0x24cf   :  { %v9092_v23 = vmul.f32 %v14483_v8, %v14483_v8 }
0x24d1   :  { %v9114_v41 = vsel %vm37_vm0, %v9092_v23, 0.0 }
0x24d2   :  { %9115 = vadd.xlane.f32.xlu2 %v9114_v41  ;;  %v9101_v46 = vpop.xlane.xlu1 %9100  ;;  %v9104_v6 = vpop.xlane.xlu0 %9103 }
0x24d3   :  { %v10642_v42 = vpop.eup %10641  ;;  %v9119_v16 = vmul.f32 0.032258064, %v9101_v46  ;;  %v9120_v9 = vmul.f32 0.032258064, %v9104_v6 }
0x24d4   :  { %v9138_v62 = vmul.f32 %v10642_v42, %v9118_v52 }
0x24d5   :  { %10643 = vrsqrt.f32 %v9119_v16  ;;  %vm9156_vm11 = vcmp.eq.f32.partialorder %v9119_v16, inf  ;;  %v9159_v57 = vand.u32 2147483648, %v9119_v16  ;;  %vm9158_vm5 = vcmp.eq.f32.partialorder %v9119_v16, 0.0 }
0x24d6   :  { %v9139_v55 = vmul.f32 %v10642_v42, %v9138_v62  ;;  %10645 = vrsqrt.f32 %v9120_v9  ;;  %vm9168_vm6 = vcmp.eq.f32.partialorder %v9120_v9, inf  ;;  %v9171_v59 = vand.u32 2147483648, %v9120_v9 }
0x24d7   :  { %vm9170_vm3 = vcmp.eq.f32.partialorder %v9120_v9, 0.0 }
0x24d8   :  { %v9140_v35 = vmul.f32 0.5, %v9139_v55 }
0x24da   :  { %v9141_v60 = vsub.f32 1.5, %v9140_v35 }
0x24db   :  { %v10644_v19 = vpop.eup %10643 }
0x24dc   :  { %v9142_v1 = vmul.f32 %v10642_v42, %v9141_v60  ;;  %v10646_v25 = vpop.eup %10645  ;;  %v9150_v32 = vmul.f32 %v10644_v19, %v9119_v16 }
0x24dd   :  { %v9162_v45 = vmul.f32 %v10646_v25, %v9120_v9 }
0x24de   :  { %v9143_v5 = vmul.f32 %v9142_v1, %v9118_v52  ;;  %v9151_v29 = vmul.f32 %v10644_v19, %v9150_v32 }
0x24df   :  { %v9163_v14 = vmul.f32 %v10646_v25, %v9162_v45 }
0x24e0   :  { %v9145_v30 = vsel %vm9144_vm2, %v9118_v52, %v9143_v5  ;;  %v9152_v40 = vmul.f32 0.5, %v9151_v29 }
0x24e1   :  { %v9148_v24 = vsel %vm9146_vm4, %v9147_v10, %v9145_v30  ;;  %v9164_v27 = vmul.f32 0.5, %v9163_v14 }
0x24e2   :  { %v9222_v61 = vadd.f32 1e-06, %v9148_v24  ;;  %v9153_v34 = vsub.f32 1.5, %v9152_v40 }
0x24e3   :  { %v9165_v44 = vsub.f32 1.5, %v9164_v27 }
0x24e4   :  { %10647 = vrcp.f32 %v9222_v61  ;;  %v9154_v7 = vmul.f32 %v10644_v19, %v9153_v34  ;;  %v9255_v11 = vand.u32 2147483648, %v9222_v61  ;;  %v9253_v58 = vand.u32 2147483647, %v9222_v61 }
0x24e5   :  { %v9166_v39 = vmul.f32 %v10646_v25, %v9165_v44  ;;  %vm9249_vm9 = vweird.f32 %v9222_v61 }
0x24e6   :  { %v9155_v49 = vmul.f32 %v9154_v7, %v9119_v16  ;;  %v9256_v54 = vor.u32 1.1754944e-38, %v9255_v11  ;;  %vm9254_vm7 = vcmp.eq.f32.partialorder %v9253_v58, 8.507059e+37 }
0x24e7   :  { %v9167_v12 = vmul.f32 %v9166_v39, %v9120_v9 }
0x24e8   :  { %v9157_v15 = vsel %vm9156_vm11, %v9119_v16, %v9155_v49 }
0x24e9   :  { %v9160_v37 = vsel %vm9158_vm5, %v9159_v57, %v9157_v15  ;;  %v9169_v56 = vsel %vm9168_vm6, %v9120_v9, %v9167_v12 }
0x24ea   :  { %v10648_v47 = vpop.eup %10647  ;;  %v9223_v43 = vadd.f32 1e-06, %v9160_v37  ;;  %v9172_v13 = vsel %vm9170_vm3, %v9171_v59, %v9169_v56 }
0x24eb   :  { %v9245_v38 = vmul.f32 %v10648_v47, %v9222_v61  ;;  %v9224_v63 = vadd.f32 1e-06, %v9172_v13  ;;  %vm9250_vm8 = vweird.f32 %v10648_v47 }
0x24ec   :  { %10649 = vrcp.f32 %v9223_v43  ;;  %vm9251_vm10 = vmor %vm9249_vm9, %vm9250_vm8  ;;  %vm9264_vm12 = vweird.f32 %v9223_v43  ;;  %v9268_v46 = vand.u32 2147483647, %v9223_v43  ;;  %v9270_v62 = vand.u32 2147483648, %v9223_v43 }
0x24ed   :  { %v9246_v20 = vsub.f32 1.0, %v9245_v38  ;;  %10651 = vrcp.f32 %v9224_v63  ;;  %v9283_v19 = vand.u32 2147483647, %v9224_v63  ;;  %v9285_v1 = vand.u32 2147483648, %v9224_v63 }
0x24ee   :  { %v9107_v3 = vpop.xlane.xlu2 %9106  ;;  %v9271_v5 = vor.u32 1.1754944e-38, %v9270_v62  ;;  %vm9279_vm15 = vweird.f32 %v9224_v63  ;;  %vm9269_vm2 = vcmp.eq.f32.partialorder %v9268_v46, 8.507059e+37 }
0x24ef   :  { %v9247_v50 = vmul.f32 %v10648_v47, %v9246_v20  ;;  %v14488_v22 = vmul.f32 0.032258064, %v9107_v3  ;;  %v9286_v30 = vor.u32 1.1754944e-38, %v9285_v1  ;;  %vm9284_vm11 = vcmp.eq.f32.partialorder %v9283_v19, 8.507059e+37 }
0x24f1   :  { %v9248_v53 = vadd.f32 %v10648_v47, %v9247_v50  ;;  %10653 = vrsqrt.f32 %v14488_v22  ;;  %vm9180_vm5 = vcmp.eq.f32.partialorder %v14488_v22, inf  ;;  %vm9182_vm6 = vcmp.eq.f32.partialorder %v14488_v22, 0.0 }
0x24f2   :  { %v10650_v4 = vpop.eup %10649 }
0x24f3   :  { %v9252_v0 = vsel %vm9251_vm10, %v10648_v47, %v9248_v53  ;;  %v9260_v52 = vmul.f32 %v10650_v4, %v9223_v43  ;;  %v10652_v18 = vpop.eup %10651  ;;  %vm9265_vm13 = vweird.f32 %v10650_v4 }
0x24f4   :  { %v9257_v28 = vsel %vm9254_vm7, %v9256_v54, %v9252_v0  ;;  %v9275_v23 = vmul.f32 %v10652_v18, %v9224_v63  ;;  %vm9280_vm1 = vweird.f32 %v10652_v18  ;;  %vm9266_vm14 = vmor %vm9264_vm12, %vm9265_vm13 }
0x24f5   :  { %v9258_v36 = vmul.f32 %v9257_v28, %v14427_v21  ;;  %v9261_v41 = vsub.f32 1.0, %v9260_v52  ;;  %vm9281_vm4 = vmor %vm9279_vm15, %vm9280_vm1 }
0x24f6   :  { %v9110_v6 = vpop.xlane.xlu1 %9109  ;;  %v9276_v9 = vsub.f32 1.0, %v9275_v23 }
0x24f7   :  { %v9351_v42 = vmul.f32 %v14463_v17, %v9258_v36  ;;  %v10654_v16 = vpop.eup %10653  ;;  %v9262_v55 = vmul.f32 %v10650_v4, %v9261_v41  ;;  %v9122_v35 = vmul.f32 0.032258064, %v9110_v6 }
0x24f8   :  { %v9174_v25 = vmul.f32 %v10654_v16, %v14488_v22  ;;  %v9277_v21 = vmul.f32 %v10652_v18, %v9276_v9 }
0x24f9   :  { %v9360_v60 = vadd.f32 %v14465_v31, %v9351_v42  ;;  %v9263_v32 = vadd.f32 %v10650_v4, %v9262_v55  ;;  %10655 = vrsqrt.f32 %v9122_v35  ;;  %vm9192_vm3 = vcmp.eq.f32.partialorder %v9122_v35, inf }
0x24fa   :  { %v9175_v45 = vmul.f32 %v10654_v16, %v9174_v25  ;;  %v9278_v10 = vadd.f32 %v10652_v18, %v9277_v21  ;;  %v9195_v11 = vand.u32 2147483648, %v9122_v35  ;;  %vm9194_vm8 = vcmp.eq.f32.partialorder %v9122_v35, 0.0 }
0x24fb   :  { %9368 = vst.msk [vmem:[%s14549_s2 + $0x8] sm:$0xff] %vm37_vm0, %v9360_v60  ;;  %v9267_v29 = vsel %vm9266_vm14, %v10650_v4, %v9263_v32 }
0x24fc   :  { %v9272_v14 = vsel %vm9269_vm2, %v9271_v5, %v9267_v29  ;;  %v9176_v24 = vmul.f32 0.5, %v9175_v45  ;;  %v9282_v40 = vsel %vm9281_vm4, %v10652_v18, %v9278_v10 }
0x24fd   :  { %v9273_v61 = vmul.f32 %v9272_v14, %v14438_v26  ;;  %v9287_v27 = vsel %vm9284_vm11, %v9286_v30, %v9282_v40  ;;  %v9183_v26 = vand.u32 2147483648, %v14488_v22 }
0x24fe   :  { %v9177_v34 = vsub.f32 1.5, %v9176_v24  ;;  %v9288_v7 = vmul.f32 %v9287_v27, %v14445_v2 }
0x24ff   :  { %v10656_v44 = vpop.eup %10655  ;;  %v9352_v39 = vmul.f32 %v14463_v17, %v9273_v61 }
0x2500   :  { %v9178_v49 = vmul.f32 %v10654_v16, %v9177_v34  ;;  %v9186_v57 = vmul.f32 %v10656_v44, %v9122_v35  ;;  %v9353_v12 = vmul.f32 %v14463_v17, %v9288_v7 }
0x2501   :  { %v9361_v15 = vadd.f32 %v14465_v31, %v9352_v39 }
0x2502   :  { %v9179_v47 = vmul.f32 %v9178_v49, %v14488_v22  ;;  %v9187_v59 = vmul.f32 %v10656_v44, %v9186_v57  ;;  %v9362_v37 = vadd.f32 %v14465_v31, %v9353_v12 }
0x2503   :  { %9369 = vst.msk [vmem:[%s14549_s2 + $0x10] sm:$0xff] %vm37_vm0, %v9361_v15 }
0x2504   :  { %v9181_v2 = vsel %vm9180_vm5, %v14488_v22, %v9179_v47  ;;  %v9188_v38 = vmul.f32 0.5, %v9187_v59  ;;  %9370 = vst.msk [vmem:[%s14549_s2 + $0x18] sm:$0xff] %vm37_vm0, %v9362_v37 }
0x2505   :  { %v9184_v56 = vsel %vm9182_vm6, %v9183_v26, %v9181_v2 }
0x2506   :  { %v9225_v43 = vadd.f32 1e-06, %v9184_v56  ;;  %v9189_v13 = vsub.f32 1.5, %v9188_v38 }
0x2508   :  { %10657 = vrcp.f32 %v9225_v43  ;;  %v9190_v20 = vmul.f32 %v10656_v44, %v9189_v13  ;;  %v9300_v4 = vand.u32 2147483648, %v9225_v43  ;;  %v9298_v28 = vand.u32 2147483647, %v9225_v43 }
0x2509   :  { %vm9294_vm10 = vweird.f32 %v9225_v43 }
0x250a   :  { %v9191_v63 = vmul.f32 %v9190_v20, %v9122_v35  ;;  %v9301_v18 = vor.u32 1.1754944e-38, %v9300_v4  ;;  %vm9299_vm12 = vcmp.eq.f32.partialorder %v9298_v28, 8.507059e+37 }
0x250c   :  { %v9193_v3 = vsel %vm9192_vm3, %v9122_v35, %v9191_v63 }
0x250d   :  { %v9196_v58 = vsel %vm9194_vm8, %v9195_v11, %v9193_v3 }
0x250e   :  { %v10658_v50 = vpop.eup %10657  ;;  %v9226_v22 = vadd.f32 1e-06, %v9196_v58 }
0x250f   :  { %v9290_v53 = vmul.f32 %v10658_v50, %v9225_v43  ;;  %vm9295_vm9 = vweird.f32 %v10658_v50 }
0x2510   :  { %10659 = vrcp.f32 %v9226_v22  ;;  %vm9296_vm7 = vmor %vm9294_vm10, %vm9295_vm9  ;;  %v9315_v16 = vand.u32 2147483648, %v9226_v22  ;;  %v9313_v55 = vand.u32 2147483647, %v9226_v22  ;;  %vm9309_vm1 = vweird.f32 %v9226_v22 }
0x2511   :  { %v9291_v54 = vsub.f32 1.0, %v9290_v53 }
0x2512   :  { %v9316_v19 = vor.u32 1.1754944e-38, %v9315_v16  ;;  %vm9314_vm15 = vcmp.eq.f32.partialorder %v9313_v55, 8.507059e+37 }
0x2513   :  { %v9292_v0 = vmul.f32 %v10658_v50, %v9291_v54 }
0x2515   :  { %v9293_v52 = vadd.f32 %v10658_v50, %v9292_v0 }
0x2516   :  { %v10660_v36 = vpop.eup %10659 }
0x2517   :  { %v9297_v23 = vsel %vm9296_vm7, %v10658_v50, %v9293_v52  ;;  %v9305_v42 = vmul.f32 %v10660_v36, %v9226_v22  ;;  %vm9310_vm13 = vweird.f32 %v10660_v36 }
0x2518   :  { %v9302_v41 = vsel %vm9299_vm12, %v9301_v18, %v9297_v23  ;;  %vm9311_vm14 = vmor %vm9309_vm1, %vm9310_vm13 }
0x2519   :  { %v9303_v46 = vmul.f32 %v9302_v41, %v14452_v33  ;;  %v9306_v62 = vsub.f32 1.0, %v9305_v42 }
0x251b   :  { %v9354_v6 = vmul.f32 %v14463_v17, %v9303_v46  ;;  %v9307_v9 = vmul.f32 %v10660_v36, %v9306_v62 }
0x251d   :  { %v9363_v35 = vadd.f32 %v14465_v31, %v9354_v6  ;;  %v9308_v60 = vadd.f32 %v10660_v36, %v9307_v9 }
0x251f   :  { %9371 = vst.msk [vmem:[%s14549_s2 + $0x20] sm:$0xff] %vm37_vm0, %v9363_v35  ;;  %v9312_v1 = vsel %vm9311_vm14, %v10660_v36, %v9308_v60 }
0x2520   :  { %v9317_v33 = vsel %vm9314_vm15, %v9316_v19, %v9312_v1 }
0x2521   :  { %v9318_v25 = vmul.f32 %v9317_v33, %v14458_v48 }
0x2523   :  { %v9355_v21 = vmul.f32 %v14463_v17, %v9318_v25 }
0x2525   :  { %v9364_v32 = vadd.f32 %v14465_v31, %v9355_v21 }
0x2527   :  { %9372 = vst.msk [vmem:[%s14549_s2 + $0x28] sm:$0xff] %vm37_vm0, %v9364_v32 }
0x253d   :  { %v9113_v5 = vpop.xlane.xlu0 %9112 }
0x253e   :  { %v9123_v45 = vmul.f32 0.032258064, %v9113_v5 }
0x2540   :  { %10661 = vrsqrt.f32 %v9123_v45  ;;  %vm9204_vm2 = vcmp.eq.f32.partialorder %v9123_v45, inf  ;;  %v9207_v7 = vand.u32 2147483648, %v9123_v45  ;;  %vm9206_vm4 = vcmp.eq.f32.partialorder %v9123_v45, 0.0 }
0x2545   :  { %v9116_v29 = vpop.xlane.xlu2 %9115 }
0x2546   :  { %v10662_v10 = vpop.eup %10661  ;;  %v9124_v14 = vmul.f32 0.032258064, %v9116_v29 }
0x2547   :  { %v9198_v30 = vmul.f32 %v10662_v10, %v9123_v45 }
0x2548   :  { %10663 = vrsqrt.f32 %v9124_v14  ;;  %vm9216_vm11 = vcmp.eq.f32.partialorder %v9124_v14, inf  ;;  %v9219_v26 = vand.u32 2147483648, %v9124_v14  ;;  %vm9218_vm5 = vcmp.eq.f32.partialorder %v9124_v14, 0.0 }
0x2549   :  { %v9199_v24 = vmul.f32 %v10662_v10, %v9198_v30 }
0x254b   :  { %v9200_v40 = vmul.f32 0.5, %v9199_v24 }
0x254d   :  { %v9201_v48 = vsub.f32 1.5, %v9200_v40 }
0x254e   :  { %v10664_v61 = vpop.eup %10663 }
0x254f   :  { %v9202_v27 = vmul.f32 %v10662_v10, %v9201_v48  ;;  %v9210_v34 = vmul.f32 %v10664_v61, %v9124_v14 }
0x2551   :  { %v9203_v44 = vmul.f32 %v9202_v27, %v9123_v45  ;;  %v9211_v39 = vmul.f32 %v10664_v61, %v9210_v34 }
0x2553   :  { %v9205_v49 = vsel %vm9204_vm2, %v9123_v45, %v9203_v44  ;;  %v9212_v12 = vmul.f32 0.5, %v9211_v39 }
0x2554   :  { %v9208_v57 = vsel %vm9206_vm4, %v9207_v7, %v9205_v49 }
0x2555   :  { %v9227_v15 = vadd.f32 1e-06, %v9208_v57  ;;  %v9213_v47 = vsub.f32 1.5, %v9212_v12 }
0x2557   :  { %10665 = vrcp.f32 %v9227_v15  ;;  %v9214_v59 = vmul.f32 %v10664_v61, %v9213_v47  ;;  %v9330_v63 = vand.u32 2147483648, %v9227_v15  ;;  %v9328_v3 = vand.u32 2147483647, %v9227_v15 }
0x2558   :  { %vm9324_vm3 = vweird.f32 %v9227_v15 }
0x2559   :  { %v9215_v37 = vmul.f32 %v9214_v59, %v9124_v14  ;;  %v9331_v58 = vor.u32 1.1754944e-38, %v9330_v63  ;;  %vm9329_vm9 = vcmp.eq.f32.partialorder %v9328_v3, 8.507059e+37 }
0x255b   :  { %v9217_v2 = vsel %vm9216_vm11, %v9124_v14, %v9215_v37 }
0x255c   :  { %v9220_v56 = vsel %vm9218_vm5, %v9219_v26, %v9217_v2 }
0x255d   :  { %v10666_v38 = vpop.eup %10665  ;;  %v9228_v13 = vadd.f32 1e-06, %v9220_v56 }
0x255e   :  { %v9320_v43 = vmul.f32 %v10666_v38, %v9227_v15  ;;  %vm9325_vm6 = vweird.f32 %v10666_v38 }
0x255f   :  { %10667 = vrcp.f32 %v9228_v13  ;;  %vm9326_vm8 = vmor %vm9324_vm3, %vm9325_vm6  ;;  %v9345_v18 = vand.u32 2147483648, %v9228_v13  ;;  %v9343_v23 = vand.u32 2147483647, %v9228_v13  ;;  %vm9339_vm7 = vweird.f32 %v9228_v13 }
0x2560   :  { %v9321_v20 = vsub.f32 1.0, %v9320_v43 }
0x2561   :  { %v9346_v46 = vor.u32 1.1754944e-38, %v9345_v18  ;;  %vm9344_vm13 = vcmp.eq.f32.partialorder %v9343_v23, 8.507059e+37 }
0x2562   :  { %v9322_v11 = vmul.f32 %v10666_v38, %v9321_v20 }
0x2564   :  { %v9323_v50 = vadd.f32 %v10666_v38, %v9322_v11 }
0x2565   :  { %v10668_v53 = vpop.eup %10667 }
0x2566   :  { %v9327_v22 = vsel %vm9326_vm8, %v10666_v38, %v9323_v50  ;;  %v9335_v4 = vmul.f32 %v10668_v53, %v9228_v13  ;;  %vm9340_vm10 = vweird.f32 %v10668_v53 }
0x2567   :  { %v9332_v54 = vsel %vm9329_vm9, %v9331_v58, %v9327_v22  ;;  %vm9341_vm12 = vmor %vm9339_vm7, %vm9340_vm10 }
0x2568   :  { %v9333_v0 = vmul.f32 %v9332_v54, %v14476_v51  ;;  %v9336_v28 = vsub.f32 1.0, %v9335_v4 }
0x256a   :  { %v9356_v52 = vmul.f32 %v14463_v17, %v9333_v0  ;;  %v9337_v36 = vmul.f32 %v10668_v53, %v9336_v28 }
0x256c   :  { %v9365_v41 = vadd.f32 %v14465_v31, %v9356_v52  ;;  %v9338_v42 = vadd.f32 %v10668_v53, %v9337_v36 }
0x256e   :  { %9373 = vst.msk [vmem:[%s14549_s2 + $0x30] sm:$0xff] %vm37_vm0, %v9365_v41  ;;  %v9342_v62 = vsel %vm9341_vm12, %v10668_v53, %v9338_v42 }
0x256f   :  { %v9347_v51 = vsel %vm9344_vm13, %v9346_v46, %v9342_v62 }
0x2570   :  { %v9348_v6 = vmul.f32 %v9347_v51, %v14483_v8 }
0x2572   :  { %v9357_v16 = vmul.f32 %v14463_v17, %v9348_v6 }
0x2574   :  { %v9366_v9 = vadd.f32 %v14465_v31, %v9357_v16 }
0x2576   :  { %9374 = vst.msk [vmem:[%s14549_s2 + $0x38] sm:$0xff] %vm37_vm0, %v9366_v9 }
0x2577   :  { %9379 = vsyncpa [#allocation3], 1 }

</bundles_post_ra>
